<compile_context>
chip_gen: v7x
topology: tpu7x:2x2x1
jax: 0.10.0
libtpu: 0.0.40
codegen_flags: <defaults>
</compile_context>

<pallas_src>
import jax
import jax.numpy as jnp
from jax.experimental import pallas as pl
from jax.experimental.pallas import tpu as pltpu


def _round_up(x, m):
    return (x + m - 1) // m * m


def _fold_bn(bn, eps=1e-5):
    gamma, beta, mean, var = bn
    s = gamma / jnp.sqrt(var + eps)
    b = beta - mean * s
    return s, b


def _device_kind():
    try:
        return jax.devices()[0].device_kind.lower()
    except Exception:
        return ""


def _vmem_cap_bytes(kind):
    # v7x has 64 MiB VMEM per TensorCore; v5e/v6e have 128 MiB.
    return (60 << 20) if "v7" in kind else (100 << 20)


def _vmem_bytes_estimate(B, H, W, Cp, Co, n_mult):
    """Rough per-grid-step VMEM footprint (blocks, weights, scratch, temps)."""
    hw_pad = (H + 2) * (W + 2)
    m = B * H * W
    in_blk = 2 * B * hw_pad * Cp * 2                 # bf16 input, double-buffered
    out_blk = 2 * B * H * W * Co * 4                 # f32 output, double-buffered
    weights = (9 * Cp * n_mult * Co + 9 * Co * Co + Cp * Co) * 2 \
        + 4 * (n_mult + 2) * Co                      # bf16 weights + f32 biases
    mid = B * hw_pad * Co * 2                        # bf16 conv2 halo scratch
    p1 = m * 9 * Cp * 2                              # bf16 im2col (conv1)
    p2 = m * 9 * Co * 2                              # bf16 im2col (conv2)
    acc = m * (n_mult * Co + Co) * 4                 # f32 matmul results
    return in_blk + out_blk + weights + mid + p1 + p2 + acc


def _pick_batch_tile(N, H, W, Cp, Co, n_mult, cap):
    budget = int(0.6 * cap)
    bt = 1
    for d in range(1, N + 1):
        if N % d == 0 and _vmem_bytes_estimate(d, H, W, Cp, Co, n_mult) <= budget:
            bt = d
    return bt


def _make_kernel(B, H, W, mode):
    """mode in {"identity", "fused_proj", "split_proj"}."""

    def kernel(*refs):
        if mode == "split_proj":
            (xp_ref, w1_ref, b1_ref, w2_ref, b2_ref,
             wsc_ref, bsc_ref, out_ref, mid_ref) = refs
        else:
            xp_ref, w1_ref, b1_ref, w2_ref, b2_ref, out_ref, mid_ref = refs

        Cp = xp_ref.shape[-1]            # padded input channels (mult of 128)
        Co = out_ref.shape[-1]           # padded output channels (mult of 128)
        M = B * H * W

        # ---- conv1 (+ folded bn1) as ONE wide-K im2col matmul ---------------
        # Taps are read straight from the ref (no materialized value-slice
        # copies); the 9 taps concatenate along K.
        p1 = jnp.concatenate(
            [xp_ref[:, dy:dy + H, dx:dx + W, :]
             for dy in range(3) for dx in range(3)],
            axis=-1).reshape(M, 9 * Cp)

        hs = jnp.dot(p1, w1_ref[...], preferred_element_type=jnp.float32)
        hs = hs + b1_ref[...]

        if mode == "fused_proj":
            # shortcut fused into conv1's N dimension (v6e/v7x 256-wide MXU):
            # columns [Co:2Co) hold the folded 1x1 projection (center tap only).
            h = jnp.maximum(hs[:, :Co], 0.0)
            sc = hs[:, Co:]
        else:
            h = jnp.maximum(hs, 0.0)
            if mode == "split_proj":
                # v5e: reuse p1's center-tap columns, separate small matmul.
                sc = jnp.dot(p1[:, 4 * Cp:5 * Cp], wsc_ref[...],
                             preferred_element_type=jnp.float32) + bsc_ref[...]
            else:                        # identity shortcut (Cp == Co)
                sc = p1[:, 4 * Cp:5 * Cp].astype(jnp.float32)

        # ---- conv2: bf16 halo scratch; borders zeroed only on step 0 --------
        @pl.when(pl.program_id(0) == 0)
        def _():
            mid_ref[:, 0:1, :, :] = jnp.zeros((B, 1, W + 2, Co), jnp.bfloat16)
            mid_ref[:, H + 1:H + 2, :, :] = jnp.zeros((B, 1, W + 2, Co), jnp.bfloat16)
            mid_ref[:, 1:H + 1, 0:1, :] = jnp.zeros((B, H, 1, Co), jnp.bfloat16)
            mid_ref[:, 1:H + 1, W + 1:W + 2, :] = jnp.zeros((B, H, 1, Co), jnp.bfloat16)

        mid_ref[:, 1:H + 1, 1:W + 1, :] = h.astype(jnp.bfloat16).reshape(B, H, W, Co)

        p2 = jnp.concatenate(
            [mid_ref[:, dy:dy + H, dx:dx + W, :]
             for dy in range(3) for dx in range(3)],
            axis=-1).reshape(M, 9 * Co)
        y = jnp.dot(p2, w2_ref[...], preferred_element_type=jnp.float32)
        y = y + b2_ref[...]

        # ---- residual add + relu --------------------------------------------
        out_ref[...] = jnp.maximum(y + sc, 0.0).reshape(B, H, W, Co)

    return kernel


def basic_block_forward(x_nchw, p, stride=1):
    assert stride == 1, "TODO(synk): strided conv path not implemented in-kernel"

    kind = _device_kind()
    cap = _vmem_cap_bytes(kind)
    wide_mxu = "v5" not in kind          # v6e/v7x: 256-wide MXU -> N-fusion free

    N, Cin, H, W = x_nchw.shape
    C = p["w1"].shape[-1]
    has_sc_conv = p["wsc"] is not None
    if not has_sc_conv:
        assert Cin == C, "identity shortcut requires inplanes == planes"
    mode = ("fused_proj" if (has_sc_conv and wide_mxu)
            else "split_proj" if has_sc_conv else "identity")
    n_mult = 2 if mode == "fused_proj" else 1

    Cp = _round_up(Cin, 128)             # lane-dense padded channel counts
    Co = _round_up(C, 128)

    # activations: bf16 BEFORE padding (halves pre-kernel HBM traffic)
    x = jnp.transpose(x_nchw, (0, 2, 3, 1)).astype(jnp.bfloat16)   # NCHW -> NHWC
    xcp = jnp.zeros((N, H, W, Cp), jnp.bfloat16).at[..., :Cin].set(x)
    xp = jnp.pad(xcp, ((0, 0), (1, 1), (1, 1), (0, 0)))

    # fold BN scales into conv weights (f32 on host), pack to bf16 for the MXU
    s1, b1 = _fold_bn(p["bn1"])
    s2, b2 = _fold_bn(p["bn2"])
    w1f = jnp.zeros((3, 3, Cp, Co), jnp.float32).at[:, :, :Cin, :C].set(p["w1"] * s1)
    w2f = jnp.zeros((3, 3, Co, Co), jnp.float32).at[:, :, :C, :C].set(p["w2"] * s2)
    w2m = w2f.reshape(9 * Co, Co).astype(jnp.bfloat16)
    b2m = jnp.zeros((1, Co), jnp.float32).at[0, :C].set(b2)

    if has_sc_conv:
        ssc, bsc = _fold_bn(p["bnsc"])
        wscf = jnp.zeros((Cp, Co), jnp.float32).at[:Cin, :C].set(
            p["wsc"].reshape(Cin, C) * ssc)
        bscm = jnp.zeros((1, Co), jnp.float32).at[0, :C].set(bsc)

    if mode == "fused_proj":
        # concat shortcut into conv1's N dim: (9*Cp, 2*Co); shortcut weight
        # lives only in the center-tap (dy=dx=1) rows.
        wcat = jnp.zeros((9, Cp, 2 * Co), jnp.float32)
        wcat = wcat.at[:, :, :Co].set(w1f.reshape(9, Cp, Co))
        wcat = wcat.at[4, :, Co:].set(wscf)
        w1m = wcat.reshape(9 * Cp, 2 * Co).astype(jnp.bfloat16)
        b1m = (jnp.zeros((1, 2 * Co), jnp.float32)
               .at[0, :C].set(b1).at[0, Co:Co + C].set(bsc))
    else:
        w1m = w1f.reshape(9 * Cp, Co).astype(jnp.bfloat16)
        b1m = jnp.zeros((1, Co), jnp.float32).at[0, :C].set(b1)

    # batch tile + VMEM limit derived from actual shapes / generation cap
    B_TILE = _pick_batch_tile(N, H, W, Cp, Co, n_mult, cap)
    est = _vmem_bytes_estimate(B_TILE, H, W, Cp, Co, n_mult)
    vmem_limit = min(cap, max(16 << 20, int(1.5 * est) + (2 << 20)))

    args = [xp, w1m, b1m, w2m, b2m]
    in_specs = [
        pl.BlockSpec((B_TILE, H + 2, W + 2, Cp), lambda n: (n, 0, 0, 0)),
        pl.BlockSpec(w1m.shape, lambda n: (0, 0)),   # weights/biases: constant
        pl.BlockSpec(b1m.shape, lambda n: (0, 0)),   # index -> stay VMEM-resident
        pl.BlockSpec(w2m.shape, lambda n: (0, 0)),
        pl.BlockSpec(b2m.shape, lambda n: (0, 0)),
    ]
    if mode == "split_proj":
        args += [wscf.astype(jnp.bfloat16), bscm]
        in_specs += [pl.BlockSpec((Cp, Co), lambda n: (0, 0)),
                     pl.BlockSpec((1, Co), lambda n: (0, 0))]

    out = pl.pallas_call(
        _make_kernel(B_TILE, H, W, mode),
        out_shape=jax.ShapeDtypeStruct((N, H, W, Co), jnp.float32),
        grid=(N // B_TILE,),
        in_specs=in_specs,
        out_specs=pl.BlockSpec((B_TILE, H, W, Co), lambda n: (n, 0, 0, 0)),
        scratch_shapes=[pltpu.VMEM((B_TILE, H + 2, W + 2, Co), jnp.bfloat16)],
        compiler_params=pltpu.CompilerParams(
            dimension_semantics=("parallel",),
            vmem_limit_bytes=vmem_limit,
        ),
    )(*args)

    return jnp.transpose(out[..., :C], (0, 3, 1, 2))              # NHWC -> NCHW


# ----------------------------- reference (plain JAX) --------------------------
def ref_forward(x_nchw, p, operand_dtype=jnp.float32):
    """Folded-BN inference reference; operand_dtype selects MXU input precision."""
    x = jnp.transpose(x_nchw, (0, 2, 3, 1)).astype(jnp.float32)
    xq = x.astype(operand_dtype)

    def conv(h, w):
        return jax.lax.conv_general_dilated(
            h, w, (1, 1), "SAME",
            dimension_numbers=("NHWC", "HWIO", "NHWC"),
            preferred_element_type=jnp.float32)

    s1, b1 = _fold_bn(p["bn1"])
    s2, b2 = _fold_bn(p["bn2"])
    w1 = (p["w1"] * s1).astype(operand_dtype)
    w2 = (p["w2"] * s2).astype(operand_dtype)

    h = jnp.maximum(conv(xq, w1) + b1, 0.0)
    y = conv(h.astype(operand_dtype), w2) + b2
    if p["wsc"] is None:
        sc = xq.astype(jnp.float32)
    else:
        ssc, bsc = _fold_bn(p["bnsc"])
        wsc = (p["wsc"] * ssc).astype(operand_dtype)
        sc = conv(xq, wsc) + bsc
    out = jnp.maximum(y + sc, 0.0)
    return jnp.transpose(out, (0, 3, 1, 2))


# ----------------------------- deterministic params ---------------------------
def init_params(key, inplanes, planes, stride=1):
    ks = jax.random.split(key, 6)

    def bn_params(k, c):
        k1, k2, k3, k4 = jax.random.split(k, 4)
        gamma = 1.0 + 0.1 * jax.random.normal(k1, (c,), jnp.float32)
        beta = 0.1 * jax.random.normal(k2, (c,), jnp.float32)
        mean = 0.1 * jax.random.normal(k3, (c,), jnp.float32)
        var = 1.0 + 0.1 * jax.random.uniform(k4, (c,), jnp.float32)
        return (gamma, beta, mean, var)

    p = {
        "w1": 0.2 * jax.random.normal(ks[0], (3, 3, inplanes, planes), jnp.float32),
        "bn1": bn_params(ks[1], planes),
        "w2": 0.2 * jax.random.normal(ks[2], (3, 3, planes, planes), jnp.float32),
        "bn2": bn_params(ks[3], planes),
    }
    if stride != 1 or inplanes != planes:
        p["wsc"] = 0.2 * jax.random.normal(ks[4], (1, 1, inplanes, planes), jnp.float32)
        p["bnsc"] = bn_params(ks[5], planes)
    else:
        p["wsc"] = None
        p["bnsc"] = None
    return p


def _max_err(a, b):
    return float(jnp.max(jnp.abs(a - b)))


if __name__ == "__main__":
    key = jax.random.PRNGKey(0)
    kx1, kx2, kp1, kp2 = jax.random.split(key, 4)

    N, H, W = 2, 16, 16

    # case 1: inplanes != planes -> 1x1-conv + BN projection shortcut
    Cin, planes = 4, 8
    x1 = jax.random.normal(kx1, (N, Cin, H, W), jnp.float32)
    p1 = init_params(kp1, Cin, planes, stride=1)
    o1 = jax.block_until_ready(basic_block_forward(x1, p1, stride=1))
    assert o1.shape == (N, planes, H, W), o1.shape
    e1m = _max_err(o1, ref_forward(x1, p1, operand_dtype=jnp.bfloat16))
    e1f = _max_err(o1, ref_forward(x1, p1, operand_dtype=jnp.float32))

    # case 2: inplanes == planes -> identity shortcut (no shortcut matmul)
    x2 = jax.random.normal(kx2, (N, planes, H, W), jnp.float32)
    p2 = init_params(kp2, planes, planes, stride=1)
    o2 = jax.block_until_ready(basic_block_forward(x2, p2, stride=1))
    assert o2.shape == (N, planes, H, W), o2.shape
    e2m = _max_err(o2, ref_forward(x2, p2, operand_dtype=jnp.bfloat16))
    e2f = _max_err(o2, ref_forward(x2, p2, operand_dtype=jnp.float32))

    finite = bool(jnp.isfinite(o1).all()) and bool(jnp.isfinite(o2).all())
    ok = (finite and e1m < 1e-2 and e2m < 1e-2 and e1f < 1e-1 and e2f < 1e-1)
    if not ok:
        raise SystemExit(
            "mismatch vs reference: matched-precision errs="
            f"({e1m:.3e}, {e2m:.3e}), f32 errs=({e1f:.3e}, {e2f:.3e})")
    print("KERNEL_OK")
</pallas_src>

<mosaic_0001>
module attributes {stable_mosaic.version = 11 : i64} {
  func.func @kernel(%arg0: i32, %arg1: memref<2x18x18x128xbf16, #tpu.memory_space<vmem>>, %arg2: memref<1152x256xbf16, #tpu.memory_space<vmem>>, %arg3: memref<1x256xf32, #tpu.memory_space<vmem>>, %arg4: memref<1152x128xbf16, #tpu.memory_space<vmem>>, %arg5: memref<1x128xf32, #tpu.memory_space<vmem>>, %arg6: memref<2x16x16x128xf32, #tpu.memory_space<vmem>>, %arg7: memref<2x18x18x128xbf16, #tpu.memory_space<vmem>>) attributes {dimension_semantics = [#tpu.dimension_semantics<parallel>], iteration_bounds = array<i64: 1>, scalar_prefetch = 0 : i64, scratch_operands = 1 : i64, tpu.core_type = #tpu.core_type<tc>, window_params = [{transform_indices = @transform_0, window_bounds = array<i64: 2, 18, 18, 128>}, {pipeline_mode = #tpu.pipeline_mode<synchronous>, transform_indices = @transform_1, window_bounds = array<i64: 1152, 256>}, {pipeline_mode = #tpu.pipeline_mode<synchronous>, transform_indices = @transform_2, window_bounds = array<i64: 1, 256>}, {pipeline_mode = #tpu.pipeline_mode<synchronous>, transform_indices = @transform_3, window_bounds = array<i64: 1152, 128>}, {pipeline_mode = #tpu.pipeline_mode<synchronous>, transform_indices = @transform_4, window_bounds = array<i64: 1, 128>}, {transform_indices = @transform_5, window_bounds = array<i64: 2, 16, 16, 128>}]} {
    %c0 = arith.constant 0 : index
    %c0_0 = arith.constant 0 : index
    %c0_1 = arith.constant 0 : index
    %c0_2 = arith.constant 0 : index
    %0 = vector.load %arg1[%c0, %c0_0, %c0_1, %c0_2] : memref<2x18x18x128xbf16, #tpu.memory_space<vmem>>, vector<2x16x16x128xbf16>
    %c0_3 = arith.constant 0 : index
    %c0_4 = arith.constant 0 : index
    %c1 = arith.constant 1 : index
    %c0_5 = arith.constant 0 : index
    %1 = vector.load %arg1[%c0_3, %c0_4, %c1, %c0_5] : memref<2x18x18x128xbf16, #tpu.memory_space<vmem>>, vector<2x16x16x128xbf16>
    %c0_6 = arith.constant 0 : index
    %c0_7 = arith.constant 0 : index
    %c2 = arith.constant 2 : index
    %c0_8 = arith.constant 0 : index
    %2 = vector.load %arg1[%c0_6, %c0_7, %c2, %c0_8] : memref<2x18x18x128xbf16, #tpu.memory_space<vmem>>, vector<2x16x16x128xbf16>
    %c0_9 = arith.constant 0 : index
    %c1_10 = arith.constant 1 : index
    %c0_11 = arith.constant 0 : index
    %c0_12 = arith.constant 0 : index
    %3 = vector.load %arg1[%c0_9, %c1_10, %c0_11, %c0_12] : memref<2x18x18x128xbf16, #tpu.memory_space<vmem>>, vector<2x16x16x128xbf16>
    %c0_13 = arith.constant 0 : index
    %c1_14 = arith.constant 1 : index
    %c1_15 = arith.constant 1 : index
    %c0_16 = arith.constant 0 : index
    %4 = vector.load %arg1[%c0_13, %c1_14, %c1_15, %c0_16] : memref<2x18x18x128xbf16, #tpu.memory_space<vmem>>, vector<2x16x16x128xbf16>
    %c0_17 = arith.constant 0 : index
    %c1_18 = arith.constant 1 : index
    %c2_19 = arith.constant 2 : index
    %c0_20 = arith.constant 0 : index
    %5 = vector.load %arg1[%c0_17, %c1_18, %c2_19, %c0_20] : memref<2x18x18x128xbf16, #tpu.memory_space<vmem>>, vector<2x16x16x128xbf16>
    %c0_21 = arith.constant 0 : index
    %c2_22 = arith.constant 2 : index
    %c0_23 = arith.constant 0 : index
    %c0_24 = arith.constant 0 : index
    %6 = vector.load %arg1[%c0_21, %c2_22, %c0_23, %c0_24] : memref<2x18x18x128xbf16, #tpu.memory_space<vmem>>, vector<2x16x16x128xbf16>
    %c0_25 = arith.constant 0 : index
    %c2_26 = arith.constant 2 : index
    %c1_27 = arith.constant 1 : index
    %c0_28 = arith.constant 0 : index
    %7 = vector.load %arg1[%c0_25, %c2_26, %c1_27, %c0_28] : memref<2x18x18x128xbf16, #tpu.memory_space<vmem>>, vector<2x16x16x128xbf16>
    %c0_29 = arith.constant 0 : index
    %c2_30 = arith.constant 2 : index
    %c2_31 = arith.constant 2 : index
    %c0_32 = arith.constant 0 : index
    %8 = vector.load %arg1[%c0_29, %c2_30, %c2_31, %c0_32] : memref<2x18x18x128xbf16, #tpu.memory_space<vmem>>, vector<2x16x16x128xbf16>
    %9 = tpu.concatenate %0, %1, %2, %3, %4, %5, %6, %7, %8 in 3 : vector<2x16x16x128xbf16>, vector<2x16x16x128xbf16>, vector<2x16x16x128xbf16>, vector<2x16x16x128xbf16>, vector<2x16x16x128xbf16>, vector<2x16x16x128xbf16>, vector<2x16x16x128xbf16>, vector<2x16x16x128xbf16>, vector<2x16x16x128xbf16> -> vector<2x16x16x1152xbf16>
    %10 = vector.shape_cast %9 : vector<2x16x16x1152xbf16> to vector<512x1152xbf16>
    %c0_33 = arith.constant 0 : index
    %c0_34 = arith.constant 0 : index
    %11 = vector.load %arg2[%c0_33, %c0_34] : memref<1152x256xbf16, #tpu.memory_space<vmem>>, vector<1152x256xbf16>
    %cst = arith.constant dense<0.000000e+00> : vector<512x256xf32>
    %12 = tpu.matmul %10, %11, %cst {dimension_numbers = #tpu.dot_dimension_numbers<[1], [0], [0], [1], [0, 0, 1, 1], [], []>} : vector<512x1152xbf16>, vector<1152x256xbf16>, vector<512x256xf32> -> vector<512x256xf32>
    %c0_35 = arith.constant 0 : index
    %c0_36 = arith.constant 0 : index
    %13 = vector.load %arg3[%c0_35, %c0_36] : memref<1x256xf32, #tpu.memory_space<vmem>>, vector<1x256xf32>
    %14 = vector.broadcast %13 : vector<1x256xf32> to vector<512x256xf32>
    %15 = arith.addf %12, %14 : vector<512x256xf32>
    %16 = vector.extract_strided_slice %15 {offsets = [0, 0], sizes = [512, 128], strides = [1, 1]} : vector<512x256xf32> to vector<512x128xf32>
    %cst_37 = arith.constant 0.000000e+00 : f32
    %17 = vector.broadcast %cst_37 : f32 to vector<512x128xf32>
    %18 = arith.maximumf %16, %17 : vector<512x128xf32>
    %19 = vector.extract_strided_slice %15 {offsets = [0, 128], sizes = [512, 128], strides = [1, 1]} : vector<512x256xf32> to vector<512x128xf32>
    %c0_i32 = arith.constant 0 : i32
    %20 = arith.cmpi eq, %arg0, %c0_i32 : i32
    %21 = arith.extui %20 : i1 to i32
    %c0_i32_38 = arith.constant 0 : i32
    %22 = arith.cmpi ne, %21, %c0_i32_38 : i32
    scf.if %22 {
      %cst_89 = arith.constant 0.000000e+00 : bf16
      %47 = vector.broadcast %cst_89 : bf16 to vector<2x1x18x128xbf16>
      %c0_90 = arith.constant 0 : index
      %c0_91 = arith.constant 0 : index
      %c0_92 = arith.constant 0 : index
      %c0_93 = arith.constant 0 : index
      %48 = vector.load %arg7[%c0_90, %c0_91, %c0_92, %c0_93] : memref<2x18x18x128xbf16, #tpu.memory_space<vmem>>, vector<2x1x18x128xbf16>
      tpu.vector_store %arg7[%c0_90, %c0_91, %c0_92, %c0_93], %47 {strides = array<i32>} : memref<2x18x18x128xbf16, #tpu.memory_space<vmem>>, vector<2x1x18x128xbf16>,
      %cst_94 = arith.constant 0.000000e+00 : bf16
      %49 = vector.broadcast %cst_94 : bf16 to vector<2x1x18x128xbf16>
      %c0_95 = arith.constant 0 : index
      %c17 = arith.constant 17 : index
      %c0_96 = arith.constant 0 : index
      %c0_97 = arith.constant 0 : index
      %50 = vector.load %arg7[%c0_95, %c17, %c0_96, %c0_97] : memref<2x18x18x128xbf16, #tpu.memory_space<vmem>>, vector<2x1x18x128xbf16>
      tpu.vector_store %arg7[%c0_95, %c17, %c0_96, %c0_97], %49 {strides = array<i32>} : memref<2x18x18x128xbf16, #tpu.memory_space<vmem>>, vector<2x1x18x128xbf16>,
      %cst_98 = arith.constant 0.000000e+00 : bf16
      %51 = vector.broadcast %cst_98 : bf16 to vector<2x16x1x128xbf16>
      %c0_99 = arith.constant 0 : index
      %c1_100 = arith.constant 1 : index
      %c0_101 = arith.constant 0 : index
      %c0_102 = arith.constant 0 : index
      %52 = vector.load %arg7[%c0_99, %c1_100, %c0_101, %c0_102] : memref<2x18x18x128xbf16, #tpu.memory_space<vmem>>, vector<2x16x1x128xbf16>
      tpu.vector_store %arg7[%c0_99, %c1_100, %c0_101, %c0_102], %51 {strides = array<i32>} : memref<2x18x18x128xbf16, #tpu.memory_space<vmem>>, vector<2x16x1x128xbf16>,
      %cst_103 = arith.constant 0.000000e+00 : bf16
      %53 = vector.broadcast %cst_103 : bf16 to vector<2x16x1x128xbf16>
      %c0_104 = arith.constant 0 : index
      %c1_105 = arith.constant 1 : index
      %c17_106 = arith.constant 17 : index
      %c0_107 = arith.constant 0 : index
      %54 = vector.load %arg7[%c0_104, %c1_105, %c17_106, %c0_107] : memref<2x18x18x128xbf16, #tpu.memory_space<vmem>>, vector<2x16x1x128xbf16>
      tpu.vector_store %arg7[%c0_104, %c1_105, %c17_106, %c0_107], %53 {strides = array<i32>} : memref<2x18x18x128xbf16, #tpu.memory_space<vmem>>, vector<2x16x1x128xbf16>,
    } else {
    }
    %23 = arith.truncf %18 : vector<512x128xf32> to vector<512x128xbf16>
    %24 = vector.shape_cast %23 : vector<512x128xbf16> to vector<2x16x16x128xbf16>
    %c0_39 = arith.constant 0 : index
    %c1_40 = arith.constant 1 : index
    %c1_41 = arith.constant 1 : index
    %c0_42 = arith.constant 0 : index
    %25 = vector.load %arg7[%c0_39, %c1_40, %c1_41, %c0_42] : memref<2x18x18x128xbf16, #tpu.memory_space<vmem>>, vector<2x16x16x128xbf16>
    tpu.vector_store %arg7[%c0_39, %c1_40, %c1_41, %c0_42], %24 {strides = array<i32>} : memref<2x18x18x128xbf16, #tpu.memory_space<vmem>>, vector<2x16x16x128xbf16>,
    %c0_43 = arith.constant 0 : index
    %c0_44 = arith.constant 0 : index
    %c0_45 = arith.constant 0 : index
    %c0_46 = arith.constant 0 : index
    %26 = vector.load %arg7[%c0_43, %c0_44, %c0_45, %c0_46] : memref<2x18x18x128xbf16, #tpu.memory_space<vmem>>, vector<2x16x16x128xbf16>
    %c0_47 = arith.constant 0 : index
    %c0_48 = arith.constant 0 : index
    %c1_49 = arith.constant 1 : index
    %c0_50 = arith.constant 0 : index
    %27 = vector.load %arg7[%c0_47, %c0_48, %c1_49, %c0_50] : memref<2x18x18x128xbf16, #tpu.memory_space<vmem>>, vector<2x16x16x128xbf16>
    %c0_51 = arith.constant 0 : index
    %c0_52 = arith.constant 0 : index
    %c2_53 = arith.constant 2 : index
    %c0_54 = arith.constant 0 : index
    %28 = vector.load %arg7[%c0_51, %c0_52, %c2_53, %c0_54] : memref<2x18x18x128xbf16, #tpu.memory_space<vmem>>, vector<2x16x16x128xbf16>
    %c0_55 = arith.constant 0 : index
    %c1_56 = arith.constant 1 : index
    %c0_57 = arith.constant 0 : index
    %c0_58 = arith.constant 0 : index
    %29 = vector.load %arg7[%c0_55, %c1_56, %c0_57, %c0_58] : memref<2x18x18x128xbf16, #tpu.memory_space<vmem>>, vector<2x16x16x128xbf16>
    %c0_59 = arith.constant 0 : index
    %c1_60 = arith.constant 1 : index
    %c1_61 = arith.constant 1 : index
    %c0_62 = arith.constant 0 : index
    %30 = vector.load %arg7[%c0_59, %c1_60, %c1_61, %c0_62] : memref<2x18x18x128xbf16, #tpu.memory_space<vmem>>, vector<2x16x16x128xbf16>
    %c0_63 = arith.constant 0 : index
    %c1_64 = arith.constant 1 : index
    %c2_65 = arith.constant 2 : index
    %c0_66 = arith.constant 0 : index
    %31 = vector.load %arg7[%c0_63, %c1_64, %c2_65, %c0_66] : memref<2x18x18x128xbf16, #tpu.memory_space<vmem>>, vector<2x16x16x128xbf16>
    %c0_67 = arith.constant 0 : index
    %c2_68 = arith.constant 2 : index
    %c0_69 = arith.constant 0 : index
    %c0_70 = arith.constant 0 : index
    %32 = vector.load %arg7[%c0_67, %c2_68, %c0_69, %c0_70] : memref<2x18x18x128xbf16, #tpu.memory_space<vmem>>, vector<2x16x16x128xbf16>
    %c0_71 = arith.constant 0 : index
    %c2_72 = arith.constant 2 : index
    %c1_73 = arith.constant 1 : index
    %c0_74 = arith.constant 0 : index
    %33 = vector.load %arg7[%c0_71, %c2_72, %c1_73, %c0_74] : memref<2x18x18x128xbf16, #tpu.memory_space<vmem>>, vector<2x16x16x128xbf16>
    %c0_75 = arith.constant 0 : index
    %c2_76 = arith.constant 2 : index
    %c2_77 = arith.constant 2 : index
    %c0_78 = arith.constant 0 : index
    %34 = vector.load %arg7[%c0_75, %c2_76, %c2_77, %c0_78] : memref<2x18x18x128xbf16, #tpu.memory_space<vmem>>, vector<2x16x16x128xbf16>
    %35 = tpu.concatenate %26, %27, %28, %29, %30, %31, %32, %33, %34 in 3 : vector<2x16x16x128xbf16>, vector<2x16x16x128xbf16>, vector<2x16x16x128xbf16>, vector<2x16x16x128xbf16>, vector<2x16x16x128xbf16>, vector<2x16x16x128xbf16>, vector<2x16x16x128xbf16>, vector<2x16x16x128xbf16>, vector<2x16x16x128xbf16> -> vector<2x16x16x1152xbf16>
    %36 = vector.shape_cast %35 : vector<2x16x16x1152xbf16> to vector<512x1152xbf16>
    %c0_79 = arith.constant 0 : index
    %c0_80 = arith.constant 0 : index
    %37 = vector.load %arg4[%c0_79, %c0_80] : memref<1152x128xbf16, #tpu.memory_space<vmem>>, vector<1152x128xbf16>
    %cst_81 = arith.constant dense<0.000000e+00> : vector<512x128xf32>
    %38 = tpu.matmul %36, %37, %cst_81 {dimension_numbers = #tpu.dot_dimension_numbers<[1], [0], [0], [1], [0, 0, 1, 1], [], []>} : vector<512x1152xbf16>, vector<1152x128xbf16>, vector<512x128xf32> -> vector<512x128xf32>
    %c0_82 = arith.constant 0 : index
    %c0_83 = arith.constant 0 : index
    %39 = vector.load %arg5[%c0_82, %c0_83] : memref<1x128xf32, #tpu.memory_space<vmem>>, vector<1x128xf32>
    %40 = vector.broadcast %39 : vector<1x128xf32> to vector<512x128xf32>
    %41 = arith.addf %38, %40 : vector<512x128xf32>
    %42 = arith.addf %41, %19 : vector<512x128xf32>
    %cst_84 = arith.constant 0.000000e+00 : f32
    %43 = vector.broadcast %cst_84 : f32 to vector<512x128xf32>
    %44 = arith.maximumf %42, %43 : vector<512x128xf32>
    %45 = vector.shape_cast %44 : vector<512x128xf32> to vector<2x16x16x128xf32>
    %c0_85 = arith.constant 0 : index
    %c0_86 = arith.constant 0 : index
    %c0_87 = arith.constant 0 : index
    %c0_88 = arith.constant 0 : index
    %46 = vector.load %arg6[%c0_85, %c0_86, %c0_87, %c0_88] : memref<2x16x16x128xf32, #tpu.memory_space<vmem>>, vector<2x16x16x128xf32>
    tpu.vector_store %arg6[%c0_85, %c0_86, %c0_87, %c0_88], %45 {strides = array<i32>} : memref<2x16x16x128xf32, #tpu.memory_space<vmem>>, vector<2x16x16x128xf32>,
    return
  }
  func.func @transform_0(%arg0: i32) -> (i32, i32, i32, i32) {
    %c0_i32 = arith.constant 0 : i32
    %c0_i32_0 = arith.constant 0 : i32
    %c0_i32_1 = arith.constant 0 : i32
    %c0_i32_2 = arith.constant 0 : i32
    return %arg0, %c0_i32, %c0_i32_0, %c0_i32_1 : i32, i32, i32, i32
  }
  func.func @transform_1(%arg0: i32) -> (i32, i32) {
    %c0_i32 = arith.constant 0 : i32
    %c0_i32_0 = arith.constant 0 : i32
    %c0_i32_1 = arith.constant 0 : i32
    return %c0_i32, %c0_i32_0 : i32, i32
  }
  func.func @transform_2(%arg0: i32) -> (i32, i32) {
    %c0_i32 = arith.constant 0 : i32
    %c0_i32_0 = arith.constant 0 : i32
    %c0_i32_1 = arith.constant 0 : i32
    return %c0_i32, %c0_i32_0 : i32, i32
  }
  func.func @transform_3(%arg0: i32) -> (i32, i32) {
    %c0_i32 = arith.constant 0 : i32
    %c0_i32_0 = arith.constant 0 : i32
    %c0_i32_1 = arith.constant 0 : i32
    return %c0_i32, %c0_i32_0 : i32, i32
  }
  func.func @transform_4(%arg0: i32) -> (i32, i32) {
    %c0_i32 = arith.constant 0 : i32
    %c0_i32_0 = arith.constant 0 : i32
    %c0_i32_1 = arith.constant 0 : i32
    return %c0_i32, %c0_i32_0 : i32, i32
  }
  func.func @transform_5(%arg0: i32) -> (i32, i32, i32, i32) {
    %c0_i32 = arith.constant 0 : i32
    %c0_i32_0 = arith.constant 0 : i32
    %c0_i32_1 = arith.constant 0 : i32
    %c0_i32_2 = arith.constant 0 : i32
    return %arg0, %c0_i32, %c0_i32_0, %c0_i32_1 : i32, i32, i32, i32
  }
}

</mosaic_0001>

<bundles_post_ra>
// kernel: tpu_custom_call.1
= control target key start
LH: loop header
LB: loop body
LE: loop exit
PB: predicated region body
PF: predicated region fallthrough
CT: control target
= control target key end

     0   :  { %10 = vsyncpa [#allocation4], 0  ;;  %s20507_s0 = inlined_call_operand.vmem [shape: bf16[2,18,18,128], index: 0, kind: input, shape index: {}]   ;;  %s20508_s1 = inlined_call_operand.hbm [shape: bf16[1152,256], index: 1, kind: input, shape index: {}]   ;;  %s20509_s2 = inlined_call_operand.vmem [shape: f32[1,256], index: 2, kind: input, shape index: {}]   ;;  %s20510_s3 = inlined_call_operand.vmem [shape: bf16[1152,128], index: 3, kind: input, shape index: {}]   ;;  %s20511_s4 = inlined_call_operand.vmem [shape: f32[1,128], index: 4, kind: input, shape index: {}]   ;;  %s20512_s5 = inlined_call_operand.hbm [shape: f32[2,16,16,128], index: 5, kind: output, shape index: {}]  }
   0x1   :  { %11 = vsyncpa [#allocation5], 0  ;;  %s16061_s18 = smov [#allocation3]   ;;  %s16013_s22 = scalar_lea.hbm %s20508_s1, 18432 }
   0x2   :  { %s19_s19 = sshll.u32 %s16061_s18, 4  ;;  %p16014_p0 = scmp.ne.s32.totalorder %s20508_s1, %s16013_s22  ;;  %s20_s19 = int_to_ptr.vmem [resolvable:$true] %s19_s19 }
   0x3   :  { %p16017_p1 = scmp.lt.u32.totalorder %s16013_s22, %s20508_s1 }
   0x5   :  { %p16019_p2 = pnand %p16017_p1, %p16014_p0 }
   0x7   :  { %16022 = shalt.err (!%p16019_p2)
}
   0x8   :  { %s16023_s27 = scalar_lea.vmem %s20_s19, 18432  ;;  %p16028_p4 = scmp.lt.s32.totalorder %s20_s19, %s20_s19 }
   0x9   :  { %p16024_p3 = scmp.ne.s32.totalorder %s20_s19, %s16023_s27  ;;  %p16029_p5 = scmp.lt.s32.totalorder %s16023_s27, %s16023_s27 }
   0xb   :  { %p16030_p6 = por %p16029_p5, %p16028_p4 }
   0xd   :  { %p16031_p7 = pnand %p16030_p6, %p16024_p3 }
   0xf   :  { %16034 = shalt.err (!%p16031_p7)
}
  0x10   :  { %s16062_s28 = smov 128   ;;  %s16063_s29 = smov 8  }
  0x11   :  { %25 = dma.hbm_to_vmem [thread:$0]  %s20508_s1, 18432, %s20_s19, [#allocation4], %s16062_s28, %s16062_s28, %s16063_s29  }
  0x12   :  { %16057 = dma.done.wait [#allocation4], 18432  }
  0x13   :  { %16058 = vsyncadd [#allocation4], 4294948864  ;;  %v15005_v0 = vld [vmem:[#allocation3 + $0x4] ss:$8 sps:$4 sm:$0xff]   ;;  %v15007_v1 = vld [vmem:[#allocation3] ss:$8 sps:$4 sm:$0xff]  }
  0x14   :  { %4084 = vmatprep.subr.bf16.mxu0 %v15005_v0  ;;  %v15008_v2 = vld [vmem:[#allocation3 + $0x14] ss:$8 sps:$4 sm:$0xff]   ;;  %v15010_v3 = vld [vmem:[#allocation3 + $0x10] ss:$8 sps:$4 sm:$0xff]   ;;  %v15011_v4 = vld [vmem:[#allocation3 + $0x24] ss:$8 sps:$4 sm:$0xff]  }
  0x15   :  { %4085 = vmatpush1.bf16.msra.mxu0 %v15007_v1  ;;  %v15013_v5 = vld [vmem:[#allocation3 + $0x20] ss:$8 sps:$4 sm:$0xff]   ;;  %v15014_v6 = vld [vmem:[#allocation3 + $0x34] ss:$8 sps:$4 sm:$0xff]   ;;  %v15016_v7 = vld [vmem:[#allocation3 + $0x30] ss:$8 sps:$4 sm:$0xff]  }
  0x16   :  { %4086 = vmatprep.subr.bf16.mxu0 %v15008_v2  ;;  %v15017_v8 = vld [vmem:[#allocation3 + $0x44] ss:$8 sps:$4 sm:$0xff]   ;;  %v15019_v9 = vld [vmem:[#allocation3 + $0x40] ss:$8 sps:$4 sm:$0xff]   ;;  %v15020_v10 = vld [vmem:[#allocation3 + $0x54] ss:$8 sps:$4 sm:$0xff]  }
  0x17   :  { %v15022_v11 = vld [vmem:[#allocation3 + $0x50] ss:$8 sps:$4 sm:$0xff]   ;;  %v15023_v12 = vld [vmem:[#allocation3 + $0x64] ss:$8 sps:$4 sm:$0xff]   ;;  %v37_v14 = vld [vmem:[%s20507_s0 + $0x4] sm:$0xf] }
  0x18   :  { %v36_v13 = vld [vmem:[%s20507_s0] sm:$0xf]  ;;  %v15054_v16 = vld [vmem:[%s20507_s0 + $0x8] ss:$0 sps:$4 sm:$0x11]   ;;  %vm1223_vm1 = vcmask 1046528  }
  0x19   :  { %4087 = vmatpush1.bf16.msra.mxu0 %v15010_v3  ;;  %v16117_v15 = vcombine.low %v36_v13, %v37_v14  ;;  %v15025_v17 = vld [vmem:[#allocation3 + $0x60] ss:$8 sps:$4 sm:$0xff]   ;;  %v15026_v18 = vld [vmem:[#allocation3 + $0x74] ss:$8 sps:$4 sm:$0xff]   ;;  %v719_v21 = vshll.u32 %v15054_v16, 16  ;;  %vm5931_vm2 = vcmask 1040384  }
  0x1a   :  { %4088 = vmatprep.subr.bf16.mxu0 %v15011_v4  ;;  %vm710_vm0 = vsmask.f32 7424  ;;  %v15028_v24 = vld [vmem:[#allocation3 + $0x70] ss:$8 sps:$4 sm:$0xff]   ;;  %v15029_v25 = vld [vmem:[#allocation3 + $0x84] ss:$8 sps:$4 sm:$0xff]  }
  0x1b   :  { %v712_v19 = vshrl.u32 %v16117_v15, 16  ;;  %v714_v20 = vshll.u32 %v16117_v15, 16  ;;  %v721_v23 = vrot.slane %v719_v21, 1  ;;  %v15031_v28 = vld [vmem:[#allocation3 + $0x80] ss:$8 sps:$4 sm:$0xff]   ;;  %vm6964_vm7 = vcmask 1043456  }
  0x1c   :  { %v15032_v29 = vld [vmem:[#allocation3 + $0x94] ss:$8 sps:$4 sm:$0xff]   ;;  %v15034_v30 = vld [vmem:[#allocation3 + $0x90] ss:$8 sps:$4 sm:$0xff]   ;;  %v15035_v31 = vld [vmem:[#allocation3 + $0xa4] ss:$8 sps:$4 sm:$0xff]  }
  0x1d   :  { %4089 = vmatpush1.bf16.msra.mxu0 %v15013_v5  ;;  %v716_v22 = vrot.slane %v714_v20, 1  ;;  %v15037_v32 = vld [vmem:[#allocation3 + $0xa0] ss:$8 sps:$4 sm:$0xff]   ;;  %v15038_v33 = vld [vmem:[#allocation3 + $0xb4] ss:$8 sps:$4 sm:$0xff]  }
  0x1e   :  { %4090 = vmatprep.subr.bf16.mxu0 %v15014_v6  ;;  %v15040_v34 = vld [vmem:[#allocation3 + $0xb0] ss:$8 sps:$4 sm:$0xff]   ;;  %v15041_v35 = vld [vmem:[#allocation3 + $0xc4] ss:$8 sps:$4 sm:$0xff]   ;;  %v38_v36 = vld [vmem:[%s20507_s0 + $0xc] sm:$0xf] }
  0x1f   :  { %v717_v26 = vor.u32 %v716_v22, %v712_v19  ;;  %v39_v37 = vld [vmem:[%s20507_s0 + $0x10] sm:$0xf]  ;;  %v15044_v39 = vld [vmem:[#allocation3 + $0xd4] ss:$8 sps:$4 sm:$0xff]   ;;  %v15046_v41 = vld [vmem:[#allocation3 + $0xd0] ss:$8 sps:$4 sm:$0xff]  }
  0x20   :  { %v15043_v38 = vld [vmem:[#allocation3 + $0xc0] ss:$8 sps:$4 sm:$0xff]   ;;  %v12856_v40 = vcombine.low %v38_v36, %v39_v37  ;;  %v15047_v42 = vld [vmem:[#allocation3 + $0xe4] ss:$8 sps:$4 sm:$0xff]   ;;  %v15050_v48 = vld [vmem:[#allocation3 + $0xf4] ss:$8 sps:$4 sm:$0xff]  }
  0x21   :  { %4091 = vmatpush1.bf16.msra.mxu0 %v15016_v7  ;;  %v722_v27 = vsel %vm710_vm0, %v717_v26, %v721_v23  ;;  %v15059_v43 = vld [vmem:[%s20507_s0 + $0x14] ss:$0 sps:$4 sm:$0x11]   ;;  %v40_v45 = vld [vmem:[%s20507_s0 + $0x18] sm:$0xf] }
  0x22   :  { %4092 = vmatprep.subr.bf16.mxu0 %v15017_v8  ;;  %4116 = vmatprep.mubr.bf16.mxu0 %v722_v27  ;;  %v726_v44 = vshll.u32 %v12856_v40, 16  ;;  %v41_v46 = vld [vmem:[%s20507_s0 + $0x1c] sm:$0xf]  ;;  %v15049_v47 = vld [vmem:[#allocation3 + $0xe0] ss:$8 sps:$4 sm:$0xff]   ;;  %v724_v49 = vshrl.u32 %v12856_v40, 16 }
  0x23   :  { %v731_v51 = vshll.u32 %v15059_v43, 16  ;;  %v12857_v52 = vcombine.low %v40_v45, %v41_v46  ;;  %v15052_v53 = vld [vmem:[#allocation3 + $0xf0] ss:$8 sps:$4 sm:$0xff]   ;;  %v15057_v55 = vld [vmem:[#allocation3 + $0x104] ss:$8 sps:$4 sm:$0xff]  }
  0x24   :  { %v728_v50 = vrot.slane %v726_v44, 1  ;;  %v15061_v54 = vld [vmem:[%s20507_s0 + $0x20] ss:$0 sps:$4 sm:$0x11]   ;;  %v42_v59 = vld [vmem:[%s20507_s0 + $0x24] sm:$0xf] }
  0x25   :  { %4093 = vmatpush1.bf16.msra.mxu0 %v15019_v9  ;;  %v733_v57 = vrot.slane %v731_v51, 1  ;;  %v738_v58 = vshll.u32 %v12857_v52, 16  ;;  %v43_v60 = vld [vmem:[%s20507_s0 + $0x28] sm:$0xf]  ;;  %v15055_v61 = vld [vmem:[#allocation3 + $0x100] ss:$8 sps:$4 sm:$0xff]  }
  0x26   :  { %4094 = vmatprep.subr.bf16.mxu0 %v15020_v10  ;;  %v729_v56 = vor.u32 %v728_v50, %v724_v49  ;;  %v743_v62 = vshll.u32 %v15061_v54, 16  ;;  %v736_v0 = vshrl.u32 %v12857_v52, 16  ;;  %v15064_v2 = vld [vmem:[#allocation3 + $0x114] ss:$8 sps:$4 sm:$0xff]   ;;  %v16150_v3 = vcombine.low %v42_v59, %v43_v60  ;;  %v15062_v4 = vld [vmem:[#allocation3 + $0x110] ss:$8 sps:$4 sm:$0xff]  }
  0x27   :  { %v740_v1 = vrot.slane %v738_v58, 1  ;;  %v44_v5 = vld [vmem:[%s20507_s0 + $0x30] sm:$0xf]  ;;  %v15066_v6 = vld [vmem:[%s20507_s0 + $0x2c] ss:$0 sps:$4 sm:$0x11]  }
  0x28   :  { %v734_v63 = vsel %vm710_vm0, %v729_v56, %v733_v57  ;;  %v745_v8 = vrot.slane %v743_v62, 1  ;;  %v750_v9 = vshll.u32 %v16150_v3, 16  ;;  %v45_v10 = vld [vmem:[%s20507_s0 + $0x34] sm:$0xf]  ;;  %v15069_v14 = vld [vmem:[#allocation3 + $0x120] ss:$8 sps:$4 sm:$0xff]  }
  0x29   :  { %4095 = vmatpush1.bf16.msra.mxu0 %v15022_v11  ;;  %v741_v7 = vor.u32 %v740_v1, %v736_v0  ;;  %v15071_v11 = vld [vmem:[#allocation3 + $0x124] ss:$8 sps:$4 sm:$0xff]   ;;  %v16163_v13 = vcombine.low %v44_v5, %v45_v10  ;;  %v748_v16 = vshrl.u32 %v16150_v3, 16  ;;  %v15068_v19 = vld [vmem:[%s20507_s0 + $0x38] ss:$0 sps:$4 sm:$0x11]  }
  0x2a   :  { %4096 = vmatprep.subr.bf16.mxu0 %v15023_v12  ;;  %v755_v12 = vshll.u32 %v15066_v6, 16  ;;  %v15076_v20 = vld [vmem:[#allocation3 + $0x130] ss:$8 sps:$4 sm:$0xff]   ;;  %v46_v23 = vld [vmem:[%s20507_s0 + $0x3c] sm:$0xf] }
  0x2b   :  { %v762_v22 = vshll.u32 %v16163_v13, 16  ;;  %v15085_v26 = vld [vmem:[#allocation3 + $0x144] ss:$8 sps:$4 sm:$0xff]   ;;  %v760_v27 = vshrl.u32 %v16163_v13, 16  ;;  %v48_v36 = vld [vmem:[%s20507_s0 + $0x48] sm:$0xf] }
  0x2c   :  { %v757_v21 = vrot.slane %v755_v12, 1  ;;  %v49_v37 = vld [vmem:[%s20507_s0 + $0x4c] sm:$0xf]  ;;  %v15097_v43 = vld [vmem:[#allocation3 + $0x160] ss:$8 sps:$4 sm:$0xff]  }
  0x2d   :  { %4097 = vmatpush1.bf16.msra.mxu0 %v15025_v17  ;;  %v752_v17 = vrot.slane %v750_v9, 1  ;;  %v15106_v44 = vld [vmem:[#allocation3 + $0x174] ss:$8 sps:$4 sm:$0xff]   ;;  %v15075_v49 = vld [vmem:[%s20507_s0 + $0x50] ss:$0 sps:$4 sm:$0x11]  }
  0x2e   :  { %4098 = vmatprep.subr.bf16.mxu0 %v15026_v18  ;;  %v15078_v18 = vld [vmem:[#allocation3 + $0x134] ss:$8 sps:$4 sm:$0xff]   ;;  %v15104_v50 = vld [vmem:[#allocation3 + $0x170] ss:$8 sps:$4 sm:$0xff]   ;;  %v15113_v51 = vld [vmem:[#allocation3 + $0x184] ss:$8 sps:$4 sm:$0xff]  }
  0x2f   :  { %v791_v57 = vshll.u32 %v15075_v49, 16  ;;  %v15111_v58 = vld [vmem:[#allocation3 + $0x180] ss:$8 sps:$4 sm:$0xff]   ;;  %v15120_v59 = vld [vmem:[#allocation3 + $0x194] ss:$8 sps:$4 sm:$0xff]  }
  0x30   :  { %v15080_v0 = vld [vmem:[%s20507_s0 + $0x5c] ss:$0 sps:$4 sm:$0x11]   ;;  %v15118_v1 = vld [vmem:[#allocation3 + $0x190] ss:$8 sps:$4 sm:$0xff]  }
  0x31   :  { %4099 = vmatpush1.bf16.msra.mxu0 %v15028_v24  ;;  %v753_v24 = vor.u32 %v752_v17, %v748_v16  ;;  %v15127_v5 = vld [vmem:[#allocation3 + $0x1a4] ss:$8 sps:$4 sm:$0xff]   ;;  %v803_v9 = vshll.u32 %v15080_v0, 16  ;;  %v15125_v10 = vld [vmem:[#allocation3 + $0x1a0] ss:$8 sps:$4 sm:$0xff]  }
  0x32   :  { %4100 = vmatprep.subr.bf16.mxu0 %v15029_v25  ;;  %v47_v25 = vld [vmem:[%s20507_s0 + $0x40] sm:$0xf]  ;;  %v55_v16 = vld [vmem:[%s20507_s0 + $0x70] sm:$0xf]  ;;  %vm5932_vm3 = vsmask.f32 256 }
  0x33   :  { %v15094_v49 = vld [vmem:[%s20507_s0 + $0x8c] ss:$0 sps:$4 sm:$0x11]   ;;  %v63_v0 = vld [vmem:[%s20507_s0 + $0xa0] sm:$0xf]  ;;  %vm18181_vm4 = vmand %vm5931_vm2, %vm5932_vm3 }
  0x34   :  { %vm6030_vm5 = vsmask.f32 7938  ;;  %vm6321_vm8 = vsmask.f32 4368 }
  0x35   :  { %4101 = vmatpush1.bf16.msra.mxu0 %v15031_v28  ;;  %v15083_v28 = vld [vmem:[#allocation3 + $0x140] ss:$8 sps:$4 sm:$0xff]   ;;  %vm18198_vm6 = vmand %vm5931_vm2, %vm6030_vm5 }
  0x36   :  { %4102 = vmatprep.subr.bf16.mxu0 %v15032_v29  ;;  %v15092_v29 = vld [vmem:[#allocation3 + $0x154] ss:$8 sps:$4 sm:$0xff]   ;;  %vm18586_vm9 = vmand %vm6964_vm7, %vm6030_vm5 }
  0x37   :  { %vm18598_vm10 = vmor %vm5932_vm3, %vm6321_vm8 }
  0x39   :  { %4103 = vmatpush1.bf16.msra.mxu0 %v15034_v30  ;;  %v758_v30 = vsel %vm710_vm0, %v753_v24, %v757_v21 }
  0x3a   :  { %4104 = vmatprep.subr.bf16.mxu0 %v15035_v31  ;;  %v764_v31 = vrot.slane %v762_v22, 1 }
  0x3d   :  { %4105 = vmatpush1.bf16.msra.mxu0 %v15037_v32  ;;  %v767_v32 = vshll.u32 %v15068_v19, 16 }
  0x3e   :  { %4106 = vmatprep.subr.bf16.mxu0 %v15038_v33  ;;  %v16179_v33 = vcombine.low %v46_v23, %v47_v25  ;;  %v15087_v25 = vld [vmem:[%s20507_s0 + $0x74] ss:$0 sps:$4 sm:$0x11]  }
  0x41   :  { %4107 = vmatpush1.bf16.msra.mxu0 %v15040_v34  ;;  %v15073_v34 = vld [vmem:[%s20507_s0 + $0x44] ss:$0 sps:$4 sm:$0x11]  }
  0x42   :  { %4108 = vmatprep.subr.bf16.mxu0 %v15041_v35  ;;  %v15090_v35 = vld [vmem:[#allocation3 + $0x150] ss:$8 sps:$4 sm:$0xff]  }
  0x45   :  { %4109 = vmatpush1.bf16.msra.mxu0 %v15043_v38  ;;  %v15099_v38 = vld [vmem:[#allocation3 + $0x164] ss:$8 sps:$4 sm:$0xff]  }
  0x46   :  { %4110 = vmatprep.subr.bf16.mxu0 %v15044_v39  ;;  %v765_v39 = vor.u32 %v764_v31, %v760_v27  ;;  %v15134_v27 = vld [vmem:[#allocation3 + $0x1b4] ss:$8 sps:$4 sm:$0xff]  }
  0x49   :  { %4111 = vmatpush1.bf16.msra.mxu0 %v15046_v41  ;;  %v774_v41 = vshll.u32 %v16179_v33, 16 }
  0x4a   :  { %4112 = vmatprep.subr.bf16.mxu0 %v15047_v42  ;;  %v772_v42 = vshrl.u32 %v16179_v33, 16 }
  0x4b   :  { %v776_v46 = vrot.slane %v774_v41, 1 }
  0x4d   :  { %4113 = vmatpush1.bf16.msra.mxu0 %v15049_v47  ;;  %v779_v47 = vshll.u32 %v15073_v34, 16  ;;  %v777_v54 = vor.u32 %v776_v46, %v772_v42  ;;  %v827_v34 = vshll.u32 %v15087_v25, 16  ;;  %v66_v25 = vld [vmem:[%s20507_s0 + $0xb4] sm:$0xf] }
  0x4e   :  { %4114 = vmatprep.subr.bf16.mxu0 %v15050_v48  ;;  %v12861_v48 = vcombine.low %v48_v36, %v49_v37 }
  0x4f   :  { %v829_v42 = vrot.slane %v827_v34, 1  ;;  %v68_v34 = vld [vmem:[%s20507_s0 + $0xd8] sm:$0xf] }
  0x50   :  { %v786_v56 = vshll.u32 %v12861_v48, 16 }
  0x51   :  { %4115 = vmatpush1.bf16.msra.mxu0 %v15052_v53  ;;  %v51_v53 = vld [vmem:[%s20507_s0 + $0x58] sm:$0xf] }
  0x52   :  { %4437 = vmatprep.subr.bf16.mxu0 %v15057_v55  ;;  %v781_v55 = vrot.slane %v779_v47, 1  ;;  %v788_v62 = vrot.slane %v786_v56, 1 }
  0x54   :  { %4117 = vmatmul.mubr.bf16.vlgmr.msra.gmra.mrb[0].mxu0 %v16117_v15  ;;  %v746_v15 = vsel %vm710_vm0, %v741_v7, %v745_v8  ;;  %v782_v60 = vsel %vm710_vm0, %v777_v54, %v781_v55  ;;  %v61_v54 = vld [vmem:[%s20507_s0 + $0x94] sm:$0xf] }
  0x55   :  { %4438 = vmatpush1.bf16.msra.mxu0 %v15055_v61  ;;  %4126 = vmatprep.mubr.bf16.mxu0 %v734_v63  ;;  %v784_v61 = vshrl.u32 %v12861_v48, 16 }
  0x56   :  { %4439 = vmatprep.subr.bf16.mxu0 %v15064_v2  ;;  %v793_v2 = vrot.slane %v791_v57, 1 }
  0x57   :  { %v789_v6 = vor.u32 %v788_v62, %v784_v61  ;;  %v15096_v62 = vld [vmem:[%s20507_s0 + $0x98] ss:$0 sps:$4 sm:$0x11]  }
  0x59   :  { %4440 = vmatpush1.bf16.msra.mxu0 %v15062_v4  ;;  %v53_v4 = vld [vmem:[%s20507_s0 + $0x64] sm:$0xf] }
  0x5a   :  { %4441 = vmatprep.subr.bf16.mxu0 %v15071_v11  ;;  %v794_v11 = vsel %vm710_vm0, %v789_v6, %v793_v2 }
  0x5c   :  { %4127 = vmatmul.mubr.bf16.gmra.mrb[4].mxu0 %v12856_v40  ;;  %v769_v40 = vrot.slane %v767_v32, 1 }
  0x5d   :  { %4136 = vmatprep.mubr.bf16.mxu0 %v746_v15  ;;  %4442 = vmatpush1.bf16.msra.mxu0 %v15069_v14  ;;  %v15082_v14 = vld [vmem:[%s20507_s0 + $0x68] ss:$0 sps:$4 sm:$0x11]   ;;  %v54_v15 = vld [vmem:[%s20507_s0 + $0x6c] sm:$0xf] }
  0x5e   :  { %4443 = vmatprep.subr.bf16.mxu0 %v15078_v18  ;;  %v770_v45 = vsel %vm710_vm0, %v765_v39, %v769_v40  ;;  %v805_v18 = vrot.slane %v803_v9, 1  ;;  %v12864_v24 = vcombine.low %v54_v15, %v55_v16  ;;  %v58_v39 = vld [vmem:[%s20507_s0 + $0x84] sm:$0xf]  ;;  %v59_v40 = vld [vmem:[%s20507_s0 + $0x88] sm:$0xf] }
  0x60   :  { %v822_v32 = vshll.u32 %v12864_v24, 16 }
  0x61   :  { %4444 = vmatpush1.bf16.msra.mxu0 %v15076_v20  ;;  %v815_v20 = vshll.u32 %v15082_v14, 16  ;;  %v65_v14 = vld [vmem:[%s20507_s0 + $0xac] sm:$0xf] }
  0x62   :  { %4445 = vmatprep.subr.bf16.mxu0 %v15085_v26  ;;  %v15132_v26 = vld [vmem:[#allocation3 + $0x1b0] ss:$8 sps:$4 sm:$0xff]   ;;  %v824_v36 = vrot.slane %v822_v32, 1  ;;  %v15108_v32 = vld [vmem:[%s20507_s0 + $0xbc] ss:$0 sps:$4 sm:$0x11]  }
  0x63   :  { %v817_v31 = vrot.slane %v815_v20, 1 }
  0x64   :  { %4137 = vmatmul.mubr.bf16.gmra.mrb[8].mxu0 %v12857_v52  ;;  %v50_v52 = vld [vmem:[%s20507_s0 + $0x54] sm:$0xf] }
  0x65   :  { %4146 = vmatprep.mubr.bf16.mxu0 %v758_v30  ;;  %4446 = vmatpush1.bf16.msra.mxu0 %v15083_v28  ;;  %v12862_v63 = vcombine.low %v50_v52, %v51_v53  ;;  %v56_v28 = vld [vmem:[%s20507_s0 + $0x78] sm:$0xf]  ;;  %v15141_v52 = vld [vmem:[#allocation3 + $0x1c4] ss:$8 sps:$4 sm:$0xff]  }
  0x66   :  { %4447 = vmatprep.subr.bf16.mxu0 %v15092_v29  ;;  %v57_v29 = vld [vmem:[%s20507_s0 + $0x7c] sm:$0xf] }
  0x67   :  { %v798_v7 = vshll.u32 %v12862_v63, 16  ;;  %v796_v8 = vshrl.u32 %v12862_v63, 16  ;;  %v12865_v37 = vcombine.low %v56_v28, %v57_v29 }
  0x69   :  { %4448 = vmatpush1.bf16.msra.mxu0 %v15090_v35  ;;  %v800_v12 = vrot.slane %v798_v7, 1  ;;  %v832_v46 = vshrl.u32 %v12865_v37, 16 }
  0x6a   :  { %4449 = vmatprep.subr.bf16.mxu0 %v15099_v38  ;;  %v15089_v38 = vld [vmem:[%s20507_s0 + $0x80] ss:$0 sps:$4 sm:$0x11]  }
  0x6b   :  { %v801_v17 = vor.u32 %v800_v12, %v796_v8  ;;  %v15101_v8 = vld [vmem:[%s20507_s0 + $0xa4] ss:$0 sps:$4 sm:$0x11]  }
  0x6c   :  { %4147 = vmatmul.mubr.bf16.gmra.mrb[12].mxu0 %v16150_v3  ;;  %v52_v3 = vld [vmem:[%s20507_s0 + $0x60] sm:$0xf]  ;;  %v15148_v12 = vld [vmem:[#allocation3 + $0x1d4] ss:$8 sps:$4 sm:$0xff]  }
  0x6d   :  { %4156 = vmatprep.mubr.bf16.mxu0 %v770_v45  ;;  %4450 = vmatpush1.bf16.msra.mxu0 %v15097_v43  ;;  %v806_v21 = vsel %vm710_vm0, %v801_v17, %v805_v18  ;;  %v834_v43 = vshll.u32 %v12865_v37, 16  ;;  %v875_v17 = vshll.u32 %v15101_v8, 16 }
  0x6e   :  { %4451 = vmatprep.subr.bf16.mxu0 %v15106_v44  ;;  %v839_v44 = vshll.u32 %v15089_v38, 16  ;;  %v69_v38 = vld [vmem:[%s20507_s0 + $0xdc] sm:$0xf] }
  0x6f   :  { %v836_v47 = vrot.slane %v834_v43, 1 }
  0x70   :  { %v841_v53 = vrot.slane %v839_v44, 1 }
  0x71   :  { %4452 = vmatpush1.bf16.msra.mxu0 %v15104_v50  ;;  %v60_v50 = vld [vmem:[%s20507_s0 + $0x90] sm:$0xf]  ;;  %v837_v55 = vor.u32 %v836_v47, %v832_v46  ;;  %v15110_v46 = vld [vmem:[%s20507_s0 + $0xe0] ss:$0 sps:$4 sm:$0x11]  }
  0x72   :  { %4453 = vmatprep.subr.bf16.mxu0 %v15113_v51  ;;  %v15139_v51 = vld [vmem:[#allocation3 + $0x1c0] ss:$8 sps:$4 sm:$0xff]  }
  0x74   :  { %4157 = vmatmul.mubr.bf16.gmra.mrb[16].mxu0 %v16163_v13  ;;  %v12863_v13 = vcombine.low %v52_v3, %v53_v4 }
  0x75   :  { %4166 = vmatprep.mubr.bf16.mxu0 %v782_v60  ;;  %4454 = vmatpush1.bf16.msra.mxu0 %v15111_v58  ;;  %v851_v58 = vshll.u32 %v15094_v49, 16  ;;  %v842_v60 = vsel %vm710_vm0, %v837_v55, %v841_v53  ;;  %v70_v49 = vld [vmem:[%s20507_s0 + $0xe4] sm:$0xf]  ;;  %v911_v53 = vshll.u32 %v15110_v46, 16 }
  0x76   :  { %4455 = vmatprep.subr.bf16.mxu0 %v15120_v59  ;;  %v810_v19 = vshll.u32 %v12863_v13, 16  ;;  %v808_v22 = vshrl.u32 %v12863_v13, 16  ;;  %v12867_v59 = vcombine.low %v60_v50, %v61_v54  ;;  %v16375_v46 = vld [vmem:[%s20507_s0 + $0x124] sm:$0xf] }
  0x77   :  { %v853_v3 = vrot.slane %v851_v58, 1  ;;  %v72_v58 = vld [vmem:[%s20507_s0 + $0xf0] sm:$0xf] }
  0x78   :  { %v812_v23 = vrot.slane %v810_v19, 1  ;;  %v856_v4 = vshrl.u32 %v12867_v59, 16 }
  0x79   :  { %4456 = vmatpush1.bf16.msra.mxu0 %v15118_v1  ;;  %v858_v1 = vshll.u32 %v12867_v59, 16 }
  0x7a   :  { %4457 = vmatprep.subr.bf16.mxu0 %v15127_v5  ;;  %v813_v30 = vor.u32 %v812_v23, %v808_v22  ;;  %v863_v5 = vshll.u32 %v15096_v62, 16  ;;  %v15103_v22 = vld [vmem:[%s20507_s0 + $0xb0] ss:$0 sps:$4 sm:$0x11]   ;;  %v877_v23 = vrot.slane %v875_v17, 1 }
  0x7b   :  { %v860_v6 = vrot.slane %v858_v1, 1  ;;  %v887_v29 = vshll.u32 %v15103_v22, 16  ;;  %v73_v62 = vld [vmem:[%s20507_s0 + $0xf4] sm:$0xf] }
  0x7c   :  { %4167 = vmatmul.mubr.bf16.gmra.mrb[20].mxu0 %v16179_v33  ;;  %v820_v33 = vshrl.u32 %v12864_v24, 16  ;;  %v818_v35 = vsel %vm710_vm0, %v813_v30, %v817_v31  ;;  %v865_v16 = vrot.slane %v863_v5, 1  ;;  %v16335_v17 = vld [vmem:[%s20507_s0 + $0x104] ss:$0 sps:$4 sm:$0x11]  }
  0x7d   :  { %4176 = vmatprep.mubr.bf16.mxu0 %v794_v11  ;;  %4458 = vmatpush1.bf16.msra.mxu0 %v15125_v10  ;;  %v64_v10 = vld [vmem:[%s20507_s0 + $0xa8] sm:$0xf]  ;;  %v861_v15 = vor.u32 %v860_v6, %v856_v4 }
  0x7e   :  { %4459 = vmatprep.subr.bf16.mxu0 %v15134_v27  ;;  %v825_v41 = vor.u32 %v824_v36, %v820_v33  ;;  %v15146_v11 = vld [vmem:[#allocation3 + $0x1d0] ss:$8 sps:$4 sm:$0xff]   ;;  %v12869_v18 = vcombine.low %v64_v10, %v65_v14  ;;  %v67_v27 = vld [vmem:[%s20507_s0 + $0xb8] sm:$0xf]  ;;  %v15155_v36 = vld [vmem:[#allocation3 + $0x1e4] ss:$8 sps:$4 sm:$0xff]  }
  0x7f   :  { %v12870_v31 = vcombine.low %v66_v25, %v67_v27  ;;  %v16327_v10 = vld [vmem:[%s20507_s0 + $0x100] sm:$0xf] }
  0x80   :  { %v830_v45 = vsel %vm710_vm0, %v825_v41, %v829_v42  ;;  %v880_v28 = vshrl.u32 %v12869_v18, 16  ;;  %v899_v41 = vshll.u32 %v15108_v32, 16  ;;  %v12871_v42 = vcombine.low %v68_v34, %v69_v38  ;;  %v78_v32 = vld [vmem:[%s20507_s0 + $0x114] sm:$0xf] }
  0x81   :  { %4460 = vmatpush1.bf16.msra.mxu0 %v15132_v26  ;;  %v892_v43 = vshrl.u32 %v12870_v31, 16 }
  0x82   :  { %4461 = vmatprep.subr.bf16.mxu0 %v15141_v52  ;;  %v901_v47 = vrot.slane %v899_v41, 1  ;;  %v904_v52 = vshrl.u32 %v12871_v42, 16 }
  0x84   :  { %4177 = vmatmul.mubr.bf16.gmra.mrb[24].mxu0 %v12861_v48  ;;  %v12866_v48 = vcombine.low %v58_v39, %v59_v40  ;;  %v889_v40 = vrot.slane %v887_v29, 1 }
  0x85   :  { %4186 = vmatprep.mubr.bf16.mxu0 %v806_v21  ;;  %4462 = vmatpush1.bf16.msra.mxu0 %v15139_v51  ;;  %v866_v21 = vsel %vm710_vm0, %v861_v15, %v865_v16  ;;  %v71_v51 = vld [vmem:[%s20507_s0 + $0xe8] sm:$0xf] }
  0x86   :  { %v846_v56 = vshll.u32 %v12866_v48, 16  ;;  %v844_v57 = vshrl.u32 %v12866_v48, 16  ;;  %4463 = vmatprep.subr.bf16.mxu0 %v15148_v12  ;;  %v12872_v55 = vcombine.low %v70_v49, %v71_v51  ;;  %v16383_v51 = vld [vmem:[%s20507_s0 + $0x128] ss:$0 sps:$4 sm:$0x11]  }
  0x88   :  { %v848_v61 = vrot.slane %v846_v56, 1  ;;  %v15115_v56 = vld [vmem:[%s20507_s0 + $0xec] ss:$0 sps:$4 sm:$0x11]  }
  0x89   :  { %4464 = vmatpush1.bf16.msra.mxu0 %v15146_v11  ;;  %v923_v1 = vshll.u32 %v15115_v56, 16  ;;  %v16391_v56 = vld [vmem:[%s20507_s0 + $0x130] sm:$0xf] }
  0x8a   :  { %v849_v2 = vor.u32 %v848_v61, %v844_v57  ;;  %4465 = vmatprep.subr.bf16.mxu0 %v15155_v36  ;;  %v918_v61 = vshll.u32 %v12872_v55, 16 }
  0x8b   :  { %v925_v6 = vrot.slane %v923_v1, 1 }
  0x8c   :  { %4187 = vmatmul.mubr.bf16.gmra.mrb[28].mxu0 %v12862_v63  ;;  %v62_v63 = vld [vmem:[%s20507_s0 + $0x9c] sm:$0xf]  ;;  %v854_v9 = vsel %vm710_vm0, %v849_v2, %v853_v3  ;;  %v12873_v2 = vcombine.low %v72_v58, %v73_v62  ;;  %v916_v3 = vshrl.u32 %v12872_v55, 16  ;;  %v920_v4 = vrot.slane %v918_v61, 1 }
  0x8d   :  { %4196 = vmatprep.mubr.bf16.mxu0 %v818_v35  ;;  %v12868_v7 = vcombine.low %v62_v63, %v63_v0  ;;  %v15153_v35 = vld [vmem:[#allocation3 + $0x1e0] ss:$8 sps:$4 sm:$0xff]   ;;  %v913_v0 = vrot.slane %v911_v53, 1  ;;  %v983_v61 = vshll.u32 %v16383_v51, 16 }
  0x8e   :  { %4466 = vmatpush1.bf16.msra.mxu0 %v15153_v35  ;;  %v930_v8 = vshll.u32 %v12873_v2, 16  ;;  %v921_v11 = vor.u32 %v920_v4, %v916_v3  ;;  %v928_v12 = vshrl.u32 %v12873_v2, 16  ;;  %v16399_v62 = vld [vmem:[%s20507_s0 + $0x134] ss:$0 sps:$4 sm:$0x11]  }
  0x8f   :  { %v868_v19 = vshrl.u32 %v12868_v7, 16  ;;  %v985_v1 = vrot.slane %v983_v61, 1  ;;  %v16407_v3 = vld [vmem:[%s20507_s0 + $0x13c] sm:$0xf] }
  0x90   :  { %v926_v16 = vsel %vm710_vm0, %v921_v11, %v925_v6  ;;  %v995_v6 = vshll.u32 %v16399_v62, 16 }
  0x94   :  { %4197 = vmatmul.mubr.bf16.gmra.mrb[32].mxu0 %v12863_v13  ;;  %v870_v13 = vshll.u32 %v12868_v7, 16 }
  0x95   :  { %4206 = vmatprep.mubr.bf16.mxu0 %v830_v45 }
  0x96   :  { %v872_v20 = vrot.slane %v870_v13, 1  ;;  %v932_v13 = vrot.slane %v930_v8, 1 }
  0x98   :  { %v873_v26 = vor.u32 %v872_v20, %v868_v19  ;;  %v76_v20 = vld [vmem:[%s20507_s0 + $0x108] sm:$0xf]  ;;  %v933_v22 = vor.u32 %v932_v13, %v928_v12  ;;  %v997_v12 = vrot.slane %v995_v6, 1  ;;  %v16415_v13 = vld [vmem:[%s20507_s0 + $0x140] ss:$0 sps:$4 sm:$0x11]  }
  0x99   :  { %v16487_v6 = vld [vmem:[%s20507_s0 + $0x178] sm:$0xf] }
  0x9a   :  { %v878_v33 = vsel %vm710_vm0, %v873_v26, %v877_v23 }
  0x9c   :  { %4207 = vmatmul.mubr.bf16.gmra.mrb[36].mxu0 %v12864_v24  ;;  %v882_v24 = vshll.u32 %v12869_v18, 16 }
  0x9d   :  { %4216 = vmatprep.mubr.bf16.mxu0 %v842_v60  ;;  %v15162_v60 = vld [vmem:[#allocation3 + $0x1f4] ss:$8 sps:$4 sm:$0xff]  }
  0x9e   :  { %v884_v30 = vrot.slane %v882_v24, 1  ;;  %4467 = vmatprep.subr.bf16.mxu0 %v15162_v60  ;;  %v947_v24 = vshll.u32 %v16335_v17, 16 }
  0xa0   :  { %v885_v39 = vor.u32 %v884_v30, %v880_v28  ;;  %v949_v29 = vrot.slane %v947_v24, 1  ;;  %v16351_v30 = vld [vmem:[%s20507_s0 + $0x110] ss:$0 sps:$4 sm:$0x11]  }
  0xa1   :  { %v16431_v24 = vld [vmem:[%s20507_s0 + $0x14c] ss:$0 sps:$4 sm:$0x11]  }
  0xa2   :  { %v890_v45 = vsel %vm710_vm0, %v885_v39, %v889_v40  ;;  %v16367_v40 = vld [vmem:[%s20507_s0 + $0x11c] ss:$0 sps:$4 sm:$0x11]  }
  0xa4   :  { %4217 = vmatmul.mubr.bf16.gmra.mrb[40].mxu0 %v12865_v37  ;;  %v894_v37 = vshll.u32 %v12870_v31, 16 }
  0xa5   :  { %4226 = vmatprep.mubr.bf16.mxu0 %v854_v9  ;;  %v74_v9 = vld [vmem:[%s20507_s0 + $0xfc] sm:$0xf] }
  0xa6   :  { %v896_v44 = vrot.slane %v894_v37, 1  ;;  %v12874_v15 = vcombine.low %v74_v9, %v16327_v10  ;;  %v959_v37 = vshll.u32 %v16351_v30, 16 }
  0xa8   :  { %v897_v50 = vor.u32 %v896_v44, %v892_v43  ;;  %v942_v19 = vshll.u32 %v12874_v15, 16  ;;  %v940_v26 = vshrl.u32 %v12874_v15, 16  ;;  %v80_v44 = vld [vmem:[%s20507_s0 + $0x120] sm:$0xf] }
  0xaa   :  { %v902_v57 = vsel %vm710_vm0, %v897_v50, %v901_v47  ;;  %v944_v27 = vrot.slane %v942_v19, 1  ;;  %v12877_v50 = vcombine.low %v80_v44, %v16375_v46 }
  0xac   :  { %4227 = vmatmul.mubr.bf16.gmra.mrb[44].mxu0 %v12866_v48  ;;  %v906_v48 = vshll.u32 %v12871_v42, 16  ;;  %v945_v34 = vor.u32 %v944_v27, %v940_v26 }
  0xad   :  { %4236 = vmatprep.mubr.bf16.mxu0 %v866_v21  ;;  %v16343_v21 = vld [vmem:[%s20507_s0 + $0x10c] sm:$0xf] }
  0xae   :  { %v908_v54 = vrot.slane %v906_v48, 1  ;;  %v12875_v25 = vcombine.low %v76_v20, %v16343_v21  ;;  %v950_v39 = vsel %vm710_vm0, %v945_v34, %v949_v29  ;;  %v971_v48 = vshll.u32 %v16367_v40, 16  ;;  %v16439_v29 = vld [vmem:[%s20507_s0 + $0x154] sm:$0xf] }
  0xb0   :  { %v909_v63 = vor.u32 %v908_v54, %v904_v52  ;;  %v952_v35 = vshrl.u32 %v12875_v25, 16  ;;  %v973_v53 = vrot.slane %v971_v48, 1  ;;  %v978_v54 = vshll.u32 %v12877_v50, 16 }
  0xb2   :  { %v914_v5 = vsel %vm710_vm0, %v909_v63, %v913_v0  ;;  %v980_v60 = vrot.slane %v978_v54, 1 }
  0xb4   :  { %4237 = vmatmul.mubr.bf16.gmra.mrb[48].mxu0 %v12867_v59  ;;  %v15160_v59 = vld [vmem:[#allocation3 + $0x1f0] ss:$8 sps:$4 sm:$0xff]  }
  0xb5   :  { %4246 = vmatprep.mubr.bf16.mxu0 %v878_v33  ;;  %4468 = vmatpush1.bf16.msra.mxu0 %v15160_v59  ;;  %v16359_v33 = vld [vmem:[%s20507_s0 + $0x118] sm:$0xf]  ;;  %v976_v59 = vshrl.u32 %v12877_v50, 16 }
  0xb6   :  { %v12876_v38 = vcombine.low %v78_v32, %v16359_v33 }
  0xb7   :  { %v981_v0 = vor.u32 %v980_v60, %v976_v59 }
  0xb8   :  { %v966_v41 = vshll.u32 %v12876_v38, 16  ;;  %v964_v43 = vshrl.u32 %v12876_v38, 16 }
  0xb9   :  { %v986_v8 = vsel %vm710_vm0, %v981_v0, %v985_v1  ;;  %v16479_v0 = vld [vmem:[%s20507_s0 + $0x170] ss:$0 sps:$4 sm:$0x11]  }
  0xba   :  { %v968_v47 = vrot.slane %v966_v41, 1 }
  0xbc   :  { %4247 = vmatmul.mubr.bf16.gmra.mrb[52].mxu0 %v12868_v7  ;;  %v16319_v7 = vld [vmem:[%s20507_s0 + $0xf8] ss:$0 sps:$4 sm:$0x11]   ;;  %v969_v52 = vor.u32 %v968_v47, %v964_v43  ;;  %v16455_v43 = vld [vmem:[%s20507_s0 + $0x160] sm:$0xf] }
  0xbd   :  { %4256 = vmatprep.mubr.bf16.mxu0 %v890_v45  ;;  %v935_v14 = vshll.u32 %v16319_v7, 16 }
  0xbe   :  { %v974_v58 = vsel %vm710_vm0, %v969_v52, %v973_v53  ;;  %v16463_v53 = vld [vmem:[%s20507_s0 + $0x164] ss:$0 sps:$4 sm:$0x11]  }
  0xbf   :  { %v937_v23 = vrot.slane %v935_v14, 1  ;;  %v1043_v61 = vshll.u32 %v16463_v53, 16 }
  0xc1   :  { %v938_v28 = vsel %vm710_vm0, %v933_v22, %v937_v23  ;;  %v1007_v22 = vshll.u32 %v16415_v13, 16 }
  0xc3   :  { %v1009_v26 = vrot.slane %v1007_v22, 1  ;;  %v96_v22 = vld [vmem:[%s20507_s0 + $0x180] sm:$0xf] }
  0xc4   :  { %4257 = vmatmul.mubr.bf16.gmra.mrb[56].mxu0 %v12869_v18  ;;  %v15170_v18 = vld [vmem:[#allocation3 + $0x204] ss:$8 sps:$4 sm:$0xff]  }
  0xc5   :  { %4266 = vmatprep.mubr.bf16.mxu0 %v902_v57  ;;  %4790 = vmatprep.subr.bf16.mxu0 %v15170_v18 }
  0xcc   :  { %4267 = vmatmul.mubr.bf16.gmra.mrb[60].mxu0 %v12870_v31  ;;  %v954_v31 = vshll.u32 %v12875_v25, 16 }
  0xcd   :  { %4276 = vmatprep.mubr.bf16.mxu0 %v914_v5 }
  0xce   :  { %v956_v36 = vrot.slane %v954_v31, 1 }
  0xd0   :  { %v957_v45 = vor.u32 %v956_v36, %v952_v35  ;;  %v1019_v36 = vshll.u32 %v16431_v24, 16 }
  0xd2   :  { %v1021_v41 = vrot.slane %v1019_v36, 1 }
  0xd4   :  { %4277 = vmatmul.mubr.bf16.gmra.mrb[64].mxu0 %v12871_v42  ;;  %v961_v42 = vrot.slane %v959_v37, 1  ;;  %v16447_v37 = vld [vmem:[%s20507_s0 + $0x158] ss:$0 sps:$4 sm:$0x11]  }
  0xd5   :  { %4286 = vmatprep.mubr.bf16.mxu0 %v926_v16  ;;  %v16423_v16 = vld [vmem:[%s20507_s0 + $0x148] sm:$0xf]  ;;  %v1031_v47 = vshll.u32 %v16447_v37, 16 }
  0xd6   :  { %v962_v49 = vsel %vm710_vm0, %v957_v45, %v961_v42  ;;  %v90_v42 = vld [vmem:[%s20507_s0 + $0x15c] sm:$0xf] }
  0xd7   :  { %v1033_v52 = vrot.slane %v1031_v47, 1 }
  0xdc   :  { %4287 = vmatmul.mubr.bf16.gmra.mrb[68].mxu0 %v12872_v55  ;;  %v82_v55 = vld [vmem:[%s20507_s0 + $0x12c] sm:$0xf] }
  0xdd   :  { %4296 = vmatprep.mubr.bf16.mxu0 %v938_v28  ;;  %v12878_v57 = vcombine.low %v82_v55, %v16391_v56  ;;  %v88_v28 = vld [vmem:[%s20507_s0 + $0x150] sm:$0xf]  ;;  %v92_v55 = vld [vmem:[%s20507_s0 + $0x168] sm:$0xf] }
  0xde   :  { %v12881_v31 = vcombine.low %v88_v28, %v16439_v29 }
  0xdf   :  { %v990_v63 = vshll.u32 %v12878_v57, 16  ;;  %v988_v4 = vshrl.u32 %v12878_v57, 16 }
  0xe0   :  { %v1024_v44 = vshrl.u32 %v12881_v31, 16 }
  0xe1   :  { %v992_v5 = vrot.slane %v990_v63, 1 }
  0xe3   :  { %v993_v11 = vor.u32 %v992_v5, %v988_v4  ;;  %v94_v5 = vld [vmem:[%s20507_s0 + $0x174] sm:$0xf] }
  0xe4   :  { %4297 = vmatmul.mubr.bf16.gmra.mrb[72].mxu0 %v12873_v2  ;;  %v84_v2 = vld [vmem:[%s20507_s0 + $0x138] sm:$0xf] }
  0xe5   :  { %4306 = vmatprep.mubr.bf16.mxu0 %v950_v39  ;;  %v12879_v9 = vcombine.low %v84_v2, %v16407_v3  ;;  %v998_v18 = vsel %vm710_vm0, %v993_v11, %v997_v12  ;;  %v1045_v2 = vrot.slane %v1043_v61, 1 }
  0xe7   :  { %v1002_v14 = vshll.u32 %v12879_v9, 16  ;;  %v1000_v19 = vshrl.u32 %v12879_v9, 16 }
  0xe9   :  { %v1004_v20 = vrot.slane %v1002_v14, 1  ;;  %v1055_v14 = vshll.u32 %v16479_v0, 16 }
  0xec   :  { %4307 = vmatmul.mubr.bf16.gmra.mrb[76].mxu0 %v12874_v15  ;;  %v86_v15 = vld [vmem:[%s20507_s0 + $0x144] sm:$0xf] }
  0xed   :  { %4316 = vmatprep.mubr.bf16.mxu0 %v962_v49  ;;  %v12880_v23 = vcombine.low %v86_v15, %v16423_v16  ;;  %v12882_v49 = vcombine.low %v90_v42, %v16455_v43  ;;  %v16495_v15 = vld [vmem:[%s20507_s0 + $0x17c] ss:$0 sps:$4 sm:$0x11]  }
  0xef   :  { %v1014_v27 = vshll.u32 %v12880_v23, 16  ;;  %v1012_v34 = vshrl.u32 %v12880_v23, 16  ;;  %v1038_v54 = vshll.u32 %v12882_v49, 16  ;;  %v1036_v59 = vshrl.u32 %v12882_v49, 16 }
  0xf1   :  { %v1016_v35 = vrot.slane %v1014_v27, 1  ;;  %v1040_v60 = vrot.slane %v1038_v54, 1  ;;  %v1067_v27 = vshll.u32 %v16495_v15, 16 }
  0xf3   :  { %v1017_v39 = vor.u32 %v1016_v35, %v1012_v34  ;;  %v1041_v1 = vor.u32 %v1040_v60, %v1036_v59  ;;  %v1069_v34 = vrot.slane %v1067_v27, 1  ;;  %v16511_v35 = vld [vmem:[%s20507_s0 + $0x188] ss:$0 sps:$4 sm:$0x11]   ;;  %v15871_v27 = vld [vmem:[%s20507_s0 + $0x10] sm:$0xf] }
  0xf4   :  { %4317 = vmatmul.mubr.bf16.gmra.mrb[80].mxu0 %v12875_v25  ;;  %v1005_v25 = vor.u32 %v1004_v20, %v1000_v19  ;;  %v1057_v20 = vrot.slane %v1055_v14, 1 }
  0xf5   :  { %4326 = vmatprep.mubr.bf16.mxu0 %v974_v58  ;;  %v1022_v48 = vsel %vm710_vm0, %v1017_v39, %v1021_v41  ;;  %v16519_v39 = vld [vmem:[%s20507_s0 + $0x190] sm:$0xf] }
  0xf6   :  { %v1010_v32 = vsel %vm710_vm0, %v1005_v25, %v1009_v26 }
  0xfc   :  { %4327 = vmatmul.mubr.bf16.gmra.mrb[84].mxu0 %v12876_v38  ;;  %v1026_v38 = vshll.u32 %v12881_v31, 16 }
  0xfd   :  { %4336 = vmatprep.mubr.bf16.mxu0 %v986_v8  ;;  %v12884_v8 = vcombine.low %v94_v5, %v16487_v6 }
  0xfe   :  { %v1028_v45 = vrot.slane %v1026_v38, 1  ;;  %v98_v38 = vld [vmem:[%s20507_s0 + $0x18c] sm:$0xf] }
  0xff   :  { %v1060_v25 = vshrl.u32 %v12884_v8, 16  ;;  %v12886_v47 = vcombine.low %v98_v38, %v16519_v39  ;;  %v12603_v38 = vld [vmem:[%s20507_s0 + $0x24] sm:$0xf] }
 0x104   :  { %4337 = vmatmul.mubr.bf16.gmra.mrb[88].mxu0 %v12877_v50  ;;  %v1029_v50 = vor.u32 %v1028_v45, %v1024_v44  ;;  %v1079_v45 = vshll.u32 %v16511_v35, 16 }
 0x105   :  { %4346 = vmatprep.mubr.bf16.mxu0 %v998_v18  ;;  %v1062_v18 = vshll.u32 %v12884_v8, 16 }
 0x106   :  { %v1034_v58 = vsel %vm710_vm0, %v1029_v50, %v1033_v52  ;;  %v16527_v50 = vld [vmem:[%s20507_s0 + $0x194] ss:$0 sps:$4 sm:$0x11]   ;;  %v1086_v52 = vshll.u32 %v12886_v47, 16 }
 0x107   :  { %v1064_v26 = vrot.slane %v1062_v18, 1  ;;  %v1091_v59 = vshll.u32 %v16527_v50, 16  ;;  %v12601_v18 = vld [vmem:[%s20507_s0 + $0x18] sm:$0xf] }
 0x109   :  { %v1093_v61 = vrot.slane %v1091_v59, 1  ;;  %v15874_v59 = vld [vmem:[%s20507_s0 + $0x20] ss:$0 sps:$4 sm:$0x11]  }
 0x10c   :  { %4347 = vmatmul.mubr.bf16.gmra.mrb[92].mxu0 %v12878_v57  ;;  %v16471_v57 = vld [vmem:[%s20507_s0 + $0x16c] sm:$0xf] }
 0x10d   :  { %4356 = vmatprep.mubr.bf16.mxu0 %v1010_v32  ;;  %v12883_v63 = vcombine.low %v92_v55, %v16471_v57  ;;  %v1065_v32 = vor.u32 %v1064_v26, %v1060_v25  ;;  %v1084_v55 = vshrl.u32 %v12886_v47, 16  ;;  %v15168_v25 = vld [vmem:[#allocation3 + $0x200] ss:$8 sps:$4 sm:$0xff]  }
 0x10f   :  { %v1050_v4 = vshll.u32 %v12883_v63, 16  ;;  %v1048_v11 = vshrl.u32 %v12883_v63, 16  ;;  %v1070_v41 = vsel %vm710_vm0, %v1065_v32, %v1069_v34  ;;  %v15872_v34 = vld [vmem:[%s20507_s0 + $0x14] ss:$0 sps:$4 sm:$0x11]  }
 0x111   :  { %v1052_v12 = vrot.slane %v1050_v4, 1  ;;  %v132_v4 = vld [vmem:[%s20507_s0] sm:$0xe] }
 0x113   :  { %v1053_v19 = vor.u32 %v1052_v12, %v1048_v11  ;;  %v15870_v11 = vld [vmem:[%s20507_s0 + $0x8] ss:$0 sps:$4 sm:$0x11]  }
 0x114   :  { %4357 = vmatmul.mubr.bf16.gmra.mrb[96].mxu0 %v12879_v9  ;;  %v1046_v9 = vsel %vm710_vm0, %v1041_v1, %v1045_v2  ;;  %v12599_v1 = vld [vmem:[%s20507_s0 + $0xc] sm:$0xf]  ;;  %v16538_v2 = vld [vmem:[%s20507_s0 + $0x10] sm:$0xf]  ;;  %v1225_v12 = vrot.slane %v15870_v11, 1 }
 0x115   :  { %4366 = vmatprep.mubr.bf16.mxu0 %v1022_v48  ;;  %v1058_v28 = vsel %vm710_vm0, %v1053_v19, %v1057_v20  ;;  %v16544_v5 = vcombine.low %v12599_v1, %v16538_v2  ;;  %v16559_v19 = vld [vmem:[%s20507_s0 + $0x1c] sm:$0xf]  ;;  %v133_v20 = vld [vmem:[%s20507_s0 + $0xc] sm:$0xe]  ;;  %v16603_v1 = vld [vmem:[%s20507_s0 + $0x34] sm:$0xf] }
 0x116   :  { %v16566_v26 = vcombine.low %v12601_v18, %v16559_v19  ;;  %v15204_v18 = vld [vmem:[#allocation3 + $0x240] ss:$8 sps:$4 sm:$0xff]  }
 0x11c   :  { %4367 = vmatmul.mubr.bf16.gmra.mrb[100].mxu0 %v12880_v23  ;;  %v16503_v23 = vld [vmem:[%s20507_s0 + $0x184] sm:$0xf] }
 0x11d   :  { %4376 = vmatprep.mubr.bf16.mxu0 %v1034_v58  ;;  %v1088_v58 = vrot.slane %v1086_v52, 1 }
 0x11f   :  { %v1089_v60 = vor.u32 %v1088_v58, %v1084_v55  ;;  %v15197_v55 = vld [vmem:[#allocation3 + $0x234] ss:$8 sps:$4 sm:$0xff]  }
 0x124   :  { %4377 = vmatmul.mubr.bf16.gmra.mrb[104].mxu0 %v12881_v31  ;;  %v12885_v31 = vcombine.low %v96_v22, %v16503_v23 }
 0x125   :  { %4386 = vmatprep.mubr.bf16.mxu0 %v1046_v9 }
 0x126   :  { %v1074_v36 = vshll.u32 %v12885_v31, 16  ;;  %v1072_v42 = vshrl.u32 %v12885_v31, 16 }
 0x128   :  { %v1076_v44 = vrot.slane %v1074_v36, 1  ;;  %v1228_v36 = vrot.slane %v15872_v34, 1  ;;  %v136_v34 = vld [vmem:[%s20507_s0 + $0x30] sm:$0xe] }
 0x12a   :  { %v1077_v48 = vor.u32 %v1076_v44, %v1072_v42  ;;  %v16581_v42 = vld [vmem:[%s20507_s0 + $0x28] sm:$0xf]  ;;  %v134_v44 = vld [vmem:[%s20507_s0 + $0x18] sm:$0xe] }
 0x12c   :  { %4387 = vmatmul.mubr.bf16.gmra.mrb[108].mxu0 %v12882_v49  ;;  %v1081_v49 = vrot.slane %v1079_v45, 1  ;;  %v15188_v45 = vld [vmem:[#allocation3 + $0x224] ss:$8 sps:$4 sm:$0xff]  }
 0x12d   :  { %4396 = vmatprep.mubr.bf16.mxu0 %v1058_v28  ;;  %v12920_v28 = vcombine.low %v133_v20, %v15871_v27  ;;  %v15215_v20 = vld [vmem:[#allocation3 + $0x254] ss:$8 sps:$4 sm:$0xff]  }
 0x12e   :  { %v1082_v54 = vsel %vm710_vm0, %v1077_v48, %v1081_v49  ;;  %v16588_v48 = vcombine.low %v12603_v38, %v16581_v42  ;;  %v15873_v49 = vld [vmem:[%s20507_s0 + $0x1c] sm:$0xf] }
 0x12f   :  { %v1227_v32 = vrot.slane %v12920_v28, 1  ;;  %v12921_v52 = vcombine.low %v134_v44, %v15873_v49  ;;  %v12607_v28 = vld [vmem:[%s20507_s0 + $0x3c] sm:$0xf]  ;;  %v15877_v44 = vld [vmem:[%s20507_s0 + $0x34] sm:$0xf] }
 0x130   :  { %v15233_v49 = vld [vmem:[#allocation3 + $0x274] ss:$8 sps:$4 sm:$0xff]  }
 0x131   :  { %v1230_v58 = vrot.slane %v12921_v52, 1 }
 0x134   :  { %4397 = vmatmul.mubr.bf16.gmra.mrb[112].mxu0 %v12883_v63  ;;  %v1094_v63 = vsel %vm710_vm0, %v1089_v60, %v1093_v61  ;;  %v1231_v60 = vrot.slane %v15874_v59, 1  ;;  %v12605_v61 = vld [vmem:[%s20507_s0 + $0x30] sm:$0xf]  ;;  %v15231_v59 = vld [vmem:[#allocation3 + $0x270] ss:$8 sps:$4 sm:$0xff]  }
 0x135   :  { %4406 = vmatprep.mubr.bf16.mxu0 %v1070_v41  ;;  %v15177_v41 = vld [vmem:[#allocation3 + $0x210] ss:$8 sps:$4 sm:$0xff]   ;;  %v16610_v11 = vcombine.low %v12605_v61, %v16603_v1  ;;  %v137_v61 = vld [vmem:[%s20507_s0 + $0x3c] sm:$0xe] }
 0x13c   :  { %4407 = vmatmul.mubr.bf16.gmra.mrb[116].mxu0 %v12884_v8  ;;  %v15869_v8 = vld [vmem:[%s20507_s0 + $0x4] sm:$0xf] }
 0x13d   :  { %4416 = vmatprep.mubr.bf16.mxu0 %v1082_v54  ;;  %v12919_v9 = vcombine.low %v132_v4, %v15869_v8  ;;  %v15186_v54 = vld [vmem:[#allocation3 + $0x220] ss:$8 sps:$4 sm:$0xff]   ;;  %v135_v4 = vld [vmem:[%s20507_s0 + $0x24] sm:$0xe]  ;;  %v15206_v8 = vld [vmem:[#allocation3 + $0x244] ss:$8 sps:$4 sm:$0xff]  }
 0x13f   :  { %v1224_v14 = vrot.slane %v12919_v9, 1  ;;  %v1232_v9 = vsel %vm1223_vm1, %v1230_v58, %v1231_v60  ;;  %v12609_v58 = vld [vmem:[%s20507_s0 + $0x48] sm:$0xf]  ;;  %v16647_v60 = vld [vmem:[%s20507_s0 + $0x4c] sm:$0xf] }
 0x141   :  { %v1226_v22 = vsel %vm1223_vm1, %v1224_v14, %v1225_v12  ;;  %v15875_v12 = vld [vmem:[%s20507_s0 + $0x28] sm:$0xf] }
 0x142   :  { %v12922_v14 = vcombine.low %v135_v4, %v15875_v12 }
 0x144   :  { %4417 = vmatmul.mubr.bf16.gmra.mrb[120].mxu0 %v12885_v31  ;;  %v15179_v31 = vld [vmem:[#allocation3 + $0x214] ss:$8 sps:$4 sm:$0xff]  }
 0x145   :  { %4426 = vmatprep.mubr.bf16.mxu0 %v1094_v63  ;;  %v15195_v63 = vld [vmem:[#allocation3 + $0x230] ss:$8 sps:$4 sm:$0xff]  }
 0x14c   :  { %4427 = vmatmul.mubr.bf16.gmra.mrb[124].mxu0 %v12886_v47  ;;  %v1229_v47 = vsel %vm1223_vm1, %v1227_v32, %v1228_v36  ;;  %v16625_v32 = vld [vmem:[%s20507_s0 + $0x40] sm:$0xf]  ;;  %v15224_v36 = vld [vmem:[#allocation3 + $0x264] ss:$8 sps:$4 sm:$0xff]  }
 0x14d   :  { %4469 = vmatprep.mubr.bf16.mxu0 %v16544_v5 }
 0x154   :  { %4470 = vmatmul.mubr.bf16.vlgmr.msra.gmra.mrb[0].mxu0 %v1226_v22  ;;  %v1233_v22 = vrot.slane %v12922_v14, 1  ;;  %v15240_v14 = vld [vmem:[#allocation3 + $0x280] ss:$8 sps:$4 sm:$0xff]  }
 0x155   :  { %4791 = vmatpush1.bf16.msra.mxu0 %v15168_v25  ;;  %4479 = vmatprep.mubr.bf16.mxu0 %v16566_v26  ;;  %v15876_v25 = vld [vmem:[%s20507_s0 + $0x2c] ss:$0 sps:$4 sm:$0x11]  }
 0x156   :  { %4792 = vmatprep.subr.bf16.mxu0 %v15179_v31  ;;  %v1234_v27 = vrot.slane %v15876_v25, 1  ;;  %v15213_v31 = vld [vmem:[#allocation3 + $0x250] ss:$8 sps:$4 sm:$0xff]  }
 0x158   :  { %v1235_v38 = vsel %vm1223_vm1, %v1233_v22, %v1234_v27  ;;  %v15880_v22 = vld [vmem:[%s20507_s0 + $0x44] ss:$0 sps:$4 sm:$0x11]   ;;  %v12611_v27 = vld [vmem:[%s20507_s0 + $0x54] sm:$0xf] }
 0x159   :  { %4793 = vmatpush1.bf16.msra.mxu0 %v15177_v41  ;;  %v16632_v41 = vcombine.low %v12607_v28, %v16625_v32  ;;  %v1240_v25 = vrot.slane %v15880_v22, 1  ;;  %v15249_v28 = vld [vmem:[#allocation3 + $0x290] ss:$8 sps:$4 sm:$0xff]   ;;  %v15884_v22 = vld [vmem:[%s20507_s0 + $0x5c] ss:$0 sps:$4 sm:$0x11]  }
 0x15a   :  { %4794 = vmatprep.subr.bf16.mxu0 %v15188_v45  ;;  %v12923_v45 = vcombine.low %v136_v34, %v15877_v44  ;;  %v138_v34 = vld [vmem:[%s20507_s0 + $0x48] sm:$0xe] }
 0x15c   :  { %4480 = vmatmul.mubr.bf16.gmra.mrb[4].mxu0 %v1229_v47  ;;  %v15222_v47 = vld [vmem:[#allocation3 + $0x260] ss:$8 sps:$4 sm:$0xff]   ;;  %v1236_v52 = vrot.slane %v12923_v45, 1  ;;  %v15881_v45 = vld [vmem:[%s20507_s0 + $0x4c] sm:$0xf] }
 0x15d   :  { %4489 = vmatprep.mubr.bf16.mxu0 %v16588_v48  ;;  %4795 = vmatpush1.bf16.msra.mxu0 %v15186_v54  ;;  %v15878_v54 = vld [vmem:[%s20507_s0 + $0x38] ss:$0 sps:$4 sm:$0x11]  }
 0x15e   :  { %4796 = vmatprep.subr.bf16.mxu0 %v15197_v55  ;;  %v1237_v55 = vrot.slane %v15878_v54, 1  ;;  %v15882_v54 = vld [vmem:[%s20507_s0 + $0x50] ss:$0 sps:$4 sm:$0x11]  }
 0x160   :  { %v1238_v4 = vsel %vm1223_vm1, %v1236_v52, %v1237_v55  ;;  %v1243_v55 = vrot.slane %v15882_v54, 1 }
 0x161   :  { %4797 = vmatpush1.bf16.msra.mxu0 %v15195_v63  ;;  %v15242_v63 = vld [vmem:[#allocation3 + $0x284] ss:$8 sps:$4 sm:$0xff]  }
 0x162   :  { %4798 = vmatprep.subr.bf16.mxu0 %v15206_v8  ;;  %v16654_v8 = vcombine.low %v12609_v58, %v16647_v60  ;;  %v12613_v58 = vld [vmem:[%s20507_s0 + $0x60] sm:$0xf] }
 0x164   :  { %4490 = vmatmul.mubr.bf16.gmra.mrb[8].mxu0 %v1232_v9  ;;  %v15879_v9 = vld [vmem:[%s20507_s0 + $0x40] sm:$0xf] }
 0x165   :  { %4499 = vmatprep.mubr.bf16.mxu0 %v16610_v11  ;;  %4799 = vmatpush1.bf16.msra.mxu0 %v15204_v18  ;;  %v12924_v12 = vcombine.low %v137_v61, %v15879_v9  ;;  %v15251_v18 = vld [vmem:[#allocation3 + $0x294] ss:$8 sps:$4 sm:$0xff]   ;;  %v139_v61 = vld [vmem:[%s20507_s0 + $0x54] sm:$0xe]  ;;  %v15883_v9 = vld [vmem:[%s20507_s0 + $0x58] sm:$0xf] }
 0x166   :  { %4800 = vmatprep.subr.bf16.mxu0 %v15215_v20 }
 0x167   :  { %v1239_v20 = vrot.slane %v12924_v12, 1  ;;  %v12926_v12 = vcombine.low %v139_v61, %v15883_v9  ;;  %v141_v61 = vld [vmem:[%s20507_s0 + $0x6c] sm:$0xe] }
 0x169   :  { %4801 = vmatpush1.bf16.msra.mxu0 %v15213_v31  ;;  %v16669_v31 = vld [vmem:[%s20507_s0 + $0x58] sm:$0xf] }
 0x16a   :  { %4802 = vmatprep.subr.bf16.mxu0 %v15224_v36  ;;  %v15260_v36 = vld [vmem:[#allocation3 + $0x2a4] ss:$8 sps:$4 sm:$0xff]   ;;  %v16676_v44 = vcombine.low %v12611_v27, %v16669_v31  ;;  %v12615_v27 = vld [vmem:[%s20507_s0 + $0x6c] sm:$0xf] }
 0x16c   :  { %4500 = vmatmul.mubr.bf16.gmra.mrb[12].mxu0 %v1235_v38  ;;  %v1241_v38 = vsel %vm1223_vm1, %v1239_v20, %v1240_v25  ;;  %v1245_v20 = vrot.slane %v12926_v12, 1  ;;  %v1246_v25 = vrot.slane %v15884_v22, 1  ;;  %v15887_v12 = vld [vmem:[%s20507_s0 + $0x70] sm:$0xf] }
 0x16d   :  { %4509 = vmatprep.mubr.bf16.mxu0 %v16632_v41  ;;  %4803 = vmatpush1.bf16.msra.mxu0 %v15222_v47  ;;  %v12925_v47 = vcombine.low %v138_v34, %v15881_v45  ;;  %v140_v34 = vld [vmem:[%s20507_s0 + $0x60] sm:$0xe]  ;;  %v15885_v45 = vld [vmem:[%s20507_s0 + $0x64] sm:$0xf] }
 0x16e   :  { %4804 = vmatprep.subr.bf16.mxu0 %v15233_v49  ;;  %v15258_v49 = vld [vmem:[#allocation3 + $0x2a0] ss:$8 sps:$4 sm:$0xff]  }
 0x16f   :  { %v1242_v52 = vrot.slane %v12925_v47, 1  ;;  %v12927_v47 = vcombine.low %v140_v34, %v15885_v45  ;;  %v12619_v34 = vld [vmem:[%s20507_s0 + $0x84] sm:$0xf]  ;;  %v142_v45 = vld [vmem:[%s20507_s0 + $0x78] sm:$0xe] }
 0x171   :  { %4805 = vmatpush1.bf16.msra.mxu0 %v15231_v59  ;;  %v16691_v59 = vld [vmem:[%s20507_s0 + $0x64] sm:$0xf] }
 0x172   :  { %4806 = vmatprep.subr.bf16.mxu0 %v15242_v63  ;;  %v1244_v63 = vsel %vm1223_vm1, %v1242_v52, %v1243_v55  ;;  %v15886_v52 = vld [vmem:[%s20507_s0 + $0x68] ss:$0 sps:$4 sm:$0x11]   ;;  %v12617_v55 = vld [vmem:[%s20507_s0 + $0x78] sm:$0xf] }
 0x173   :  { %v1249_v54 = vrot.slane %v15886_v52, 1  ;;  %v15889_v52 = vld [vmem:[%s20507_s0 + $0x7c] sm:$0xf] }
 0x174   :  { %4510 = vmatmul.mubr.bf16.gmra.mrb[16].mxu0 %v1238_v4  ;;  %v16698_v4 = vcombine.low %v12613_v58, %v16691_v59  ;;  %v16735_v58 = vld [vmem:[%s20507_s0 + $0x7c] sm:$0xf] }
 0x175   :  { %4519 = vmatprep.mubr.bf16.mxu0 %v16654_v8  ;;  %4807 = vmatpush1.bf16.msra.mxu0 %v15240_v14  ;;  %v15267_v14 = vld [vmem:[#allocation3 + $0x2b0] ss:$8 sps:$4 sm:$0xff]   ;;  %v16742_v9 = vcombine.low %v12617_v55, %v16735_v58 }
 0x176   :  { %4808 = vmatprep.subr.bf16.mxu0 %v15251_v18  ;;  %v15269_v18 = vld [vmem:[#allocation3 + $0x2b4] ss:$8 sps:$4 sm:$0xff]  }
 0x179   :  { %4809 = vmatpush1.bf16.msra.mxu0 %v15249_v28  ;;  %v16713_v28 = vld [vmem:[%s20507_s0 + $0x70] sm:$0xf] }
 0x17a   :  { %4810 = vmatprep.subr.bf16.mxu0 %v15260_v36  ;;  %v1247_v36 = vsel %vm1223_vm1, %v1245_v20, %v1246_v25  ;;  %v15278_v20 = vld [vmem:[#allocation3 + $0x2c4] ss:$8 sps:$4 sm:$0xff]  }
 0x17b   :  { %v15888_v25 = vld [vmem:[%s20507_s0 + $0x74] ss:$0 sps:$4 sm:$0x11]  }
 0x17c   :  { %4520 = vmatmul.mubr.bf16.gmra.mrb[20].mxu0 %v1241_v38  ;;  %v16720_v38 = vcombine.low %v12615_v27, %v16713_v28  ;;  %v1252_v27 = vrot.slane %v15888_v25, 1  ;;  %v15891_v25 = vld [vmem:[%s20507_s0 + $0x88] sm:$0xf] }
 0x17d   :  { %4529 = vmatprep.mubr.bf16.mxu0 %v16676_v44  ;;  %4811 = vmatpush1.bf16.msra.mxu0 %v15258_v49  ;;  %v1248_v49 = vrot.slane %v12927_v47, 1 }
 0x17e   :  { %4812 = vmatprep.subr.bf16.mxu0 %v15269_v18  ;;  %v15276_v18 = vld [vmem:[#allocation3 + $0x2c0] ss:$8 sps:$4 sm:$0xff]  }
 0x181   :  { %4813 = vmatpush1.bf16.msra.mxu0 %v15267_v14  ;;  %v12928_v14 = vcombine.low %v141_v61, %v15887_v12  ;;  %v15890_v61 = vld [vmem:[%s20507_s0 + $0x80] ss:$0 sps:$4 sm:$0x11]   ;;  %v12621_v12 = vld [vmem:[%s20507_s0 + $0x90] sm:$0xf] }
 0x182   :  { %4814 = vmatprep.subr.bf16.mxu0 %v15278_v20 }
 0x183   :  { %v1251_v22 = vrot.slane %v12928_v14, 1  ;;  %v16779_v14 = vld [vmem:[%s20507_s0 + $0x94] sm:$0xf] }
 0x184   :  { %4530 = vmatmul.mubr.bf16.gmra.mrb[24].mxu0 %v1244_v63  ;;  %v1250_v63 = vsel %vm1223_vm1, %v1248_v49, %v1249_v54  ;;  %v12929_v54 = vcombine.low %v142_v45, %v15889_v52  ;;  %v15287_v45 = vld [vmem:[#allocation3 + $0x2d4] ss:$8 sps:$4 sm:$0xff]  }
 0x185   :  { %4539 = vmatprep.mubr.bf16.mxu0 %v16698_v4  ;;  %4815 = vmatpush1.bf16.msra.mxu0 %v15276_v18  ;;  %v1253_v47 = vsel %vm1223_vm1, %v1251_v22, %v1252_v27  ;;  %v143_v18 = vld [vmem:[%s20507_s0 + $0x84] sm:$0xe]  ;;  %v16786_v22 = vcombine.low %v12621_v12, %v16779_v14  ;;  %v15892_v52 = vld [vmem:[%s20507_s0 + $0x8c] ss:$0 sps:$4 sm:$0x11]  }
 0x186   :  { %v1254_v55 = vrot.slane %v12929_v54, 1  ;;  %v12930_v27 = vcombine.low %v143_v18, %v15891_v25  ;;  %v1258_v54 = vrot.slane %v15892_v52, 1  ;;  %4816 = vmatprep.subr.bf16.mxu0 %v15287_v45  ;;  %v15894_v52 = vld [vmem:[%s20507_s0 + $0x98] ss:$0 sps:$4 sm:$0x11]  }
 0x187   :  { %20565 = vst [vmem:[#allocation9_spill] sm:$0xff] %v16786_v22  ;;  %v1261_v45 = vrot.slane %v15894_v52, 1  ;;  %v15296_v52 = vld [vmem:[#allocation3 + $0x2e4] ss:$8 sps:$4 sm:$0xff]  }
 0x18c   :  { %4540 = vmatmul.mubr.bf16.gmra.mrb[28].mxu0 %v1247_v36  ;;  %v16757_v36 = vld [vmem:[%s20507_s0 + $0x88] sm:$0xf] }
 0x18d   :  { %4549 = vmatprep.mubr.bf16.mxu0 %v16720_v38  ;;  %v16764_v49 = vcombine.low %v12619_v34, %v16757_v36  ;;  %v15285_v34 = vld [vmem:[#allocation3 + $0x2d0] ss:$8 sps:$4 sm:$0xff]  }
 0x18e   :  { %4817 = vmatpush1.bf16.msra.mxu0 %v15285_v34  ;;  %v12625_v34 = vld [vmem:[%s20507_s0 + $0xa8] sm:$0xf] }
 0x18f   :  { %4818 = vmatprep.subr.bf16.mxu0 %v15296_v52 }
 0x194   :  { %4550 = vmatmul.mubr.bf16.gmra.mrb[32].mxu0 %v1250_v63  ;;  %v1255_v63 = vrot.slane %v15890_v61, 1  ;;  %v16801_v61 = vld [vmem:[%s20507_s0 + $0xa0] sm:$0xf] }
 0x195   :  { %4559 = vmatprep.mubr.bf16.mxu0 %v16742_v9  ;;  %20566 = vst [vmem:[#allocation10_spill] sm:$0xff] %v16801_v61 }
 0x196   :  { %v1256_v20 = vsel %vm1223_vm1, %v1254_v55, %v1255_v63  ;;  %v12623_v55 = vld [vmem:[%s20507_s0 + $0x9c] sm:$0xf]  ;;  %v144_v63 = vld [vmem:[%s20507_s0 + $0x90] sm:$0xe] }
 0x197   :  { %v16808_v18 = vcombine.low %v12623_v55, %v16801_v61  ;;  %v15896_v61 = vld [vmem:[%s20507_s0 + $0xa4] ss:$0 sps:$4 sm:$0x11]  }
 0x199   :  { %20567 = vst [vmem:[#allocation11_spill] sm:$0xff] %v16808_v18 }
 0x19c   :  { %4560 = vmatmul.mubr.bf16.gmra.mrb[36].mxu0 %v1253_v47  ;;  %v1257_v47 = vrot.slane %v12930_v27, 1 }
 0x19d   :  { %4569 = vmatprep.mubr.bf16.mxu0 %v16764_v49 }
 0x19e   :  { %v1259_v12 = vsel %vm1223_vm1, %v1257_v47, %v1258_v54  ;;  %v16823_v47 = vld [vmem:[%s20507_s0 + $0xac] sm:$0xf]  ;;  %v145_v54 = vld [vmem:[%s20507_s0 + $0x9c] sm:$0xe] }
 0x19f   :  { %20568 = vst [vmem:[#allocation12_spill] sm:$0xff] %v16823_v47 }
 0x1a4   :  { %4570 = vmatmul.mubr.bf16.gmra.mrb[40].mxu0 %v1256_v20  ;;  %v15893_v20 = vld [vmem:[%s20507_s0 + $0x94] sm:$0xf] }
 0x1a5   :  { %4579 = vmatprep.mubr.bf16.mxu0 %v16786_v22  ;;  %v12931_v25 = vcombine.low %v144_v63, %v15893_v20  ;;  %v16830_v63 = vcombine.low %v12625_v34, %v16823_v47  ;;  %v1264_v22 = vrot.slane %v15896_v61, 1  ;;  %v146_v34 = vld [vmem:[%s20507_s0 + $0xa8] sm:$0xe]  ;;  %v15897_v61 = vld [vmem:[%s20507_s0 + $0xac] sm:$0xf] }
 0x1a7   :  { %v1260_v27 = vrot.slane %v12931_v25, 1  ;;  %20569 = vst [vmem:[#allocation13_spill] sm:$0xff] %v16830_v63  ;;  %v15294_v25 = vld [vmem:[#allocation3 + $0x2e0] ss:$8 sps:$4 sm:$0xff]  }
 0x1a8   :  { %4819 = vmatpush1.bf16.msra.mxu0 %v15294_v25  ;;  %v147_v25 = vld [vmem:[%s20507_s0 + $0xb4] sm:$0xe] }
 0x1a9   :  { %v1262_v55 = vsel %vm1223_vm1, %v1260_v27, %v1261_v45  ;;  %v12627_v27 = vld [vmem:[%s20507_s0 + $0xb4] sm:$0xf]  ;;  %v16845_v45 = vld [vmem:[%s20507_s0 + $0xb8] sm:$0xf] }
 0x1aa   :  { %20570 = vst [vmem:[#allocation14_spill] sm:$0xff] %v16845_v45 }
 0x1ac   :  { %4580 = vmatmul.mubr.bf16.gmra.mrb[44].mxu0 %v1259_v12  ;;  %v15895_v12 = vld [vmem:[%s20507_s0 + $0xa0] sm:$0xf] }
 0x1ad   :  { %4589 = vmatprep.mubr.bf16.mxu0 %v16808_v18  ;;  %v12932_v20 = vcombine.low %v145_v54, %v15895_v12  ;;  %v12933_v12 = vcombine.low %v146_v34, %v15897_v61  ;;  %v15303_v61 = vld [vmem:[#allocation3 + $0x2f0] ss:$8 sps:$4 sm:$0xff]  }
 0x1af   :  { %v1263_v18 = vrot.slane %v12932_v20, 1  ;;  %v1266_v20 = vrot.slane %v12933_v12, 1  ;;  %v15305_v12 = vld [vmem:[#allocation3 + $0x2f4] ss:$8 sps:$4 sm:$0xff]  }
 0x1b0   :  { %4820 = vmatprep.subr.bf16.mxu0 %v15305_v12 }
 0x1b1   :  { %v1265_v54 = vsel %vm1223_vm1, %v1263_v18, %v1264_v22  ;;  %v12629_v22 = vld [vmem:[%s20507_s0 + $0xc0] sm:$0xf]  ;;  %v16867_v18 = vld [vmem:[%s20507_s0 + $0xc4] sm:$0xf]  ;;  %4821 = vmatpush1.bf16.msra.mxu0 %v15303_v61 }
 0x1b2   :  { %v16874_v34 = vcombine.low %v12629_v22, %v16867_v18  ;;  %v148_v22 = vld [vmem:[%s20507_s0 + $0xd8] sm:$0xe]  ;;  %v149_v61 = vld [vmem:[%s20507_s0 + $0xe4] sm:$0xe] }
 0x1b4   :  { %4590 = vmatmul.mubr.bf16.gmra.mrb[48].mxu0 %v1262_v55  ;;  %v16852_v55 = vcombine.low %v12627_v27, %v16845_v45  ;;  %20572 = vst [vmem:[#allocation16_spill] sm:$0xff] %v16874_v34  ;;  %v15900_v45 = vld [vmem:[%s20507_s0 + $0xbc] ss:$0 sps:$4 sm:$0x11]  }
 0x1b5   :  { %4599 = vmatprep.mubr.bf16.mxu0 %v16830_v63  ;;  %v15898_v63 = vld [vmem:[%s20507_s0 + $0xb0] ss:$0 sps:$4 sm:$0x11]   ;;  %v1270_v47 = vrot.slane %v15900_v45, 1  ;;  %v15901_v45 = vld [vmem:[%s20507_s0 + $0xdc] sm:$0xf] }
 0x1b6   :  { %20571 = vst [vmem:[#allocation15_spill] sm:$0xff] %v16852_v55  ;;  %v1267_v52 = vrot.slane %v15898_v63, 1  ;;  %v15899_v63 = vld [vmem:[%s20507_s0 + $0xb8] sm:$0xf] }
 0x1b8   :  { %v1268_v27 = vsel %vm1223_vm1, %v1266_v20, %v1267_v52  ;;  %v12631_v20 = vld [vmem:[%s20507_s0 + $0xe4] sm:$0xf]  ;;  %v16889_v52 = vld [vmem:[%s20507_s0 + $0xe8] sm:$0xf] }
 0x1b9   :  { %20573 = vst [vmem:[#allocation17_spill] sm:$0xff] %v16889_v52 }
 0x1bc   :  { %4600 = vmatmul.mubr.bf16.gmra.mrb[52].mxu0 %v1265_v54  ;;  %v12934_v54 = vcombine.low %v147_v25, %v15899_v63  ;;  %v12935_v63 = vcombine.low %v148_v22, %v15901_v45  ;;  %v15312_v45 = vld [vmem:[#allocation3 + $0x304] ss:$8 sps:$4 sm:$0xff]  }
 0x1bd   :  { %4609 = vmatprep.mubr.bf16.mxu0 %v16852_v55  ;;  %5143 = vmatprep.subr.bf16.mxu0 %v15312_v45  ;;  %v12637_v45 = vld [vmem:[%s20507_s0 + $0x108] sm:$0xf] }
 0x1be   :  { %v1269_v55 = vrot.slane %v12934_v54, 1  ;;  %v1272_v54 = vrot.slane %v12935_v63, 1 }
 0x1c0   :  { %v1271_v25 = vsel %vm1223_vm1, %v1269_v55, %v1270_v47  ;;  %v12633_v47 = vld [vmem:[%s20507_s0 + $0xf0] sm:$0xf]  ;;  %v16911_v55 = vld [vmem:[%s20507_s0 + $0xf4] sm:$0xf] }
 0x1c1   :  { %v16918_v22 = vcombine.low %v12633_v47, %v16911_v55  ;;  %v150_v47 = vld [vmem:[%s20507_s0 + $0xf0] sm:$0xe] }
 0x1c3   :  { %20575 = vst [vmem:[#allocation19_spill] sm:$0xff] %v16918_v22 }
 0x1c4   :  { %4610 = vmatmul.mubr.bf16.gmra.mrb[56].mxu0 %v1268_v27  ;;  %v16896_v27 = vcombine.low %v12631_v20, %v16889_v52 }
 0x1c5   :  { %4619 = vmatprep.mubr.bf16.mxu0 %v16874_v34  ;;  %v15902_v34 = vld [vmem:[%s20507_s0 + $0xe0] ss:$0 sps:$4 sm:$0x11]  }
 0x1c6   :  { %20574 = vst [vmem:[#allocation18_spill] sm:$0xff] %v16896_v27  ;;  %v1273_v12 = vrot.slane %v15902_v34, 1  ;;  %v15903_v34 = vld [vmem:[%s20507_s0 + $0xe8] sm:$0xf] }
 0x1c8   :  { %v1274_v20 = vsel %vm1223_vm1, %v1272_v54, %v1273_v12  ;;  %v12635_v54 = vld [vmem:[%s20507_s0 + $0xfc] sm:$0xf]  ;;  %v16933_v12 = vld [vmem:[%s20507_s0 + $0x100] sm:$0xf] }
 0x1cc   :  { %4620 = vmatmul.mubr.bf16.gmra.mrb[60].mxu0 %v1271_v25  ;;  %v12936_v25 = vcombine.low %v149_v61, %v15903_v34 }
 0x1cd   :  { %4629 = vmatprep.mubr.bf16.mxu0 %v16896_v27  ;;  %v15904_v27 = vld [vmem:[%s20507_s0 + $0xec] ss:$0 sps:$4 sm:$0x11]  }
 0x1ce   :  { %v1275_v63 = vrot.slane %v12936_v25, 1  ;;  %v1276_v52 = vrot.slane %v15904_v27, 1  ;;  %v15905_v27 = vld [vmem:[%s20507_s0 + $0xf4] sm:$0xf] }
 0x1cf   :  { %v12937_v34 = vcombine.low %v150_v47, %v15905_v27  ;;  %v1282_v27 = vrot.slane %v16335_v17, 1 }
 0x1d0   :  { %v1277_v61 = vsel %vm1223_vm1, %v1275_v63, %v1276_v52  ;;  %v16953_v52 = vld [vmem:[%s20507_s0 + $0x10c] sm:$0xf]  ;;  %v151_v63 = vld [vmem:[%s20507_s0 + $0xfc] sm:$0xe] }
 0x1d1   :  { %v1278_v25 = vrot.slane %v12937_v34, 1  ;;  %v16960_v47 = vcombine.low %v12637_v45, %v16953_v52  ;;  %v12639_v34 = vld [vmem:[%s20507_s0 + $0x114] sm:$0xf] }
 0x1d4   :  { %4630 = vmatmul.mubr.bf16.gmra.mrb[64].mxu0 %v1274_v20  ;;  %v16940_v20 = vcombine.low %v12635_v54, %v16933_v12 }
 0x1d5   :  { %4639 = vmatprep.mubr.bf16.mxu0 %v16918_v22  ;;  %v1279_v22 = vrot.slane %v16319_v7, 1  ;;  %v12938_v7 = vcombine.low %v151_v63, %v16327_v10  ;;  %v1285_v63 = vrot.slane %v16351_v30, 1 }
 0x1d6   :  { %20576 = vst [vmem:[#allocation20_spill] sm:$0xff] %v16940_v20 }
 0x1d7   :  { %v1280_v54 = vsel %vm1223_vm1, %v1278_v25, %v1279_v22  ;;  %v152_v22 = vld [vmem:[%s20507_s0 + $0x108] sm:$0xe] }
 0x1d8   :  { %v12939_v17 = vcombine.low %v152_v22, %v16343_v21  ;;  %v1288_v22 = vrot.slane %v16367_v40, 1 }
 0x1da   :  { %v1284_v45 = vrot.slane %v12939_v17, 1  ;;  %v17007_v17 = vld [vmem:[%s20507_s0 + $0x130] sm:$0xf] }
 0x1dc   :  { %4640 = vmatmul.mubr.bf16.gmra.mrb[68].mxu0 %v1277_v61  ;;  %v1281_v61 = vrot.slane %v12938_v7, 1  ;;  %v16989_v7 = vld [vmem:[%s20507_s0 + $0x124] sm:$0xf]  ;;  %v1286_v21 = vsel %vm1223_vm1, %v1284_v45, %v1285_v63  ;;  %v154_v45 = vld [vmem:[%s20507_s0 + $0x120] sm:$0xe] }
 0x1dd   :  { %4649 = vmatprep.mubr.bf16.mxu0 %v16940_v20  ;;  %v16971_v20 = vld [vmem:[%s20507_s0 + $0x118] sm:$0xf]  ;;  %v12941_v40 = vcombine.low %v154_v45, %v16375_v46  ;;  %v1294_v45 = vrot.slane %v16399_v62, 1 }
 0x1de   :  { %v1283_v10 = vsel %vm1223_vm1, %v1281_v61, %v1282_v27  ;;  %v16978_v25 = vcombine.low %v12639_v34, %v16971_v20  ;;  %v153_v61 = vld [vmem:[%s20507_s0 + $0x114] sm:$0xe] }
 0x1df   :  { %v12940_v30 = vcombine.low %v153_v61, %v16359_v33  ;;  %v1291_v61 = vrot.slane %v16383_v51, 1 }
 0x1e1   :  { %v1287_v34 = vrot.slane %v12940_v30, 1  ;;  %v17025_v30 = vld [vmem:[%s20507_s0 + $0x13c] sm:$0xf] }
 0x1e3   :  { %v1289_v33 = vsel %vm1223_vm1, %v1287_v34, %v1288_v22  ;;  %v155_v34 = vld [vmem:[%s20507_s0 + $0x12c] sm:$0xe] }
 0x1e4   :  { %4650 = vmatmul.mubr.bf16.gmra.mrb[72].mxu0 %v1280_v54  ;;  %v12641_v54 = vld [vmem:[%s20507_s0 + $0x120] sm:$0xf]  ;;  %v12942_v51 = vcombine.low %v155_v34, %v16391_v56  ;;  %v1297_v34 = vrot.slane %v16415_v13, 1 }
 0x1e5   :  { %4659 = vmatprep.mubr.bf16.mxu0 %v16960_v47  ;;  %v16996_v27 = vcombine.low %v12641_v54, %v16989_v7  ;;  %v1290_v54 = vrot.slane %v12941_v40, 1  ;;  %v17043_v40 = vld [vmem:[%s20507_s0 + $0x148] sm:$0xf] }
 0x1e7   :  { %v1292_v46 = vsel %vm1223_vm1, %v1290_v54, %v1291_v61  ;;  %v156_v54 = vld [vmem:[%s20507_s0 + $0x138] sm:$0xe] }
 0x1e8   :  { %v12943_v62 = vcombine.low %v156_v54, %v16407_v3  ;;  %v1300_v54 = vrot.slane %v16431_v24, 1 }
 0x1ec   :  { %4660 = vmatmul.mubr.bf16.gmra.mrb[76].mxu0 %v1283_v10  ;;  %v12643_v10 = vld [vmem:[%s20507_s0 + $0x12c] sm:$0xf] }
 0x1ed   :  { %4669 = vmatprep.mubr.bf16.mxu0 %v16978_v25  ;;  %v17014_v63 = vcombine.low %v12643_v10, %v17007_v17  ;;  %v1293_v10 = vrot.slane %v12942_v51, 1  ;;  %v17061_v51 = vld [vmem:[%s20507_s0 + $0x154] sm:$0xf] }
 0x1ef   :  { %v1295_v56 = vsel %vm1223_vm1, %v1293_v10, %v1294_v45  ;;  %v157_v10 = vld [vmem:[%s20507_s0 + $0x144] sm:$0xe] }
 0x1f0   :  { %v12944_v13 = vcombine.low %v157_v10, %v16423_v16  ;;  %v1303_v10 = vrot.slane %v16447_v37, 1 }
 0x1f4   :  { %4670 = vmatmul.mubr.bf16.gmra.mrb[80].mxu0 %v1286_v21  ;;  %v12645_v21 = vld [vmem:[%s20507_s0 + $0x138] sm:$0xf] }
 0x1f5   :  { %4679 = vmatprep.mubr.bf16.mxu0 %v16996_v27  ;;  %v17032_v22 = vcombine.low %v12645_v21, %v17025_v30  ;;  %v1296_v21 = vrot.slane %v12943_v62, 1  ;;  %v12652_v62 = vld [vmem:[%s20507_s0 + $0x160] sm:$0xf] }
 0x1f7   :  { %v1298_v3 = vsel %vm1223_vm1, %v1296_v21, %v1297_v34  ;;  %v158_v21 = vld [vmem:[%s20507_s0 + $0x150] sm:$0xe] }
 0x1fc   :  { %4680 = vmatmul.mubr.bf16.gmra.mrb[84].mxu0 %v1289_v33  ;;  %v12647_v33 = vld [vmem:[%s20507_s0 + $0x144] sm:$0xf] }
 0x1fd   :  { %4689 = vmatprep.mubr.bf16.mxu0 %v17014_v63  ;;  %v17050_v61 = vcombine.low %v12647_v33, %v17043_v40  ;;  %v1299_v33 = vrot.slane %v12944_v13, 1  ;;  %v12654_v13 = vld [vmem:[%s20507_s0 + $0x16c] sm:$0xf] }
 0x1ff   :  { %v1301_v16 = vsel %vm1223_vm1, %v1299_v33, %v1300_v54  ;;  %v159_v33 = vld [vmem:[%s20507_s0 + $0x15c] sm:$0xe] }
 0x204   :  { %4690 = vmatmul.mubr.bf16.gmra.mrb[88].mxu0 %v1292_v46  ;;  %v12649_v46 = vld [vmem:[%s20507_s0 + $0x150] sm:$0xf] }
 0x205   :  { %4699 = vmatprep.mubr.bf16.mxu0 %v17032_v22  ;;  %v17068_v45 = vcombine.low %v12649_v46, %v17061_v51  ;;  %v12945_v46 = vcombine.low %v158_v21, %v16439_v29  ;;  %v12655_v21 = vld [vmem:[%s20507_s0 + $0x174] sm:$0xf] }
 0x207   :  { %v1302_v24 = vrot.slane %v12945_v46, 1  ;;  %v160_v46 = vld [vmem:[%s20507_s0 + $0x168] sm:$0xe] }
 0x209   :  { %v1304_v29 = vsel %vm1223_vm1, %v1302_v24, %v1303_v10  ;;  %v12947_v10 = vcombine.low %v160_v46, %v16471_v57  ;;  %v162_v46 = vld [vmem:[%s20507_s0 + $0x180] sm:$0xe] }
 0x20c   :  { %4700 = vmatmul.mubr.bf16.gmra.mrb[92].mxu0 %v1295_v56  ;;  %v12651_v56 = vld [vmem:[%s20507_s0 + $0x15c] sm:$0xf] }
 0x20d   :  { %4709 = vmatprep.mubr.bf16.mxu0 %v17050_v61  ;;  %v17083_v34 = vcombine.low %v12651_v56, %v12652_v62  ;;  %v12946_v56 = vcombine.low %v159_v33, %v16455_v43  ;;  %v1306_v62 = vrot.slane %v16463_v53, 1  ;;  %v1308_v53 = vrot.slane %v12947_v10, 1  ;;  %v12658_v33 = vld [vmem:[%s20507_s0 + $0x184] sm:$0xf] }
 0x20e   :  { %v12949_v10 = vcombine.low %v162_v46, %v16503_v23  ;;  %v12695_v23 = vld [vmem:[%s20507_s0 + $0xc] sm:$0xe] }
 0x20f   :  { %v1305_v37 = vrot.slane %v12946_v56, 1 }
 0x211   :  { %v1307_v43 = vsel %vm1223_vm1, %v1305_v37, %v1306_v62  ;;  %v1312_v62 = vrot.slane %v16495_v15, 1  ;;  %v1314_v15 = vrot.slane %v12949_v10, 1 }
 0x214   :  { %4710 = vmatmul.mubr.bf16.gmra.mrb[96].mxu0 %v1298_v3  ;;  %v12653_v3 = vld [vmem:[%s20507_s0 + $0x168] sm:$0xf] }
 0x215   :  { %4719 = vmatprep.mubr.bf16.mxu0 %v17068_v45  ;;  %v17098_v54 = vcombine.low %v12653_v3, %v12654_v13  ;;  %v1309_v3 = vrot.slane %v16479_v0, 1  ;;  %v12657_v13 = vld [vmem:[%s20507_s0 + $0x180] sm:$0xf] }
 0x216   :  { %v17128_v56 = vcombine.low %v12657_v13, %v12658_v33  ;;  %v12662_v13 = vld [vmem:[%s20507_s0 + $0x19c] sm:$0xf]  ;;  %v163_v33 = vld [vmem:[%s20507_s0 + $0x18c] sm:$0xe] }
 0x217   :  { %v1310_v57 = vsel %vm1223_vm1, %v1308_v53, %v1309_v3  ;;  %v1315_v53 = vrot.slane %v16511_v35, 1  ;;  %v12661_v3 = vld [vmem:[%s20507_s0 + $0x198] sm:$0xf]  ;;  %v12950_v35 = vcombine.low %v163_v33, %v16519_v39  ;;  %v1655_v33 = vshll.u32 %v16566_v26, 16 }
 0x218   :  { %v12696_v39 = vld [vmem:[%s20507_s0 + $0x18] sm:$0xe] }
 0x21c   :  { %4720 = vmatmul.mubr.bf16.gmra.mrb[100].mxu0 %v1301_v16  ;;  %v12656_v16 = vld [vmem:[%s20507_s0 + $0x178] sm:$0xf] }
 0x21d   :  { %4729 = vmatprep.mubr.bf16.mxu0 %v17083_v34  ;;  %v17113_v24 = vcombine.low %v12655_v21, %v12656_v16  ;;  %v12659_v21 = vld [vmem:[%s20507_s0 + $0x18c] sm:$0xf]  ;;  %v12660_v16 = vld [vmem:[%s20507_s0 + $0x190] sm:$0xf] }
 0x224   :  { %4730 = vmatmul.mubr.bf16.gmra.mrb[104].mxu0 %v1304_v29  ;;  %v161_v29 = vld [vmem:[%s20507_s0 + $0x174] sm:$0xe] }
 0x225   :  { %4739 = vmatprep.mubr.bf16.mxu0 %v17098_v54  ;;  %v12948_v37 = vcombine.low %v161_v29, %v16487_v6  ;;  %v1316_v29 = vsel %vm1223_vm1, %v1314_v15, %v1315_v53 }
 0x227   :  { %v1311_v0 = vrot.slane %v12948_v37, 1  ;;  %v13015_v37 = vcombine.low %v12695_v23, %v16538_v2  ;;  %v1641_v2 = vshrl.u32 %v16544_v5, 16 }
 0x229   :  { %v1313_v6 = vsel %vm1223_vm1, %v1311_v0, %v1312_v62  ;;  %v15309_v0 = vld [vmem:[%s20507_s0 + $0x14] ss:$0 sps:$4 sm:$0x11]   ;;  %v1643_v62 = vshll.u32 %v16544_v5, 16  ;;  %v2152_v46 = vrot.slane %v13015_v37, 1 }
 0x22a   :  { %v1648_v53 = vshll.u32 %v15309_v0, 16  ;;  %v12697_v37 = vld [vmem:[%s20507_s0 + $0x24] sm:$0xe] }
 0x22b   :  { %v1645_v10 = vrot.slane %v1643_v62, 1  ;;  %v1653_v62 = vshrl.u32 %v16566_v26, 16 }
 0x22c   :  { %4740 = vmatmul.mubr.bf16.gmra.mrb[108].mxu0 %v1307_v43  ;;  %v17143_v43 = vcombine.low %v12659_v21, %v12660_v16  ;;  %v1317_v21 = vrot.slane %v12950_v35, 1  ;;  %v1318_v16 = vrot.slane %v16527_v50, 1  ;;  %v15313_v50 = vld [vmem:[%s20507_s0 + $0x20] ss:$0 sps:$4 sm:$0x11]  }
 0x22d   :  { %4749 = vmatprep.mubr.bf16.mxu0 %v17113_v24  ;;  %v1646_v23 = vor.u32 %v1645_v10, %v1641_v2  ;;  %v2156_v5 = vrot.slane %v15313_v50, 1  ;;  %v15317_v2 = vld [vmem:[#allocation3 + $0x314] ss:$8 sps:$4 sm:$0xff]   ;;  %v1667_v10 = vshll.u32 %v16588_v48, 16 }
 0x22e   :  { %v1319_v15 = vsel %vm1223_vm1, %v1317_v21, %v1318_v16  ;;  %v1657_v21 = vrot.slane %v1655_v33, 1  ;;  %v1660_v16 = vshll.u32 %v15313_v50, 16  ;;  %v15322_v50 = vld [vmem:[#allocation3 + $0x324] ss:$8 sps:$4 sm:$0xff]  }
 0x234   :  { %4750 = vmatmul.mubr.bf16.gmra.mrb[112].mxu0 %v1310_v57  ;;  %v17161_v57 = vcombine.low %v12661_v3, %v12662_v13  ;;  %v13016_v3 = vcombine.low %v12696_v39, %v16559_v19  ;;  %v15314_v39 = vld [vmem:[%s20507_s0 + $0x2c] ss:$0 sps:$4 sm:$0x11]  }
 0x235   :  { %4759 = vmatprep.mubr.bf16.mxu0 %v17128_v56 }
 0x236   :  { %v2155_v35 = vrot.slane %v13016_v3, 1  ;;  %v15315_v3 = vld [vmem:[#allocation3 + $0x310] ss:$8 sps:$4 sm:$0xff]  }
 0x23c   :  { %4760 = vmatmul.mubr.bf16.gmra.mrb[116].mxu0 %v1313_v6  ;;  %v2153_v6 = vrot.slane %v15309_v0, 1  ;;  %v15310_v0 = vld [vmem:[#allocation3 + $0x300] ss:$8 sps:$4 sm:$0xff]  }
 0x23d   :  { %4769 = vmatprep.mubr.bf16.mxu0 %v17143_v43 }
 0x23e   :  { %v2154_v13 = vsel %vm1223_vm1, %v2152_v46, %v2153_v6  ;;  %v13017_v46 = vcombine.low %v12697_v37, %v16581_v42  ;;  %v2157_v6 = vsel %vm1223_vm1, %v2155_v35, %v2156_v5  ;;  %v12698_v42 = vld [vmem:[%s20507_s0 + $0x30] sm:$0xe]  ;;  %v1672_v35 = vshll.u32 %v15314_v39, 16 }
 0x23f   :  { %v15320_v5 = vld [vmem:[#allocation3 + $0x320] ss:$8 sps:$4 sm:$0xff]   ;;  %v13018_v37 = vcombine.low %v12698_v42, %v16603_v1  ;;  %v15332_v1 = vld [vmem:[#allocation3 + $0x344] ss:$8 sps:$4 sm:$0xff]  }
 0x240   :  { %v2158_v26 = vrot.slane %v13017_v46, 1  ;;  %v15325_v46 = vld [vmem:[#allocation3 + $0x330] ss:$8 sps:$4 sm:$0xff]   ;;  %v15319_v42 = vld [vmem:[%s20507_s0 + $0x44] ss:$0 sps:$4 sm:$0x11]  }
 0x244   :  { %4770 = vmatmul.mubr.bf16.gmra.mrb[120].mxu0 %v1316_v29  ;;  %v1650_v29 = vrot.slane %v1648_v53, 1  ;;  %v1662_v53 = vrot.slane %v1660_v16, 1 }
 0x245   :  { %4779 = vmatprep.mubr.bf16.mxu0 %v17161_v57 }
 0x246   :  { %v1651_v19 = vsel %vm710_vm0, %v1646_v23, %v1650_v29  ;;  %v1665_v23 = vshrl.u32 %v16588_v48, 16  ;;  %v1669_v29 = vrot.slane %v1667_v10, 1  ;;  %v1674_v48 = vrot.slane %v1672_v35, 1  ;;  %v15335_v35 = vld [vmem:[#allocation3 + $0x350] ss:$8 sps:$4 sm:$0xff]  }
 0x248   :  { %v1670_v16 = vor.u32 %v1669_v29, %v1665_v23  ;;  %v1691_v23 = vshll.u32 %v16632_v41, 16 }
 0x24a   :  { %v1675_v10 = vsel %vm710_vm0, %v1670_v16, %v1674_v48  ;;  %v1696_v16 = vshll.u32 %v15319_v42, 16  ;;  %v15340_v48 = vld [vmem:[#allocation3 + $0x360] ss:$8 sps:$4 sm:$0xff]  }
 0x24c   :  { %4780 = vmatmul.mubr.bf16.gmra.mrb[124].mxu0 %v1319_v15  ;;  %v1658_v15 = vor.u32 %v1657_v21, %v1653_v62  ;;  %v15327_v62 = vld [vmem:[#allocation3 + $0x334] ss:$8 sps:$4 sm:$0xff]   ;;  %v1679_v21 = vshll.u32 %v16610_v11, 16 }
 0x24d   :  { %4822 = vmatprep.mubr.bf16.mxu0 %v2154_v13  ;;  %v2159_v13 = vrot.slane %v15314_v39, 1 }
 0x24e   :  { %v1663_v33 = vsel %vm710_vm0, %v1658_v15, %v1662_v53  ;;  %v1677_v15 = vshrl.u32 %v16610_v11, 16  ;;  %v1681_v53 = vrot.slane %v1679_v21, 1  ;;  %v1693_v21 = vrot.slane %v1691_v23, 1  ;;  %v15350_v23 = vld [vmem:[#allocation3 + $0x380] ss:$8 sps:$4 sm:$0xff]  }
 0x250   :  { %v1682_v29 = vor.u32 %v1681_v53, %v1677_v15  ;;  %v15345_v15 = vld [vmem:[#allocation3 + $0x370] ss:$8 sps:$4 sm:$0xff]  }
 0x254   :  { %4823 = vmatmul.mubr.bf16.vlgmr.msra.gmra.mrb[0].mxu0 %v1651_v19  ;;  %v2160_v19 = vsel %vm1223_vm1, %v2158_v26, %v2159_v13  ;;  %v15330_v26 = vld [vmem:[#allocation3 + $0x340] ss:$8 sps:$4 sm:$0xff]  }
 0x255   :  { %5144 = vmatpush1.bf16.msra.mxu0 %v15310_v0  ;;  %4832 = vmatprep.mubr.bf16.mxu0 %v2157_v6  ;;  %v15318_v0 = vld [vmem:[%s20507_s0 + $0x38] ss:$0 sps:$4 sm:$0x11]   ;;  %v2161_v6 = vrot.slane %v13018_v37, 1  ;;  %v2165_v37 = vrot.slane %v15319_v42, 1 }
 0x256   :  { %5145 = vmatprep.subr.bf16.mxu0 %v15317_v2  ;;  %v2162_v39 = vrot.slane %v15318_v0, 1  ;;  %v12699_v2 = vld [vmem:[%s20507_s0 + $0x3c] sm:$0xe] }
 0x257   :  { %v13019_v13 = vcombine.low %v12699_v2, %v16625_v32  ;;  %v15342_v32 = vld [vmem:[#allocation3 + $0x364] ss:$8 sps:$4 sm:$0xff]   ;;  %v1703_v2 = vshll.u32 %v16654_v8, 16 }
 0x259   :  { %5146 = vmatpush1.bf16.msra.mxu0 %v15315_v3  ;;  %v1684_v3 = vshll.u32 %v15318_v0, 16  ;;  %v1705_v42 = vrot.slane %v1703_v2, 1 }
 0x25a   :  { %5147 = vmatprep.subr.bf16.mxu0 %v15322_v50  ;;  %v2163_v50 = vsel %vm1223_vm1, %v2161_v6, %v2162_v39  ;;  %v15323_v39 = vld [vmem:[%s20507_s0 + $0x50] ss:$0 sps:$4 sm:$0x11]  }
 0x25b   :  { %v1686_v11 = vrot.slane %v1684_v3, 1  ;;  %v2168_v3 = vrot.slane %v15323_v39, 1 }
 0x25c   :  { %4833 = vmatmul.mubr.bf16.gmra.mrb[4].mxu0 %v1663_v33  ;;  %v15337_v33 = vld [vmem:[#allocation3 + $0x354] ss:$8 sps:$4 sm:$0xff]  }
 0x25d   :  { %4842 = vmatprep.mubr.bf16.mxu0 %v2160_v19  ;;  %5148 = vmatpush1.bf16.msra.mxu0 %v15320_v5  ;;  %v2164_v5 = vrot.slane %v13019_v13, 1  ;;  %v12700_v19 = vld [vmem:[%s20507_s0 + $0x48] sm:$0xe]  ;;  %v1687_v0 = vsel %vm710_vm0, %v1682_v29, %v1686_v11 }
 0x25e   :  { %5149 = vmatprep.subr.bf16.mxu0 %v15327_v62  ;;  %v1689_v62 = vshrl.u32 %v16632_v41, 16  ;;  %v1698_v41 = vrot.slane %v1696_v16, 1 }
 0x25f   :  { %v2166_v6 = vsel %vm1223_vm1, %v2164_v5, %v2165_v37  ;;  %v15357_v5 = vld [vmem:[#allocation3 + $0x394] ss:$8 sps:$4 sm:$0xff]   ;;  %v1715_v37 = vshll.u32 %v16676_v44, 16 }
 0x261   :  { %5150 = vmatpush1.bf16.msra.mxu0 %v15325_v46  ;;  %v13020_v46 = vcombine.low %v12700_v19, %v16647_v60  ;;  %v15352_v60 = vld [vmem:[#allocation3 + $0x384] ss:$8 sps:$4 sm:$0xff]   ;;  %v15355_v19 = vld [vmem:[#allocation3 + $0x390] ss:$8 sps:$4 sm:$0xff]  }
 0x262   :  { %5151 = vmatprep.subr.bf16.mxu0 %v15332_v1  ;;  %v15347_v1 = vld [vmem:[#allocation3 + $0x374] ss:$8 sps:$4 sm:$0xff]  }
 0x263   :  { %v2167_v53 = vrot.slane %v13020_v46, 1  ;;  %v1717_v46 = vrot.slane %v1715_v37, 1 }
 0x264   :  { %4843 = vmatmul.mubr.bf16.gmra.mrb[8].mxu0 %v1675_v10  ;;  %v1694_v10 = vor.u32 %v1693_v21, %v1689_v62  ;;  %v12702_v21 = vld [vmem:[%s20507_s0 + $0x60] sm:$0xe] }
 0x265   :  { %4852 = vmatprep.mubr.bf16.mxu0 %v2163_v50  ;;  %5152 = vmatpush1.bf16.msra.mxu0 %v15330_v26  ;;  %v12701_v26 = vld [vmem:[%s20507_s0 + $0x54] sm:$0xe]  ;;  %v1701_v50 = vshrl.u32 %v16654_v8, 16  ;;  %v2169_v11 = vsel %vm1223_vm1, %v2167_v53, %v2168_v3 }
 0x266   :  { %5153 = vmatprep.subr.bf16.mxu0 %v15337_v33  ;;  %v1699_v13 = vsel %vm710_vm0, %v1694_v10, %v1698_v41  ;;  %v1708_v33 = vshll.u32 %v15323_v39, 16  ;;  %v13021_v29 = vcombine.low %v12701_v26, %v16669_v31  ;;  %v15362_v31 = vld [vmem:[#allocation3 + $0x3a4] ss:$8 sps:$4 sm:$0xff]   ;;  %v15360_v39 = vld [vmem:[#allocation3 + $0x3a0] ss:$8 sps:$4 sm:$0xff]   ;;  %v1727_v41 = vshll.u32 %v16698_v4, 16 }
 0x267   :  { %v15328_v10 = vld [vmem:[%s20507_s0 + $0x68] ss:$0 sps:$4 sm:$0x11]   ;;  %v1725_v26 = vshrl.u32 %v16698_v4, 16 }
 0x268   :  { %v1710_v8 = vrot.slane %v1708_v33, 1  ;;  %v2174_v3 = vrot.slane %v15328_v10, 1 }
 0x269   :  { %5154 = vmatpush1.bf16.msra.mxu0 %v15335_v35  ;;  %v15324_v35 = vld [vmem:[%s20507_s0 + $0x5c] ss:$0 sps:$4 sm:$0x11]  }
 0x26a   :  { %5155 = vmatprep.subr.bf16.mxu0 %v15342_v32  ;;  %v1706_v32 = vor.u32 %v1705_v42, %v1701_v50  ;;  %v2171_v62 = vrot.slane %v15324_v35, 1  ;;  %v1732_v50 = vshll.u32 %v15328_v10, 16 }
 0x26c   :  { %4853 = vmatmul.mubr.bf16.gmra.mrb[12].mxu0 %v1687_v0  ;;  %v2170_v0 = vrot.slane %v13021_v29, 1  ;;  %v1711_v16 = vsel %vm710_vm0, %v1706_v32, %v1710_v8  ;;  %v15365_v29 = vld [vmem:[#allocation3 + $0x3b0] ss:$8 sps:$4 sm:$0xff]   ;;  %v1734_v37 = vrot.slane %v1732_v50, 1 }
 0x26d   :  { %4862 = vmatprep.mubr.bf16.mxu0 %v2166_v6  ;;  %5156 = vmatpush1.bf16.msra.mxu0 %v15340_v48  ;;  %v1713_v48 = vshrl.u32 %v16676_v44, 16  ;;  %v1720_v6 = vshll.u32 %v15324_v35, 16  ;;  %v1739_v35 = vshll.u32 %v16720_v38, 16 }
 0x26e   :  { %5157 = vmatprep.subr.bf16.mxu0 %v15347_v1  ;;  %v13022_v1 = vcombine.low %v12702_v21, %v16691_v59  ;;  %v2172_v2 = vsel %vm1223_vm1, %v2170_v0, %v2171_v62  ;;  %v12703_v59 = vld [vmem:[%s20507_s0 + $0x6c] sm:$0xe] }
 0x26f   :  { %v1722_v53 = vrot.slane %v1720_v6, 1  ;;  %v13023_v42 = vcombine.low %v12703_v59, %v16713_v28  ;;  %v12704_v28 = vld [vmem:[%s20507_s0 + $0x78] sm:$0xe]  ;;  %v1741_v0 = vrot.slane %v1739_v35, 1  ;;  %v15372_v59 = vld [vmem:[#allocation3 + $0x3c4] ss:$8 sps:$4 sm:$0xff]  }
 0x270   :  { %v2173_v44 = vrot.slane %v13022_v1, 1 }
 0x271   :  { %5158 = vmatpush1.bf16.msra.mxu0 %v15345_v15  ;;  %v1718_v15 = vor.u32 %v1717_v46, %v1713_v48  ;;  %v2176_v32 = vrot.slane %v13023_v42, 1  ;;  %v1751_v48 = vshll.u32 %v16742_v9, 16 }
 0x272   :  { %5159 = vmatprep.subr.bf16.mxu0 %v15352_v60  ;;  %v2175_v33 = vsel %vm1223_vm1, %v2173_v44, %v2174_v3  ;;  %v15334_v44 = vld [vmem:[%s20507_s0 + $0x8c] ss:$0 sps:$4 sm:$0x11]   ;;  %v15370_v3 = vld [vmem:[#allocation3 + $0x3c0] ss:$8 sps:$4 sm:$0xff]  }
 0x273   :  { %v1723_v60 = vsel %vm710_vm0, %v1718_v15, %v1722_v53  ;;  %v1753_v10 = vrot.slane %v1751_v48, 1 }
 0x274   :  { %4863 = vmatmul.mubr.bf16.gmra.mrb[16].mxu0 %v1699_v13  ;;  %v1729_v13 = vrot.slane %v1727_v41, 1 }
 0x275   :  { %4872 = vmatprep.mubr.bf16.mxu0 %v2169_v11  ;;  %5160 = vmatpush1.bf16.msra.mxu0 %v15350_v23  ;;  %v15329_v23 = vld [vmem:[%s20507_s0 + $0x74] ss:$0 sps:$4 sm:$0x11]   ;;  %v15367_v11 = vld [vmem:[#allocation3 + $0x3b4] ss:$8 sps:$4 sm:$0xff]  }
 0x276   :  { %5161 = vmatprep.subr.bf16.mxu0 %v15357_v5  ;;  %v1730_v5 = vor.u32 %v1729_v13, %v1725_v26  ;;  %v2177_v4 = vrot.slane %v15329_v23, 1  ;;  %v1744_v62 = vshll.u32 %v15329_v23, 16 }
 0x278   :  { %v1735_v8 = vsel %vm710_vm0, %v1730_v5, %v1734_v37  ;;  %v2178_v21 = vsel %vm1223_vm1, %v2176_v32, %v2177_v4  ;;  %v1746_v6 = vrot.slane %v1744_v62, 1  ;;  %v15338_v5 = vld [vmem:[%s20507_s0 + $0x98] ss:$0 sps:$4 sm:$0x11]   ;;  %v20577_v37 = vld [vmem:[#allocation9_spill] sm:$0xff] }
 0x279   :  { %5162 = vmatpush1.bf16.msra.mxu0 %v15355_v19  ;;  %v1737_v19 = vshrl.u32 %v16720_v38, 16  ;;  %v12705_v38 = vld [vmem:[%s20507_s0 + $0x84] sm:$0xe]  ;;  %v1775_v32 = vshll.u32 %v20577_v37, 16 }
 0x27a   :  { %5163 = vmatprep.subr.bf16.mxu0 %v15362_v31  ;;  %v13024_v31 = vcombine.low %v12704_v28, %v16735_v58  ;;  %v13025_v15 = vcombine.low %v12705_v38, %v16757_v36  ;;  %v12706_v36 = vld [vmem:[%s20507_s0 + $0x90] sm:$0xe] }
 0x27b   :  { %v1742_v46 = vor.u32 %v1741_v0, %v1737_v19  ;;  %v2186_v19 = vrot.slane %v15338_v5, 1  ;;  %v1773_v0 = vshrl.u32 %v20577_v37, 16  ;;  %v1777_v62 = vrot.slane %v1775_v32, 1 }
 0x27c   :  { %4873 = vmatmul.mubr.bf16.gmra.mrb[20].mxu0 %v1711_v16  ;;  %v15333_v16 = vld [vmem:[%s20507_s0 + $0x80] ss:$0 sps:$4 sm:$0x11]   ;;  %v2182_v50 = vrot.slane %v13025_v15, 1  ;;  %v12708_v15 = vld [vmem:[%s20507_s0 + $0xa8] sm:$0xe] }
 0x27d   :  { %4882 = vmatprep.mubr.bf16.mxu0 %v2172_v2  ;;  %5164 = vmatpush1.bf16.msra.mxu0 %v15360_v39  ;;  %v2179_v39 = vrot.slane %v13024_v31, 1  ;;  %v2180_v1 = vrot.slane %v15333_v16, 1  ;;  %v1747_v58 = vsel %vm710_vm0, %v1742_v46, %v1746_v6  ;;  %v1749_v2 = vshrl.u32 %v16742_v9, 16  ;;  %v15339_v46 = vld [vmem:[%s20507_s0 + $0xa4] ss:$0 sps:$4 sm:$0x11]  }
 0x27e   :  { %5165 = vmatprep.subr.bf16.mxu0 %v15367_v11  ;;  %v1756_v41 = vshll.u32 %v15333_v16, 16  ;;  %v2183_v9 = vrot.slane %v15334_v44, 1  ;;  %v13026_v11 = vcombine.low %v12706_v36, %v16779_v14  ;;  %v1780_v31 = vshll.u32 %v15338_v5, 16  ;;  %v15375_v6 = vld [vmem:[#allocation3 + $0x3d0] ss:$8 sps:$4 sm:$0xff]  }
 0x27f   :  { %v2181_v53 = vsel %vm1223_vm1, %v2179_v39, %v2180_v1  ;;  %v1754_v26 = vor.u32 %v1753_v10, %v1749_v2  ;;  %v15377_v39 = vld [vmem:[#allocation3 + $0x3d4] ss:$8 sps:$4 sm:$0xff]  }
 0x280   :  { %v1758_v13 = vrot.slane %v1756_v41, 1  ;;  %v2184_v35 = vsel %vm1223_vm1, %v2182_v50, %v2183_v9  ;;  %v20579_v1 = vld [vmem:[#allocation11_spill] sm:$0xff]  ;;  %v1782_v2 = vrot.slane %v1780_v31, 1  ;;  %v2189_v41 = vrot.slane %v15339_v46, 1  ;;  %v20581_v9 = vld [vmem:[#allocation13_spill] sm:$0xff] }
 0x281   :  { %5166 = vmatpush1.bf16.msra.mxu0 %v15365_v29  ;;  %v1768_v29 = vshll.u32 %v15334_v44, 16  ;;  %v1787_v38 = vshll.u32 %v20579_v1, 16  ;;  %v1785_v44 = vshrl.u32 %v20579_v1, 16  ;;  %v15343_v50 = vld [vmem:[%s20507_s0 + $0xb0] ss:$0 sps:$4 sm:$0x11]  }
 0x282   :  { %5167 = vmatprep.subr.bf16.mxu0 %v15372_v59  ;;  %v1759_v42 = vsel %vm710_vm0, %v1754_v26, %v1758_v13  ;;  %v1792_v59 = vshll.u32 %v15339_v46, 16  ;;  %v1799_v36 = vshll.u32 %v20581_v9, 16  ;;  %v1797_v5 = vshrl.u32 %v20581_v9, 16  ;;  %v12710_v46 = vld [vmem:[%s20507_s0 + $0xc0] sm:$0xe]  ;;  %v20585_v9 = vld [vmem:[#allocation17_spill] sm:$0xff] }
 0x283   :  { %v1770_v28 = vrot.slane %v1768_v29, 1  ;;  %v2192_v29 = vrot.slane %v15343_v50, 1  ;;  %v1804_v32 = vshll.u32 %v15343_v50, 16 }
 0x284   :  { %4883 = vmatmul.mubr.bf16.gmra.mrb[24].mxu0 %v1723_v60  ;;  %v1763_v60 = vshll.u32 %v16764_v49, 16  ;;  %v1801_v37 = vrot.slane %v1799_v36, 1 }
 0x285   :  { %4892 = vmatprep.mubr.bf16.mxu0 %v2175_v33  ;;  %5168 = vmatpush1.bf16.msra.mxu0 %v15370_v3  ;;  %v1761_v33 = vshrl.u32 %v16764_v49, 16  ;;  %v12707_v49 = vld [vmem:[%s20507_s0 + $0x9c] sm:$0xe]  ;;  %v1789_v3 = vrot.slane %v1787_v38, 1 }
 0x286   :  { %v1765_v23 = vrot.slane %v1763_v60, 1  ;;  %5169 = vmatprep.subr.bf16.mxu0 %v15377_v39  ;;  %v20580_v60 = vld [vmem:[#allocation12_spill] sm:$0xff]  ;;  %v1802_v31 = vor.u32 %v1801_v37, %v1797_v5 }
 0x287   :  { %v13028_v26 = vcombine.low %v12708_v15, %v20580_v60  ;;  %v12711_v60 = vld [vmem:[%s20507_s0 + $0xe4] sm:$0xe] }
 0x288   :  { %v1766_v4 = vor.u32 %v1765_v23, %v1761_v33  ;;  %v1794_v33 = vrot.slane %v1792_v59, 1  ;;  %v13031_v36 = vcombine.low %v12711_v60, %v20585_v9 }
 0x289   :  { %5170 = vmatpush1.bf16.msra.mxu0 %v15375_v6  ;;  %v2191_v23 = vrot.slane %v13028_v26, 1 }
 0x28a   :  { %v1771_v14 = vsel %vm710_vm0, %v1766_v4, %v1770_v28  ;;  %v20582_v4 = vld [vmem:[#allocation14_spill] sm:$0xff] }
 0x28c   :  { %4893 = vmatmul.mubr.bf16.gmra.mrb[28].mxu0 %v1735_v8  ;;  %v2185_v8 = vrot.slane %v13026_v11, 1  ;;  %v12709_v11 = vld [vmem:[%s20507_s0 + $0xb4] sm:$0xe] }
 0x28d   :  { %4902 = vmatprep.mubr.bf16.mxu0 %v2178_v21  ;;  %v20578_v21 = vld [vmem:[#allocation10_spill] sm:$0xff]  ;;  %v13029_v28 = vcombine.low %v12709_v11, %v20582_v4 }
 0x28e   :  { %v13027_v16 = vcombine.low %v12707_v49, %v20578_v21  ;;  %v2187_v48 = vsel %vm1223_vm1, %v2185_v8, %v2186_v19  ;;  %v2193_v8 = vsel %vm1223_vm1, %v2191_v23, %v2192_v29  ;;  %v15344_v19 = vld [vmem:[%s20507_s0 + $0xbc] ss:$0 sps:$4 sm:$0x11]   ;;  %v15380_v49 = vld [vmem:[#allocation3 + $0x3e0] ss:$8 sps:$4 sm:$0xff]   ;;  %v1806_v21 = vrot.slane %v1804_v32, 1 }
 0x28f   :  { %v1816_v38 = vshll.u32 %v15344_v19, 16  ;;  %v15385_v23 = vld [vmem:[#allocation3 + $0x3f0] ss:$8 sps:$4 sm:$0xff]   ;;  %v15387_v29 = vld [vmem:[#allocation3 + $0x3f4] ss:$8 sps:$4 sm:$0xff]   ;;  %v20586_v11 = vld [vmem:[#allocation18_spill] sm:$0xff] }
 0x290   :  { %v2188_v10 = vrot.slane %v13027_v16, 1  ;;  %v2194_v16 = vrot.slane %v13029_v28, 1  ;;  %v1807_v6 = vsel %vm710_vm0, %v1802_v31, %v1806_v21  ;;  %v2200_v32 = vrot.slane %v13031_v36, 1  ;;  %v12712_v28 = vld [vmem:[%s20507_s0 + $0xf0] sm:$0xe]  ;;  %v20587_v21 = vld [vmem:[#allocation19_spill] sm:$0xff] }
 0x291   :  { %v15353_v31 = vld [vmem:[%s20507_s0 + $0xf8] ss:$0 sps:$4 sm:$0x11]  }
 0x292   :  { %v2190_v13 = vsel %vm1223_vm1, %v2188_v10, %v2189_v41  ;;  %v15348_v10 = vld [vmem:[%s20507_s0 + $0xc8] ss:$0 sps:$4 sm:$0x11]  }
 0x293   :  { %v20584_v41 = vld [vmem:[#allocation16_spill] sm:$0xff]  ;;  %v2198_v59 = vrot.slane %v15348_v10, 1  ;;  %v1828_v50 = vshll.u32 %v15348_v10, 16 }
 0x294   :  { %4903 = vmatmul.mubr.bf16.gmra.mrb[32].mxu0 %v1747_v58  ;;  %v1778_v58 = vor.u32 %v1777_v62, %v1773_v0  ;;  %v20583_v0 = vld [vmem:[#allocation15_spill] sm:$0xff]  ;;  %v1823_v15 = vshll.u32 %v20584_v41, 16  ;;  %v1821_v26 = vshrl.u32 %v20584_v41, 16 }
 0x295   :  { %4912 = vmatprep.mubr.bf16.mxu0 %v2181_v53  ;;  %v1811_v62 = vshll.u32 %v20583_v0, 16  ;;  %v1809_v39 = vshrl.u32 %v20583_v0, 16  ;;  %v1830_v37 = vrot.slane %v1828_v50, 1  ;;  %v13032_v0 = vcombine.low %v12712_v28, %v16911_v55 }
 0x296   :  { %v1783_v53 = vsel %vm710_vm0, %v1778_v58, %v1782_v2  ;;  %v13030_v58 = vcombine.low %v12710_v46, %v16867_v18  ;;  %v1869_v28 = vshrl.u32 %v16960_v47, 16 }
 0x297   :  { %v1813_v1 = vrot.slane %v1811_v62, 1 }
 0x29c   :  { %4913 = vmatmul.mubr.bf16.gmra.mrb[36].mxu0 %v1759_v42  ;;  %v1790_v42 = vor.u32 %v1789_v3, %v1785_v44  ;;  %v1818_v44 = vrot.slane %v1816_v38, 1  ;;  %v2197_v3 = vrot.slane %v13030_v58, 1  ;;  %v1845_v38 = vshrl.u32 %v20587_v21, 16 }
 0x29d   :  { %4922 = vmatprep.mubr.bf16.mxu0 %v2184_v35 }
 0x29e   :  { %v1795_v35 = vsel %vm710_vm0, %v1790_v42, %v1794_v33  ;;  %v2199_v42 = vsel %vm1223_vm1, %v2197_v3, %v2198_v59  ;;  %v15349_v33 = vld [vmem:[%s20507_s0 + $0xec] ss:$0 sps:$4 sm:$0x11]  }
 0x29f   :  { %v2201_v4 = vrot.slane %v15349_v33, 1  ;;  %v20588_v3 = vld [vmem:[#allocation20_spill] sm:$0xff] }
 0x2a0   :  { %v1859_v59 = vshll.u32 %v20588_v3, 16  ;;  %v1857_v9 = vshrl.u32 %v20588_v3, 16 }
 0x2a1   :  { %v2202_v62 = vsel %vm1223_vm1, %v2200_v32, %v2201_v4  ;;  %v12715_v4 = vld [vmem:[%s20507_s0 + $0x114] sm:$0xe] }
 0x2a2   :  { %v1861_v36 = vrot.slane %v1859_v59, 1 }
 0x2a4   :  { %4923 = vmatmul.mubr.bf16.gmra.mrb[40].mxu0 %v1771_v14  ;;  %v15382_v14 = vld [vmem:[#allocation3 + $0x3e4] ss:$8 sps:$4 sm:$0xff]  }
 0x2a5   :  { %4932 = vmatprep.mubr.bf16.mxu0 %v2187_v48  ;;  %v2195_v48 = vrot.slane %v15344_v19, 1  ;;  %5171 = vmatprep.subr.bf16.mxu0 %v15382_v14  ;;  %v1833_v19 = vshrl.u32 %v20586_v11, 16  ;;  %v1840_v14 = vshll.u32 %v15349_v33, 16 }
 0x2a6   :  { %5172 = vmatpush1.bf16.msra.mxu0 %v15380_v49 }
 0x2a7   :  { %v2196_v2 = vsel %vm1223_vm1, %v2194_v16, %v2195_v48  ;;  %5173 = vmatprep.subr.bf16.mxu0 %v15387_v29  ;;  %v1847_v16 = vshll.u32 %v20587_v21, 16  ;;  %v1842_v46 = vrot.slane %v1840_v14, 1  ;;  %v15358_v29 = vld [vmem:[%s20507_s0 + $0x110] ss:$0 sps:$4 sm:$0x11]  }
 0x2a8   :  { %v2210_v32 = vrot.slane %v15358_v29, 1 }
 0x2a9   :  { %v1849_v58 = vrot.slane %v1847_v16, 1 }
 0x2aa   :  { %5174 = vmatpush1.bf16.msra.mxu0 %v15385_v23 }
 0x2ab   :  { %v1850_v60 = vor.u32 %v1849_v58, %v1845_v38  ;;  %v15363_v38 = vld [vmem:[%s20507_s0 + $0x128] ss:$0 sps:$4 sm:$0x11]   ;;  %v1895_v58 = vshll.u32 %v16996_v27, 16 }
 0x2ac   :  { %4933 = vmatmul.mubr.bf16.gmra.mrb[44].mxu0 %v1783_v53  ;;  %v1814_v53 = vor.u32 %v1813_v1, %v1809_v39  ;;  %v2204_v39 = vrot.slane %v15353_v31, 1  ;;  %v12713_v1 = vld [vmem:[%s20507_s0 + $0xfc] sm:$0xe]  ;;  %v1900_v59 = vshll.u32 %v15363_v38, 16 }
 0x2ad   :  { %4942 = vmatprep.mubr.bf16.mxu0 %v2190_v13  ;;  %v1825_v13 = vrot.slane %v1823_v15, 1  ;;  %v13033_v10 = vcombine.low %v12713_v1, %v16933_v12  ;;  %v15354_v15 = vld [vmem:[%s20507_s0 + $0x104] ss:$0 sps:$4 sm:$0x11]   ;;  %v12714_v12 = vld [vmem:[%s20507_s0 + $0x108] sm:$0xe] }
 0x2ae   :  { %v1819_v18 = vsel %vm710_vm0, %v1814_v53, %v1818_v44  ;;  %v17368_v53 = vld [vmem:[#allocation3 + $0x400] ss:$8 sps:$4 sm:$0xff]   ;;  %v15393_v44 = vld [vmem:[#allocation3 + $0x404] ss:$8 sps:$4 sm:$0xff]   ;;  %v13034_v33 = vcombine.low %v12714_v12, %v16953_v52  ;;  %v1897_v3 = vrot.slane %v1895_v58, 1  ;;  %v1943_v58 = vshll.u32 %v17068_v45, 16 }
 0x2af   :  { %v1826_v5 = vor.u32 %v1825_v13, %v1821_v26  ;;  %v2206_v26 = vrot.slane %v13033_v10, 1  ;;  %v2207_v13 = vrot.slane %v15354_v15, 1  ;;  %5496 = vmatprep.subr.bf16.mxu0 %v15393_v44  ;;  %13896 = vmatprep.subr.bf16.mxu1 %v15393_v44  ;;  %v1893_v44 = vshrl.u32 %v16996_v27, 16  ;;  %v17417_v12 = vld [vmem:[#allocation3 + $0x414] ss:$8 sps:$4 sm:$0xff]  }
 0x2b0   :  { %13904 = vmatpush1.bf16.msra.mxu1 %v17368_v53  ;;  %v1902_v27 = vrot.slane %v1900_v59, 1 }
 0x2b1   :  { %v2208_v23 = vsel %vm1223_vm1, %v2206_v26, %v2207_v13  ;;  %v15364_v26 = vld [vmem:[%s20507_s0 + $0x134] ss:$0 sps:$4 sm:$0x11]   ;;  %v17415_v13 = vld [vmem:[#allocation3 + $0x410] ss:$8 sps:$4 sm:$0xff]   ;;  %13897 = vmatprep.subr.bf16.mxu1 %v17417_v12 }
 0x2b4   :  { %4943 = vmatmul.mubr.bf16.gmra.mrb[48].mxu0 %v1795_v35  ;;  %v1835_v35 = vshll.u32 %v20586_v11, 16  ;;  %v1871_v11 = vshll.u32 %v16960_v47, 16  ;;  %v12716_v47 = vld [vmem:[%s20507_s0 + $0x120] sm:$0xe]  ;;  %13905 = vmatpush1.bf16.msra.mxu1 %v17415_v13 }
 0x2b5   :  { %4952 = vmatprep.mubr.bf16.mxu0 %v2193_v8  ;;  %v1831_v8 = vsel %vm710_vm0, %v1826_v5, %v1830_v37  ;;  %v2209_v37 = vrot.slane %v13034_v33, 1  ;;  %v13036_v1 = vcombine.low %v12716_v47, %v16989_v7 }
 0x2b6   :  { %v1837_v49 = vrot.slane %v1835_v35, 1  ;;  %v1862_v35 = vor.u32 %v1861_v36, %v1857_v9  ;;  %v1898_v9 = vor.u32 %v1897_v3, %v1893_v44  ;;  %v15906_v3 = vld [vmem:[%s20507_s0 + $0x160] sm:$0xf] }
 0x2b7   :  { %v2211_v14 = vsel %vm1223_vm1, %v2209_v37, %v2210_v32  ;;  %v15368_v37 = vld [vmem:[%s20507_s0 + $0x140] ss:$0 sps:$4 sm:$0x11]   ;;  %v1919_v32 = vshll.u32 %v17032_v22, 16 }
 0x2b8   :  { %v1838_v48 = vor.u32 %v1837_v49, %v1833_v19  ;;  %v1876_v19 = vshll.u32 %v15358_v29, 16  ;;  %v13035_v49 = vcombine.low %v12715_v4, %v16971_v20  ;;  %v1903_v33 = vsel %vm710_vm0, %v1898_v9, %v1902_v27 }
 0x2ba   :  { %v1843_v55 = vsel %vm710_vm0, %v1838_v48, %v1842_v46  ;;  %v1878_v21 = vrot.slane %v1876_v19, 1  ;;  %v2212_v16 = vrot.slane %v13035_v49, 1  ;;  %v1881_v46 = vshrl.u32 %v16978_v25, 16 }
 0x2bb   :  { %v1917_v19 = vshrl.u32 %v17032_v22, 16  ;;  %v1921_v49 = vrot.slane %v1919_v32, 1  ;;  %v12720_v22 = vld [vmem:[%s20507_s0 + $0x150] sm:$0xe] }
 0x2bc   :  { %4953 = vmatmul.mubr.bf16.gmra.mrb[52].mxu0 %v1807_v6  ;;  %v2203_v6 = vrot.slane %v13032_v0, 1  ;;  %v15359_v0 = vld [vmem:[%s20507_s0 + $0x11c] ss:$0 sps:$4 sm:$0x11]  }
 0x2bd   :  { %4962 = vmatprep.mubr.bf16.mxu0 %v2196_v2  ;;  %v1852_v2 = vshll.u32 %v15353_v31, 16  ;;  %v2213_v48 = vrot.slane %v15359_v0, 1  ;;  %v15378_v32 = vld [vmem:[%s20507_s0 + $0x170] ss:$0 sps:$4 sm:$0x11]  }
 0x2be   :  { %v2205_v41 = vsel %vm1223_vm1, %v2203_v6, %v2204_v39  ;;  %v1888_v39 = vshll.u32 %v15359_v0, 16 }
 0x2c0   :  { %v1890_v10 = vrot.slane %v1888_v39, 1 }
 0x2c4   :  { %4963 = vmatmul.mubr.bf16.gmra.mrb[56].mxu0 %v1819_v18  ;;  %v1854_v18 = vrot.slane %v1852_v2, 1 }
 0x2c5   :  { %4972 = vmatprep.mubr.bf16.mxu0 %v2199_v42  ;;  %v1864_v42 = vshll.u32 %v15354_v15, 16  ;;  %v2216_v15 = vrot.slane %v15363_v38, 1  ;;  %v15373_v38 = vld [vmem:[%s20507_s0 + $0x158] ss:$0 sps:$4 sm:$0x11]  }
 0x2c6   :  { %v1855_v50 = vsel %vm710_vm0, %v1850_v60, %v1854_v18  ;;  %v1948_v44 = vshll.u32 %v15373_v38, 16 }
 0x2c7   :  { %v1866_v5 = vrot.slane %v1864_v42, 1  ;;  %v2219_v42 = vrot.slane %v15364_v26, 1 }
 0x2c8   :  { %v1950_v27 = vrot.slane %v1948_v44, 1 }
 0x2c9   :  { %v1867_v52 = vsel %vm710_vm0, %v1862_v35, %v1866_v5 }
 0x2cc   :  { %4973 = vmatmul.mubr.bf16.gmra.mrb[60].mxu0 %v1831_v8  ;;  %v1873_v8 = vrot.slane %v1871_v11, 1  ;;  %v1912_v11 = vshll.u32 %v15364_v26, 16  ;;  %v17467_v26 = vld [vmem:[#allocation3 + $0x420] ss:$8 sps:$4 sm:$0xff]  }
 0x2cd   :  { %4982 = vmatprep.mubr.bf16.mxu0 %v2202_v62  ;;  %v1883_v62 = vshll.u32 %v16978_v25, 16  ;;  %v12717_v25 = vld [vmem:[%s20507_s0 + $0x12c] sm:$0xe] }
 0x2ce   :  { %v1874_v31 = vor.u32 %v1873_v8, %v1869_v28  ;;  %v13037_v60 = vcombine.low %v12717_v25, %v17007_v17  ;;  %v12718_v17 = vld [vmem:[%s20507_s0 + $0x138] sm:$0xe]  ;;  %v2222_v8 = vrot.slane %v15368_v37, 1  ;;  %v1941_v25 = vshrl.u32 %v17068_v45, 16 }
 0x2cf   :  { %v1885_v6 = vrot.slane %v1883_v62, 1  ;;  %v13038_v35 = vcombine.low %v12718_v17, %v17025_v30  ;;  %v1955_v45 = vshll.u32 %v17083_v34, 16  ;;  %v12722_v17 = vld [vmem:[%s20507_s0 + $0x168] sm:$0xe] }
 0x2d0   :  { %v1879_v20 = vsel %vm710_vm0, %v1874_v31, %v1878_v21  ;;  %v2218_v36 = vrot.slane %v13037_v60, 1  ;;  %v15369_v31 = vld [vmem:[%s20507_s0 + $0x14c] ss:$0 sps:$4 sm:$0x11]   ;;  %v1931_v21 = vshll.u32 %v17050_v61, 16 }
 0x2d1   :  { %v1886_v2 = vor.u32 %v1885_v6, %v1881_v46  ;;  %v2221_v28 = vrot.slane %v13038_v35, 1  ;;  %v1929_v46 = vshrl.u32 %v17050_v61, 16  ;;  %v1936_v39 = vshll.u32 %v15369_v31, 16  ;;  %v12721_v61 = vld [vmem:[%s20507_s0 + $0x15c] sm:$0xe] }
 0x2d2   :  { %v2220_v5 = vsel %vm1223_vm1, %v2218_v36, %v2219_v42  ;;  %v1933_v6 = vrot.slane %v1931_v21, 1  ;;  %v13041_v59 = vcombine.low %v12721_v61, %v15906_v3  ;;  %v15907_v35 = vld [vmem:[%s20507_s0 + $0x16c] sm:$0xf]  ;;  %v15379_v21 = vld [vmem:[%s20507_s0 + $0x17c] ss:$0 sps:$4 sm:$0x11]  }
 0x2d3   :  { %v1891_v7 = vsel %vm710_vm0, %v1886_v2, %v1890_v10  ;;  %v2223_v62 = vsel %vm1223_vm1, %v2221_v28, %v2222_v8  ;;  %v1938_v10 = vrot.slane %v1936_v39, 1  ;;  %v2234_v8 = vrot.slane %v15378_v32, 1  ;;  %v12725_v61 = vld [vmem:[%s20507_s0 + $0x18c] sm:$0xe]  ;;  %v15910_v3 = vld [vmem:[%s20507_s0 + $0x190] sm:$0xf] }
 0x2d4   :  { %4983 = vmatmul.mubr.bf16.gmra.mrb[64].mxu0 %v1843_v55  ;;  %v2214_v55 = vsel %vm1223_vm1, %v2212_v16, %v2213_v48  ;;  %v1922_v16 = vor.u32 %v1921_v49, %v1917_v19  ;;  %v1934_v2 = vor.u32 %v1933_v6, %v1929_v46  ;;  %v2230_v36 = vrot.slane %v13041_v59, 1 }
 0x2d5   :  { %4992 = vmatprep.mubr.bf16.mxu0 %v2205_v41  ;;  %v2215_v41 = vrot.slane %v13036_v1, 1  ;;  %v13040_v1 = vcombine.low %v12720_v22, %v17061_v51  ;;  %v1965_v19 = vshrl.u32 %v17098_v54, 16  ;;  %v12724_v22 = vld [vmem:[%s20507_s0 + $0x180] sm:$0xe]  ;;  %v1977_v46 = vshrl.u32 %v17113_v24, 16 }
 0x2d6   :  { %v1939_v51 = vsel %vm710_vm0, %v1934_v2, %v1938_v10  ;;  %v1984_v39 = vshll.u32 %v15379_v21, 16  ;;  %v1991_v2 = vshll.u32 %v17128_v56, 16  ;;  %v13045_v59 = vcombine.low %v12725_v61, %v15910_v3  ;;  %v12733_v3 = vld [vmem:[%s20507_s0 + $0x3c] sm:$0xf] }
 0x2d7   :  { %v2217_v18 = vsel %vm1223_vm1, %v2215_v41, %v2216_v15  ;;  %v2227_v41 = vrot.slane %v13040_v1, 1  ;;  %v2228_v15 = vrot.slane %v15373_v38, 1  ;;  %v15909_v1 = vld [vmem:[%s20507_s0 + $0x184] sm:$0xf] }
 0x2d9   :  { %v2229_v60 = vsel %vm1223_vm1, %v2227_v41, %v2228_v15  ;;  %v1986_v41 = vrot.slane %v1984_v39, 1 }
 0x2dc   :  { %4993 = vmatmul.mubr.bf16.gmra.mrb[68].mxu0 %v1855_v50  ;;  %v1907_v50 = vshll.u32 %v17014_v63, 16 }
 0x2dd   :  { %5002 = vmatprep.mubr.bf16.mxu0 %v2208_v23  ;;  %v1905_v23 = vshrl.u32 %v17014_v63, 16  ;;  %v12719_v63 = vld [vmem:[%s20507_s0 + $0x144] sm:$0xe] }
 0x2de   :  { %v1909_v29 = vrot.slane %v1907_v50, 1  ;;  %v13039_v0 = vcombine.low %v12719_v63, %v17043_v40  ;;  %v17469_v50 = vld [vmem:[#allocation3 + $0x424] ss:$8 sps:$4 sm:$0xff]  }
 0x2df   :  { %13898 = vmatprep.subr.bf16.mxu1 %v17469_v50  ;;  %v12723_v63 = vld [vmem:[%s20507_s0 + $0x174] sm:$0xe] }
 0x2e0   :  { %v1910_v4 = vor.u32 %v1909_v29, %v1905_v23  ;;  %v2224_v47 = vrot.slane %v13039_v0, 1  ;;  %13906 = vmatpush1.bf16.msra.mxu1 %v17467_v26  ;;  %v1953_v23 = vshrl.u32 %v17083_v34, 16  ;;  %v1957_v29 = vrot.slane %v1955_v45, 1  ;;  %v15908_v0 = vld [vmem:[%s20507_s0 + $0x178] sm:$0xf] }
 0x2e1   :  { %v2003_v45 = vshll.u32 %v17143_v43, 16 }
 0x2e4   :  { %5003 = vmatmul.mubr.bf16.gmra.mrb[72].mxu0 %v1867_v52  ;;  %v1914_v52 = vrot.slane %v1912_v11, 1 }
 0x2e5   :  { %5012 = vmatprep.mubr.bf16.mxu0 %v2211_v14  ;;  %v1924_v14 = vshll.u32 %v15368_v37, 16 }
 0x2e6   :  { %v1915_v30 = vsel %vm710_vm0, %v1910_v4, %v1914_v52  ;;  %v1967_v4 = vshll.u32 %v17098_v54, 16  ;;  %v1958_v52 = vor.u32 %v1957_v29, %v1953_v23  ;;  %v12728_v23 = vld [vmem:[%s20507_s0 + $0x1c] sm:$0xf]  ;;  %v12726_v29 = vld [vmem:[%s20507_s0 + $0x198] sm:$0xe] }
 0x2e7   :  { %v1926_v48 = vrot.slane %v1924_v14, 1  ;;  %v1972_v14 = vshll.u32 %v15378_v32, 16 }
 0x2e8   :  { %v1969_v49 = vrot.slane %v1967_v4, 1  ;;  %v15911_v4 = vld [vmem:[%s20507_s0 + $0x19c] sm:$0xf] }
 0x2e9   :  { %v1927_v40 = vsel %vm710_vm0, %v1922_v16, %v1926_v48  ;;  %v1979_v16 = vshll.u32 %v17113_v24, 16 }
 0x2ea   :  { %v1970_v48 = vor.u32 %v1969_v49, %v1965_v19 }
 0x2eb   :  { %v1981_v6 = vrot.slane %v1979_v16, 1 }
 0x2ec   :  { %5013 = vmatmul.mubr.bf16.gmra.mrb[76].mxu0 %v1879_v20  ;;  %v2225_v20 = vrot.slane %v15369_v31, 1 }
 0x2ed   :  { %5022 = vmatprep.mubr.bf16.mxu0 %v2214_v55  ;;  %v1982_v10 = vor.u32 %v1981_v6, %v1977_v46 }
 0x2ee   :  { %v2226_v55 = vsel %vm1223_vm1, %v2224_v47, %v2225_v20  ;;  %v1974_v47 = vrot.slane %v1972_v14, 1  ;;  %v2237_v20 = vrot.slane %v15379_v21, 1  ;;  %v2013_v21 = vshrl.u32 %v17161_v57, 16 }
 0x2f4   :  { %5023 = vmatmul.mubr.bf16.gmra.mrb[80].mxu0 %v1891_v7  ;;  %v1945_v7 = vrot.slane %v1943_v58, 1  ;;  %v15383_v58 = vld [vmem:[%s20507_s0 + $0x188] ss:$0 sps:$4 sm:$0x11]  }
 0x2f5   :  { %5032 = vmatprep.mubr.bf16.mxu0 %v2217_v18  ;;  %v15374_v18 = vld [vmem:[%s20507_s0 + $0x164] ss:$0 sps:$4 sm:$0x11]   ;;  %v2240_v15 = vrot.slane %v15383_v58, 1  ;;  %v1996_v44 = vshll.u32 %v15383_v58, 16 }
 0x2f6   :  { %v1946_v9 = vor.u32 %v1945_v7, %v1941_v25  ;;  %v2231_v42 = vrot.slane %v15374_v18, 1  ;;  %v1960_v11 = vshll.u32 %v15374_v18, 16  ;;  %v1989_v25 = vshrl.u32 %v17128_v56, 16  ;;  %v15384_v18 = vld [vmem:[%s20507_s0 + $0x194] ss:$0 sps:$4 sm:$0x11]  }
 0x2f7   :  { %v1993_v7 = vrot.slane %v1991_v2, 1  ;;  %v12732_v58 = vld [vmem:[%s20507_s0 + $0x34] sm:$0xf] }
 0x2f8   :  { %v2232_v37 = vsel %vm1223_vm1, %v2230_v36, %v2231_v42  ;;  %v1962_v28 = vrot.slane %v1960_v11, 1  ;;  %v1998_v36 = vrot.slane %v1996_v44, 1  ;;  %v2242_v42 = vrot.slane %v13045_v59, 1  ;;  %v12734_v59 = vld [vmem:[%s20507_s0 + $0x40] sm:$0xf] }
 0x2f9   :  { %v1994_v56 = vor.u32 %v1993_v7, %v1989_v25  ;;  %v2001_v11 = vshrl.u32 %v17143_v43, 16 }
 0x2fc   :  { %5033 = vmatmul.mubr.bf16.gmra.mrb[84].mxu0 %v1903_v33  ;;  %v1951_v33 = vsel %vm710_vm0, %v1946_v9, %v1950_v27  ;;  %v17526_v9 = vld [vmem:[#allocation3 + $0x430] ss:$8 sps:$4 sm:$0xff]   ;;  %v17528_v27 = vld [vmem:[#allocation3 + $0x434] ss:$8 sps:$4 sm:$0xff]  }
 0x2fd   :  { %5042 = vmatprep.mubr.bf16.mxu0 %v2220_v5  ;;  %v13042_v5 = vcombine.low %v12722_v17, %v15907_v35  ;;  %v2243_v17 = vrot.slane %v15384_v18, 1  ;;  %13899 = vmatprep.subr.bf16.mxu1 %v17528_v27  ;;  %v2005_v35 = vrot.slane %v2003_v45, 1 }
 0x2fe   :  { %13907 = vmatpush1.bf16.msra.mxu1 %v17526_v9 }
 0x2ff   :  { %v2233_v34 = vrot.slane %v13042_v5, 1  ;;  %v2008_v5 = vshll.u32 %v15384_v18, 16  ;;  %v2006_v43 = vor.u32 %v2005_v35, %v2001_v11  ;;  %v12735_v35 = vld [vmem:[%s20507_s0 + $0x48] sm:$0xf] }
 0x301   :  { %v2235_v31 = vsel %vm1223_vm1, %v2233_v34, %v2234_v8  ;;  %v15388_v34 = vld [vmem:[%s20507_s0 + $0x1a0] ss:$0 sps:$4 sm:$0x11]   ;;  %v2015_v8 = vshll.u32 %v17161_v57, 16  ;;  %v12731_v57 = vld [vmem:[%s20507_s0 + $0x30] sm:$0xf] }
 0x302   :  { %v2246_v14 = vrot.slane %v15388_v34, 1  ;;  %v13049_v61 = vcombine.low %v12731_v57, %v12732_v58  ;;  %v12743_v58 = vld [vmem:[%s20507_s0 + $0x78] sm:$0xf] }
 0x303   :  { %v2017_v16 = vrot.slane %v2015_v8, 1 }
 0x304   :  { %5043 = vmatmul.mubr.bf16.gmra.mrb[88].mxu0 %v1915_v30  ;;  %v1963_v30 = vsel %vm710_vm0, %v1958_v52, %v1962_v28  ;;  %v13046_v52 = vcombine.low %v12726_v29, %v15911_v4  ;;  %v2244_v28 = vsel %vm1223_vm1, %v2242_v42, %v2243_v17  ;;  %v2595_v44 = vshll.u32 %v13049_v61, 16  ;;  %v15435_v42 = vld [vmem:[#allocation3 + $0x440] ss:$8 sps:$4 sm:$0xff]   ;;  %v15437_v17 = vld [vmem:[#allocation3 + $0x444] ss:$8 sps:$4 sm:$0xff]  }
 0x305   :  { %5052 = vmatprep.mubr.bf16.mxu0 %v2223_v62  ;;  %v13043_v62 = vcombine.low %v12723_v63, %v15908_v0  ;;  %v2010_v63 = vrot.slane %v2008_v5, 1  ;;  %v12729_v0 = vld [vmem:[%s20507_s0 + $0x24] sm:$0xf]  ;;  %v2018_v46 = vor.u32 %v2017_v16, %v2013_v21  ;;  %v2593_v45 = vshrl.u32 %v13049_v61, 16  ;;  %13900 = vmatprep.subr.bf16.mxu1 %v15437_v17  ;;  %v12736_v5 = vld [vmem:[%s20507_s0 + $0x4c] sm:$0xf] }
 0x306   :  { %v2245_v49 = vrot.slane %v13046_v52, 1  ;;  %13908 = vmatpush1.bf16.msra.mxu1 %v15435_v42  ;;  %v13051_v52 = vcombine.low %v12735_v35, %v12736_v5 }
 0x307   :  { %v2236_v54 = vrot.slane %v13043_v62, 1  ;;  %v12730_v62 = vld [vmem:[%s20507_s0 + $0x28] sm:$0xf] }
 0x308   :  { %v2619_v8 = vshll.u32 %v13051_v52, 16 }
 0x309   :  { %v2238_v38 = vsel %vm1223_vm1, %v2236_v54, %v2237_v20 }
 0x30c   :  { %5053 = vmatmul.mubr.bf16.gmra.mrb[92].mxu0 %v1927_v40  ;;  %v1975_v40 = vsel %vm710_vm0, %v1970_v48, %v1974_v47  ;;  %v2020_v48 = vshll.u32 %v15388_v34, 16  ;;  %v15401_v34 = vld [vmem:[%s20507_s0 + $0x50] ss:$0 sps:$4 sm:$0x11]  }
 0x30d   :  { %5062 = vmatprep.mubr.bf16.mxu0 %v2226_v55  ;;  %v13044_v55 = vcombine.low %v12724_v22, %v15909_v1  ;;  %v2247_v22 = vsel %vm1223_vm1, %v2245_v49, %v2246_v14 }
 0x30e   :  { %v2022_v6 = vrot.slane %v2020_v48, 1 }
 0x30f   :  { %v2239_v24 = vrot.slane %v13044_v55, 1  ;;  %v15395_v55 = vld [vmem:[%s20507_s0 + $0x2c] ss:$0 sps:$4 sm:$0x11]  }
 0x310   :  { %v2023_v2 = vsel %vm710_vm0, %v2018_v46, %v2022_v6  ;;  %v12741_v46 = vld [vmem:[%s20507_s0 + $0x6c] sm:$0xf]  ;;  %v12742_v6 = vld [vmem:[%s20507_s0 + $0x70] sm:$0xf] }
 0x311   :  { %v17635_v57 = vcombine.low %v12741_v46, %v12742_v6 }
 0x314   :  { %5063 = vmatmul.mubr.bf16.gmra.mrb[96].mxu0 %v1939_v51  ;;  %v1987_v51 = vsel %vm710_vm0, %v1982_v10, %v1986_v41 }
 0x315   :  { %5072 = vmatprep.mubr.bf16.mxu0 %v2229_v60  ;;  %v2241_v60 = vsel %vm1223_vm1, %v2239_v24, %v2240_v15  ;;  %v2588_v15 = vshll.u32 %v15395_v55, 16 }
 0x317   :  { %v2590_v7 = vrot.slane %v2588_v15, 1 }
 0x31c   :  { %5073 = vmatmul.mubr.bf16.gmra.mrb[100].mxu0 %v1951_v33  ;;  %v12727_v33 = vld [vmem:[%s20507_s0 + $0x18] sm:$0xf] }
 0x31d   :  { %5082 = vmatprep.mubr.bf16.mxu0 %v2232_v37  ;;  %v1999_v37 = vsel %vm710_vm0, %v1994_v56, %v1998_v36  ;;  %v13047_v32 = vcombine.low %v12727_v33, %v12728_v23  ;;  %v2597_v56 = vrot.slane %v2595_v44, 1  ;;  %v15399_v33 = vld [vmem:[%s20507_s0 + $0x44] ss:$0 sps:$4 sm:$0x11]   ;;  %v12771_v44 = vld [vmem:[%s20507_s0 + $0x138] sm:$0xf] }
 0x31f   :  { %v2571_v19 = vshll.u32 %v13047_v32, 16  ;;  %v2569_v47 = vshrl.u32 %v13047_v32, 16  ;;  %v2598_v29 = vor.u32 %v2597_v56, %v2593_v45  ;;  %v15412_v56 = vld [vmem:[%s20507_s0 + $0x80] ss:$0 sps:$4 sm:$0x11]  }
 0x321   :  { %v2573_v54 = vrot.slane %v2571_v19, 1 }
 0x323   :  { %v2574_v39 = vor.u32 %v2573_v54, %v2569_v47  ;;  %v15408_v54 = vld [vmem:[%s20507_s0 + $0x68] ss:$0 sps:$4 sm:$0x11]  }
 0x324   :  { %5083 = vmatmul.mubr.bf16.gmra.mrb[104].mxu0 %v1963_v30  ;;  %v15390_v30 = vld [vmem:[%s20507_s0 + $0x20] ss:$0 sps:$4 sm:$0x11]   ;;  %v2648_v55 = vshll.u32 %v15408_v54, 16  ;;  %v12747_v54 = vld [vmem:[%s20507_s0 + $0x90] sm:$0xf] }
 0x325   :  { %5092 = vmatprep.mubr.bf16.mxu0 %v2235_v31  ;;  %v2011_v31 = vsel %vm710_vm0, %v2006_v43, %v2010_v63  ;;  %v2576_v20 = vshll.u32 %v15390_v30, 16  ;;  %v2621_v63 = vrot.slane %v2619_v8, 1  ;;  %v2624_v30 = vshll.u32 %v15401_v34, 16  ;;  %v12845_v34 = vld [vmem:[%s20507_s0 + $0x138] sm:$0xe] }
 0x326   :  { %v2650_v15 = vrot.slane %v2648_v55, 1  ;;  %v2672_v8 = vshll.u32 %v15412_v56, 16  ;;  %v12749_v56 = vld [vmem:[%s20507_s0 + $0x9c] sm:$0xf] }
 0x327   :  { %v2578_v1 = vrot.slane %v2576_v20, 1  ;;  %v2626_v14 = vrot.slane %v2624_v30, 1 }
 0x329   :  { %v2579_v10 = vsel %vm710_vm0, %v2574_v39, %v2578_v1 }
 0x32c   :  { %5093 = vmatmul.mubr.bf16.gmra.mrb[108].mxu0 %v1975_v40  ;;  %v13048_v40 = vcombine.low %v12729_v0, %v12730_v62  ;;  %v12739_v62 = vld [vmem:[%s20507_s0 + $0x60] sm:$0xf] }
 0x32d   :  { %5102 = vmatprep.mubr.bf16.mxu0 %v2238_v38 }
 0x32e   :  { %v2583_v38 = vshll.u32 %v13048_v40, 16  ;;  %v2581_v41 = vshrl.u32 %v13048_v40, 16 }
 0x330   :  { %v2585_v24 = vrot.slane %v2583_v38, 1 }
 0x332   :  { %v2586_v25 = vor.u32 %v2585_v24, %v2581_v41  ;;  %v15448_v41 = vld [vmem:[#allocation3 + $0x454] ss:$8 sps:$4 sm:$0xff]  }
 0x333   :  { %13901 = vmatprep.subr.bf16.mxu1 %v15448_v41 }
 0x334   :  { %5103 = vmatmul.mubr.bf16.gmra.mrb[112].mxu0 %v1987_v51  ;;  %v15397_v51 = vld [vmem:[%s20507_s0 + $0x38] ss:$0 sps:$4 sm:$0x11]   ;;  %v2591_v18 = vsel %vm710_vm0, %v2586_v25, %v2590_v7 }
 0x335   :  { %5112 = vmatprep.mubr.bf16.mxu0 %v2241_v60  ;;  %v13050_v60 = vcombine.low %v12733_v3, %v12734_v59  ;;  %v2600_v36 = vshll.u32 %v15397_v51, 16  ;;  %v2655_v51 = vshll.u32 %v17635_v57, 16  ;;  %v12772_v3 = vld [vmem:[%s20507_s0 + $0x13c] sm:$0xf]  ;;  %v2653_v59 = vshrl.u32 %v17635_v57, 16 }
 0x336   :  { %v17657_v45 = vcombine.low %v12771_v44, %v12772_v3 }
 0x337   :  { %v2607_v23 = vshll.u32 %v13050_v60, 16  ;;  %v2602_v11 = vrot.slane %v2600_v36, 1 }
 0x339   :  { %v2603_v4 = vsel %vm710_vm0, %v2598_v29, %v2602_v11  ;;  %v2833_v29 = vshrl.u32 %v17657_v45, 16  ;;  %v2835_v11 = vshll.u32 %v17657_v45, 16 }
 0x33c   :  { %5113 = vmatmul.mubr.bf16.gmra.mrb[116].mxu0 %v1999_v37  ;;  %v2609_v37 = vrot.slane %v2607_v23, 1  ;;  %v15457_v23 = vld [vmem:[%s20507_s0 + $0x140] ss:$0 sps:$4 sm:$0x11]  }
 0x33d   :  { %5122 = vmatprep.mubr.bf16.mxu0 %v2244_v28 }
 0x344   :  { %5123 = vmatmul.mubr.bf16.gmra.mrb[120].mxu0 %v2011_v31 }
 0x345   :  { %5132 = vmatprep.mubr.bf16.mxu0 %v2247_v22 }
 0x34c   :  { %5133 = vmatmul.mubr.bf16.gmra.mrb[124].mxu0 %v2023_v2  ;;  %v12744_v2 = vld [vmem:[%s20507_s0 + $0x7c] sm:$0xf] }
 0x34d   :  { %5175 = vmatprep.mubr.bf16.mxu0 %v2579_v10  ;;  %v15446_v10 = vld [vmem:[#allocation3 + $0x450] ss:$8 sps:$4 sm:$0xff]   ;;  %v17647_v25 = vcombine.low %v12743_v58, %v12744_v2  ;;  %v12846_v58 = vld [vmem:[%s20507_s0 + $0x144] sm:$0xe] }
 0x34e   :  { %13909 = vmatpush1.bf16.msra.mxu1 %v15446_v10 }
 0x34f   :  { %v2667_v36 = vshll.u32 %v17647_v25, 16 }
 0x354   :  { %5176 = vmatmul.mubr.bf16.vlgmr.msra.gmra.mrb[0].mxu0 %v13047_v32  ;;  %v2612_v32 = vshll.u32 %v15399_v33, 16  ;;  %v15454_v33 = vld [vmem:[#allocation3 + $0x474] ss:$8 sps:$4 sm:$0xff]  }
 0x355   :  { %5497 = vmatpush1.bf16.msra.mxu0 %v17368_v53  ;;  %5185 = vmatprep.mubr.bf16.mxu0 %v2591_v18  ;;  %v2605_v53 = vshrl.u32 %v13050_v60, 16 }
 0x356   :  { %5498 = vmatprep.subr.bf16.mxu0 %v17417_v12  ;;  %v2614_v28 = vrot.slane %v2612_v32, 1  ;;  %v2837_v32 = vrot.slane %v2835_v11, 1 }
 0x357   :  { %v2610_v12 = vor.u32 %v2609_v37, %v2605_v53  ;;  %v12745_v53 = vld [vmem:[%s20507_s0 + $0x84] sm:$0xf]  ;;  %v12746_v37 = vld [vmem:[%s20507_s0 + $0x88] sm:$0xf] }
 0x359   :  { %5499 = vmatpush1.bf16.msra.mxu0 %v17415_v13  ;;  %v12737_v13 = vld [vmem:[%s20507_s0 + $0x54] sm:$0xf]  ;;  %v2615_v43 = vsel %vm710_vm0, %v2610_v12, %v2614_v28  ;;  %v2665_v12 = vshrl.u32 %v17647_v25, 16  ;;  %v2669_v28 = vrot.slane %v2667_v36, 1 }
 0x35a   :  { %5500 = vmatprep.subr.bf16.mxu0 %v17469_v50  ;;  %v12738_v50 = vld [vmem:[%s20507_s0 + $0x58] sm:$0xf] }
 0x35b   :  { %v13052_v19 = vcombine.low %v12737_v13, %v12738_v50  ;;  %v2838_v13 = vor.u32 %v2837_v32, %v2833_v29  ;;  %v15464_v36 = vld [vmem:[%s20507_s0 + $0x158] ss:$0 sps:$4 sm:$0x11]  }
 0x35c   :  { %5186 = vmatmul.mubr.bf16.gmra.mrb[4].mxu0 %v13048_v40  ;;  %v2864_v11 = vshll.u32 %v15464_v36, 16 }
 0x35d   :  { %5195 = vmatprep.mubr.bf16.mxu0 %v2603_v4  ;;  %5501 = vmatpush1.bf16.msra.mxu0 %v17467_v26  ;;  %v2617_v26 = vshrl.u32 %v13051_v52, 16  ;;  %v2631_v0 = vshll.u32 %v13052_v19, 16  ;;  %v2629_v16 = vshrl.u32 %v13052_v19, 16  ;;  %v2840_v4 = vshll.u32 %v15457_v23, 16 }
 0x35e   :  { %5502 = vmatprep.subr.bf16.mxu0 %v17528_v27  ;;  %v15406_v27 = vld [vmem:[%s20507_s0 + $0x5c] ss:$0 sps:$4 sm:$0x11]  }
 0x35f   :  { %v2622_v49 = vor.u32 %v2621_v63, %v2617_v26  ;;  %v2633_v48 = vrot.slane %v2631_v0, 1  ;;  %v2636_v47 = vshll.u32 %v15406_v27, 16  ;;  %v2842_v50 = vrot.slane %v2840_v4, 1  ;;  %v12773_v26 = vld [vmem:[%s20507_s0 + $0x144] sm:$0xf] }
 0x360   :  { %v12774_v63 = vld [vmem:[%s20507_s0 + $0x148] sm:$0xf] }
 0x361   :  { %5503 = vmatpush1.bf16.msra.mxu0 %v17526_v9  ;;  %v12740_v9 = vld [vmem:[%s20507_s0 + $0x64] sm:$0xf]  ;;  %v2627_v21 = vsel %vm710_vm0, %v2622_v49, %v2626_v14  ;;  %v2634_v22 = vor.u32 %v2633_v48, %v2629_v16  ;;  %v2638_v40 = vrot.slane %v2636_v47, 1  ;;  %v17687_v27 = vcombine.low %v12773_v26, %v12774_v63  ;;  %v15417_v49 = vld [vmem:[%s20507_s0 + $0x8c] ss:$0 sps:$4 sm:$0x11]  }
 0x362   :  { %5504 = vmatprep.subr.bf16.mxu0 %v15437_v17  ;;  %v17620_v31 = vcombine.low %v12739_v62, %v12740_v9  ;;  %v15453_v17 = vld [vmem:[#allocation3 + $0x460] ss:$8 sps:$4 sm:$0xff]   ;;  %v17693_v14 = vsel %vm710_vm0, %v2838_v13, %v2842_v50  ;;  %v3147_v62 = vrot.slane %v15457_v23, 1  ;;  %v15461_v9 = vld [vmem:[%s20507_s0 + $0x14c] ss:$0 sps:$4 sm:$0x11]   ;;  %v2670_v48 = vor.u32 %v2669_v28, %v2665_v12 }
 0x363   :  { %v2639_v38 = vsel %vm710_vm0, %v2634_v22, %v2638_v40  ;;  %v2847_v16 = vshll.u32 %v17687_v27, 16  ;;  %v2674_v47 = vrot.slane %v2672_v8, 1  ;;  %v2852_v6 = vshll.u32 %v15461_v9, 16  ;;  %v12777_v28 = vld [vmem:[%s20507_s0 + $0x15c] sm:$0xf] }
 0x364   :  { %5196 = vmatmul.mubr.bf16.gmra.mrb[8].mxu0 %v13049_v61  ;;  %v2643_v20 = vshll.u32 %v17620_v31, 16  ;;  %v2641_v39 = vshrl.u32 %v17620_v31, 16  ;;  %v15410_v61 = vld [vmem:[%s20507_s0 + $0x74] ss:$0 sps:$4 sm:$0x11]   ;;  %v3153_v26 = vrot.slane %v15464_v36, 1 }
 0x365   :  { %5205 = vmatprep.mubr.bf16.mxu0 %v2615_v43  ;;  %5505 = vmatpush1.bf16.msra.mxu0 %v15435_v42  ;;  %v2660_v18 = vshll.u32 %v15410_v61, 16  ;;  %v15451_v42 = vld [vmem:[#allocation3 + $0x464] ss:$8 sps:$4 sm:$0xff]   ;;  %v13133_v43 = vcombine.low %v12845_v34, %v12772_v3  ;;  %v2849_v46 = vrot.slane %v2847_v16, 1  ;;  %v2675_v2 = vsel %vm710_vm0, %v2670_v48, %v2674_v47  ;;  %v12778_v34 = vld [vmem:[%s20507_s0 + $0x160] sm:$0xf] }
 0x366   :  { %v2645_v1 = vrot.slane %v2643_v20, 1  ;;  %5506 = vmatprep.subr.bf16.mxu0 %v15448_v41  ;;  %13902 = vmatprep.subr.bf16.mxu1 %v15451_v42  ;;  %v12748_v20 = vld [vmem:[%s20507_s0 + $0x94] sm:$0xf]  ;;  %v12775_v41 = vld [vmem:[%s20507_s0 + $0x150] sm:$0xf]  ;;  %v17776_v50 = vcombine.low %v12777_v28, %v12778_v34 }
 0x367   :  { %v2662_v5 = vrot.slane %v2660_v18, 1  ;;  %13910 = vmatpush1.bf16.msra.mxu1 %v15453_v17  ;;  %v3146_v0 = vrot.slane %v13133_v43, 1  ;;  %v15419_v3 = vld [vmem:[%s20507_s0 + $0x98] ss:$0 sps:$4 sm:$0x11]  }
 0x368   :  { %v2646_v24 = vor.u32 %v2645_v1, %v2641_v39  ;;  %13903 = vmatprep.subr.bf16.mxu1 %v15454_v33  ;;  %v2684_v39 = vshll.u32 %v15417_v49, 16  ;;  %v17724_v1 = vcombine.low %v12747_v54, %v12748_v20  ;;  %v2696_v4 = vshll.u32 %v15419_v3, 16  ;;  %v12751_v16 = vld [vmem:[%s20507_s0 + $0xa8] sm:$0xf]  ;;  %v17797_v48 = vld [vmem:[%s20507_s0 + $0xac] sm:$0xf] }
 0x369   :  { %5507 = vmatpush1.bf16.msra.mxu0 %v15446_v10  ;;  %v3148_v22 = vsel %vm1223_vm1, %v3146_v0, %v3147_v62  ;;  %v13134_v10 = vcombine.low %v12846_v58, %v12774_v63  ;;  %v15467_v63 = vld [vmem:[%s20507_s0 + $0x164] ss:$0 sps:$4 sm:$0x11]   ;;  %v2871_v49 = vshll.u32 %v17776_v50, 16  ;;  %v12780_v58 = vld [vmem:[%s20507_s0 + $0x16c] sm:$0xf] }
 0x36a   :  { %v2651_v7 = vsel %vm710_vm0, %v2646_v24, %v2650_v15  ;;  %5508 = vmatprep.subr.bf16.mxu0 %v15451_v42  ;;  %v12776_v24 = vld [vmem:[%s20507_s0 + $0x154] sm:$0xf]  ;;  %v2686_v44 = vrot.slane %v2684_v39, 1  ;;  %v2691_v18 = vshll.u32 %v17724_v1, 16  ;;  %v2698_v62 = vrot.slane %v2696_v4, 1 }
 0x36b   :  { %v2873_v47 = vrot.slane %v2871_v49, 1  ;;  %v2876_v54 = vshll.u32 %v15467_v63, 16  ;;  %v17806_v39 = vcombine.low %v12751_v16, %v17797_v48  ;;  %v12781_v4 = vld [vmem:[%s20507_s0 + $0x174] sm:$0xf]  ;;  %v12755_v16 = vld [vmem:[%s20507_s0 + $0xc0] sm:$0xf] }
 0x36c   :  { %5206 = vmatmul.mubr.bf16.gmra.mrb[12].mxu0 %v13050_v60  ;;  %v2657_v60 = vrot.slane %v2655_v51, 1  ;;  %v2693_v32 = vrot.slane %v2691_v18, 1  ;;  %v17829_v18 = vld [vmem:[%s20507_s0 + $0xb0] ss:$0 sps:$4 sm:$0x11]  }
 0x36d   :  { %5215 = vmatprep.mubr.bf16.mxu0 %v2627_v21  ;;  %5509 = vmatpush1.bf16.msra.mxu0 %v15453_v17  ;;  %v2845_v21 = vshrl.u32 %v17687_v27, 16 }
 0x36e   :  { %v2658_v35 = vor.u32 %v2657_v60, %v2653_v59  ;;  %5510 = vmatprep.subr.bf16.mxu0 %v15454_v33  ;;  %v3149_v59 = vrot.slane %v13134_v10, 1  ;;  %v3150_v60 = vrot.slane %v15461_v9, 1  ;;  %v17787_v9 = vld [vmem:[%s20507_s0 + $0xa4] ss:$0 sps:$4 sm:$0x11]  }
 0x36f   :  { %v2850_v55 = vor.u32 %v2849_v46, %v2845_v21 }
 0x370   :  { %v2663_v30 = vsel %vm710_vm0, %v2658_v35, %v2662_v5  ;;  %v3151_v33 = vsel %vm1223_vm1, %v3149_v59, %v3150_v60  ;;  %v2689_v35 = vshrl.u32 %v17724_v1, 16 }
 0x372   :  { %v2694_v0 = vor.u32 %v2693_v32, %v2689_v35  ;;  %v12849_v35 = vld [vmem:[%s20507_s0 + $0x168] sm:$0xe] }
 0x373   :  { %v13137_v32 = vcombine.low %v12849_v35, %v12780_v58 }
 0x374   :  { %5216 = vmatmul.mubr.bf16.gmra.mrb[16].mxu0 %v13051_v52  ;;  %v15458_v52 = vld [vmem:[#allocation3 + $0x470] ss:$8 sps:$4 sm:$0xff]   ;;  %v2699_v46 = vsel %vm710_vm0, %v2694_v0, %v2698_v62 }
 0x375   :  { %5225 = vmatprep.mubr.bf16.mxu0 %v2639_v38  ;;  %13911 = vmatpush1.bf16.msra.mxu1 %v15458_v52  ;;  %v2854_v38 = vrot.slane %v2852_v6, 1  ;;  %v2708_v6 = vshll.u32 %v17787_v9, 16 }
 0x376   :  { %5511 = vmatpush1.bf16.msra.mxu0 %v15458_v52 }
 0x377   :  { %v17738_v51 = vsel %vm710_vm0, %v2850_v55, %v2854_v38  ;;  %v12779_v38 = vld [vmem:[%s20507_s0 + $0x168] sm:$0xf]  ;;  %v2710_v60 = vrot.slane %v2708_v6, 1 }
 0x37c   :  { %5226 = vmatmul.mubr.bf16.gmra.mrb[20].mxu0 %v13052_v19  ;;  %v17685_v19 = vcombine.low %v12745_v53, %v12746_v37  ;;  %v2866_v53 = vrot.slane %v2864_v11, 1  ;;  %v12847_v37 = vld [vmem:[%s20507_s0 + $0x150] sm:$0xe] }
 0x37d   :  { %5235 = vmatprep.mubr.bf16.mxu0 %v2651_v7  ;;  %v17740_v7 = vcombine.low %v12775_v41, %v12776_v24  ;;  %v13135_v12 = vcombine.low %v12847_v37, %v12776_v24  ;;  %v17818_v24 = vcombine.low %v12779_v38, %v12780_v58 }
 0x37e   :  { %v2679_v40 = vshll.u32 %v17685_v19, 16  ;;  %v2677_v15 = vshrl.u32 %v17685_v19, 16 }
 0x37f   :  { %v2857_v42 = vshrl.u32 %v17740_v7, 16  ;;  %v2859_v17 = vshll.u32 %v17740_v7, 16  ;;  %v3152_v43 = vrot.slane %v13135_v12, 1  ;;  %v2881_v3 = vshrl.u32 %v17818_v24, 16  ;;  %v12782_v12 = vld [vmem:[%s20507_s0 + $0x178] sm:$0xf] }
 0x380   :  { %v2681_v61 = vrot.slane %v2679_v40, 1  ;;  %v12848_v40 = vld [vmem:[%s20507_s0 + $0x15c] sm:$0xe]  ;;  %v2883_v59 = vshll.u32 %v17818_v24, 16 }
 0x381   :  { %v2861_v29 = vrot.slane %v2859_v17, 1  ;;  %v13136_v55 = vcombine.low %v12848_v40, %v12778_v34  ;;  %v17839_v17 = vld [vmem:[%s20507_s0 + $0xb8] sm:$0xf] }
 0x382   :  { %v2682_v23 = vor.u32 %v2681_v61, %v2677_v15  ;;  %v3156_v61 = vrot.slane %v15467_v63, 1  ;;  %v15473_v63 = vld [vmem:[%s20507_s0 + $0x17c] ss:$0 sps:$4 sm:$0x11]  }
 0x383   :  { %v2862_v5 = vor.u32 %v2861_v29, %v2857_v42  ;;  %v3155_v15 = vrot.slane %v13136_v55, 1  ;;  %v12753_v42 = vld [vmem:[%s20507_s0 + $0xb4] sm:$0xf] }
 0x384   :  { %5236 = vmatmul.mubr.bf16.gmra.mrb[24].mxu0 %v17620_v31  ;;  %v20533_v31 = vmov 0   ;;  %v2687_v8 = vsel %vm710_vm0, %v2682_v23, %v2686_v44  ;;  %v15470_v44 = vld [vmem:[%s20507_s0 + $0x170] ss:$0 sps:$4 sm:$0x11]   ;;  %v17848_v37 = vcombine.low %v12753_v42, %v17839_v17 }
 0x385   :  { %5245 = vmatprep.mubr.bf16.mxu0 %v2663_v30  ;;  %5748 = vmatprep.mubr.bf16.mxu1 %v20533_v31  ;;  %5917 = vst [vmem:[#allocation2] sm:$0xf] %v20533_v31  ;;  %5918 = vst [vmem:[#allocation2 + $0x4] sm:$0xf] %v20533_v31  ;;  %v17774_v13 = vsel %vm710_vm0, %v2862_v5, %v2866_v53  ;;  %v2869_v30 = vshrl.u32 %v17776_v50, 16  ;;  %v3157_v36 = vsel %vm1223_vm1, %v3155_v15, %v3156_v61 }
 0x386   :  { %5919 = vst [vmem:[#allocation2 + $0x8] sm:$0x1] %v20533_v31  ;;  %5920 = vst [vmem:[#allocation2 + $0xd8] sm:$0xf] %v20533_v31  ;;  %5749 = vmatmul.mubr.bf16.vlgmr.msra.gmra.mrb[0].mxu1 %v3148_v22  ;;  %10945 = vmatprep.subr.bf16.mxu1 %v20533_v31  ;;  %v2878_v22 = vrot.slane %v2876_v54, 1  ;;  %v2888_v23 = vshll.u32 %v15470_v44, 16 }
 0x387   :  { %5921 = vst [vmem:[#allocation2 + $0xdc] sm:$0xf] %v20533_v31  ;;  %5922 = vst [vmem:[#allocation2 + $0xe0] sm:$0x1] %v20533_v31  ;;  %5758 = vmatprep.mubr.bf16.mxu1 %v20533_v31  ;;  %v2874_v20 = vor.u32 %v2873_v47, %v2869_v30  ;;  %v2720_v53 = vshll.u32 %v17829_v18, 16  ;;  %v2725_v15 = vshrl.u32 %v17848_v37, 16 }
 0x388   :  { %5924 = vst [vmem:[#allocation2 + $0xcc] sm:$0xf] %v20533_v31  ;;  %5925 = vst [vmem:[#allocation2 + $0xd0] sm:$0xf] %v20533_v31  ;;  %v2890_v11 = vrot.slane %v2888_v23, 1 }
 0x389   :  { %5926 = vst [vmem:[#allocation2 + $0xd4] sm:$0x1] %v20533_v31  ;;  %5927 = vst [vmem:[#allocation2 + $0x1a4] sm:$0xf] %v20533_v31  ;;  %v17816_v41 = vsel %vm710_vm0, %v2874_v20, %v2878_v22  ;;  %v2722_v62 = vrot.slane %v2720_v53, 1  ;;  %v2900_v20 = vshll.u32 %v15473_v63, 16 }
 0x38a   :  { %5928 = vst [vmem:[#allocation2 + $0x1a8] sm:$0xf] %v20533_v31  ;;  %5929 = vst [vmem:[#allocation2 + $0x1ac] sm:$0x1] %v20533_v31  ;;  %v17881_v47 = vld [vmem:[%s20507_s0 + $0xc4] sm:$0xf] }
 0x38b   :  { %v2902_v40 = vrot.slane %v2900_v20, 1  ;;  %v17890_v38 = vcombine.low %v12755_v16, %v17881_v47 }
 0x38c   :  { %5246 = vmatmul.mubr.bf16.gmra.mrb[28].mxu0 %v17635_v57  ;;  %v12750_v57 = vld [vmem:[%s20507_s0 + $0xa0] sm:$0xf] }
 0x38d   :  { %5255 = vmatprep.mubr.bf16.mxu0 %v2675_v2  ;;  %v17764_v52 = vcombine.low %v12749_v56, %v12750_v57  ;;  %v2715_v56 = vshll.u32 %v17806_v39, 16  ;;  %v2713_v57 = vshrl.u32 %v17806_v39, 16  ;;  %v2739_v23 = vshll.u32 %v17890_v38, 16 }
 0x38e   :  { %5759 = vmatmul.mubr.bf16.gmra.mrb[4].mxu1 %v3151_v33  ;;  %v2885_v33 = vrot.slane %v2883_v59, 1  ;;  %v2737_v53 = vshrl.u32 %v17890_v38, 16 }
 0x38f   :  { %5768 = vmatprep.mubr.bf16.mxu1 %v20533_v31  ;;  %v2703_v21 = vshll.u32 %v17764_v52, 16  ;;  %v2701_v2 = vshrl.u32 %v17764_v52, 16  ;;  %v2717_v5 = vrot.slane %v2715_v56, 1  ;;  %v15476_v56 = vld [vmem:[%s20507_s0 + $0x188] ss:$0 sps:$4 sm:$0x11]  }
 0x390   :  { %v2886_v29 = vor.u32 %v2885_v33, %v2881_v3  ;;  %v17913_v33 = vld [vmem:[%s20507_s0 + $0xc8] ss:$0 sps:$4 sm:$0x11]   ;;  %v3165_v16 = vrot.slane %v15476_v56, 1 }
 0x391   :  { %v2705_v10 = vrot.slane %v2703_v21, 1  ;;  %v2718_v0 = vor.u32 %v2717_v5, %v2713_v57  ;;  %v17871_v21 = vld [vmem:[%s20507_s0 + $0xbc] ss:$0 sps:$4 sm:$0x11]   ;;  %v2912_v5 = vshll.u32 %v15476_v56, 16 }
 0x392   :  { %v17858_v34 = vsel %vm710_vm0, %v2886_v29, %v2890_v11  ;;  %v2732_v55 = vshll.u32 %v17871_v21, 16  ;;  %v12757_v29 = vld [vmem:[%s20507_s0 + $0xcc] sm:$0xf]  ;;  %v17923_v11 = vld [vmem:[%s20507_s0 + $0xd0] sm:$0xf] }
 0x393   :  { %v2723_v6 = vsel %vm710_vm0, %v2718_v0, %v2722_v62 }
 0x394   :  { %5256 = vmatmul.mubr.bf16.gmra.mrb[32].mxu0 %v17647_v25  ;;  %v3154_v25 = vsel %vm1223_vm1, %v3152_v43, %v3153_v26  ;;  %v3158_v43 = vrot.slane %v13137_v32, 1  ;;  %v3159_v26 = vrot.slane %v15470_v44, 1  ;;  %v2734_v42 = vrot.slane %v2732_v55, 1 }
 0x395   :  { %5265 = vmatprep.mubr.bf16.mxu0 %v2687_v8  ;;  %v17860_v8 = vcombine.low %v12781_v4, %v12782_v12  ;;  %v2914_v4 = vrot.slane %v2912_v5, 1 }
 0x396   :  { %5769 = vmatmul.mubr.bf16.gmra.mrb[8].mxu1 %v3154_v25  ;;  %v2727_v25 = vshll.u32 %v17848_v37, 16 }
 0x397   :  { %5778 = vmatprep.mubr.bf16.mxu1 %v20533_v31  ;;  %v2893_v30 = vshrl.u32 %v17860_v8, 16  ;;  %v2895_v49 = vshll.u32 %v17860_v8, 16 }
 0x398   :  { %v2729_v61 = vrot.slane %v2727_v25, 1 }
 0x399   :  { %v2897_v54 = vrot.slane %v2895_v49, 1  ;;  %v12786_v49 = vld [vmem:[%s20507_s0 + $0x190] sm:$0xf] }
 0x39b   :  { %v2898_v22 = vor.u32 %v2897_v54, %v2893_v30  ;;  %v12785_v30 = vld [vmem:[%s20507_s0 + $0x18c] sm:$0xf]  ;;  %v15479_v54 = vld [vmem:[%s20507_s0 + $0x194] ss:$0 sps:$4 sm:$0x11]  }
 0x39c   :  { %5266 = vmatmul.mubr.bf16.gmra.mrb[36].mxu0 %v17685_v19  ;;  %v2706_v19 = vor.u32 %v2705_v10, %v2701_v2  ;;  %v12783_v2 = vld [vmem:[%s20507_s0 + $0x180] sm:$0xf]  ;;  %v12784_v10 = vld [vmem:[%s20507_s0 + $0x184] sm:$0xf]  ;;  %v17944_v25 = vcombine.low %v12785_v30, %v12786_v49 }
 0x39d   :  { %5275 = vmatprep.mubr.bf16.mxu0 %v2699_v46  ;;  %v12850_v46 = vld [vmem:[%s20507_s0 + $0x174] sm:$0xe]  ;;  %v17900_v44 = vsel %vm710_vm0, %v2898_v22, %v2902_v40  ;;  %v17902_v3 = vcombine.low %v12783_v2, %v12784_v10 }
 0x39e   :  { %5779 = vmatmul.mubr.bf16.gmra.mrb[12].mxu1 %v3157_v36  ;;  %v2711_v28 = vsel %vm710_vm0, %v2706_v19, %v2710_v60  ;;  %v13138_v58 = vcombine.low %v12850_v46, %v12782_v12  ;;  %v3162_v60 = vrot.slane %v15473_v63, 1  ;;  %v12851_v12 = vld [vmem:[%s20507_s0 + $0x180] sm:$0xe]  ;;  %v2917_v20 = vshrl.u32 %v17944_v25, 16  ;;  %v17965_v2 = vld [vmem:[%s20507_s0 + $0xf4] sm:$0xf] }
 0x39f   :  { %5788 = vmatprep.mubr.bf16.mxu1 %v20533_v31  ;;  %v2905_v36 = vshrl.u32 %v17902_v3, 16  ;;  %v2907_v19 = vshll.u32 %v17902_v3, 16  ;;  %v13139_v63 = vcombine.low %v12851_v12, %v12784_v10  ;;  %v2919_v22 = vshll.u32 %v17944_v25, 16 }
 0x3a0   :  { %v3161_v59 = vrot.slane %v13138_v58, 1  ;;  %v12759_v58 = vld [vmem:[%s20507_s0 + $0xf0] sm:$0xf] }
 0x3a1   :  { %v2909_v35 = vrot.slane %v2907_v19, 1  ;;  %v2921_v10 = vrot.slane %v2919_v22, 1  ;;  %v17974_v19 = vcombine.low %v12759_v58, %v17965_v2 }
 0x3a2   :  { %v3163_v57 = vsel %vm1223_vm1, %v3161_v59, %v3162_v60  ;;  %v12852_v60 = vld [vmem:[%s20507_s0 + $0x18c] sm:$0xe] }
 0x3a3   :  { %v2910_v32 = vor.u32 %v2909_v35, %v2905_v36 }
 0x3a4   :  { %5276 = vmatmul.mubr.bf16.gmra.mrb[40].mxu0 %v17724_v1  ;;  %v3160_v1 = vsel %vm1223_vm1, %v3158_v43, %v3159_v26  ;;  %v2744_v43 = vshll.u32 %v17913_v33, 16  ;;  %v17932_v26 = vcombine.low %v12757_v29, %v17923_v11 }
 0x3a5   :  { %5285 = vmatprep.mubr.bf16.mxu0 %v2711_v28  ;;  %v2741_v28 = vrot.slane %v2739_v23, 1  ;;  %v17942_v62 = vsel %vm710_vm0, %v2910_v32, %v2914_v4  ;;  %v12787_v23 = vld [vmem:[%s20507_s0 + $0x198] sm:$0xf]  ;;  %v3168_v32 = vrot.slane %v15479_v54, 1 }
 0x3a6   :  { %5789 = vmatmul.mubr.bf16.gmra.mrb[16].mxu1 %v3160_v1  ;;  %v3164_v1 = vrot.slane %v13139_v63, 1  ;;  %v2746_v46 = vrot.slane %v2744_v43, 1  ;;  %v2751_v55 = vshll.u32 %v17932_v26, 16  ;;  %v2749_v36 = vshrl.u32 %v17932_v26, 16 }
 0x3a7   :  { %5798 = vmatprep.mubr.bf16.mxu1 %v20533_v31  ;;  %v2742_v40 = vor.u32 %v2741_v28, %v2737_v53  ;;  %v15482_v4 = vld [vmem:[%s20507_s0 + $0x1a0] ss:$0 sps:$4 sm:$0x11]   ;;  %v17997_v43 = vld [vmem:[%s20507_s0 + $0xf8] ss:$0 sps:$4 sm:$0x11]  }
 0x3a8   :  { %v2763_v63 = vshll.u32 %v17974_v19, 16 }
 0x3a9   :  { %v2747_v56 = vsel %vm710_vm0, %v2742_v40, %v2746_v46  ;;  %v12853_v46 = vld [vmem:[%s20507_s0 + $0x198] sm:$0xe] }
 0x3ac   :  { %5286 = vmatmul.mubr.bf16.gmra.mrb[44].mxu0 %v17764_v52  ;;  %v2730_v52 = vor.u32 %v2729_v61, %v2725_v15  ;;  %v2924_v15 = vshll.u32 %v15479_v54, 16  ;;  %v2922_v61 = vor.u32 %v2921_v10, %v2917_v20  ;;  %v18007_v54 = vld [vmem:[%s20507_s0 + $0x100] sm:$0xf]  ;;  %v2761_v20 = vshrl.u32 %v17974_v19, 16  ;;  %v12789_v10 = vld [vmem:[%s20507_s0 + $0x1a4] sm:$0xf] }
 0x3ad   :  { %5295 = vmatprep.mubr.bf16.mxu0 %v2723_v6  ;;  %v17955_v6 = vld [vmem:[%s20507_s0 + $0xd4] ss:$0 sps:$4 sm:$0x11]  }
 0x3ae   :  { %5799 = vmatmul.mubr.bf16.gmra.mrb[20].mxu1 %v3163_v57  ;;  %v2735_v0 = vsel %vm710_vm0, %v2730_v52, %v2734_v42  ;;  %v2926_v59 = vrot.slane %v2924_v15, 1  ;;  %v13140_v42 = vcombine.low %v12852_v60, %v12786_v49  ;;  %v12788_v57 = vld [vmem:[%s20507_s0 + $0x19c] sm:$0xf]  ;;  %v2753_v52 = vrot.slane %v2751_v55, 1  ;;  %v12790_v15 = vld [vmem:[%s20507_s0 + $0x1a8] sm:$0xf] }
 0x3af   :  { %5808 = vmatprep.mubr.bf16.mxu1 %v20533_v31  ;;  %v2756_v29 = vshll.u32 %v17955_v6, 16  ;;  %v17986_v5 = vcombine.low %v12787_v23, %v12788_v57  ;;  %v2765_v55 = vrot.slane %v2763_v63, 1  ;;  %v13141_v58 = vcombine.low %v12853_v46, %v12788_v57  ;;  %v15485_v23 = vld [vmem:[%s20507_s0 + $0x1ac] ss:$0 sps:$4 sm:$0x11]  }
 0x3b0   :  { %v17984_v35 = vsel %vm710_vm0, %v2922_v61, %v2926_v59  ;;  %v3167_v53 = vrot.slane %v13140_v42, 1  ;;  %v2754_v49 = vor.u32 %v2753_v52, %v2749_v36  ;;  %v3171_v42 = vrot.slane %v15482_v4, 1  ;;  %v12763_v63 = vld [vmem:[%s20507_s0 + $0x108] sm:$0xf] }
 0x3b1   :  { %v2929_v12 = vshrl.u32 %v17986_v5, 16  ;;  %v2931_v28 = vshll.u32 %v17986_v5, 16  ;;  %v3170_v36 = vrot.slane %v13141_v58, 1  ;;  %v3174_v58 = vrot.slane %v15485_v23, 1 }
 0x3b2   :  { %v3169_v30 = vsel %vm1223_vm1, %v3167_v53, %v3168_v32 }
 0x3b3   :  { %v3172_v32 = vsel %vm1223_vm1, %v3170_v36, %v3171_v42 }
 0x3b4   :  { %5296 = vmatmul.mubr.bf16.gmra.mrb[48].mxu0 %v17806_v39  ;;  %v3166_v39 = vsel %vm1223_vm1, %v3164_v1, %v3165_v16  ;;  %v2936_v1 = vshll.u32 %v15482_v4, 16  ;;  %v12761_v16 = vld [vmem:[%s20507_s0 + $0xfc] sm:$0xf] }
 0x3b5   :  { %5305 = vmatprep.mubr.bf16.mxu0 %v2735_v0  ;;  %v2933_v0 = vrot.slane %v2931_v28, 1  ;;  %v13064_v59 = vcombine.low %v12761_v16, %v18007_v54  ;;  %v2948_v28 = vshll.u32 %v15485_v23, 16  ;;  %v18071_v23 = vld [vmem:[%s20507_s0 + $0x118] sm:$0xf] }
 0x3b6   :  { %5809 = vmatmul.mubr.bf16.gmra.mrb[24].mxu1 %v3166_v39  ;;  %v2938_v40 = vrot.slane %v2936_v1, 1  ;;  %v2768_v39 = vshll.u32 %v17997_v43, 16 }
 0x3b7   :  { %5818 = vmatprep.mubr.bf16.mxu1 %v20533_v31  ;;  %v2934_v22 = vor.u32 %v2933_v0, %v2929_v12  ;;  %v18038_v12 = vld [vmem:[%s20507_s0 + $0x104] ss:$0 sps:$4 sm:$0x11]   ;;  %v2775_v4 = vshll.u32 %v13064_v59, 16  ;;  %v12854_v0 = vld [vmem:[%s20507_s0 + $0x1a4] sm:$0xe] }
 0x3b8   :  { %v2770_v53 = vrot.slane %v2768_v39, 1  ;;  %v2773_v16 = vshrl.u32 %v13064_v59, 16 }
 0x3b9   :  { %v18024_v60 = vsel %vm710_vm0, %v2934_v22, %v2938_v40  ;;  %v2777_v22 = vrot.slane %v2775_v4, 1  ;;  %v2780_v40 = vshll.u32 %v18038_v12, 16  ;;  %v18080_v4 = vld [vmem:[%s20507_s0 + $0x11c] ss:$0 sps:$4 sm:$0x11]  }
 0x3bb   :  { %v2782_v36 = vrot.slane %v2780_v40, 1 }
 0x3bc   :  { %5306 = vmatmul.mubr.bf16.gmra.mrb[52].mxu0 %v17848_v37  ;;  %v2758_v37 = vrot.slane %v2756_v29, 1  ;;  %v2766_v29 = vor.u32 %v2765_v55, %v2761_v20  ;;  %v13142_v20 = vcombine.low %v12854_v0, %v12790_v15 }
 0x3bd   :  { %5315 = vmatprep.mubr.bf16.mxu0 %v2747_v56  ;;  %v18026_v56 = vcombine.low %v12789_v10, %v12790_v15  ;;  %v18062_v10 = vld [vmem:[%s20507_s0 + $0x110] ss:$0 sps:$4 sm:$0x11]  }
 0x3be   :  { %5819 = vmatmul.mubr.bf16.gmra.mrb[28].mxu1 %v3169_v30  ;;  %v2759_v61 = vsel %vm710_vm0, %v2754_v49, %v2758_v37  ;;  %v18046_v30 = vld [vmem:[%s20507_s0 + $0x10c] sm:$0xf]  ;;  %v2950_v37 = vrot.slane %v2948_v28, 1  ;;  %v2771_v1 = vsel %vm710_vm0, %v2766_v29, %v2770_v53  ;;  %v3173_v39 = vrot.slane %v13142_v20, 1 }
 0x3bf   :  { %5828 = vmatprep.mubr.bf16.mxu1 %v20533_v31  ;;  %v2941_v57 = vshrl.u32 %v18026_v56, 16  ;;  %v2943_v52 = vshll.u32 %v18026_v56, 16  ;;  %v13065_v46 = vcombine.low %v12763_v63, %v18046_v30 }
 0x3c0   :  { %v3175_v15 = vsel %vm1223_vm1, %v3173_v39, %v3174_v58  ;;  %v18096_v39 = vld [vmem:[%s20507_s0 + $0x128] ss:$0 sps:$4 sm:$0x11]  }
 0x3c1   :  { %v2787_v42 = vshll.u32 %v13065_v46, 16  ;;  %v2785_v29 = vshrl.u32 %v13065_v46, 16 }
 0x3c3   :  { %v2789_v53 = vrot.slane %v2787_v42, 1 }
 0x3c4   :  { %5316 = vmatmul.mubr.bf16.gmra.mrb[56].mxu0 %v17890_v38  ;;  %v2945_v38 = vrot.slane %v2943_v52, 1 }
 0x3c5   :  { %5325 = vmatprep.mubr.bf16.mxu0 %v2759_v61  ;;  %v2778_v61 = vor.u32 %v2777_v22, %v2773_v16  ;;  %v2790_v28 = vor.u32 %v2789_v53, %v2785_v29 }
 0x3c6   :  { %5829 = vmatmul.mubr.bf16.gmra.mrb[32].mxu1 %v3172_v32  ;;  %v2946_v49 = vor.u32 %v2945_v38, %v2941_v57  ;;  %v12765_v57 = vld [vmem:[%s20507_s0 + $0x114] sm:$0xf]  ;;  %v2792_v32 = vshll.u32 %v18062_v10, 16 }
 0x3c7   :  { %5838 = vmatprep.mubr.bf16.mxu1 %v20533_v31  ;;  %v2783_v52 = vsel %vm710_vm0, %v2778_v61, %v2782_v36  ;;  %v18104_v61 = vld [vmem:[%s20507_s0 + $0x130] sm:$0xf] }
 0x3c8   :  { %v18056_v55 = vsel %vm710_vm0, %v2946_v49, %v2950_v37  ;;  %v2794_v63 = vrot.slane %v2792_v32, 1  ;;  %v12767_v49 = vld [vmem:[%s20507_s0 + $0x120] sm:$0xf]  ;;  %v18088_v37 = vld [vmem:[%s20507_s0 + $0x124] sm:$0xf] }
 0x3c9   :  { %v13067_v20 = vcombine.low %v12767_v49, %v18088_v37  ;;  %v15450_v32 = vld [vmem:[%s20507_s0 + $0x134] ss:$0 sps:$4 sm:$0x11]  }
 0x3ca   :  { %v2795_v16 = vsel %vm710_vm0, %v2790_v28, %v2794_v63 }
 0x3cb   :  { %v2811_v58 = vshll.u32 %v13067_v20, 16  ;;  %v2809_v36 = vshrl.u32 %v13067_v20, 16 }
 0x3cc   :  { %5326 = vmatmul.mubr.bf16.gmra.mrb[60].mxu0 %v17932_v26  ;;  %v13066_v26 = vcombine.low %v12765_v57, %v18071_v23  ;;  %v2816_v57 = vshll.u32 %v18096_v39, 16 }
 0x3cd   :  { %5335 = vmatprep.mubr.bf16.mxu0 %v2771_v1  ;;  %v2804_v1 = vshll.u32 %v18080_v4, 16  ;;  %v2813_v42 = vrot.slane %v2811_v58, 1 }
 0x3ce   :  { %5839 = vmatmul.mubr.bf16.gmra.mrb[36].mxu1 %v3175_v15  ;;  %v2799_v38 = vshll.u32 %v13066_v26, 16  ;;  %v2797_v0 = vshrl.u32 %v13066_v26, 16  ;;  %v12769_v15 = vld [vmem:[%s20507_s0 + $0x12c] sm:$0xf]  ;;  %v2818_v53 = vrot.slane %v2816_v57, 1 }
 0x3cf   :  { %v2806_v40 = vrot.slane %v2804_v1, 1  ;;  %v2814_v29 = vor.u32 %v2813_v42, %v2809_v36  ;;  %v15917_v42 = vld [vmem:[%s20507_s0 + $0x38] ss:$0 sps:$4 sm:$0x11]  }
 0x3d0   :  { %v3087_v57 = vrot.slane %v15917_v42, 1  ;;  %v6104_v42 = vld [vmem:[#allocation2 + $0x14c] sm:$0x1] }
 0x3d1   :  { %v2819_v28 = vsel %vm710_vm0, %v2814_v29, %v2818_v53  ;;  %v12826_v29 = vld [vmem:[%s20507_s0 + $0x3c] sm:$0xe] }
 0x3d4   :  { %5336 = vmatmul.mubr.bf16.gmra.mrb[64].mxu0 %v17974_v19  ;;  %v2801_v19 = vrot.slane %v2799_v38, 1 }
 0x3d5   :  { %5345 = vmatprep.mubr.bf16.mxu0 %v2783_v52  ;;  %v13068_v52 = vcombine.low %v12769_v15, %v18104_v61  ;;  %v6000_v15 = vld [vmem:[#allocation2 + $0x12c] sm:$0x1] }
 0x3d6   :  { %v2802_v22 = vor.u32 %v2801_v19, %v2797_v0  ;;  %v2828_v0 = vshll.u32 %v15450_v32, 16  ;;  %v6098_v32 = vld [vmem:[#allocation2 + $0x134] sm:$0x1] }
 0x3d7   :  { %v2823_v38 = vshll.u32 %v13068_v52, 16  ;;  %v2821_v63 = vshrl.u32 %v13068_v52, 16 }
 0x3d8   :  { %v2830_v1 = vrot.slane %v2828_v0, 1 }
 0x3d9   :  { %v2825_v49 = vrot.slane %v2823_v38, 1  ;;  %v6099_v38 = vsel %vm18198_vm6, 0, %v6098_v32 }
 0x3da   :  { %6100 = vst [vmem:[#allocation2 + $0x134] sm:$0x1] %v6099_v38 }
 0x3db   :  { %v2826_v19 = vor.u32 %v2825_v49, %v2821_v63  ;;  %v15918_v63 = vld [vmem:[%s20507_s0 + $0x40] sm:$0xf] }
 0x3dc   :  { %5346 = vmatmul.mubr.bf16.gmra.mrb[68].mxu0 %v13064_v59  ;;  %v2807_v59 = vsel %vm710_vm0, %v2802_v22, %v2806_v40  ;;  %v13114_v49 = vcombine.low %v12826_v29, %v15918_v63  ;;  %v15922_v29 = vld [vmem:[%s20507_s0 + $0x58] sm:$0xf] }
 0x3dd   :  { %5355 = vmatprep.mubr.bf16.mxu0 %v2795_v16  ;;  %v2831_v16 = vsel %vm710_vm0, %v2826_v19, %v2830_v1 }
 0x3e4   :  { %5356 = vmatmul.mubr.bf16.gmra.mrb[72].mxu0 %v13065_v46 }
 0x3e5   :  { %5365 = vmatprep.mubr.bf16.mxu0 %v2807_v59 }
 0x3ec   :  { %5366 = vmatmul.mubr.bf16.gmra.mrb[76].mxu0 %v13066_v26 }
 0x3ed   :  { %5375 = vmatprep.mubr.bf16.mxu0 %v2819_v28 }
 0x3f4   :  { %5376 = vmatmul.mubr.bf16.gmra.mrb[80].mxu0 %v13067_v20 }
 0x3f5   :  { %5385 = vmatprep.mubr.bf16.mxu0 %v2831_v16  ;;  %v3089_v16 = vrot.slane %v13114_v49, 1 }
 0x3fc   :  { %5386 = vmatmul.mubr.bf16.gmra.mrb[84].mxu0 %v13068_v52  ;;  %v6001_v52 = vsel %vm18181_vm4, 0, %v6000_v15  ;;  %v12828_v15 = vld [vmem:[%s20507_s0 + $0x54] sm:$0xe] }
 0x3fd   :  { %5395 = vmatprep.mubr.bf16.mxu0 %v17693_v14  ;;  %6002 = vst [vmem:[#allocation2 + $0x12c] sm:$0x1] %v6001_v52  ;;  %v13116_v32 = vcombine.low %v12828_v15, %v15922_v29  ;;  %v15925_v15 = vld [vmem:[%s20507_s0 + $0x68] ss:$0 sps:$4 sm:$0x11]  }
 0x3ff   :  { %v3095_v49 = vrot.slane %v13116_v32, 1  ;;  %v6110_v32 = vld [vmem:[#allocation2 + $0x164] sm:$0x1] }
 0x404   :  { %5396 = vmatmul.mubr.bf16.gmra.mrb[88].mxu0 %v17657_v45  ;;  %v12823_v45 = vld [vmem:[%s20507_s0 + $0x18] sm:$0xe] }
 0x405   :  { %5405 = vmatprep.mubr.bf16.mxu0 %v17738_v51 }
 0x40c   :  { %5406 = vmatmul.mubr.bf16.gmra.mrb[92].mxu0 %v17687_v27  ;;  %v15912_v27 = vld [vmem:[%s20507_s0 + $0x1c] sm:$0xf] }
 0x40d   :  { %5415 = vmatprep.mubr.bf16.mxu0 %v17774_v13  ;;  %v13111_v14 = vcombine.low %v12823_v45, %v15912_v27  ;;  %v15919_v45 = vld [vmem:[%s20507_s0 + $0x44] ss:$0 sps:$4 sm:$0x11]  }
 0x40e   :  { %v3090_v27 = vrot.slane %v15919_v45, 1 }
 0x40f   :  { %v3080_v51 = vrot.slane %v13111_v14, 1  ;;  %v6003_v14 = vld [vmem:[#allocation2 + $0x138] sm:$0x1] }
 0x414   :  { %5416 = vmatmul.mubr.bf16.gmra.mrb[96].mxu0 %v17740_v7  ;;  %v15913_v7 = vld [vmem:[%s20507_s0 + $0x20] ss:$0 sps:$4 sm:$0x11]  }
 0x415   :  { %5425 = vmatprep.mubr.bf16.mxu0 %v17816_v41  ;;  %v3081_v13 = vrot.slane %v15913_v7, 1  ;;  %v3354_v41 = vlaneseq  ;;  %v12827_v7 = vld [vmem:[%s20507_s0 + $0x48] sm:$0xe] }
 0x41c   :  { %5426 = vmatmul.mubr.bf16.gmra.mrb[100].mxu0 %v17776_v50  ;;  %v12824_v50 = vld [vmem:[%s20507_s0 + $0x24] sm:$0xe] }
 0x41d   :  { %5435 = vmatprep.mubr.bf16.mxu0 %v17858_v34  ;;  %v15914_v34 = vld [vmem:[%s20507_s0 + $0x28] sm:$0xf] }
 0x424   :  { %5436 = vmatmul.mubr.bf16.gmra.mrb[104].mxu0 %v17818_v24  ;;  %v3082_v24 = vsel %vm1223_vm1, %v3080_v51, %v3081_v13  ;;  %v6004_v13 = vsel %vm18181_vm4, 0, %v6003_v14 }
 0x425   :  { %5445 = vmatprep.mubr.bf16.mxu0 %v17900_v44  ;;  %v18151_v44 = vshrl.u32 %v3354_v41, 7  ;;  %6005 = vst [vmem:[#allocation2 + $0x138] sm:$0x1] %v6004_v13 }
 0x42c   :  { %5446 = vmatmul.mubr.bf16.gmra.mrb[108].mxu0 %v17860_v8  ;;  %v13112_v8 = vcombine.low %v12824_v50, %v15914_v34  ;;  %v6101_v50 = vld [vmem:[#allocation2 + $0x140] sm:$0x1]  ;;  %v15920_v34 = vld [vmem:[%s20507_s0 + $0x4c] sm:$0xf] }
 0x42d   :  { %5455 = vmatprep.mubr.bf16.mxu0 %v17942_v62  ;;  %v6102_v41 = vsel %vm18198_vm6, 0, %v6101_v50  ;;  %v6107_v50 = vld [vmem:[#allocation2 + $0x158] sm:$0x1] }
 0x42e   :  { %v3083_v62 = vrot.slane %v13112_v8, 1  ;;  %v13115_v8 = vcombine.low %v12827_v7, %v15920_v34  ;;  %6103 = vst [vmem:[#allocation2 + $0x140] sm:$0x1] %v6102_v41  ;;  %v12829_v7 = vld [vmem:[%s20507_s0 + $0x60] sm:$0xe]  ;;  %v6108_v41 = vsel %vm18198_vm6, 0, %v6107_v50 }
 0x42f   :  { %v15924_v34 = vld [vmem:[%s20507_s0 + $0x64] sm:$0xf]  ;;  %6109 = vst [vmem:[#allocation2 + $0x158] sm:$0x1] %v6108_v41 }
 0x434   :  { %5456 = vmatmul.mubr.bf16.gmra.mrb[112].mxu0 %v17902_v3  ;;  %v18156_v3 = vld [vmem:[%s20509_s2] sm:$0x3] }
 0x435   :  { %5465 = vmatprep.mubr.bf16.mxu0 %v17984_v35 }
 0x43c   :  { %5466 = vmatmul.mubr.bf16.gmra.mrb[116].mxu0 %v17944_v25  ;;  %v15915_v25 = vld [vmem:[%s20507_s0 + $0x2c] ss:$0 sps:$4 sm:$0x11]  }
 0x43d   :  { %5475 = vmatprep.mubr.bf16.mxu0 %v18024_v60  ;;  %v3084_v35 = vrot.slane %v15915_v25, 1  ;;  %v12825_v60 = vld [vmem:[%s20507_s0 + $0x30] sm:$0xe] }
 0x43f   :  { %v3085_v46 = vsel %vm1223_vm1, %v3083_v62, %v3084_v35 }
 0x444   :  { %5476 = vmatmul.mubr.bf16.gmra.mrb[120].mxu0 %v17986_v5  ;;  %v3360_v5 = vsub.s32 1, %v18151_v44 }
 0x445   :  { %5485 = vmatprep.mubr.bf16.mxu0 %v18056_v55  ;;  %v15916_v55 = vld [vmem:[%s20507_s0 + $0x34] sm:$0xf] }
 0x446   :  { %v13113_v26 = vcombine.low %v12825_v60, %v15916_v55  ;;  %v15921_v60 = vld [vmem:[%s20507_s0 + $0x50] ss:$0 sps:$4 sm:$0x11]   ;;  %v6006_v55 = vld [vmem:[#allocation2 + $0x144] sm:$0x1] }
 0x448   :  { %v3086_v36 = vrot.slane %v13113_v26, 1 }
 0x44a   :  { %v3088_v28 = vsel %vm1223_vm1, %v3086_v36, %v3087_v57  ;;  %v6007_v36 = vsel %vm18181_vm4, 0, %v6006_v55  ;;  %v6105_v57 = vsel %vm18198_vm6, 0, %v6104_v42  ;;  %v6012_v42 = vld [vmem:[#allocation2 + $0x15c] sm:$0x1] }
 0x44b   :  { %6008 = vst [vmem:[#allocation2 + $0x144] sm:$0x1] %v6007_v36  ;;  %6106 = vst [vmem:[#allocation2 + $0x14c] sm:$0x1] %v6105_v57  ;;  %v3099_v36 = vrot.slane %v15925_v15, 1  ;;  %v6013_v29 = vsel %vm18181_vm4, 0, %v6012_v42 }
 0x44c   :  { %5486 = vmatmul.mubr.bf16.gmra.mrb[124].mxu0 %v18026_v56  ;;  %v18167_v56 = vrot.slane %v18156_v3, %v3360_v5  ;;  %v3092_v5 = vrot.slane %v13115_v8, 1  ;;  %v13117_v8 = vcombine.low %v12829_v7, %v15924_v34  ;;  %6014 = vst [vmem:[#allocation2 + $0x15c] sm:$0x1] %v6013_v29  ;;  %v6015_v15 = vld [vmem:[#allocation2 + $0x168] sm:$0x1] }
 0x44d   :  { %5528 = vmatprep.mubr.bf16.mxu0 %v20533_v31  ;;  %v12831_v42 = vld [vmem:[%s20507_s0 + $0x78] sm:$0xe]  ;;  %v6113_v29 = vld [vmem:[#allocation2 + $0x170] sm:$0x1] }
 0x44e   :  { %20589 = vst [vmem:[#allocation9_spill] sm:$0xff] %v18167_v56  ;;  %v3098_v55 = vrot.slane %v13117_v8, 1  ;;  %v15927_v8 = vld [vmem:[%s20507_s0 + $0x74] ss:$0 sps:$4 sm:$0x11]  }
 0x454   :  { %5529 = vmatmul.mubr.bf16.vlgmr.msra.gmra.mrb[0].mxu0 %v3082_v24  ;;  %v3091_v24 = vsel %vm1223_vm1, %v3089_v16, %v3090_v27  ;;  %v15923_v16 = vld [vmem:[%s20507_s0 + $0x5c] ss:$0 sps:$4 sm:$0x11]   ;;  %v6009_v27 = vld [vmem:[#allocation2 + $0x150] sm:$0x1] }
 0x455   :  { %5538 = vmatprep.mubr.bf16.mxu0 %v20533_v31  ;;  %v3096_v45 = vrot.slane %v15923_v16, 1  ;;  %v6010_v13 = vsel %vm18181_vm4, 0, %v6009_v27  ;;  %v6111_v16 = vsel %vm18198_vm6, 0, %v6110_v32  ;;  %v15926_v27 = vld [vmem:[%s20507_s0 + $0x70] sm:$0xf]  ;;  %v6114_v32 = vsel %vm18198_vm6, 0, %v6113_v29 }
 0x456   :  { %6011 = vst [vmem:[#allocation2 + $0x150] sm:$0x1] %v6010_v13  ;;  %6112 = vst [vmem:[#allocation2 + $0x164] sm:$0x1] %v6111_v16  ;;  %v15509_v13 = vld [vmem:[%s20510_s3 + $0x8] sm:$0xff]  }
 0x457   :  { %v15928_v16 = vld [vmem:[%s20507_s0 + $0x7c] sm:$0xf]  ;;  %6115 = vst [vmem:[#allocation2 + $0x170] sm:$0x1] %v6114_v32  ;;  %v12832_v32 = vld [vmem:[%s20507_s0 + $0x84] sm:$0xe] }
 0x459   :  { %v18173_v20 = vpop.f32.mrb[0].mxu1 }
 0x45a   :  { %v18175_v22 = vpop.f32.mrb[1].mxu1 }
 0x45b   :  { %v18177_v40 = vpop.f32.mrb[2].mxu1 }
 0x45c   :  { %5539 = vmatmul.mubr.bf16.gmra.mrb[4].mxu0 %v3085_v46  ;;  %v18185_v59 = vpop.f32.mrb[3].mxu1  ;;  %v3093_v46 = vrot.slane %v15921_v60, 1 }
 0x45d   :  { %5548 = vmatprep.mubr.bf16.mxu0 %v20533_v31 }
 0x45e   :  { %v3094_v52 = vsel %vm1223_vm1, %v3092_v5, %v3093_v46 }
 0x461   :  { %v18208_v0 = vpop.f32.mrb[4].mxu1 }
 0x462   :  { %v18210_v19 = vpop.f32.mrb[5].mxu1 }
 0x463   :  { %v18212_v1 = vpop.f32.mrb[6].mxu1 }
 0x464   :  { %5549 = vmatmul.mubr.bf16.gmra.mrb[8].mxu0 %v3088_v28  ;;  %v18218_v51 = vpop.f32.mrb[7].mxu1 }
 0x465   :  { %5558 = vmatprep.mubr.bf16.mxu0 %v20533_v31 }
 0x469   :  { %v18231_v62 = vpop.f32.mrb[8].mxu1 }
 0x46a   :  { %v18233_v25 = vpop.f32.mrb[9].mxu1 }
 0x46b   :  { %v18235_v35 = vpop.f32.mrb[10].mxu1 }
 0x46c   :  { %5559 = vmatmul.mubr.bf16.gmra.mrb[12].mxu0 %v3091_v24  ;;  %v18241_v26 = vpop.f32.mrb[11].mxu1  ;;  %v3097_v24 = vsel %vm1223_vm1, %v3095_v49, %v3096_v45  ;;  %v15507_v49 = vld [vmem:[%s20510_s3] sm:$0xff]   ;;  %v3100_v45 = vsel %vm1223_vm1, %v3098_v55, %v3099_v36  ;;  %v3102_v55 = vrot.slane %v15927_v8, 1 }
 0x46d   :  { %5568 = vmatprep.mubr.bf16.mxu0 %v20533_v31  ;;  %10946 = vmatpush1.bf16.msra.mxu1 %v15507_v49 }
 0x46e   :  { %10947 = vmatprep.subr.bf16.mxu1 %v20533_v31 }
 0x471   :  { %v18254_v38 = vpop.f32.mrb[12].mxu1  ;;  %10948 = vmatpush1.bf16.msra.mxu1 %v15509_v13 }
 0x472   :  { %v18256_v28 = vpop.f32.mrb[13].mxu1  ;;  %10949 = vmatprep.subr.bf16.mxu1 %v20533_v31 }
 0x473   :  { %v18258_v63 = vpop.f32.mrb[14].mxu1 }
 0x474   :  { %5569 = vmatmul.mubr.bf16.gmra.mrb[16].mxu0 %v3094_v52  ;;  %v18264_v14 = vpop.f32.mrb[15].mxu1  ;;  %v12830_v52 = vld [vmem:[%s20507_s0 + $0x6c] sm:$0xe] }
 0x475   :  { %5578 = vmatprep.mubr.bf16.mxu0 %v20533_v31  ;;  %v13118_v7 = vcombine.low %v12830_v52, %v15926_v27  ;;  %v6016_v52 = vsel %vm18181_vm4, 0, %v6015_v15  ;;  %v15511_v27 = vld [vmem:[%s20510_s3 + $0x10] sm:$0xff]  }
 0x476   :  { %6017 = vst [vmem:[#allocation2 + $0x168] sm:$0x1] %v6016_v52  ;;  %10950 = vmatpush1.bf16.msra.mxu1 %v15511_v27  ;;  %v6018_v52 = vld [vmem:[#allocation2 + $0x174] sm:$0x1] }
 0x477   :  { %v3101_v34 = vrot.slane %v13118_v7, 1  ;;  %10951 = vmatprep.subr.bf16.mxu1 %v20533_v31 }
 0x479   :  { %v18277_v5 = vpop.f32.mrb[16].mxu1  ;;  %v3103_v49 = vsel %vm1223_vm1, %v3101_v34, %v3102_v55  ;;  %v15929_v55 = vld [vmem:[%s20507_s0 + $0x80] ss:$0 sps:$4 sm:$0x11]  }
 0x47a   :  { %v18279_v60 = vpop.f32.mrb[17].mxu1  ;;  %v3105_v15 = vrot.slane %v15929_v55, 1  ;;  %v15930_v55 = vld [vmem:[%s20507_s0 + $0x88] sm:$0xf] }
 0x47b   :  { %v18281_v46 = vpop.f32.mrb[18].mxu1 }
 0x47c   :  { %5579 = vmatmul.mubr.bf16.gmra.mrb[20].mxu0 %v3097_v24  ;;  %v18287_v57 = vpop.f32.mrb[19].mxu1 }
 0x47d   :  { %5588 = vmatprep.mubr.bf16.mxu0 %v20533_v31 }
 0x481   :  { %v18306_v50 = vpop.f32.mrb[20].mxu1 }
 0x482   :  { %v18309_v41 = vpop.f32.mrb[21].mxu1 }
 0x483   :  { %v18311_v24 = vpop.f32.mrb[22].mxu1 }
 0x484   :  { %5589 = vmatmul.mubr.bf16.gmra.mrb[24].mxu0 %v3100_v45  ;;  %v18317_v36 = vpop.f32.mrb[23].mxu1  ;;  %v13119_v45 = vcombine.low %v12831_v42, %v15928_v16  ;;  %v15512_v42 = vld [vmem:[%s20510_s3 + $0x18] sm:$0xff]  }
 0x485   :  { %5598 = vmatprep.mubr.bf16.mxu0 %v20533_v31  ;;  %10952 = vmatpush1.bf16.msra.mxu1 %v15512_v42  ;;  %v6116_v16 = vld [vmem:[#allocation2 + $0x17c] sm:$0x1] }
 0x486   :  { %v3104_v34 = vrot.slane %v13119_v45, 1  ;;  %10953 = vmatprep.subr.bf16.mxu1 %v20533_v31  ;;  %v6117_v45 = vsel %vm18198_vm6, 0, %v6116_v16  ;;  %v15514_v16 = vld [vmem:[%s20510_s3 + $0x28] sm:$0xff]  }
 0x487   :  { %6118 = vst [vmem:[#allocation2 + $0x17c] sm:$0x1] %v6117_v45 }
 0x488   :  { %v3106_v27 = vsel %vm1223_vm1, %v3104_v34, %v3105_v15  ;;  %v15931_v15 = vld [vmem:[%s20507_s0 + $0x8c] ss:$0 sps:$4 sm:$0x11]  }
 0x489   :  { %v18334_v7 = vpop.f32.mrb[24].mxu1 }
 0x48a   :  { %v18336_v13 = vpop.f32.mrb[25].mxu1 }
 0x48b   :  { %v18339_v8 = vpop.f32.mrb[26].mxu1 }
 0x48c   :  { %5599 = vmatmul.mubr.bf16.gmra.mrb[28].mxu0 %v3103_v49  ;;  %20594 = vst [vmem:[#allocation10_spill] sm:$0xff] %v18339_v8  ;;  %v18348_v29 = vpop.f32.mrb[27].mxu1  ;;  %v6019_v49 = vsel %vm18181_vm4, 0, %v6018_v52  ;;  %v15513_v8 = vld [vmem:[%s20510_s3 + $0x20] sm:$0xff]  }
 0x48d   :  { %5608 = vmatprep.mubr.bf16.mxu0 %v20533_v31  ;;  %20595 = vst [vmem:[#allocation11_spill] sm:$0xff] %v18348_v29  ;;  %6020 = vst [vmem:[#allocation2 + $0x174] sm:$0x1] %v6019_v49  ;;  %v13120_v29 = vcombine.low %v12832_v32, %v15930_v55  ;;  %10954 = vmatpush1.bf16.msra.mxu1 %v15513_v8  ;;  %v3108_v32 = vrot.slane %v15931_v15, 1  ;;  %v6021_v8 = vld [vmem:[#allocation2 + $0x180] sm:$0x1] }
 0x48e   :  { %10955 = vmatprep.subr.bf16.mxu1 %v20533_v31  ;;  %v6022_v55 = vsel %vm18181_vm4, 0, %v6021_v8 }
 0x48f   :  { %v3107_v34 = vrot.slane %v13120_v29, 1  ;;  %6023 = vst [vmem:[#allocation2 + $0x180] sm:$0x1] %v6022_v55  ;;  %v6119_v29 = vld [vmem:[#allocation2 + $0x188] sm:$0x1] }
 0x490   :  { %v6120_v15 = vsel %vm18198_vm6, 0, %v6119_v29 }
 0x491   :  { %v18365_v42 = vpop.f32.mrb[28].mxu1  ;;  %10956 = vmatpush1.bf16.msra.mxu1 %v15514_v16  ;;  %6121 = vst [vmem:[#allocation2 + $0x188] sm:$0x1] %v6120_v15 }
 0x492   :  { %20596 = vst [vmem:[#allocation12_spill] sm:$0xff] %v18365_v42  ;;  %v18367_v52 = vpop.f32.mrb[29].mxu1  ;;  %10957 = vmatprep.subr.bf16.mxu1 %v20533_v31  ;;  %v15515_v42 = vld [vmem:[%s20510_s3 + $0x30] sm:$0xff]  }
 0x493   :  { %20597 = vst [vmem:[#allocation13_spill] sm:$0xff] %v18367_v52  ;;  %v18370_v49 = vpop.f32.mrb[30].mxu1 }
 0x494   :  { %5609 = vmatmul.mubr.bf16.gmra.mrb[32].mxu0 %v3106_v27  ;;  %20598 = vst [vmem:[#allocation14_spill] sm:$0xff] %v18370_v49  ;;  %v18379_v45 = vpop.f32.mrb[31].mxu1  ;;  %v12833_v27 = vld [vmem:[%s20507_s0 + $0x90] sm:$0xe]  ;;  %v3109_v49 = vsel %vm1223_vm1, %v3107_v34, %v3108_v32 }
 0x495   :  { %5618 = vmatprep.mubr.bf16.mxu0 %v20533_v31  ;;  %20599 = vst [vmem:[#allocation15_spill] sm:$0xff] %v18379_v45  ;;  %v15932_v45 = vld [vmem:[%s20507_s0 + $0x94] sm:$0xf]  ;;  %10958 = vmatpush1.bf16.msra.mxu1 %v15515_v42  ;;  %v15933_v32 = vld [vmem:[%s20507_s0 + $0x98] ss:$0 sps:$4 sm:$0x11]  }
 0x496   :  { %v13121_v52 = vcombine.low %v12833_v27, %v15932_v45  ;;  %10959 = vmatprep.subr.bf16.mxu1 %v20533_v31  ;;  %v3111_v45 = vrot.slane %v15933_v32, 1  ;;  %v15516_v27 = vld [vmem:[%s20510_s3 + $0x38] sm:$0xff]   ;;  %v6024_v42 = vld [vmem:[#allocation2 + $0x18c] sm:$0x1] }
 0x497   :  { %v6025_v15 = vsel %vm18181_vm4, 0, %v6024_v42 }
 0x498   :  { %v3110_v34 = vrot.slane %v13121_v52, 1  ;;  %6026 = vst [vmem:[#allocation2 + $0x18c] sm:$0x1] %v6025_v15  ;;  %v6122_v52 = vld [vmem:[#allocation2 + $0x194] sm:$0x1] }
 0x499   :  { %v18396_v16 = vpop.f32.mrb[32].mxu1  ;;  %10960 = vmatpush1.bf16.msra.mxu1 %v15516_v27  ;;  %v6123_v32 = vsel %vm18198_vm6, 0, %v6122_v52 }
 0x49a   :  { %20600 = vst [vmem:[#allocation16_spill] sm:$0xff] %v18396_v16  ;;  %v18398_v8 = vpop.f32.mrb[33].mxu1  ;;  %10961 = vmatprep.subr.bf16.mxu1 %v20533_v31  ;;  %v15517_v16 = vld [vmem:[%s20510_s3 + $0x40] sm:$0xff]   ;;  %6124 = vst [vmem:[#allocation2 + $0x194] sm:$0x1] %v6123_v32 }
 0x49b   :  { %20601 = vst [vmem:[#allocation17_spill] sm:$0xff] %v18398_v8  ;;  %v18401_v55 = vpop.f32.mrb[34].mxu1  ;;  %v6125_v32 = vld [vmem:[#allocation2 + $0x1a0] sm:$0x1] }
 0x49c   :  { %5619 = vmatmul.mubr.bf16.gmra.mrb[36].mxu0 %v3109_v49  ;;  %20602 = vst [vmem:[#allocation18_spill] sm:$0xff] %v18401_v55  ;;  %v18410_v29 = vpop.f32.mrb[35].mxu1  ;;  %v12834_v49 = vld [vmem:[%s20507_s0 + $0x9c] sm:$0xe]  ;;  %v3112_v55 = vsel %vm1223_vm1, %v3110_v34, %v3111_v45  ;;  %v3114_v45 = vrot.slane %v17787_v9, 1  ;;  %v6126_v9 = vsel %vm18198_vm6, 0, %v6125_v32 }
 0x49d   :  { %5628 = vmatprep.mubr.bf16.mxu0 %v20533_v31  ;;  %20603 = vst [vmem:[#allocation19_spill] sm:$0xff] %v18410_v29  ;;  %v15934_v29 = vld [vmem:[%s20507_s0 + $0xa0] sm:$0xf]  ;;  %10962 = vmatpush1.bf16.msra.mxu1 %v15517_v16  ;;  %v12835_v16 = vld [vmem:[%s20507_s0 + $0xa8] sm:$0xe] }
 0x49e   :  { %v13122_v8 = vcombine.low %v12834_v49, %v15934_v29  ;;  %10963 = vmatprep.subr.bf16.mxu1 %v20533_v31  ;;  %v15518_v29 = vld [vmem:[%s20510_s3 + $0x48] sm:$0xff]   ;;  %v6027_v49 = vld [vmem:[#allocation2 + $0x198] sm:$0x1]  ;;  %6127 = vst [vmem:[#allocation2 + $0x1a0] sm:$0x1] %v6126_v9 }
 0x4a0   :  { %v3113_v34 = vrot.slane %v13122_v8, 1 }
 0x4a1   :  { %v18427_v27 = vpop.f32.mrb[36].mxu1  ;;  %10964 = vmatpush1.bf16.msra.mxu1 %v15518_v29 }
 0x4a2   :  { %v18429_v42 = vpop.f32.mrb[37].mxu1  ;;  %10965 = vmatprep.subr.bf16.mxu1 %v20533_v31  ;;  %v3115_v8 = vsel %vm1223_vm1, %v3113_v34, %v3114_v45  ;;  %v3117_v34 = vrot.slane %v17829_v18, 1  ;;  %v15520_v45 = vld [vmem:[%s20510_s3 + $0x58] sm:$0xff]  }
 0x4a3   :  { %20604 = vst [vmem:[#allocation20_spill] sm:$0xff] %v18429_v42  ;;  %v18432_v15 = vpop.f32.mrb[38].mxu1  ;;  %v5934_v42 = vld [vmem:[#allocation2 + $0xc] sm:$0x1] }
 0x4a4   :  { %5629 = vmatmul.mubr.bf16.gmra.mrb[40].mxu0 %v3112_v55  ;;  %20605 = vst [vmem:[#allocation21_spill] sm:$0xff] %v18432_v15  ;;  %v18439_v52 = vpop.f32.mrb[39].mxu1  ;;  %v6028_v55 = vsel %vm18181_vm4, 0, %v6027_v49  ;;  %v13123_v15 = vcombine.low %v12835_v16, %v17797_v48  ;;  %v5935_v29 = vsel %vm18181_vm4, 0, %v5934_v42  ;;  %v6032_v48 = vld [vmem:[#allocation2 + $0x14] sm:$0x1] }
 0x4a5   :  { %5638 = vmatprep.mubr.bf16.mxu0 %v20533_v31  ;;  %20606 = vst [vmem:[#allocation22_spill] sm:$0xff] %v18439_v52  ;;  %6029 = vst [vmem:[#allocation2 + $0x198] sm:$0x1] %v6028_v55  ;;  %v15519_v52 = vld [vmem:[%s20510_s3 + $0x50] sm:$0xff]   ;;  %v6033_v42 = vsel %vm18198_vm6, 0, %v6032_v48  ;;  %v15521_v16 = vld [vmem:[%s20510_s3 + $0x60] sm:$0xff]  }
 0x4a6   :  { %10966 = vmatpush1.bf16.msra.mxu1 %v15519_v52  ;;  %v3116_v49 = vrot.slane %v13123_v15, 1  ;;  %5936 = vst [vmem:[#allocation2 + $0xc] sm:$0x1] %v5935_v29  ;;  %v12836_v52 = vld [vmem:[%s20507_s0 + $0xb4] sm:$0xe] }
 0x4a7   :  { %10967 = vmatprep.subr.bf16.mxu1 %v20533_v31  ;;  %6034 = vst [vmem:[#allocation2 + $0x14] sm:$0x1] %v6033_v42  ;;  %v13124_v18 = vcombine.low %v12836_v52, %v17839_v17  ;;  %v5937_v55 = vld [vmem:[#allocation2 + $0x18] sm:$0x1]  ;;  %v6035_v29 = vld [vmem:[#allocation2 + $0x20] sm:$0x1] }
 0x4a8   :  { %v3118_v15 = vsel %vm1223_vm1, %v3116_v49, %v3117_v34  ;;  %v5938_v32 = vsel %vm18181_vm4, 0, %v5937_v55  ;;  %v15522_v17 = vld [vmem:[%s20510_s3 + $0x68] sm:$0xff]   ;;  %v12837_v49 = vld [vmem:[%s20507_s0 + $0xc0] sm:$0xe]  ;;  %v6036_v34 = vsel %vm18198_vm6, 0, %v6035_v29 }
 0x4a9   :  { %v3119_v9 = vrot.slane %v13124_v18, 1  ;;  %5939 = vst [vmem:[#allocation2 + $0x18] sm:$0x1] %v5938_v32  ;;  %6037 = vst [vmem:[#allocation2 + $0x20] sm:$0x1] %v6036_v34  ;;  %v13125_v42 = vcombine.low %v12837_v49, %v17881_v47  ;;  %v15524_v49 = vld [vmem:[%s20510_s3 + $0x78] sm:$0xff]  }
 0x4aa   :  { %10968 = vmatpush1.bf16.msra.mxu1 %v15520_v45  ;;  %v7193_v48 = vld [vmem:[#allocation2] sm:$0xf]  ;;  %v7194_v45 = vld [vmem:[#allocation2 + $0x4] sm:$0xf] }
 0x4ab   :  { %10969 = vmatprep.subr.bf16.mxu1 %v20533_v31  ;;  %v15526_v18 = vld [vmem:[#allocation2 + $0x8] ss:$0 sps:$4 sm:$0x11]   ;;  %v5940_v55 = vld [vmem:[#allocation2 + $0x24] sm:$0x1]  ;;  %v3122_v47 = vrot.slane %v13125_v42, 1 }
 0x4ac   :  { %5639 = vmatmul.mubr.bf16.gmra.mrb[44].mxu0 %v3115_v8  ;;  %v3120_v8 = vrot.slane %v17871_v21, 1  ;;  %v13351_v21 = vcombine.low %v7193_v48, %v7194_v45  ;;  %v5941_v32 = vsel %vm18181_vm4, 0, %v5940_v55  ;;  %v7874_v34 = vshll.u32 %v15526_v18, 16  ;;  %v12838_v48 = vld [vmem:[%s20507_s0 + $0xcc] sm:$0xe] }
 0x4ad   :  { %5648 = vmatprep.mubr.bf16.mxu0 %v20533_v31  ;;  %5942 = vst [vmem:[#allocation2 + $0x24] sm:$0x1] %v5941_v32  ;;  %v13126_v18 = vcombine.low %v12838_v48, %v17923_v11  ;;  %v12840_v48 = vld [vmem:[%s20507_s0 + $0xfc] sm:$0xe] }
 0x4ae   :  { %10970 = vmatpush1.bf16.msra.mxu1 %v15521_v16  ;;  %v3121_v52 = vsel %vm1223_vm1, %v3119_v9, %v3120_v8  ;;  %v7869_v16 = vshll.u32 %v13351_v21, 16  ;;  %v7867_v29 = vshrl.u32 %v13351_v21, 16  ;;  %v3123_v9 = vrot.slane %v17913_v33, 1  ;;  %v6038_v8 = vld [vmem:[#allocation2 + $0x2c] sm:$0x1] }
 0x4af   :  { %10971 = vmatprep.subr.bf16.mxu1 %v20533_v31  ;;  %v6039_v45 = vsel %vm18198_vm6, 0, %v6038_v8  ;;  %v3125_v32 = vrot.slane %v13126_v18, 1 }
 0x4b0   :  { %6040 = vst [vmem:[#allocation2 + $0x2c] sm:$0x1] %v6039_v45  ;;  %v3124_v33 = vsel %vm1223_vm1, %v3122_v47, %v3123_v9  ;;  %v5946_v9 = vld [vmem:[#allocation2 + $0x3c] sm:$0x1]  ;;  %v15527_v45 = vld [vmem:[%s20510_s3 + $0x80] sm:$0xff]  }
 0x4b1   :  { %v5947_v8 = vsel %vm18181_vm4, 0, %v5946_v9 }
 0x4b2   :  { %10972 = vmatpush1.bf16.msra.mxu1 %v15522_v17  ;;  %v7871_v17 = vrot.slane %v7869_v16, 1  ;;  %v5943_v16 = vld [vmem:[#allocation2 + $0x30] sm:$0x1]  ;;  %5948 = vst [vmem:[#allocation2 + $0x3c] sm:$0x1] %v5947_v8 }
 0x4b3   :  { %10973 = vmatprep.subr.bf16.mxu1 %v20533_v31  ;;  %v5944_v55 = vsel %vm18181_vm4, 0, %v5943_v16  ;;  %v5949_v16 = vld [vmem:[#allocation2 + $0x48] sm:$0x1] }
 0x4b4   :  { %5649 = vmatmul.mubr.bf16.gmra.mrb[48].mxu0 %v3118_v15  ;;  %v15523_v15 = vld [vmem:[%s20510_s3 + $0x70] sm:$0xff]   ;;  %5945 = vst [vmem:[#allocation2 + $0x30] sm:$0x1] %v5944_v55 }
 0x4b5   :  { %5658 = vmatprep.mubr.bf16.mxu0 %v20533_v31 }
 0x4b6   :  { %10974 = vmatpush1.bf16.msra.mxu1 %v15523_v15  ;;  %v7876_v15 = vrot.slane %v7874_v34, 1  ;;  %v12839_v34 = vld [vmem:[%s20507_s0 + $0xf0] sm:$0xe] }
 0x4b7   :  { %10975 = vmatprep.subr.bf16.mxu1 %v20533_v31  ;;  %v13127_v47 = vcombine.low %v12839_v34, %v17965_v2  ;;  %v3356_v2 = vsub.s32 0, %v18151_v44  ;;  %v3132_v44 = vrot.slane %v18038_v12, 1  ;;  %v6047_v34 = vld [vmem:[#allocation2 + $0x50] sm:$0x1] }
 0x4ba   :  { %10976 = vmatpush1.bf16.msra.mxu1 %v15524_v49  ;;  %v3129_v49 = vrot.slane %v17997_v43, 1 }
 0x4bb   :  { %11234 = vmatprep.subr.bf16.mxu1 %v20533_v31 }
 0x4bc   :  { %5659 = vmatmul.mubr.bf16.gmra.mrb[52].mxu0 %v3121_v52  ;;  %v7872_v52 = vor.u32 %v7871_v17, %v7867_v29  ;;  %v3126_v29 = vrot.slane %v17955_v6, 1  ;;  %v6041_v17 = vld [vmem:[#allocation2 + $0x38] sm:$0x1]  ;;  %v3128_v6 = vrot.slane %v13127_v47, 1  ;;  %v6048_v47 = vsel %vm18198_vm6, 0, %v6047_v34 }
 0x4bd   :  { %5668 = vmatprep.mubr.bf16.mxu0 %v20533_v31  ;;  %v6042_v11 = vsel %vm18198_vm6, 0, %v6041_v17  ;;  %6049 = vst [vmem:[#allocation2 + $0x50] sm:$0x1] %v6048_v47 }
 0x4be   :  { %v7877_v42 = vsel %vm710_vm0, %v7872_v52, %v7876_v15  ;;  %6043 = vst [vmem:[#allocation2 + $0x38] sm:$0x1] %v6042_v11  ;;  %v6044_v52 = vld [vmem:[#allocation2 + $0x44] sm:$0x1]  ;;  %v3130_v15 = vsel %vm1223_vm1, %v3128_v6, %v3129_v49 }
 0x4bf   :  { %10977 = vmatprep.mubr.bf16.mxu1 %v7877_v42  ;;  %v13128_v42 = vcombine.low %v12840_v48, %v18007_v54  ;;  %v6045_v43 = vsel %vm18198_vm6, 0, %v6044_v52  ;;  %v12841_v54 = vld [vmem:[%s20507_s0 + $0x108] sm:$0xe]  ;;  %v3135_v52 = vrot.slane %v18062_v10, 1 }
 0x4c0   :  { %10978 = vmatmul.mubr.bf16.vlgmr.msra.gmra.mrb[40].mxu1 %v13351_v21  ;;  %v3127_v21 = vsel %vm1223_vm1, %v3125_v32, %v3126_v29  ;;  %6046 = vst [vmem:[#allocation2 + $0x44] sm:$0x1] %v6045_v43  ;;  %v5950_v32 = vsel %vm18181_vm4, 0, %v5949_v16  ;;  %v15532_v10 = vld [vmem:[%s20510_s3 + $0x88] sm:$0xff]  }
 0x4c1   :  { %11235 = vmatpush1.bf16.msra.mxu1 %v15527_v45  ;;  %v3131_v18 = vrot.slane %v13128_v42, 1  ;;  %5951 = vst [vmem:[#allocation2 + $0x48] sm:$0x1] %v5950_v32 }
 0x4c2   :  { %11236 = vmatprep.subr.bf16.mxu1 %v20533_v31 }
 0x4c3   :  { %v3133_v12 = vsel %vm1223_vm1, %v3131_v18, %v3132_v44 }
 0x4c4   :  { %5669 = vmatmul.mubr.bf16.gmra.mrb[56].mxu0 %v3124_v33  ;;  %v18537_v33 = vrot.slane %v18156_v3, %v3356_v2  ;;  %v13129_v3 = vcombine.low %v12841_v54, %v18046_v30 }
 0x4c5   :  { %5678 = vmatprep.mubr.bf16.mxu0 %v20533_v31  ;;  %11237 = vmatpush1.bf16.msra.mxu1 %v15532_v10 }
 0x4c6   :  { %v3134_v2 = vrot.slane %v13129_v3, 1  ;;  %v3138_v3 = vrot.slane %v18080_v4, 1  ;;  %11238 = vmatprep.subr.bf16.mxu1 %v20533_v31 }
 0x4c8   :  { %v3136_v32 = vsel %vm1223_vm1, %v3134_v2, %v3135_v52 }
 0x4cc   :  { %5679 = vmatmul.mubr.bf16.gmra.mrb[60].mxu0 %v3127_v21 }
 0x4cd   :  { %5688 = vmatprep.mubr.bf16.mxu0 %v20533_v31 }
 0x4d4   :  { %5689 = vmatmul.mubr.bf16.gmra.mrb[64].mxu0 %v3130_v15  ;;  %v12842_v15 = vld [vmem:[%s20507_s0 + $0x114] sm:$0xe] }
 0x4d5   :  { %5698 = vmatprep.mubr.bf16.mxu0 %v20533_v31 }
 0x4d7   :  { %v5397_v55 = vpop.f32.mrb[88].mxu0 }
 0x4d8   :  { %v14000_v29 = vadd.f32 %v5397_v55, %v18537_v33  ;;  %v5399_v17 = vpop.f32.mrb[89].mxu0 }
 0x4d9   :  { %v14002_v11 = vadd.f32 %v5399_v17, %v18167_v56  ;;  %v5401_v21 = vpop.f32.mrb[90].mxu0 }
 0x4da   :  { %v14004_v9 = vadd.f32 %v5401_v21, %v18537_v33  ;;  %v14001_v8 = vadd.f32 %v14000_v29, %v18173_v20  ;;  %v5403_v6 = vpop.f32.mrb[91].mxu0  ;;  %v6050_v29 = vld [vmem:[#allocation2 + $0x5c] sm:$0x1] }
 0x4db   :  { %v14006_v49 = vadd.f32 %v5403_v6, %v18167_v56  ;;  %v18556_v30 = vadd.f32 %v14002_v11, %v18175_v22  ;;  %v5952_v22 = vld [vmem:[#allocation2 + $0x54] sm:$0x1]  ;;  %v6051_v34 = vsel %vm18198_vm6, 0, %v6050_v29  ;;  %v7123_v6 = vld [vmem:[#allocation2 + $0x12c] sm:$0xf] }
 0x4dc   :  { %v5893_v48 = vmax.f32 %v14001_v8, 0.0  ;;  %v14005_v45 = vadd.f32 %v14004_v9, %v18177_v40  ;;  %5699 = vmatmul.mubr.bf16.gmra.mrb[68].mxu0 %v3133_v12  ;;  %v13130_v40 = vcombine.low %v12842_v15, %v18071_v23  ;;  %v5953_v44 = vsel %vm18181_vm4, 0, %v5952_v22  ;;  %v12843_v8 = vld [vmem:[%s20507_s0 + $0x120] sm:$0xe]  ;;  %6052 = vst [vmem:[#allocation2 + $0x5c] sm:$0x1] %v6051_v34 }
 0x4dd   :  { %20607 = vst [vmem:[#allocation23_spill] sm:$0xff] %v18556_v30  ;;  %v18564_v20 = vadd.f32 %v14006_v49, %v18185_v59  ;;  %5708 = vmatprep.mubr.bf16.mxu0 %v20533_v31  ;;  %5954 = vst [vmem:[#allocation2 + $0x54] sm:$0x1] %v5953_v44 }
 0x4de   :  { %v13756_v42 = vpack.c.bf16 %v5893_v48, %v5893_v48  ;;  %v5894_v43 = vmax.f32 %v14005_v45, 0.0  ;;  %v3137_v2 = vrot.slane %v13130_v40, 1 }
 0x4df   :  { %20608 = vst [vmem:[#allocation24_spill] sm:$0xff] %v18564_v20  ;;  %v5407_v18 = vpop.f32.mrb[92].mxu0 }
 0x4e0   :  { %v6698_v54 = vshrl.u32 %v13756_v42, 16  ;;  %v13757_v16 = vpack.c.bf16 %v5894_v43, %v5894_v43  ;;  %v14008_v59 = vadd.f32 %v5407_v18, %v18537_v33  ;;  %v5409_v55 = vpop.f32.mrb[93].mxu0  ;;  %v6701_v21 = vshll.u32 %v13756_v42, 16 }
 0x4e1   :  { %v14010_v17 = vadd.f32 %v5409_v55, %v18167_v56  ;;  %v5411_v23 = vpop.f32.mrb[94].mxu0  ;;  %v3139_v29 = vsel %vm1223_vm1, %v3137_v2, %v3138_v3 }
 0x4e2   :  { %v6700_v11 = vrot.slane %v6698_v54, 7  ;;  %v6706_v12 = vshrl.u32 %v13757_v16, 16  ;;  %v14012_v47 = vadd.f32 %v5411_v23, %v18537_v33  ;;  %v5413_v9 = vpop.f32.mrb[95].mxu0  ;;  %v14009_v49 = vadd.f32 %v14008_v59, %v18208_v0  ;;  %v7127_v0 = vld [vmem:[#allocation2 + $0x134] sm:$0x1] }
 0x4e3   :  { %v14014_v48 = vadd.f32 %v5413_v9, %v18167_v56  ;;  %v18593_v45 = vadd.f32 %v14010_v17, %v18210_v19  ;;  %v6709_v42 = vshll.u32 %v13757_v16, 16  ;;  %v13131_v19 = vcombine.low %v12843_v8, %v18088_v37  ;;  %v5955_v59 = vld [vmem:[#allocation2 + $0x60] sm:$0x1] }
 0x4e4   :  { %v6703_v52 = vor.u32 %v6701_v21, %v6700_v11  ;;  %v6708_v15 = vrot.slane %v6706_v12, 7  ;;  %v14013_v43 = vadd.f32 %v14012_v47, %v18212_v1  ;;  %5709 = vmatmul.mubr.bf16.gmra.mrb[72].mxu0 %v3136_v32  ;;  %v6704_v22 = vrot.slane %v6700_v11, 4  ;;  %v6053_v21 = vld [vmem:[#allocation2 + $0x68] sm:$0x1] }
 0x4e5   :  { %20611 = vst [vmem:[#allocation25_spill] sm:$0xff] %v18593_v45  ;;  %v5895_v10 = vmax.f32 %v14009_v49, 0.0  ;;  %v18603_v44 = vadd.f32 %v14014_v48, %v18218_v51  ;;  %5718 = vmatprep.mubr.bf16.mxu0 %v20533_v31  ;;  %v5956_v51 = vsel %vm18181_vm4, 0, %v5955_v59  ;;  %v3140_v9 = vrot.slane %v13131_v19, 1 }
 0x4e6   :  { %v7124_v1 = vsel %vm18586_vm9, %v6703_v52, %v7123_v6  ;;  %v6711_v40 = vor.u32 %v6709_v42, %v6708_v15  ;;  %v6713_v54 = vrot.slane %v6708_v15, 4  ;;  %v5896_v16 = vmax.f32 %v14013_v43, 0.0  ;;  %5957 = vst [vmem:[#allocation2 + $0x60] sm:$0x1] %v5956_v51  ;;  %v7130_v43 = vld [vmem:[#allocation2 + $0x138] sm:$0xf] }
 0x4e7   :  { %20614 = vst [vmem:[#allocation26_spill] sm:$0xff] %v18603_v44  ;;  %7125 = vst [vmem:[#allocation2 + $0x12c] sm:$0xf] %v7124_v1  ;;  %v13758_v55 = vpack.c.bf16 %v5895_v10, %v5895_v10  ;;  %v5417_v32 = vpop.f32.mrb[96].mxu0  ;;  %v6054_v8 = vsel %vm18198_vm6, 0, %v6053_v21  ;;  %v3141_v52 = vrot.slane %v18096_v39, 1 }
 0x4e8   :  { %v6712_v17 = vsel %vm18598_vm10, %v6704_v22, %v6711_v40  ;;  %v7128_v37 = vsel %vm18181_vm4, %v6713_v54, %v7127_v0  ;;  %v13759_v23 = vpack.c.bf16 %v5896_v16, %v5896_v16  ;;  %v14016_v34 = vadd.f32 %v5417_v32, %v18537_v33  ;;  %v5419_v11 = vpop.f32.mrb[97].mxu0  ;;  %6055 = vst [vmem:[#allocation2 + $0x68] sm:$0x1] %v6054_v8  ;;  %v7134_v16 = vld [vmem:[#allocation2 + $0x140] sm:$0x1] }
 0x4e9   :  { %7126 = vst [vmem:[#allocation2 + $0x130] sm:$0xf] %v6712_v17  ;;  %7129 = vst [vmem:[#allocation2 + $0x134] sm:$0x1] %v7128_v37  ;;  %v6715_v12 = vshrl.u32 %v13758_v55, 16  ;;  %v14018_v3 = vadd.f32 %v5419_v11, %v18167_v56  ;;  %v5421_v47 = vpop.f32.mrb[98].mxu0 }
 0x4ea   :  { %v6723_v6 = vshrl.u32 %v13759_v23, 16  ;;  %v14020_v49 = vadd.f32 %v5421_v47, %v18537_v33  ;;  %v14017_v48 = vadd.f32 %v14016_v34, %v18231_v62  ;;  %v5423_v2 = vpop.f32.mrb[99].mxu0  ;;  %v6718_v42 = vshll.u32 %v13758_v55, 16  ;;  %v12844_v62 = vld [vmem:[%s20507_s0 + $0x12c] sm:$0xe] }
 0x4eb   :  { %v6717_v15 = vrot.slane %v6715_v12, 7  ;;  %v14022_v22 = vadd.f32 %v5423_v2, %v18167_v56  ;;  %v18625_v0 = vadd.f32 %v14018_v3, %v18233_v25  ;;  %v6726_v19 = vshll.u32 %v13759_v23, 16  ;;  %v5958_v17 = vld [vmem:[#allocation2 + $0x6c] sm:$0x1]  ;;  %v15537_v23 = vld [vmem:[%s20510_s3 + $0x90] sm:$0xff]  }
 0x4ec   :  { %v6725_v10 = vrot.slane %v6723_v6, 7  ;;  %v5897_v1 = vmax.f32 %v14017_v48, 0.0  ;;  %v14021_v40 = vadd.f32 %v14020_v49, %v18235_v35  ;;  %5719 = vmatmul.mubr.bf16.gmra.mrb[76].mxu0 %v3139_v29  ;;  %v13132_v37 = vcombine.low %v12844_v62, %v18104_v61  ;;  %v6056_v61 = vld [vmem:[#allocation2 + $0x74] sm:$0x1]  ;;  %11239 = vmatpush1.bf16.msra.mxu1 %v15537_v23 }
 0x4ed   :  { %20615 = vst [vmem:[#allocation27_spill] sm:$0xff] %v18625_v0  ;;  %v6720_v39 = vor.u32 %v6718_v42, %v6717_v15  ;;  %v6721_v54 = vrot.slane %v6717_v15, 4  ;;  %v18632_v59 = vadd.f32 %v14022_v22, %v18241_v26  ;;  %5728 = vmatprep.mubr.bf16.mxu0 %v20533_v31  ;;  %v5959_v26 = vsel %vm18181_vm4, 0, %v5958_v17  ;;  %11240 = vmatprep.subr.bf16.mxu1 %v20533_v31  ;;  %v5961_v17 = vld [vmem:[#allocation2 + $0x78] sm:$0x1] }
 0x4ee   :  { %v6728_v25 = vor.u32 %v6726_v19, %v6725_v10  ;;  %v6730_v55 = vrot.slane %v6725_v10, 4  ;;  %v13760_v32 = vpack.c.bf16 %v5897_v1, %v5897_v1  ;;  %v5898_v51 = vmax.f32 %v14021_v40, 0.0  ;;  %5960 = vst [vmem:[#allocation2 + $0x6c] sm:$0x1] %v5959_v26 }
 0x4ef   :  { %20616 = vst [vmem:[#allocation28_spill] sm:$0xff] %v18632_v59  ;;  %v7131_v35 = vsel %vm18586_vm9, %v6720_v39, %v7130_v43  ;;  %v5427_v29 = vpop.f32.mrb[100].mxu0  ;;  %v3142_v3 = vsel %vm1223_vm1, %v3140_v9, %v3141_v52  ;;  %v6057_v48 = vsel %vm18198_vm6, 0, %v6056_v61  ;;  %v7137_v9 = vld [vmem:[#allocation2 + $0x144] sm:$0xf]  ;;  %v3143_v19 = vrot.slane %v13132_v37, 1 }
 0x4f0   :  { %7132 = vst [vmem:[#allocation2 + $0x138] sm:$0xf] %v7131_v35  ;;  %v6729_v34 = vsel %vm18598_vm10, %v6721_v54, %v6728_v25  ;;  %v7135_v11 = vsel %vm18181_vm4, %v6730_v55, %v7134_v16  ;;  %v6732_v21 = vshrl.u32 %v13760_v32, 16  ;;  %v5429_v12 = vpop.f32.mrb[101].mxu0  ;;  %v13761_v47 = vpack.c.bf16 %v5898_v51, %v5898_v51  ;;  %6058 = vst [vmem:[#allocation2 + $0x74] sm:$0x1] %v6057_v48 }
 0x4f1   :  { %7133 = vst [vmem:[#allocation2 + $0x13c] sm:$0xf] %v6729_v34  ;;  %7136 = vst [vmem:[#allocation2 + $0x140] sm:$0x1] %v7135_v11  ;;  %v14024_v8 = vadd.f32 %v5427_v29, %v18537_v33  ;;  %v14026_v6 = vadd.f32 %v5429_v12, %v18167_v56  ;;  %v5431_v49 = vpop.f32.mrb[102].mxu0  ;;  %v6735_v15 = vshll.u32 %v13760_v32, 16 }
 0x4f2   :  { %v6734_v2 = vrot.slane %v6732_v21, 7  ;;  %v14028_v42 = vadd.f32 %v5431_v49, %v18537_v33  ;;  %v5433_v43 = vpop.f32.mrb[103].mxu0  ;;  %v6740_v52 = vshrl.u32 %v13761_v47, 16  ;;  %v15935_v39 = vld [vmem:[%s20507_s0 + $0x134] ss:$0 sps:$4 sm:$0x11]  }
 0x4f3   :  { %v14025_v22 = vadd.f32 %v14024_v8, %v18254_v38  ;;  %v14030_v10 = vadd.f32 %v5433_v43, %v18167_v56  ;;  %v18657_v40 = vadd.f32 %v14026_v6, %v18256_v28  ;;  %v3144_v54 = vrot.slane %v15935_v39, 1  ;;  %v7141_v51 = vld [vmem:[#allocation2 + $0x14c] sm:$0x1]  ;;  %v6059_v21 = vld [vmem:[#allocation2 + $0x80] sm:$0x1] }
 0x4f4   :  { %v6737_v1 = vor.u32 %v6735_v15, %v6734_v2  ;;  %v14029_v62 = vadd.f32 %v14028_v42, %v18258_v63  ;;  %5729 = vmatmul.mubr.bf16.gmra.mrb[80].mxu0 %v3142_v3  ;;  %v6742_v16 = vrot.slane %v6740_v52, 7  ;;  %v6743_v25 = vshll.u32 %v13761_v47, 16  ;;  %v7144_v43 = vld [vmem:[#allocation2 + $0x150] sm:$0xf] }
 0x4f5   :  { %20617 = vst [vmem:[#allocation29_spill] sm:$0xff] %v18657_v40  ;;  %v5899_v55 = vmax.f32 %v14025_v22, 0.0  ;;  %v18664_v38 = vadd.f32 %v14030_v10, %v18264_v14  ;;  %5738 = vmatprep.mubr.bf16.mxu0 %v20533_v31  ;;  %v6738_v32 = vrot.slane %v6734_v2, 4  ;;  %v5962_v26 = vsel %vm18181_vm4, 0, %v5961_v17 }
 0x4f6   :  { %v7138_v28 = vsel %vm18586_vm9, %v6737_v1, %v7137_v9  ;;  %v5900_v63 = vmax.f32 %v14029_v62, 0.0  ;;  %v6745_v35 = vor.u32 %v6743_v25, %v6742_v16  ;;  %v6747_v29 = vrot.slane %v6742_v16, 4  ;;  %5963 = vst [vmem:[#allocation2 + $0x78] sm:$0x1] %v5962_v26  ;;  %v7148_v1 = vld [vmem:[#allocation2 + $0x158] sm:$0x1] }
 0x4f7   :  { %20618 = vst [vmem:[#allocation30_spill] sm:$0xff] %v18664_v38  ;;  %7139 = vst [vmem:[#allocation2 + $0x144] sm:$0xf] %v7138_v28  ;;  %v13762_v37 = vpack.c.bf16 %v5899_v55, %v5899_v55  ;;  %v5437_v23 = vpop.f32.mrb[104].mxu0  ;;  %v3145_v8 = vsel %vm1223_vm1, %v3143_v19, %v3144_v54  ;;  %v6060_v22 = vsel %vm18198_vm6, 0, %v6059_v21 }
 0x4f8   :  { %v13763_v34 = vpack.c.bf16 %v5900_v63, %v5900_v63  ;;  %v14032_v14 = vadd.f32 %v5437_v23, %v18537_v33  ;;  %v5439_v11 = vpop.f32.mrb[105].mxu0  ;;  %v6746_v12 = vsel %vm18598_vm10, %v6738_v32, %v6745_v35  ;;  %v7142_v3 = vsel %vm18181_vm4, %v6747_v29, %v7141_v51  ;;  %6061 = vst [vmem:[#allocation2 + $0x80] sm:$0x1] %v6060_v22  ;;  %v5964_v51 = vld [vmem:[#allocation2 + $0x84] sm:$0x1] }
 0x4f9   :  { %v6749_v61 = vshrl.u32 %v13762_v37, 16  ;;  %v5441_v47 = vpop.f32.mrb[106].mxu0  ;;  %7140 = vst [vmem:[#allocation2 + $0x148] sm:$0xf] %v6746_v12  ;;  %7143 = vst [vmem:[#allocation2 + $0x14c] sm:$0x1] %v7142_v3  ;;  %v14034_v48 = vadd.f32 %v5439_v11, %v18167_v56 }
 0x4fa   :  { %v6752_v6 = vshll.u32 %v13762_v37, 16  ;;  %v6757_v49 = vshrl.u32 %v13763_v34, 16  ;;  %v14036_v2 = vadd.f32 %v5441_v47, %v18537_v33  ;;  %v5443_v15 = vpop.f32.mrb[107].mxu0  ;;  %v14033_v9 = vadd.f32 %v14032_v14, %v18277_v5 }
 0x4fb   :  { %v6751_v42 = vrot.slane %v6749_v61, 7  ;;  %v14038_v52 = vadd.f32 %v5443_v15, %v18167_v56  ;;  %v6760_v19 = vshll.u32 %v13763_v34, 16  ;;  %v18684_v62 = vadd.f32 %v14034_v48, %v18279_v60  ;;  %v6062_v34 = vld [vmem:[#allocation2 + $0x8c] sm:$0x1]  ;;  %v7151_v15 = vld [vmem:[#allocation2 + $0x15c] sm:$0xf] }
 0x4fc   :  { %v6759_v10 = vrot.slane %v6757_v49, 7  ;;  %v14037_v39 = vadd.f32 %v14036_v2, %v18281_v46  ;;  %5739 = vmatmul.mubr.bf16.gmra.mrb[84].mxu0 %v3145_v8  ;;  %v5901_v16 = vmax.f32 %v14033_v9, 0.0  ;;  %v15542_v46 = vld [vmem:[%s20510_s3 + $0x98] sm:$0xff]   ;;  %v5965_v35 = vsel %vm18181_vm4, 0, %v5964_v51 }
 0x4fd   :  { %20619 = vst [vmem:[#allocation31_spill] sm:$0xff] %v18684_v62  ;;  %v6754_v54 = vor.u32 %v6752_v6, %v6751_v42  ;;  %v18688_v25 = vadd.f32 %v14038_v52, %v18287_v57  ;;  %v6755_v5 = vrot.slane %v6751_v42, 4  ;;  %5966 = vst [vmem:[#allocation2 + $0x84] sm:$0x1] %v5965_v35  ;;  %11241 = vmatpush1.bf16.msra.mxu1 %v15542_v46  ;;  %v6063_v12 = vsel %vm18198_vm6, 0, %v6062_v34 }
 0x4fe   :  { %v6762_v55 = vor.u32 %v6760_v19, %v6759_v10  ;;  %v6764_v32 = vrot.slane %v6759_v10, 4  ;;  %v5902_v28 = vmax.f32 %v14037_v39, 0.0  ;;  %v13764_v17 = vpack.c.bf16 %v5901_v16, %v5901_v16  ;;  %6064 = vst [vmem:[#allocation2 + $0x8c] sm:$0x1] %v6063_v12  ;;  %11242 = vmatprep.subr.bf16.mxu1 %v20533_v31  ;;  %v7158_v34 = vld [vmem:[#allocation2 + $0x168] sm:$0xf] }
 0x4ff   :  { %20620 = vst [vmem:[#allocation32_spill] sm:$0xff] %v18688_v25  ;;  %v7145_v63 = vsel %vm18586_vm9, %v6754_v54, %v7144_v43  ;;  %v5447_v60 = vpop.f32.mrb[108].mxu0 }
 0x500   :  { %7146 = vst [vmem:[#allocation2 + $0x150] sm:$0xf] %v7145_v63  ;;  %v6763_v57 = vsel %vm18598_vm10, %v6755_v5, %v6762_v55  ;;  %v7149_v29 = vsel %vm18181_vm4, %v6764_v32, %v7148_v1  ;;  %v13765_v37 = vpack.c.bf16 %v5902_v28, %v5902_v28  ;;  %v14040_v23 = vadd.f32 %v5447_v60, %v18537_v33  ;;  %v5449_v26 = vpop.f32.mrb[109].mxu0  ;;  %v5967_v5 = vld [vmem:[#allocation2 + $0x90] sm:$0x1] }
 0x501   :  { %7147 = vst [vmem:[#allocation2 + $0x154] sm:$0xf] %v6763_v57  ;;  %7150 = vst [vmem:[#allocation2 + $0x158] sm:$0x1] %v7149_v29  ;;  %v6766_v14 = vshrl.u32 %v13764_v17, 16  ;;  %v14042_v11 = vadd.f32 %v5449_v26, %v18167_v56  ;;  %v5451_v21 = vpop.f32.mrb[110].mxu0 }
 0x502   :  { %v6774_v3 = vshrl.u32 %v13765_v37, 16  ;;  %v14044_v61 = vadd.f32 %v5451_v21, %v18537_v33  ;;  %v14041_v47 = vadd.f32 %v14040_v23, %v18306_v50  ;;  %v5453_v8 = vpop.f32.mrb[111].mxu0  ;;  %v6769_v49 = vshll.u32 %v13764_v17, 16  ;;  %v7155_v50 = vld [vmem:[#allocation2 + $0x164] sm:$0x1] }
 0x503   :  { %v6768_v6 = vrot.slane %v6766_v14, 7  ;;  %v14046_v48 = vadd.f32 %v5453_v8, %v18167_v56  ;;  %v18710_v2 = vadd.f32 %v14042_v11, %v18309_v41  ;;  %v6777_v43 = vshll.u32 %v13765_v37, 16  ;;  %v6065_v63 = vld [vmem:[#allocation2 + $0x98] sm:$0x1] }
 0x504   :  { %v6776_v42 = vrot.slane %v6774_v3, 7  ;;  %v5903_v9 = vmax.f32 %v14041_v47, 0.0  ;;  %v14045_v52 = vadd.f32 %v14044_v61, %v18311_v24  ;;  %v5968_v32 = vsel %vm18181_vm4, 0, %v5967_v5  ;;  %v20624_v61 = vld [vmem:[#allocation10_spill] sm:$0xff] }
 0x505   :  { %20621 = vst [vmem:[#allocation33_spill] sm:$0xff] %v18710_v2  ;;  %v6771_v22 = vor.u32 %v6769_v49, %v6768_v6  ;;  %v6772_v10 = vrot.slane %v6768_v6, 4  ;;  %v18714_v19 = vadd.f32 %v14046_v48, %v18317_v36  ;;  %5969 = vst [vmem:[#allocation2 + $0x90] sm:$0x1] %v5968_v32  ;;  %v6066_v57 = vsel %vm18198_vm6, 0, %v6065_v63  ;;  %v20625_v48 = vld [vmem:[#allocation11_spill] sm:$0xff] }
 0x506   :  { %v6779_v1 = vor.u32 %v6777_v43, %v6776_v42  ;;  %v6781_v39 = vrot.slane %v6776_v42, 4  ;;  %v13766_v54 = vpack.c.bf16 %v5903_v9, %v5903_v9  ;;  %v5904_v16 = vmax.f32 %v14045_v52, 0.0  ;;  %6067 = vst [vmem:[#allocation2 + $0x98] sm:$0x1] %v6066_v57  ;;  %v7162_v9 = vld [vmem:[#allocation2 + $0x170] sm:$0x1] }
 0x507   :  { %20622 = vst [vmem:[#allocation34_spill] sm:$0xff] %v18714_v19  ;;  %v7152_v41 = vsel %vm18586_vm9, %v6771_v22, %v7151_v15  ;;  %v5457_v55 = vpop.f32.mrb[112].mxu0  ;;  %v5970_v52 = vld [vmem:[#allocation2 + $0x9c] sm:$0x1] }
 0x508   :  { %7153 = vst [vmem:[#allocation2 + $0x15c] sm:$0xf] %v7152_v41  ;;  %v6780_v24 = vsel %vm18598_vm10, %v6772_v10, %v6779_v1  ;;  %v7156_v36 = vsel %vm18181_vm4, %v6781_v39, %v7155_v50  ;;  %v6783_v28 = vshrl.u32 %v13766_v54, 16  ;;  %v5459_v51 = vpop.f32.mrb[113].mxu0  ;;  %v13767_v17 = vpack.c.bf16 %v5904_v16, %v5904_v16  ;;  %v15547_v1 = vld [vmem:[%s20510_s3 + $0xa0] sm:$0xff]  }
 0x509   :  { %7154 = vst [vmem:[#allocation2 + $0x160] sm:$0xf] %v6780_v24  ;;  %7157 = vst [vmem:[#allocation2 + $0x164] sm:$0x1] %v7156_v36  ;;  %v14048_v60 = vadd.f32 %v5457_v55, %v18537_v33  ;;  %v14050_v46 = vadd.f32 %v5459_v51, %v18167_v56  ;;  %v5461_v35 = vpop.f32.mrb[114].mxu0  ;;  %v6786_v37 = vshll.u32 %v13766_v54, 16  ;;  %11243 = vmatpush1.bf16.msra.mxu1 %v15547_v1 }
 0x50a   :  { %v6785_v29 = vrot.slane %v6783_v28, 7  ;;  %v14052_v23 = vadd.f32 %v5461_v35, %v18537_v33  ;;  %v5463_v26 = vpop.f32.mrb[115].mxu0  ;;  %v6791_v14 = vshrl.u32 %v13767_v17, 16  ;;  %v6794_v6 = vshll.u32 %v13767_v17, 16  ;;  %v6068_v41 = vld [vmem:[#allocation2 + $0xa4] sm:$0x1]  ;;  %11244 = vmatprep.subr.bf16.mxu1 %v20533_v31 }
 0x50b   :  { %v14049_v11 = vadd.f32 %v14048_v60, %v18334_v7  ;;  %v14054_v21 = vadd.f32 %v5463_v26, %v18167_v56  ;;  %v18732_v3 = vadd.f32 %v14050_v46, %v18336_v13  ;;  %v5971_v39 = vsel %vm18181_vm4, 0, %v5970_v52  ;;  %v20627_v35 = vld [vmem:[#allocation12_spill] sm:$0xff] }
 0x50c   :  { %v6788_v12 = vor.u32 %v6786_v37, %v6785_v29  ;;  %v14053_v47 = vadd.f32 %v14052_v23, %v20624_v61  ;;  %v6793_v8 = vrot.slane %v6791_v14, 7  ;;  %v6789_v42 = vrot.slane %v6785_v29, 4  ;;  %5972 = vst [vmem:[#allocation2 + $0x9c] sm:$0x1] %v5971_v39  ;;  %v7165_v23 = vld [vmem:[#allocation2 + $0x174] sm:$0xf] }
 0x50d   :  { %20623 = vst [vmem:[#allocation35_spill] sm:$0xff] %v18732_v3  ;;  %v5905_v49 = vmax.f32 %v14049_v11, 0.0  ;;  %v18736_v15 = vadd.f32 %v14054_v21, %v20625_v48  ;;  %v6069_v37 = vsel %vm18198_vm6, 0, %v6068_v41  ;;  %v20628_v14 = vld [vmem:[#allocation13_spill] sm:$0xff]  ;;  %v20630_v21 = vld [vmem:[#allocation14_spill] sm:$0xff] }
 0x50e   :  { %v7159_v43 = vsel %vm18586_vm9, %v6788_v12, %v7158_v34  ;;  %v5906_v7 = vmax.f32 %v14053_v47, 0.0  ;;  %v6796_v22 = vor.u32 %v6794_v6, %v6793_v8  ;;  %v6798_v10 = vrot.slane %v6793_v8, 4  ;;  %6070 = vst [vmem:[#allocation2 + $0xa4] sm:$0x1] %v6069_v37  ;;  %v7169_v47 = vld [vmem:[#allocation2 + $0x17c] sm:$0x1] }
 0x50f   :  { %20626 = vst [vmem:[#allocation10_spill] sm:$0xff] %v18736_v15  ;;  %7160 = vst [vmem:[#allocation2 + $0x168] sm:$0xf] %v7159_v43  ;;  %v13768_v13 = vpack.c.bf16 %v5905_v49, %v5905_v49  ;;  %v5467_v50 = vpop.f32.mrb[116].mxu0  ;;  %v20631_v6 = vld [vmem:[#allocation15_spill] sm:$0xff] }
 0x510   :  { %v13769_v54 = vpack.c.bf16 %v5906_v7, %v5906_v7  ;;  %v14056_v16 = vadd.f32 %v5467_v50, %v18537_v33  ;;  %v5469_v5 = vpop.f32.mrb[117].mxu0  ;;  %v6797_v55 = vsel %vm18598_vm10, %v6789_v42, %v6796_v22  ;;  %v7163_v32 = vsel %vm18181_vm4, %v6798_v10, %v7162_v9  ;;  %v5973_v7 = vld [vmem:[#allocation2 + $0xa8] sm:$0x1] }
 0x511   :  { %v6800_v24 = vshrl.u32 %v13768_v13, 16  ;;  %v5471_v36 = vpop.f32.mrb[118].mxu0  ;;  %7161 = vst [vmem:[#allocation2 + $0x16c] sm:$0xf] %v6797_v55  ;;  %7164 = vst [vmem:[#allocation2 + $0x170] sm:$0x1] %v7163_v32  ;;  %v14058_v63 = vadd.f32 %v5469_v5, %v18167_v56 }
 0x512   :  { %v6803_v28 = vshll.u32 %v13768_v13, 16  ;;  %v6808_v51 = vshrl.u32 %v13769_v54, 16  ;;  %v14060_v17 = vadd.f32 %v5471_v36, %v18537_v33  ;;  %v5473_v60 = vpop.f32.mrb[119].mxu0  ;;  %v14057_v57 = vadd.f32 %v14056_v16, %v20627_v35  ;;  %v6071_v5 = vld [vmem:[#allocation2 + $0xb0] sm:$0x1] }
 0x513   :  { %v6802_v46 = vrot.slane %v6800_v24, 7  ;;  %v14062_v29 = vadd.f32 %v5473_v60, %v18167_v56  ;;  %v6811_v34 = vshll.u32 %v13769_v54, 16  ;;  %v18758_v11 = vadd.f32 %v14058_v63, %v20628_v14  ;;  %v7172_v35 = vld [vmem:[#allocation2 + $0x180] sm:$0xf]  ;;  %v20636_v14 = vld [vmem:[#allocation18_spill] sm:$0xff] }
 0x514   :  { %v6810_v26 = vrot.slane %v6808_v51, 7  ;;  %v14061_v12 = vadd.f32 %v14060_v17, %v20630_v21  ;;  %v5907_v8 = vmax.f32 %v14057_v57, 0.0  ;;  %v5974_v13 = vsel %vm18181_vm4, 0, %v5973_v7  ;;  %v20633_v51 = vld [vmem:[#allocation16_spill] sm:$0xff]  ;;  %v5976_v7 = vld [vmem:[#allocation2 + $0xb4] sm:$0x1] }
 0x515   :  { %20629 = vst [vmem:[#allocation11_spill] sm:$0xff] %v18758_v11  ;;  %v6805_v61 = vor.u32 %v6803_v28, %v6802_v46  ;;  %v18762_v49 = vadd.f32 %v14062_v29, %v20631_v6  ;;  %v6806_v48 = vrot.slane %v6802_v46, 4  ;;  %5975 = vst [vmem:[#allocation2 + $0xa8] sm:$0x1] %v5974_v13  ;;  %v6072_v24 = vsel %vm18198_vm6, 0, %v6071_v5  ;;  %v20634_v29 = vld [vmem:[#allocation17_spill] sm:$0xff] }
 0x516   :  { %v6813_v42 = vor.u32 %v6811_v34, %v6810_v26  ;;  %v6815_v43 = vrot.slane %v6810_v26, 4  ;;  %v5908_v9 = vmax.f32 %v14061_v12, 0.0  ;;  %v13770_v22 = vpack.c.bf16 %v5907_v8, %v5907_v8  ;;  %6073 = vst [vmem:[#allocation2 + $0xb0] sm:$0x1] %v6072_v24  ;;  %v20637_v8 = vld [vmem:[#allocation19_spill] sm:$0xff] }
 0x517   :  { %20632 = vst [vmem:[#allocation12_spill] sm:$0xff] %v18762_v49  ;;  %v7166_v52 = vsel %vm18586_vm9, %v6805_v61, %v7165_v23  ;;  %v5477_v10 = vpop.f32.mrb[120].mxu0  ;;  %v5977_v13 = vsel %vm18181_vm4, 0, %v5976_v7 }
 0x518   :  { %7167 = vst [vmem:[#allocation2 + $0x174] sm:$0xf] %v7166_v52  ;;  %v6814_v50 = vsel %vm18598_vm10, %v6806_v48, %v6813_v42  ;;  %v7170_v1 = vsel %vm18181_vm4, %v6815_v43, %v7169_v47  ;;  %v13771_v39 = vpack.c.bf16 %v5908_v9, %v5908_v9  ;;  %v14064_v54 = vadd.f32 %v5477_v10, %v18537_v33  ;;  %v5479_v16 = vpop.f32.mrb[121].mxu0  ;;  %v7176_v47 = vld [vmem:[#allocation2 + $0x188] sm:$0x1] }
 0x519   :  { %7168 = vst [vmem:[#allocation2 + $0x178] sm:$0xf] %v6814_v50  ;;  %7171 = vst [vmem:[#allocation2 + $0x17c] sm:$0x1] %v7170_v1  ;;  %v6817_v41 = vshrl.u32 %v13770_v22, 16  ;;  %v14066_v55 = vadd.f32 %v5479_v16, %v18167_v56  ;;  %v5481_v32 = vpop.f32.mrb[122].mxu0 }
 0x51a   :  { %v6825_v36 = vshrl.u32 %v13771_v39, 16  ;;  %v14068_v28 = vadd.f32 %v5481_v32, %v18537_v33  ;;  %v14065_v63 = vadd.f32 %v14064_v54, %v20633_v51  ;;  %v5483_v17 = vpop.f32.mrb[123].mxu0  ;;  %v6820_v46 = vshll.u32 %v13770_v22, 16  ;;  %v15552_v10 = vld [vmem:[%s20510_s3 + $0xa8] sm:$0xff]   ;;  %5978 = vst [vmem:[#allocation2 + $0xb4] sm:$0x1] %v5977_v13 }
 0x51b   :  { %v6819_v60 = vrot.slane %v6817_v41, 7  ;;  %v14070_v57 = vadd.f32 %v5483_v17, %v18167_v56  ;;  %v18780_v37 = vadd.f32 %v14066_v55, %v20634_v29  ;;  %v6828_v26 = vshll.u32 %v13771_v39, 16  ;;  %v6074_v16 = vld [vmem:[#allocation2 + $0xbc] sm:$0x1]  ;;  %11245 = vmatpush1.bf16.msra.mxu1 %v15552_v10  ;;  %v7179_v51 = vld [vmem:[#allocation2 + $0x18c] sm:$0xf] }
 0x51c   :  { %v6827_v23 = vrot.slane %v6825_v36, 7  ;;  %v5909_v34 = vmax.f32 %v14065_v63, 0.0  ;;  %v14069_v21 = vadd.f32 %v14068_v28, %v20636_v14  ;;  %v6075_v24 = vsel %vm18198_vm6, 0, %v6074_v16  ;;  %11246 = vmatprep.subr.bf16.mxu1 %v20533_v31  ;;  %v20639_v29 = vld [vmem:[#allocation20_spill] sm:$0xff] }
 0x51d   :  { %20635 = vst [vmem:[#allocation13_spill] sm:$0xff] %v18780_v37  ;;  %v6822_v12 = vor.u32 %v6820_v46, %v6819_v60  ;;  %v6823_v61 = vrot.slane %v6819_v60, 4  ;;  %v18784_v6 = vadd.f32 %v14070_v57, %v20637_v8  ;;  %6076 = vst [vmem:[#allocation2 + $0xbc] sm:$0x1] %v6075_v24  ;;  %v6092_v37 = vld [vmem:[#allocation2 + $0x11c] sm:$0x1] }
 0x51e   :  { %v6830_v48 = vor.u32 %v6828_v26, %v6827_v23  ;;  %v6832_v42 = vrot.slane %v6827_v23, 4  ;;  %v13772_v43 = vpack.c.bf16 %v5909_v34, %v5909_v34  ;;  %v5910_v9 = vmax.f32 %v14069_v21, 0.0  ;;  %v20641_v26 = vld [vmem:[#allocation21_spill] sm:$0xff] }
 0x51f   :  { %20638 = vst [vmem:[#allocation14_spill] sm:$0xff] %v18784_v6  ;;  %v7173_v52 = vsel %vm18586_vm9, %v6822_v12, %v7172_v35  ;;  %v5487_v22 = vpop.f32.mrb[124].mxu0 }
 0x520   :  { %7174 = vst [vmem:[#allocation2 + $0x180] sm:$0xf] %v7173_v52  ;;  %v6831_v50 = vsel %vm18598_vm10, %v6823_v61, %v6830_v48  ;;  %v7177_v1 = vsel %vm18181_vm4, %v6832_v42, %v7176_v47  ;;  %v6834_v39 = vshrl.u32 %v13772_v43, 16  ;;  %v5489_v54 = vpop.f32.mrb[125].mxu0  ;;  %v13773_v5 = vpack.c.bf16 %v5910_v9, %v5910_v9  ;;  %v20642_v61 = vld [vmem:[#allocation22_spill] sm:$0xff] }
 0x521   :  { %7175 = vst [vmem:[#allocation2 + $0x184] sm:$0xf] %v6831_v50  ;;  %7178 = vst [vmem:[#allocation2 + $0x188] sm:$0x1] %v7177_v1  ;;  %v14072_v41 = vadd.f32 %v5487_v22, %v18537_v33  ;;  %v14074_v55 = vadd.f32 %v5489_v54, %v18167_v56  ;;  %v5491_v32 = vpop.f32.mrb[126].mxu0  ;;  %v6837_v28 = vshll.u32 %v13772_v43, 16 }
 0x522   :  { %v6836_v36 = vrot.slane %v6834_v39, 7  ;;  %v14076_v63 = vadd.f32 %v5491_v32, %v18537_v33  ;;  %v5493_v17 = vpop.f32.mrb[127].mxu0  ;;  %v6842_v60 = vshrl.u32 %v13773_v5, 16  ;;  %v6845_v21 = vshll.u32 %v13773_v5, 16  ;;  %v7183_v42 = vld [vmem:[#allocation2 + $0x194] sm:$0x1] }
 0x523   :  { %v14073_v46 = vadd.f32 %v14072_v41, %v18427_v27  ;;  %v14078_v35 = vadd.f32 %v5493_v17, %v18167_v56  ;;  %v18806_v23 = vadd.f32 %v14074_v55, %v20639_v29  ;;  %v5979_v43 = vld [vmem:[#allocation2 + $0xc0] sm:$0x1]  ;;  %v6077_v39 = vld [vmem:[#allocation2 + $0xc8] sm:$0x1]  ;;  %v7186_v17 = vld [vmem:[#allocation2 + $0x198] sm:$0xf] }
 0x524   :  { %v6839_v57 = vor.u32 %v6837_v28, %v6836_v36  ;;  %v14077_v34 = vadd.f32 %v14076_v63, %v20641_v26  ;;  %v6844_v14 = vrot.slane %v6842_v60, 7  ;;  %v6840_v8 = vrot.slane %v6836_v36, 4  ;;  %v7190_v29 = vld [vmem:[#allocation2 + $0x1a0] sm:$0x1]  ;;  %v19481_v56 = vld [vmem:[#allocation2 + $0x154] sm:$0xf] }
 0x525   :  { %20640 = vst [vmem:[#allocation15_spill] sm:$0xff] %v18806_v23  ;;  %v5911_v12 = vmax.f32 %v14073_v46, 0.0  ;;  %v18810_v47 = vadd.f32 %v14078_v35, %v20642_v61  ;;  %v5980_v10 = vsel %vm18181_vm4, 0, %v5979_v43  ;;  %v6078_v63 = vsel %vm18198_vm6, 0, %v6077_v39  ;;  %v5982_v61 = vld [vmem:[#allocation2 + $0xe4] sm:$0x1] }
 0x526   :  { %v7180_v48 = vsel %vm18586_vm9, %v6839_v57, %v7179_v51  ;;  %v5912_v27 = vmax.f32 %v14077_v34, 0.0  ;;  %v6847_v9 = vor.u32 %v6845_v21, %v6844_v14  ;;  %v6849_v7 = vrot.slane %v6844_v14, 4  ;;  %5981 = vst [vmem:[#allocation2 + $0xc0] sm:$0x1] %v5980_v10  ;;  %6079 = vst [vmem:[#allocation2 + $0xc8] sm:$0x1] %v6078_v63 }
 0x527   :  { %20643 = vst [vmem:[#allocation16_spill] sm:$0xff] %v18810_v47  ;;  %7181 = vst [vmem:[#allocation2 + $0x18c] sm:$0xf] %v7180_v48  ;;  %v13774_v52 = vpack.c.bf16 %v5911_v12, %v5911_v12  ;;  %v5530_v22 = vpop.f32.mrb[0].mxu0  ;;  %v15557_v43 = vld [vmem:[%s20510_s3 + $0xb0] sm:$0xff]  }
 0x528   :  { %v13775_v13 = vpack.c.bf16 %v5912_v27, %v5912_v27  ;;  %v13912_v50 = vadd.f32 %v5530_v22, %v18537_v33  ;;  %v18817_v1 = vpop.f32.mrb[1].mxu0  ;;  %v6848_v54 = vsel %vm18598_vm10, %v6840_v8, %v6847_v9  ;;  %v7184_v16 = vsel %vm18181_vm4, %v6849_v7, %v7183_v42  ;;  %v6967_v39 = vld [vmem:[#allocation2 + $0xc] sm:$0xf]  ;;  %11247 = vmatpush1.bf16.msra.mxu1 %v15557_v43  ;;  %v5994_v47 = vld [vmem:[#allocation2 + $0x114] sm:$0x1] }
 0x529   :  { %20644 = vst [vmem:[#allocation17_spill] sm:$0xff] %v18817_v1  ;;  %v6851_v5 = vshrl.u32 %v13774_v52, 16  ;;  %v5534_v41 = vpop.f32.mrb[2].mxu0  ;;  %7182 = vst [vmem:[#allocation2 + $0x190] sm:$0xf] %v6848_v54  ;;  %v6854_v55 = vshll.u32 %v13774_v52, 16  ;;  %11248 = vmatprep.subr.bf16.mxu1 %v20533_v31 }
 0x52a   :  { %7185 = vst [vmem:[#allocation2 + $0x194] sm:$0x1] %v7184_v16  ;;  %v6859_v32 = vshrl.u32 %v13775_v13, 16  ;;  %v5849_v24 = vmax.f32 %v13912_v50, 0.0  ;;  %v18823_v36 = vpop.f32.mrb[3].mxu0  ;;  %v13914_v51 = vadd.f32 %v5534_v41, %v18537_v33  ;;  %v6862_v46 = vshll.u32 %v13775_v13, 16 }
 0x52b   :  { %20645 = vst [vmem:[#allocation18_spill] sm:$0xff] %v18823_v36  ;;  %v6853_v28 = vrot.slane %v6851_v5, 7  ;;  %v5983_v9 = vsel %vm18181_vm4, 0, %v5982_v61  ;;  %v6080_v50 = vld [vmem:[#allocation2 + $0xec] sm:$0x1] }
 0x52c   :  { %v6861_v60 = vrot.slane %v6859_v32, 7  ;;  %v13712_v35 = vpack.c.bf16 %v5849_v24, %v5849_v24  ;;  %v5850_v26 = vmax.f32 %v13914_v51, 0.0  ;;  %5984 = vst [vmem:[#allocation2 + $0xe4] sm:$0x1] %v5983_v9  ;;  %v6081_v5 = vsel %vm18198_vm6, 0, %v6080_v50 }
 0x52d   :  { %v6856_v57 = vor.u32 %v6854_v55, %v6853_v28  ;;  %v6857_v34 = vrot.slane %v6853_v28, 4  ;;  %6082 = vst [vmem:[#allocation2 + $0xec] sm:$0x1] %v6081_v5 }
 0x52e   :  { %v6864_v14 = vor.u32 %v6862_v46, %v6861_v60  ;;  %v6866_v21 = vrot.slane %v6861_v60, 4  ;;  %v6324_v12 = vshrl.u32 %v13712_v35, 16  ;;  %v6327_v48 = vshll.u32 %v13712_v35, 16 }
 0x52f   :  { %v7187_v8 = vsel %vm18586_vm9, %v6856_v57, %v7186_v17  ;;  %v13713_v42 = vpack.c.bf16 %v5850_v26, %v5850_v26  ;;  %v5540_v27 = vpop.f32.mrb[4].mxu0  ;;  %v6973_v17 = vld [vmem:[#allocation2 + $0x14] sm:$0x1] }
 0x530   :  { %7188 = vst [vmem:[#allocation2 + $0x198] sm:$0xf] %v7187_v8  ;;  %v6865_v7 = vsel %vm18598_vm10, %v6857_v34, %v6864_v14  ;;  %v7191_v52 = vsel %vm18181_vm4, %v6866_v21, %v7190_v29  ;;  %v6326_v22 = vrot.slane %v6324_v12, 7  ;;  %v13916_v10 = vadd.f32 %v5540_v27, %v18537_v33  ;;  %v18840_v13 = vpop.f32.mrb[5].mxu0  ;;  %v5985_v14 = vld [vmem:[#allocation2 + $0xf0] sm:$0x1] }
 0x531   :  { %20646 = vst [vmem:[#allocation19_spill] sm:$0xff] %v18840_v13  ;;  %7189 = vst [vmem:[#allocation2 + $0x19c] sm:$0xf] %v6865_v7  ;;  %v6332_v54 = vshrl.u32 %v13713_v42, 16  ;;  %v5544_v16 = vpop.f32.mrb[6].mxu0  ;;  %v6335_v51 = vshll.u32 %v13713_v42, 16 }
 0x532   :  { %7192 = vst [vmem:[#allocation2 + $0x1a0] sm:$0x1] %v7191_v52  ;;  %v6329_v41 = vor.u32 %v6327_v48, %v6326_v22  ;;  %v5851_v55 = vmax.f32 %v13916_v10, 0.0  ;;  %v13918_v32 = vadd.f32 %v5544_v16, %v18537_v33  ;;  %v18845_v24 = vpop.f32.mrb[7].mxu0  ;;  %v6330_v35 = vrot.slane %v6326_v22, 4 }
 0x533   :  { %20647 = vst [vmem:[#allocation20_spill] sm:$0xff] %v18845_v24  ;;  %v6334_v28 = vrot.slane %v6332_v54, 7  ;;  %v5986_v8 = vsel %vm18181_vm4, 0, %v5985_v14  ;;  %v6083_v7 = vld [vmem:[#allocation2 + $0xf8] sm:$0x1] }
 0x534   :  { %v6968_v63 = vsel %vm18586_vm9, %v6329_v41, %v6967_v39  ;;  %v13714_v60 = vpack.c.bf16 %v5851_v55, %v5851_v55  ;;  %v5852_v46 = vmax.f32 %v13918_v32, 0.0  ;;  %5987 = vst [vmem:[#allocation2 + $0xf0] sm:$0x1] %v5986_v8  ;;  %v6976_v52 = vld [vmem:[#allocation2 + $0x18] sm:$0xf]  ;;  %v6084_v10 = vsel %vm18198_vm6, 0, %v6083_v7 }
 0x535   :  { %6969 = vst [vmem:[#allocation2 + $0xc] sm:$0xf] %v6968_v63  ;;  %v6337_v57 = vor.u32 %v6335_v51, %v6334_v28  ;;  %v6339_v29 = vrot.slane %v6334_v28, 4  ;;  %6085 = vst [vmem:[#allocation2 + $0xf8] sm:$0x1] %v6084_v10 }
 0x536   :  { %v6341_v26 = vshrl.u32 %v13714_v60, 16  ;;  %v13715_v34 = vpack.c.bf16 %v5852_v46, %v5852_v46  ;;  %v6344_v42 = vshll.u32 %v13714_v60, 16  ;;  %v6980_v55 = vld [vmem:[#allocation2 + $0x20] sm:$0x1] }
 0x537   :  { %v6338_v21 = vsel %vm18598_vm10, %v6330_v35, %v6337_v57  ;;  %v6974_v12 = vsel %vm18181_vm4, %v6339_v29, %v6973_v17  ;;  %v5550_v61 = vpop.f32.mrb[8].mxu0 }
 0x538   :  { %6970 = vst [vmem:[#allocation2 + $0x10] sm:$0xf] %v6338_v21  ;;  %6975 = vst [vmem:[#allocation2 + $0x14] sm:$0x1] %v6974_v12  ;;  %v6343_v48 = vrot.slane %v6341_v26, 7  ;;  %v6349_v27 = vshrl.u32 %v13715_v34, 16  ;;  %v13920_v43 = vadd.f32 %v5550_v61, %v18537_v33 }
 0x539   :  { %v18857_v9 = vpop.f32.mrb[9].mxu0  ;;  %v6352_v54 = vshll.u32 %v13715_v34, 16  ;;  %v5988_v34 = vld [vmem:[#allocation2 + $0xfc] sm:$0x1] }
 0x53a   :  { %20648 = vst [vmem:[#allocation21_spill] sm:$0xff] %v18857_v9  ;;  %v5554_v22 = vpop.f32.mrb[10].mxu0  ;;  %v6346_v50 = vor.u32 %v6344_v42, %v6343_v48  ;;  %v6351_v39 = vrot.slane %v6349_v27, 7  ;;  %v5853_v16 = vmax.f32 %v13920_v43, 0.0  ;;  %v6347_v41 = vrot.slane %v6343_v48, 4  ;;  %v15562_v61 = vld [vmem:[%s20510_s3 + $0xb8] sm:$0xff]  }
 0x53b   :  { %v18861_v5 = vpop.f32.mrb[11].mxu0  ;;  %v13922_v32 = vadd.f32 %v5554_v22, %v18537_v33  ;;  %v5989_v7 = vsel %vm18181_vm4, 0, %v5988_v34  ;;  %11249 = vmatpush1.bf16.msra.mxu1 %v15562_v61 }
 0x53c   :  { %20649 = vst [vmem:[#allocation22_spill] sm:$0xff] %v18861_v5  ;;  %v6977_v28 = vsel %vm18586_vm9, %v6346_v50, %v6976_v52  ;;  %v6354_v51 = vor.u32 %v6352_v54, %v6351_v39  ;;  %v6356_v63 = vrot.slane %v6351_v39, 4  ;;  %v13716_v17 = vpack.c.bf16 %v5853_v16, %v5853_v16  ;;  %v7195_v26 = vld [vmem:[#allocation2 + $0xc] sm:$0xf]  ;;  %v6983_v52 = vld [vmem:[#allocation2 + $0x24] sm:$0xf]  ;;  %11250 = vmatprep.subr.bf16.mxu1 %v20533_v31 }
 0x53d   :  { %6978 = vst [vmem:[#allocation2 + $0x18] sm:$0xf] %v6977_v28  ;;  %v5854_v60 = vmax.f32 %v13922_v32, 0.0  ;;  %5990 = vst [vmem:[#allocation2 + $0xfc] sm:$0x1] %v5989_v7 }
 0x53e   :  { %v6355_v46 = vsel %vm18598_vm10, %v6347_v41, %v6354_v51  ;;  %v6981_v35 = vsel %vm18181_vm4, %v6356_v63, %v6980_v55  ;;  %v6358_v57 = vshrl.u32 %v13716_v17, 16  ;;  %v6361_v29 = vshll.u32 %v13716_v17, 16  ;;  %v6086_v63 = vld [vmem:[#allocation2 + $0x104] sm:$0x1] }
 0x53f   :  { %6979 = vst [vmem:[#allocation2 + $0x1c] sm:$0xf] %v6355_v46  ;;  %6982 = vst [vmem:[#allocation2 + $0x20] sm:$0x1] %v6981_v35  ;;  %v13717_v14 = vpack.c.bf16 %v5854_v60, %v5854_v60  ;;  %v5560_v21 = vpop.f32.mrb[12].mxu0 }
 0x540   :  { %v7196_v12 = vld [vmem:[#allocation2 + $0x10] sm:$0xf]  ;;  %v6360_v8 = vrot.slane %v6358_v57, 7  ;;  %v13924_v48 = vadd.f32 %v5560_v21, %v18537_v33  ;;  %v18874_v42 = vpop.f32.mrb[13].mxu0  ;;  %v6987_v60 = vld [vmem:[#allocation2 + $0x2c] sm:$0x1] }
 0x541   :  { %20650 = vst [vmem:[#allocation36_spill] sm:$0xff] %v18874_v42  ;;  %v18876_v27 = vcombine.low %v7195_v26, %v7196_v12  ;;  %v15529_v43 = vld [vmem:[#allocation2 + $0x14] ss:$0 sps:$4 sm:$0x11]   ;;  %v6366_v22 = vshrl.u32 %v13717_v14, 16  ;;  %v5564_v10 = vpop.f32.mrb[14].mxu0 }
 0x542   :  { %v6363_v50 = vor.u32 %v6361_v29, %v6360_v8  ;;  %v6369_v39 = vshll.u32 %v13717_v14, 16  ;;  %v5855_v54 = vmax.f32 %v13924_v48, 0.0  ;;  %v13926_v16 = vadd.f32 %v5564_v10, %v18537_v33  ;;  %v18881_v41 = vpop.f32.mrb[15].mxu0 }
 0x543   :  { %20651 = vst [vmem:[#allocation37_spill] sm:$0xff] %v18881_v41  ;;  %v6364_v55 = vrot.slane %v6360_v8, 4  ;;  %v6368_v32 = vrot.slane %v6366_v22, 7  ;;  %v7879_v28 = vshrl.u32 %v18876_v27, 16  ;;  %v7881_v51 = vshll.u32 %v18876_v27, 16 }
 0x544   :  { %v6984_v17 = vsel %vm18586_vm9, %v6363_v50, %v6983_v52  ;;  %v13718_v46 = vpack.c.bf16 %v5855_v54, %v5855_v54  ;;  %v5856_v35 = vmax.f32 %v13926_v16, 0.0  ;;  %v7886_v57 = vshll.u32 %v15529_v43, 16  ;;  %v7197_v8 = vld [vmem:[#allocation2 + $0x18] sm:$0xf] }
 0x545   :  { %6985 = vst [vmem:[#allocation2 + $0x24] sm:$0xf] %v6984_v17  ;;  %v6371_v29 = vor.u32 %v6369_v39, %v6368_v32  ;;  %v6373_v26 = vrot.slane %v6368_v32, 4  ;;  %v7883_v34 = vrot.slane %v7881_v51, 1  ;;  %v6087_v14 = vsel %vm18198_vm6, 0, %v6086_v63 }
 0x546   :  { %v6375_v21 = vshrl.u32 %v13718_v46, 16  ;;  %v13719_v12 = vpack.c.bf16 %v5856_v35, %v5856_v35  ;;  %v7888_v61 = vrot.slane %v7886_v57, 1  ;;  %v7198_v48 = vld [vmem:[#allocation2 + $0x1c] sm:$0xf]  ;;  %6088 = vst [vmem:[#allocation2 + $0x104] sm:$0x1] %v6087_v14 }
 0x547   :  { %v6372_v7 = vsel %vm18598_vm10, %v6364_v55, %v6371_v29  ;;  %v6988_v52 = vsel %vm18181_vm4, %v6373_v26, %v6987_v60  ;;  %v5570_v43 = vpop.f32.mrb[16].mxu0  ;;  %v7884_v22 = vor.u32 %v7883_v34, %v7879_v28  ;;  %v18894_v10 = vcombine.low %v7197_v8, %v7198_v48  ;;  %v15531_v50 = vld [vmem:[#allocation2 + $0x20] ss:$0 sps:$4 sm:$0x11]   ;;  %v6990_v63 = vld [vmem:[#allocation2 + $0x30] sm:$0xf] }
 0x548   :  { %6986 = vst [vmem:[#allocation2 + $0x28] sm:$0xf] %v6372_v7  ;;  %6989 = vst [vmem:[#allocation2 + $0x2c] sm:$0x1] %v6988_v52  ;;  %v6377_v39 = vrot.slane %v6375_v21, 7  ;;  %v6378_v54 = vshll.u32 %v13718_v46, 16  ;;  %v13928_v32 = vadd.f32 %v5570_v43, %v18537_v33 }
 0x549   :  { %v6383_v16 = vshrl.u32 %v13719_v12, 16  ;;  %v18897_v51 = vpop.f32.mrb[17].mxu0  ;;  %v6386_v17 = vshll.u32 %v13719_v12, 16  ;;  %v7889_v55 = vsel %vm710_vm0, %v7884_v22, %v7888_v61  ;;  %v7893_v60 = vshll.u32 %v18894_v10, 16  ;;  %v5991_v34 = vld [vmem:[#allocation2 + $0x108] sm:$0x1] }
 0x54a   :  { %20652 = vst [vmem:[#allocation38_spill] sm:$0xff] %v18897_v51  ;;  %v5574_v35 = vpop.f32.mrb[18].mxu0  ;;  %v6380_v28 = vor.u32 %v6378_v54, %v6377_v39  ;;  %v5857_v29 = vmax.f32 %v13928_v32, 0.0  ;;  %10985 = vmatprep.mubr.bf16.mxu1 %v7889_v55  ;;  %v7891_v46 = vshrl.u32 %v18894_v10, 16  ;;  %v6381_v14 = vrot.slane %v6377_v39, 4 }
 0x54b   :  { %v6385_v57 = vrot.slane %v6383_v16, 7  ;;  %v18901_v26 = vpop.f32.mrb[19].mxu0  ;;  %v6994_v21 = vld [vmem:[#allocation2 + $0x38] sm:$0x1]  ;;  %v13930_v8 = vadd.f32 %v5574_v35, %v18537_v33  ;;  %10986 = vmatmul.mubr.bf16.gmra.mrb[44].mxu1 %v18876_v27  ;;  %v7895_v12 = vrot.slane %v7893_v60, 1  ;;  %v7898_v61 = vshll.u32 %v15531_v50, 16 }
 0x54c   :  { %20653 = vst [vmem:[#allocation39_spill] sm:$0xff] %v18901_v26  ;;  %v6991_v48 = vsel %vm18586_vm9, %v6380_v28, %v6990_v63  ;;  %v13720_v43 = vpack.c.bf16 %v5857_v29, %v5857_v29  ;;  %v5992_v39 = vsel %vm18181_vm4, 0, %v5991_v34  ;;  %v7199_v55 = vld [vmem:[#allocation2 + $0x24] sm:$0xf] }
 0x54d   :  { %v6388_v7 = vor.u32 %v6386_v17, %v6385_v57  ;;  %v6390_v52 = vrot.slane %v6385_v57, 4  ;;  %6992 = vst [vmem:[#allocation2 + $0x30] sm:$0xf] %v6991_v48  ;;  %v5858_v22 = vmax.f32 %v13930_v8, 0.0  ;;  %v7896_v54 = vor.u32 %v7895_v12, %v7891_v46  ;;  %5993 = vst [vmem:[#allocation2 + $0x108] sm:$0x1] %v5992_v39 }
 0x54e   :  { %v7900_v16 = vrot.slane %v7898_v61, 1  ;;  %v6392_v50 = vshrl.u32 %v13720_v43, 16  ;;  %v6395_v57 = vshll.u32 %v13720_v43, 16  ;;  %v15567_v61 = vld [vmem:[%s20510_s3 + $0xc0] sm:$0xff]  }
 0x54f   :  { %v6389_v32 = vsel %vm18598_vm10, %v6381_v14, %v6388_v7  ;;  %v6995_v27 = vsel %vm18181_vm4, %v6390_v52, %v6994_v21  ;;  %v13721_v63 = vpack.c.bf16 %v5858_v22, %v5858_v22  ;;  %v5580_v17 = vpop.f32.mrb[20].mxu0  ;;  %v7200_v60 = vld [vmem:[#allocation2 + $0x28] sm:$0xf]  ;;  %v15534_v14 = vld [vmem:[#allocation2 + $0x2c] ss:$0 sps:$4 sm:$0x11]   ;;  %11251 = vmatpush1.bf16.msra.mxu1 %v15567_v61 }
 0x550   :  { %6993 = vst [vmem:[#allocation2 + $0x34] sm:$0xf] %v6389_v32  ;;  %6996 = vst [vmem:[#allocation2 + $0x38] sm:$0x1] %v6995_v27  ;;  %v7901_v35 = vsel %vm710_vm0, %v7896_v54, %v7900_v16  ;;  %v6394_v28 = vrot.slane %v6392_v50, 7  ;;  %v13932_v29 = vadd.f32 %v5580_v17, %v18537_v33  ;;  %v18916_v46 = vpop.f32.mrb[21].mxu0  ;;  %v13354_v34 = vcombine.low %v7199_v55, %v7200_v60 }
 0x551   :  { %20654 = vst [vmem:[#allocation40_spill] sm:$0xff] %v18916_v46  ;;  %10993 = vmatprep.mubr.bf16.mxu1 %v7901_v35  ;;  %v6997_v21 = vld [vmem:[#allocation2 + $0x3c] sm:$0xf]  ;;  %v6400_v8 = vshrl.u32 %v13721_v63, 16  ;;  %v5584_v12 = vpop.f32.mrb[22].mxu0  ;;  %v6403_v16 = vshll.u32 %v13721_v63, 16  ;;  %11252 = vmatprep.subr.bf16.mxu1 %v20533_v31 }
 0x552   :  { %v6397_v48 = vor.u32 %v6395_v57, %v6394_v28  ;;  %v5859_v7 = vmax.f32 %v13932_v29, 0.0  ;;  %v13934_v52 = vadd.f32 %v5584_v12, %v18537_v33  ;;  %v18922_v22 = vpop.f32.mrb[23].mxu0  ;;  %v6398_v43 = vrot.slane %v6394_v28, 4  ;;  %v7001_v27 = vld [vmem:[#allocation2 + $0x44] sm:$0x1] }
 0x553   :  { %20655 = vst [vmem:[#allocation41_spill] sm:$0xff] %v18922_v22  ;;  %v6402_v54 = vrot.slane %v6400_v8, 7  ;;  %10994 = vmatmul.mubr.bf16.gmra.mrb[48].mxu1 %v18894_v10  ;;  %v7905_v39 = vshll.u32 %v13354_v34, 16  ;;  %v7910_v17 = vshll.u32 %v15534_v14, 16  ;;  %v7903_v57 = vshrl.u32 %v13354_v34, 16 }
 0x554   :  { %v6998_v32 = vsel %vm18586_vm9, %v6397_v48, %v6997_v21  ;;  %v13722_v50 = vpack.c.bf16 %v5859_v7, %v5859_v7  ;;  %v5860_v55 = vmax.f32 %v13934_v52, 0.0  ;;  %v7201_v10 = vld [vmem:[#allocation2 + $0x30] sm:$0xf] }
 0x555   :  { %6999 = vst [vmem:[#allocation2 + $0x3c] sm:$0xf] %v6998_v32  ;;  %v6405_v35 = vor.u32 %v6403_v16, %v6402_v54  ;;  %v6407_v60 = vrot.slane %v6402_v54, 4  ;;  %v7907_v29 = vrot.slane %v7905_v39, 1  ;;  %v7912_v8 = vrot.slane %v7910_v17, 1 }
 0x556   :  { %v6409_v28 = vshrl.u32 %v13722_v50, 16  ;;  %v13723_v63 = vpack.c.bf16 %v5860_v55, %v5860_v55  ;;  %v6412_v16 = vshll.u32 %v13722_v50, 16  ;;  %v7004_v17 = vld [vmem:[#allocation2 + $0x48] sm:$0xf] }
 0x557   :  { %v7202_v12 = vld [vmem:[#allocation2 + $0x34] sm:$0xf]  ;;  %v6406_v21 = vsel %vm18598_vm10, %v6398_v43, %v6405_v35  ;;  %v7002_v48 = vsel %vm18181_vm4, %v6407_v60, %v7001_v27  ;;  %v5590_v14 = vpop.f32.mrb[24].mxu0  ;;  %v7908_v61 = vor.u32 %v7907_v29, %v7903_v57  ;;  %v15536_v52 = vld [vmem:[#allocation2 + $0x38] ss:$0 sps:$4 sm:$0x11]  }
 0x558   :  { %v18932_v7 = vcombine.low %v7201_v10, %v7202_v12  ;;  %7000 = vst [vmem:[#allocation2 + $0x40] sm:$0xf] %v6406_v21  ;;  %7003 = vst [vmem:[#allocation2 + $0x44] sm:$0x1] %v7002_v48  ;;  %v6411_v54 = vrot.slane %v6409_v28, 7  ;;  %v6417_v39 = vshrl.u32 %v13723_v63, 16  ;;  %v13936_v32 = vadd.f32 %v5590_v14, %v18537_v33 }
 0x559   :  { %v18935_v55 = vpop.f32.mrb[25].mxu0  ;;  %v6420_v31 = vshll.u32 %v13723_v63, 16  ;;  %v7913_v43 = vsel %vm710_vm0, %v7908_v61, %v7912_v8  ;;  %v7008_v12 = vld [vmem:[#allocation2 + $0x50] sm:$0x1]  ;;  %v7922_v63 = vshll.u32 %v15536_v52, 16 }
 0x55a   :  { %20656 = vst [vmem:[#allocation42_spill] sm:$0xff] %v18935_v55  ;;  %v5594_v35 = vpop.f32.mrb[26].mxu0  ;;  %v7917_v27 = vshll.u32 %v18932_v7, 16  ;;  %v6414_v60 = vor.u32 %v6412_v16, %v6411_v54  ;;  %v6419_v57 = vrot.slane %v6417_v39, 7  ;;  %v5861_v29 = vmax.f32 %v13936_v32, 0.0  ;;  %11001 = vmatprep.mubr.bf16.mxu1 %v7913_v43 }
 0x55b   :  { %v18939_v10 = vpop.f32.mrb[27].mxu0  ;;  %v7915_v50 = vshrl.u32 %v18932_v7, 16  ;;  %v6415_v28 = vrot.slane %v6411_v54, 4  ;;  %v13938_v21 = vadd.f32 %v5594_v35, %v18537_v33  ;;  %11002 = vmatmul.mubr.bf16.gmra.mrb[52].mxu1 %v13354_v34  ;;  %v6089_v39 = vld [vmem:[#allocation2 + $0x110] sm:$0x1]  ;;  %v7924_v6 = vrot.slane %v7922_v63, 1 }
 0x55c   :  { %20657 = vst [vmem:[#allocation43_spill] sm:$0xff] %v18939_v10  ;;  %v7919_v48 = vrot.slane %v7917_v27, 1  ;;  %v7005_v8 = vsel %vm18586_vm9, %v6414_v60, %v7004_v17  ;;  %v6422_v14 = vor.u32 %v6420_v31, %v6419_v57  ;;  %v6424_v61 = vrot.slane %v6419_v57, 4  ;;  %v7203_v27 = vld [vmem:[#allocation2 + $0x3c] sm:$0xf] }
 0x55d   :  { %v13724_v16 = vpack.c.bf16 %v5861_v29, %v5861_v29  ;;  %7006 = vst [vmem:[#allocation2 + $0x48] sm:$0xf] %v7005_v8  ;;  %v5862_v32 = vmax.f32 %v13938_v21, 0.0  ;;  %v6090_v29 = vsel %vm18198_vm6, 0, %v6089_v39  ;;  %v5995_v63 = vsel %vm18181_vm4, 0, %v5994_v47 }
 0x55e   :  { %v7920_v43 = vor.u32 %v7919_v48, %v7915_v50  ;;  %v6423_v54 = vsel %vm18598_vm10, %v6415_v28, %v6422_v14  ;;  %v7009_v34 = vsel %vm18181_vm4, %v6424_v61, %v7008_v12  ;;  %6091 = vst [vmem:[#allocation2 + $0x110] sm:$0x1] %v6090_v29  ;;  %v7011_v8 = vld [vmem:[#allocation2 + $0x54] sm:$0xf]  ;;  %5996 = vst [vmem:[#allocation2 + $0x114] sm:$0x1] %v5995_v63 }
 0x55f   :  { %v6426_v35 = vshrl.u32 %v13724_v16, 16  ;;  %v6429_v52 = vshll.u32 %v13724_v16, 16  ;;  %7007 = vst [vmem:[#allocation2 + $0x4c] sm:$0xf] %v6423_v54  ;;  %7010 = vst [vmem:[#allocation2 + $0x50] sm:$0x1] %v7009_v34  ;;  %v13725_v31 = vpack.c.bf16 %v5862_v32, %v5862_v32 }
 0x560   :  { %v5600_v17 = vpop.f32.mrb[28].mxu0  ;;  %v7925_v60 = vsel %vm710_vm0, %v7920_v43, %v7924_v6  ;;  %v7204_v57 = vld [vmem:[#allocation2 + $0x40] sm:$0xf]  ;;  %v15539_v48 = vld [vmem:[#allocation2 + $0x44] ss:$0 sps:$4 sm:$0x11]  }
 0x561   :  { %v6428_v50 = vrot.slane %v6426_v35, 7  ;;  %v13940_v28 = vadd.f32 %v5600_v17, %v18537_v33  ;;  %v18953_v21 = vpop.f32.mrb[29].mxu0  ;;  %11009 = vmatprep.mubr.bf16.mxu1 %v7925_v60  ;;  %v18955_v12 = vcombine.low %v7203_v27, %v7204_v57  ;;  %v6434_v14 = vshrl.u32 %v13725_v31, 16  ;;  %v15572_v16 = vld [vmem:[%s20510_s3 + $0xc8] sm:$0xff]   ;;  %v5997_v47 = vld [vmem:[#allocation2 + $0x120] sm:$0x1] }
 0x562   :  { %20658 = vst [vmem:[#allocation44_spill] sm:$0xff] %v18953_v21  ;;  %v5604_v6 = vpop.f32.mrb[30].mxu0  ;;  %v6093_v61 = vsel %vm18198_vm6, 0, %v6092_v37  ;;  %v6437_v32 = vshll.u32 %v13725_v31, 16  ;;  %v7015_v17 = vld [vmem:[#allocation2 + $0x5c] sm:$0x1]  ;;  %11253 = vmatpush1.bf16.msra.mxu1 %v15572_v16 }
 0x563   :  { %v6431_v39 = vor.u32 %v6429_v52, %v6428_v50  ;;  %v5863_v43 = vmax.f32 %v13940_v28, 0.0  ;;  %v13942_v54 = vadd.f32 %v5604_v6, %v18537_v33  ;;  %v18965_v34 = vpop.f32.mrb[31].mxu0  ;;  %6094 = vst [vmem:[#allocation2 + $0x11c] sm:$0x1] %v6093_v61  ;;  %v6432_v35 = vrot.slane %v6428_v50, 4  ;;  %11010 = vmatmul.mubr.bf16.gmra.mrb[56].mxu1 %v18932_v7  ;;  %v15577_v28 = vld [vmem:[%s20510_s3 + $0xd0] sm:$0xff]  }
 0x564   :  { %20659 = vst [vmem:[#allocation45_spill] sm:$0xff] %v18965_v34  ;;  %v6436_v27 = vrot.slane %v6434_v14, 7  ;;  %v7927_v37 = vshrl.u32 %v18955_v12, 16  ;;  %v7929_v60 = vshll.u32 %v18955_v12, 16  ;;  %v7934_v29 = vshll.u32 %v15539_v48, 16 }
 0x565   :  { %v7012_v52 = vsel %vm18586_vm9, %v6431_v39, %v7011_v8  ;;  %v13726_v31 = vpack.c.bf16 %v5863_v43, %v5863_v43  ;;  %v5864_v57 = vmax.f32 %v13942_v54, 0.0  ;;  %v5998_v7 = vsel %vm18181_vm4, 0, %v5997_v47  ;;  %v7205_v39 = vld [vmem:[#allocation2 + $0x48] sm:$0xf] }
 0x566   :  { %7013 = vst [vmem:[#allocation2 + $0x54] sm:$0xf] %v7012_v52  ;;  %v6439_v50 = vor.u32 %v6437_v32, %v6436_v27  ;;  %v6441_v63 = vrot.slane %v6436_v27, 4  ;;  %v7931_v14 = vrot.slane %v7929_v60, 1  ;;  %v20660_v6 = vmov 0  }
 0x567   :  { %11254 = vmatprep.subr.bf16.mxu1 %v20660_v6  ;;  %v6443_v61 = vshrl.u32 %v13726_v31, 16  ;;  %v13727_v23 = vpack.c.bf16 %v5864_v57, %v5864_v57  ;;  %v7936_v8 = vrot.slane %v7934_v29, 1  ;;  %v7206_v43 = vld [vmem:[#allocation2 + $0x4c] sm:$0xf]  ;;  %5999 = vst [vmem:[#allocation2 + $0x120] sm:$0x1] %v5998_v7 }
 0x568   :  { %v6440_v48 = vsel %vm18598_vm10, %v6432_v35, %v6439_v50  ;;  %v7016_v16 = vsel %vm18181_vm4, %v6441_v63, %v7015_v17  ;;  %v5610_v32 = vpop.f32.mrb[32].mxu0  ;;  %v7932_v54 = vor.u32 %v7931_v14, %v7927_v37  ;;  %v18982_v27 = vcombine.low %v7205_v39, %v7206_v43  ;;  %v15541_v60 = vld [vmem:[#allocation2 + $0x50] ss:$0 sps:$4 sm:$0x11]   ;;  %11255 = vmatpush1.bf16.msra.mxu1 %v15577_v28  ;;  %v7018_v7 = vld [vmem:[#allocation2 + $0x60] sm:$0xf] }
 0x569   :  { %7014 = vst [vmem:[#allocation2 + $0x58] sm:$0xf] %v6440_v48  ;;  %7017 = vst [vmem:[#allocation2 + $0x5c] sm:$0x1] %v7016_v16  ;;  %v6445_v47 = vrot.slane %v6443_v61, 7  ;;  %v6446_v52 = vshll.u32 %v13726_v31, 16  ;;  %v13944_v29 = vadd.f32 %v5610_v32, %v18537_v33  ;;  %11256 = vmatprep.subr.bf16.mxu1 %v20660_v6 }
 0x56a   :  { %v6451_v57 = vshrl.u32 %v13727_v23, 16  ;;  %v18985_v15 = vpop.f32.mrb[33].mxu0  ;;  %v6454_v35 = vshll.u32 %v13727_v23, 16  ;;  %v7937_v50 = vsel %vm710_vm0, %v7932_v54, %v7936_v8  ;;  %v7941_v37 = vshll.u32 %v18982_v27, 16  ;;  %v6095_v43 = vld [vmem:[#allocation2 + $0x128] sm:$0x1] }
 0x56b   :  { %20661 = vst [vmem:[#allocation46_spill] sm:$0xff] %v18985_v15  ;;  %v5614_v17 = vpop.f32.mrb[34].mxu0  ;;  %v6448_v63 = vor.u32 %v6446_v52, %v6445_v47  ;;  %v5865_v39 = vmax.f32 %v13944_v29, 0.0  ;;  %11017 = vmatprep.mubr.bf16.mxu1 %v7937_v50  ;;  %v7939_v61 = vshrl.u32 %v18982_v27, 16  ;;  %v6449_v48 = vrot.slane %v6445_v47, 4 }
 0x56c   :  { %v6453_v14 = vrot.slane %v6451_v57, 7  ;;  %v18990_v31 = vpop.f32.mrb[35].mxu0  ;;  %v7022_v28 = vld [vmem:[#allocation2 + $0x68] sm:$0x1]  ;;  %v13946_v23 = vadd.f32 %v5614_v17, %v18537_v33  ;;  %11018 = vmatmul.mubr.bf16.gmra.mrb[60].mxu1 %v18955_v12  ;;  %v7943_v8 = vrot.slane %v7941_v37, 1  ;;  %v7946_v16 = vshll.u32 %v15541_v60, 16 }
 0x56d   :  { %20662 = vst [vmem:[#allocation47_spill] sm:$0xff] %v18990_v31  ;;  %v7019_v32 = vsel %vm18586_vm9, %v6448_v63, %v7018_v7  ;;  %v13728_v57 = vpack.c.bf16 %v5865_v39, %v5865_v39  ;;  %v6096_v47 = vsel %vm18198_vm6, 0, %v6095_v43  ;;  %v7207_v37 = vld [vmem:[#allocation2 + $0x54] sm:$0xf] }
 0x56e   :  { %v6456_v54 = vor.u32 %v6454_v35, %v6453_v14  ;;  %v6458_v52 = vrot.slane %v6453_v14, 4  ;;  %7020 = vst [vmem:[#allocation2 + $0x60] sm:$0xf] %v7019_v32  ;;  %v5866_v29 = vmax.f32 %v13946_v23, 0.0  ;;  %v7944_v50 = vor.u32 %v7943_v8, %v7939_v61  ;;  %6097 = vst [vmem:[#allocation2 + $0x128] sm:$0x1] %v6096_v47 }
 0x56f   :  { %v7948_v49 = vrot.slane %v7946_v16, 1  ;;  %v6460_v60 = vshrl.u32 %v13728_v57, 16  ;;  %v5620_v35 = vpop.f32.mrb[36].mxu0  ;;  %v6463_v61 = vshll.u32 %v13728_v57, 16 }
 0x570   :  { %v6457_v17 = vsel %vm18598_vm10, %v6449_v48, %v6456_v54  ;;  %v7023_v12 = vsel %vm18181_vm4, %v6458_v52, %v7022_v28  ;;  %v13729_v7 = vpack.c.bf16 %v5866_v29, %v5866_v29  ;;  %v7208_v14 = vld [vmem:[#allocation2 + $0x58] sm:$0xf]  ;;  %v13948_v53 = vadd.f32 %v5620_v35, %v18537_v33  ;;  %v19005_v43 = vpop.f32.mrb[37].mxu0  ;;  %v15544_v23 = vld [vmem:[#allocation2 + $0x5c] ss:$0 sps:$4 sm:$0x11]  }
 0x571   :  { %7021 = vst [vmem:[#allocation2 + $0x64] sm:$0xf] %v6457_v17  ;;  %7024 = vst [vmem:[#allocation2 + $0x68] sm:$0x1] %v7023_v12  ;;  %v7949_v63 = vsel %vm710_vm0, %v7944_v50, %v7948_v49  ;;  %v6462_v39 = vrot.slane %v6460_v60, 7  ;;  %v13358_v48 = vcombine.low %v7207_v37, %v7208_v14  ;;  %v5624_v16 = vpop.f32.mrb[38].mxu0 }
 0x572   :  { %20663 = vst [vmem:[#allocation48_spill] sm:$0xff] %v19005_v43  ;;  %11025 = vmatprep.mubr.bf16.mxu1 %v7949_v63  ;;  %v7025_v28 = vld [vmem:[#allocation2 + $0x6c] sm:$0xf]  ;;  %v6468_v8 = vshrl.u32 %v13729_v7, 16  ;;  %v5867_v54 = vmax.f32 %v13948_v53, 0.0  ;;  %v13950_v52 = vadd.f32 %v5624_v16, %v18537_v33  ;;  %v19008_v29 = vpop.f32.mrb[39].mxu0 }
 0x573   :  { %v6465_v32 = vor.u32 %v6463_v61, %v6462_v39  ;;  %20664 = vst [vmem:[#allocation49_spill] sm:$0xff] %v19008_v29  ;;  %v6466_v49 = vrot.slane %v6462_v39, 4  ;;  %v6471_v47 = vshll.u32 %v13729_v7, 16  ;;  %v7953_v57 = vshll.u32 %v13358_v48, 16  ;;  %v7029_v12 = vld [vmem:[#allocation2 + $0x74] sm:$0x1] }
 0x574   :  { %v6470_v50 = vrot.slane %v6468_v8, 7  ;;  %11026 = vmatmul.mubr.bf16.gmra.mrb[64].mxu1 %v18982_v27  ;;  %v13730_v60 = vpack.c.bf16 %v5867_v54, %v5867_v54  ;;  %v5868_v37 = vmax.f32 %v13950_v52, 0.0  ;;  %v7958_v35 = vshll.u32 %v15544_v23, 16  ;;  %v15584_v63 = vld [vmem:[%s20510_s3 + $0xd8] sm:$0xff]   ;;  %v7296_v29 = vld [vmem:[#allocation2 + $0x54] sm:$0xe] }
 0x575   :  { %v7026_v17 = vsel %vm18586_vm9, %v6465_v32, %v7025_v28  ;;  %v7951_v39 = vshrl.u32 %v13358_v48, 16  ;;  %v7955_v53 = vrot.slane %v7953_v57, 1  ;;  %v7209_v16 = vld [vmem:[#allocation2 + $0x60] sm:$0xf]  ;;  %11257 = vmatpush1.bf16.msra.mxu1 %v15584_v63  ;;  %v7032_v63 = vld [vmem:[#allocation2 + $0x78] sm:$0xf] }
 0x576   :  { %7027 = vst [vmem:[#allocation2 + $0x6c] sm:$0xf] %v7026_v17  ;;  %v6473_v14 = vor.u32 %v6471_v47, %v6470_v50  ;;  %v6475_v61 = vrot.slane %v6470_v50, 4  ;;  %v6477_v7 = vshrl.u32 %v13730_v60, 16  ;;  %v13731_v8 = vpack.c.bf16 %v5868_v37, %v5868_v37  ;;  %11258 = vmatprep.subr.bf16.mxu1 %v20660_v6  ;;  %v7335_v31 = vld [vmem:[#allocation2 + $0x60] sm:$0xf] }
 0x577   :  { %v7960_v27 = vrot.slane %v7958_v35, 1  ;;  %v5630_v32 = vpop.f32.mrb[40].mxu0  ;;  %v7956_v54 = vor.u32 %v7955_v53, %v7951_v39  ;;  %v6480_v47 = vshll.u32 %v13730_v60, 16  ;;  %v7036_v60 = vld [vmem:[#allocation2 + $0x80] sm:$0x1] }
 0x578   :  { %v7210_v3 = vld [vmem:[#allocation2 + $0x64] sm:$0xf]  ;;  %v6474_v28 = vsel %vm18598_vm10, %v6466_v49, %v6473_v14  ;;  %v7030_v23 = vsel %vm18181_vm4, %v6475_v61, %v7029_v12  ;;  %v15546_v17 = vld [vmem:[#allocation2 + $0x68] ss:$0 sps:$4 sm:$0x11]   ;;  %v6479_v50 = vrot.slane %v6477_v7, 7  ;;  %v13952_v37 = vadd.f32 %v5630_v32, %v18537_v33 }
 0x579   :  { %v13359_v52 = vcombine.low %v7209_v16, %v7210_v3  ;;  %7028 = vst [vmem:[#allocation2 + $0x70] sm:$0xf] %v6474_v28  ;;  %7031 = vst [vmem:[#allocation2 + $0x74] sm:$0x1] %v7030_v23  ;;  %v6485_v57 = vshrl.u32 %v13731_v8, 16  ;;  %v19022_v35 = vpop.f32.mrb[41].mxu0  ;;  %v7961_v14 = vsel %vm710_vm0, %v7956_v54, %v7960_v27 }
 0x57a   :  { %20665 = vst [vmem:[#allocation50_spill] sm:$0xff] %v19022_v35  ;;  %v6488_v49 = vshll.u32 %v13731_v8, 16  ;;  %v5634_v12 = vpop.f32.mrb[42].mxu0  ;;  %v6482_v39 = vor.u32 %v6480_v47, %v6479_v50  ;;  %v5869_v53 = vmax.f32 %v13952_v37, 0.0  ;;  %11033 = vmatprep.mubr.bf16.mxu1 %v7961_v14  ;;  %v6483_v7 = vrot.slane %v6479_v50, 4 }
 0x57b   :  { %v7965_v61 = vshll.u32 %v13359_v52, 16  ;;  %v6487_v3 = vrot.slane %v6485_v57, 7  ;;  %v19025_v16 = vpop.f32.mrb[43].mxu0  ;;  %v7963_v28 = vshrl.u32 %v13359_v52, 16  ;;  %v13954_v23 = vadd.f32 %v5634_v12, %v18537_v33  ;;  %v19407_v35 = vld [vmem:[#allocation2 + $0x58] sm:$0xf] }
 0x57c   :  { %20666 = vst [vmem:[#allocation51_spill] sm:$0xff] %v19025_v16  ;;  %11034 = vmatmul.mubr.bf16.gmra.mrb[68].mxu1 %v13358_v48  ;;  %v7970_v11 = vshll.u32 %v15546_v17, 16  ;;  %v7033_v8 = vsel %vm18586_vm9, %v6482_v39, %v7032_v63  ;;  %v13732_v25 = vpack.c.bf16 %v5869_v53, %v5869_v53  ;;  %v19392_v16 = vld [vmem:[#allocation2 + $0x4c] sm:$0xf]  ;;  %20692 = vst [vmem:[#allocation76_spill] sm:$0xff] %v19407_v35 }
 0x57d   :  { %v7967_v32 = vrot.slane %v7965_v61, 1  ;;  %v6490_v27 = vor.u32 %v6488_v49, %v6487_v3  ;;  %v6492_v54 = vrot.slane %v6487_v3, 4  ;;  %7034 = vst [vmem:[#allocation2 + $0x78] sm:$0xf] %v7033_v8  ;;  %v5870_v47 = vmax.f32 %v13954_v23, 0.0  ;;  %20690 = vst [vmem:[#allocation74_spill] sm:$0xff] %v19392_v16 }
 0x57e   :  { %v7972_v37 = vrot.slane %v7970_v11, 1  ;;  %v6494_v12 = vshrl.u32 %v13732_v25, 16  ;;  %v7211_v48 = vld [vmem:[#allocation2 + $0x6c] sm:$0xf]  ;;  %v6497_v3 = vshll.u32 %v13732_v25, 16 }
 0x57f   :  { %v7968_v57 = vor.u32 %v7967_v32, %v7963_v28  ;;  %v6491_v14 = vsel %vm18598_vm10, %v6483_v7, %v6490_v27  ;;  %v7037_v50 = vsel %vm18181_vm4, %v6492_v54, %v7036_v60  ;;  %v13733_v17 = vpack.c.bf16 %v5870_v47, %v5870_v47  ;;  %v5640_v61 = vpop.f32.mrb[44].mxu0  ;;  %v7039_v23 = vld [vmem:[#allocation2 + $0x84] sm:$0xf]  ;;  %v15953_v15 = vld [vmem:[#allocation2 + $0x68] ss:$0 sps:$4 sm:$0x11]  }
 0x580   :  { %7035 = vst [vmem:[#allocation2 + $0x7c] sm:$0xf] %v6491_v14  ;;  %7038 = vst [vmem:[#allocation2 + $0x80] sm:$0x1] %v7037_v50  ;;  %v7212_v49 = vld [vmem:[#allocation2 + $0x70] sm:$0xf]  ;;  %v13956_v53 = vadd.f32 %v5640_v61, %v18537_v33 }
 0x581   :  { %v7973_v63 = vsel %vm710_vm0, %v7968_v57, %v7972_v37  ;;  %v6496_v39 = vrot.slane %v6494_v12, 7  ;;  %v19036_v11 = vpop.f32.mrb[45].mxu0  ;;  %v13360_v28 = vcombine.low %v7211_v48, %v7212_v49  ;;  %v15549_v7 = vld [vmem:[#allocation2 + $0x74] ss:$0 sps:$4 sm:$0x11]   ;;  %v6502_v60 = vshrl.u32 %v13733_v17, 16 }
 0x582   :  { %20667 = vst [vmem:[#allocation52_spill] sm:$0xff] %v19036_v11  ;;  %11041 = vmatprep.mubr.bf16.mxu1 %v7973_v63  ;;  %v5644_v32 = vpop.f32.mrb[46].mxu0  ;;  %v5871_v27 = vmax.f32 %v13956_v53, 0.0  ;;  %v6505_v14 = vshll.u32 %v13733_v17, 16  ;;  %v7043_v12 = vld [vmem:[#allocation2 + $0x8c] sm:$0x1] }
 0x583   :  { %v6499_v8 = vor.u32 %v6497_v3, %v6496_v39  ;;  %v13958_v54 = vadd.f32 %v5644_v32, %v18537_v33  ;;  %v19039_v47 = vpop.f32.mrb[47].mxu0  ;;  %v6500_v57 = vrot.slane %v6496_v39, 4  ;;  %v6504_v37 = vrot.slane %v6502_v60, 7  ;;  %v15589_v49 = vld [vmem:[%s20510_s3 + $0xe0] sm:$0xff]   ;;  %v7298_v10 = vld [vmem:[#allocation2 + $0x6c] sm:$0xe] }
 0x584   :  { %20668 = vst [vmem:[#allocation53_spill] sm:$0xff] %v19039_v47  ;;  %11042 = vmatmul.mubr.bf16.gmra.mrb[72].mxu1 %v13359_v52  ;;  %v7977_v25 = vshll.u32 %v13360_v28, 16  ;;  %v13734_v48 = vpack.c.bf16 %v5871_v27, %v5871_v27  ;;  %v7982_v63 = vshll.u32 %v15549_v7, 16  ;;  %v7975_v32 = vshrl.u32 %v13360_v28, 16  ;;  %v7213_v19 = vld [vmem:[#allocation2 + $0x78] sm:$0xf] }
 0x585   :  { %v7040_v50 = vsel %vm18586_vm9, %v6499_v8, %v7039_v23  ;;  %v5872_v61 = vmax.f32 %v13958_v54, 0.0  ;;  %v6507_v3 = vor.u32 %v6505_v14, %v6504_v37  ;;  %v6509_v53 = vrot.slane %v6504_v37, 4  ;;  %11259 = vmatpush1.bf16.msra.mxu1 %v15589_v49  ;;  %v7046_v49 = vld [vmem:[#allocation2 + $0x90] sm:$0xf]  ;;  %v19419_v11 = vld [vmem:[#allocation2 + $0x64] sm:$0xf] }
 0x586   :  { %7041 = vst [vmem:[#allocation2 + $0x84] sm:$0xf] %v7040_v50  ;;  %v7979_v39 = vrot.slane %v7977_v25, 1  ;;  %v6511_v60 = vshrl.u32 %v13734_v48, 16  ;;  %v7984_v52 = vrot.slane %v7982_v63, 1  ;;  %11260 = vmatprep.subr.bf16.mxu1 %v20660_v6  ;;  %v6514_v14 = vshll.u32 %v13734_v48, 16 }
 0x587   :  { %v13735_v17 = vpack.c.bf16 %v5872_v61, %v5872_v61  ;;  %v7214_v62 = vld [vmem:[#allocation2 + $0x7c] sm:$0xf]  ;;  %v6508_v23 = vsel %vm18598_vm10, %v6500_v57, %v6507_v3  ;;  %v7044_v7 = vsel %vm18181_vm4, %v6509_v53, %v7043_v12  ;;  %v5650_v8 = vpop.f32.mrb[48].mxu0  ;;  %v15551_v50 = vld [vmem:[#allocation2 + $0x80] ss:$0 sps:$4 sm:$0x11]  }
 0x588   :  { %v7980_v27 = vor.u32 %v7979_v39, %v7975_v32  ;;  %v13361_v54 = vcombine.low %v7213_v19, %v7214_v62  ;;  %7042 = vst [vmem:[#allocation2 + $0x88] sm:$0xf] %v6508_v23  ;;  %7045 = vst [vmem:[#allocation2 + $0x8c] sm:$0x1] %v7044_v7  ;;  %v6513_v37 = vrot.slane %v6511_v60, 7  ;;  %v13960_v61 = vadd.f32 %v5650_v8, %v18537_v33  ;;  %v19052_v63 = vpop.f32.mrb[49].mxu0 }
 0x589   :  { %v6519_v25 = vshrl.u32 %v13735_v17, 16  ;;  %20669 = vst [vmem:[#allocation54_spill] sm:$0xff] %v19052_v63  ;;  %v6522_v57 = vshll.u32 %v13735_v17, 16  ;;  %v5654_v12 = vpop.f32.mrb[50].mxu0  ;;  %v7050_v48 = vld [vmem:[#allocation2 + $0x98] sm:$0x1] }
 0x58a   :  { %v7985_v3 = vsel %vm710_vm0, %v7980_v27, %v7984_v52  ;;  %v7989_v53 = vshll.u32 %v13361_v54, 16  ;;  %v6516_v32 = vor.u32 %v6514_v14, %v6513_v37  ;;  %v5873_v19 = vmax.f32 %v13960_v61, 0.0  ;;  %v19055_v39 = vpop.f32.mrb[51].mxu0  ;;  %v19377_v63 = vld [vmem:[#allocation2 + $0x40] sm:$0xf]  ;;  %20694 = vst [vmem:[#allocation78_spill] sm:$0xff] %v19419_v11 }
 0x58b   :  { %v6521_v62 = vrot.slane %v6519_v25, 7  ;;  %11049 = vmatprep.mubr.bf16.mxu1 %v7985_v3  ;;  %20670 = vst [vmem:[#allocation55_spill] sm:$0xff] %v19055_v39  ;;  %v7987_v23 = vshrl.u32 %v13361_v54, 16  ;;  %v6517_v60 = vrot.slane %v6513_v37, 4  ;;  %v13962_v7 = vadd.f32 %v5654_v12, %v18537_v33  ;;  %v7339_v43 = vld [vmem:[#allocation2 + $0x78] sm:$0xf] }
 0x58c   :  { %11050 = vmatmul.mubr.bf16.gmra.mrb[76].mxu1 %v13360_v28  ;;  %v7991_v8 = vrot.slane %v7989_v53, 1  ;;  %v7994_v2 = vshll.u32 %v15551_v50, 16  ;;  %v7047_v17 = vsel %vm18586_vm9, %v6516_v32, %v7046_v49  ;;  %v13736_v59 = vpack.c.bf16 %v5873_v19, %v5873_v19  ;;  %v7461_v26 = vld [vmem:[#allocation2 + $0x58] sm:$0xf]  ;;  %v7552_v41 = vld [vmem:[#allocation2 + $0x60] sm:$0xe] }
 0x58d   :  { %v6524_v52 = vor.u32 %v6522_v57, %v6521_v62  ;;  %v6526_v27 = vrot.slane %v6521_v62, 4  ;;  %7048 = vst [vmem:[#allocation2 + $0x90] sm:$0xf] %v7047_v17  ;;  %v5874_v14 = vmax.f32 %v13962_v7, 0.0  ;;  %v7215_v28 = vld [vmem:[#allocation2 + $0x84] sm:$0xf] }
 0x58e   :  { %v7992_v25 = vor.u32 %v7991_v8, %v7987_v23  ;;  %v7996_v61 = vrot.slane %v7994_v2, 1  ;;  %v6528_v12 = vshrl.u32 %v13736_v59, 16  ;;  %v6531_v62 = vshll.u32 %v13736_v59, 16  ;;  %v7053_v7 = vld [vmem:[#allocation2 + $0x9c] sm:$0xf] }
 0x58f   :  { %v6525_v3 = vsel %vm18598_vm10, %v6517_v60, %v6524_v52  ;;  %v7051_v37 = vsel %vm18181_vm4, %v6526_v27, %v7050_v48  ;;  %v13737_v50 = vpack.c.bf16 %v5874_v14, %v5874_v14  ;;  %v5660_v53 = vpop.f32.mrb[52].mxu0  ;;  %v7216_v57 = vld [vmem:[#allocation2 + $0x88] sm:$0xf]  ;;  %v15554_v60 = vld [vmem:[#allocation2 + $0x8c] ss:$0 sps:$4 sm:$0x11]  }
 0x590   :  { %7049 = vst [vmem:[#allocation2 + $0x94] sm:$0xf] %v6525_v3  ;;  %7052 = vst [vmem:[#allocation2 + $0x98] sm:$0x1] %v7051_v37  ;;  %v7997_v49 = vsel %vm710_vm0, %v7992_v25, %v7996_v61  ;;  %v6530_v32 = vrot.slane %v6528_v12, 7  ;;  %v13964_v19 = vadd.f32 %v5660_v53, %v18537_v33  ;;  %v19066_v2 = vpop.f32.mrb[53].mxu0  ;;  %v13362_v23 = vcombine.low %v7215_v28, %v7216_v57 }
 0x591   :  { %20671 = vst [vmem:[#allocation56_spill] sm:$0xff] %v19066_v2  ;;  %11057 = vmatprep.mubr.bf16.mxu1 %v7997_v49  ;;  %v6536_v48 = vshrl.u32 %v13737_v50, 16  ;;  %v5664_v8 = vpop.f32.mrb[54].mxu0  ;;  %v6539_v3 = vshll.u32 %v13737_v50, 16  ;;  %v7057_v12 = vld [vmem:[#allocation2 + $0xa4] sm:$0x1] }
 0x592   :  { %v6533_v17 = vor.u32 %v6531_v62, %v6530_v32  ;;  %v5875_v52 = vmax.f32 %v13964_v19, 0.0  ;;  %v13966_v27 = vadd.f32 %v5664_v8, %v18537_v33  ;;  %v19069_v14 = vpop.f32.mrb[55].mxu0  ;;  %v6534_v25 = vrot.slane %v6530_v32, 4  ;;  %v15594_v57 = vld [vmem:[%s20510_s3 + $0xe8] sm:$0xff]   ;;  %v7300_v21 = vld [vmem:[#allocation2 + $0x84] sm:$0xe] }
 0x593   :  { %20672 = vst [vmem:[#allocation57_spill] sm:$0xff] %v19069_v14  ;;  %v6538_v61 = vrot.slane %v6536_v48, 7  ;;  %v8001_v59 = vshll.u32 %v13362_v23, 16  ;;  %v8006_v49 = vshll.u32 %v15554_v60, 16  ;;  %v7999_v8 = vshrl.u32 %v13362_v23, 16  ;;  %11261 = vmatpush1.bf16.msra.mxu1 %v15594_v57 }
 0x594   :  { %11058 = vmatmul.mubr.bf16.gmra.mrb[80].mxu1 %v13361_v54  ;;  %v7054_v37 = vsel %vm18586_vm9, %v6533_v17, %v7053_v7  ;;  %v13738_v28 = vpack.c.bf16 %v5875_v52, %v5875_v52  ;;  %v5876_v53 = vmax.f32 %v13966_v27, 0.0  ;;  %v7217_v38 = vld [vmem:[#allocation2 + $0x90] sm:$0xf]  ;;  %11262 = vmatprep.subr.bf16.mxu1 %v20660_v6  ;;  %v15778_v22 = vld [vmem:[#allocation2 + $0x5c] ss:$0 sps:$4 sm:$0x11]  }
 0x595   :  { %7055 = vst [vmem:[#allocation2 + $0x9c] sm:$0xf] %v7054_v37  ;;  %v6541_v62 = vor.u32 %v6539_v3, %v6538_v61  ;;  %v6543_v19 = vrot.slane %v6538_v61, 4  ;;  %v8003_v32 = vrot.slane %v8001_v59, 1  ;;  %v8008_v54 = vrot.slane %v8006_v49, 1 }
 0x596   :  { %v6545_v48 = vshrl.u32 %v13738_v28, 16  ;;  %v13739_v50 = vpack.c.bf16 %v5876_v53, %v5876_v53  ;;  %v6548_v59 = vshll.u32 %v13738_v28, 16  ;;  %v7343_v51 = vld [vmem:[#allocation2 + $0x90] sm:$0xf]  ;;  %v15958_v46 = vld [vmem:[#allocation2 + $0x88] sm:$0xf] }
 0x597   :  { %v7218_v0 = vld [vmem:[#allocation2 + $0x94] sm:$0xf]  ;;  %v6542_v7 = vsel %vm18598_vm10, %v6534_v25, %v6541_v62  ;;  %v7058_v60 = vsel %vm18181_vm4, %v6543_v19, %v7057_v12  ;;  %v5670_v17 = vpop.f32.mrb[56].mxu0  ;;  %v8004_v52 = vor.u32 %v8003_v32, %v7999_v8  ;;  %v15556_v3 = vld [vmem:[#allocation2 + $0x98] ss:$0 sps:$4 sm:$0x11]   ;;  %v13426_v5 = vcombine.low %v7300_v21, %v15958_v46 }
 0x598   :  { %v19080_v27 = vcombine.low %v7217_v38, %v7218_v0  ;;  %7056 = vst [vmem:[#allocation2 + $0xa0] sm:$0xf] %v6542_v7  ;;  %7059 = vst [vmem:[#allocation2 + $0xa4] sm:$0x1] %v7058_v60  ;;  %v6547_v61 = vrot.slane %v6545_v48, 7  ;;  %v6553_v37 = vshrl.u32 %v13739_v50, 16  ;;  %v13968_v53 = vadd.f32 %v5670_v17, %v18537_v33 }
 0x599   :  { %v19084_v49 = vpop.f32.mrb[57].mxu0  ;;  %v7060_v25 = vld [vmem:[#allocation2 + $0xa8] sm:$0xf]  ;;  %v6556_v57 = vshll.u32 %v13739_v50, 16  ;;  %v8009_v12 = vsel %vm710_vm0, %v8004_v52, %v8008_v54  ;;  %v7064_v7 = vld [vmem:[#allocation2 + $0xb0] sm:$0x1] }
 0x59a   :  { %20673 = vst [vmem:[#allocation58_spill] sm:$0xff] %v19084_v49  ;;  %v5674_v62 = vpop.f32.mrb[58].mxu0  ;;  %v8013_v0 = vshll.u32 %v19080_v27, 16  ;;  %v6550_v38 = vor.u32 %v6548_v59, %v6547_v61  ;;  %v6555_v19 = vrot.slane %v6553_v37, 7  ;;  %v5877_v8 = vmax.f32 %v13968_v53, 0.0  ;;  %11065 = vmatprep.mubr.bf16.mxu1 %v8009_v12  ;;  %v15701_v46 = vld [vmem:[%s20510_s3 + $0x168] sm:$0xff]  }
 0x59b   :  { %v19088_v32 = vpop.f32.mrb[59].mxu0  ;;  %v8011_v28 = vshrl.u32 %v19080_v27, 16  ;;  %v6551_v48 = vrot.slane %v6547_v61, 4  ;;  %v13970_v60 = vadd.f32 %v5674_v62, %v18537_v33  ;;  %v8018_v50 = vshll.u32 %v15556_v3, 16  ;;  %v7225_v37 = vld [vmem:[#allocation2 + $0xd8] sm:$0xf] }
 0x59c   :  { %20674 = vst [vmem:[#allocation59_spill] sm:$0xff] %v19088_v32  ;;  %11066 = vmatmul.mubr.bf16.gmra.mrb[84].mxu1 %v13362_v23  ;;  %v8015_v17 = vrot.slane %v8013_v0, 1  ;;  %v7061_v54 = vsel %vm18586_vm9, %v6550_v38, %v7060_v25  ;;  %v6558_v52 = vor.u32 %v6556_v57, %v6555_v19  ;;  %v6560_v40 = vrot.slane %v6555_v19, 4  ;;  %v7226_v53 = vld [vmem:[#allocation2 + $0xdc] sm:$0xf] }
 0x59d   :  { %v13740_v59 = vpack.c.bf16 %v5877_v8, %v5877_v8  ;;  %7062 = vst [vmem:[#allocation2 + $0xa8] sm:$0xf] %v7061_v54  ;;  %v5878_v12 = vmax.f32 %v13970_v60, 0.0  ;;  %v8020_v44 = vrot.slane %v8018_v50, 1  ;;  %v7219_v3 = vld [vmem:[#allocation2 + $0x9c] sm:$0xf]  ;;  %v19099_v19 = vcombine.low %v7225_v37, %v7226_v53 }
 0x59e   :  { %v8016_v20 = vor.u32 %v8015_v17, %v8011_v28  ;;  %v6559_v61 = vsel %vm18598_vm10, %v6551_v48, %v6558_v52  ;;  %v7065_v23 = vsel %vm18181_vm4, %v6560_v40, %v7064_v7  ;;  %v7067_v7 = vld [vmem:[#allocation2 + $0xb4] sm:$0xf]  ;;  %v10250_v21 = vrot.slane %v15778_v22, 1  ;;  %v15959_v42 = vld [vmem:[#allocation2 + $0x8c] ss:$0 sps:$4 sm:$0x11]  }
 0x59f   :  { %v6562_v62 = vshrl.u32 %v13740_v59, 16  ;;  %7063 = vst [vmem:[#allocation2 + $0xac] sm:$0xf] %v6559_v61  ;;  %7066 = vst [vmem:[#allocation2 + $0xb0] sm:$0x1] %v7065_v23  ;;  %v13741_v25 = vpack.c.bf16 %v5878_v12, %v5878_v12  ;;  %v5680_v57 = vpop.f32.mrb[60].mxu0 }
 0x5a0   :  { %v8021_v0 = vsel %vm710_vm0, %v8016_v20, %v8020_v44  ;;  %v7220_v38 = vld [vmem:[#allocation2 + $0xa0] sm:$0xf]  ;;  %v6565_v28 = vshll.u32 %v13740_v59, 16  ;;  %v13972_v60 = vadd.f32 %v5680_v57, %v18537_v33  ;;  %v19102_v17 = vpop.f32.mrb[61].mxu0  ;;  %v8412_v36 = vrot.slane %v15959_v42, 1 }
 0x5a1   :  { %v6564_v8 = vrot.slane %v6562_v62, 7  ;;  %20675 = vst [vmem:[#allocation60_spill] sm:$0xff] %v19102_v17  ;;  %11073 = vmatprep.mubr.bf16.mxu1 %v8021_v0  ;;  %v13364_v48 = vcombine.low %v7219_v3, %v7220_v38  ;;  %v15559_v40 = vld [vmem:[#allocation2 + $0xa4] ss:$0 sps:$4 sm:$0x11]   ;;  %v6570_v50 = vshrl.u32 %v13741_v25, 16 }
 0x5a2   :  { %v5684_v54 = vpop.f32.mrb[62].mxu0  ;;  %v5879_v12 = vmax.f32 %v13972_v60, 0.0  ;;  %v6573_v53 = vshll.u32 %v13741_v25, 16  ;;  %v7071_v3 = vld [vmem:[#allocation2 + $0xbc] sm:$0x1]  ;;  %v8030_v38 = vshll.u32 %v15559_v40, 16 }
 0x5a3   :  { %v6567_v52 = vor.u32 %v6565_v28, %v6564_v8  ;;  %v13974_v61 = vadd.f32 %v5684_v54, %v18537_v33  ;;  %v19105_v20 = vpop.f32.mrb[63].mxu0  ;;  %v6568_v37 = vrot.slane %v6564_v8, 4  ;;  %v6572_v59 = vrot.slane %v6570_v50, 7  ;;  %v15599_v28 = vld [vmem:[%s20510_s3 + $0xf0] sm:$0xff]   ;;  %v19462_v9 = vld [vmem:[#allocation2 + $0xa0] sm:$0xf] }
 0x5a4   :  { %20676 = vst [vmem:[#allocation61_spill] sm:$0xff] %v19105_v20  ;;  %11074 = vmatmul.mubr.bf16.gmra.mrb[88].mxu1 %v19080_v27  ;;  %v8025_v23 = vshll.u32 %v13364_v48, 16  ;;  %v13742_v57 = vpack.c.bf16 %v5879_v12, %v5879_v12  ;;  %v8023_v8 = vshrl.u32 %v13364_v48, 16  ;;  %v8032_v27 = vrot.slane %v8030_v38, 1  ;;  %v7221_v30 = vld [vmem:[#allocation2 + $0xa8] sm:$0xf] }
 0x5a5   :  { %v7068_v62 = vsel %vm18586_vm9, %v6567_v52, %v7067_v7  ;;  %v5880_v0 = vmax.f32 %v13974_v61, 0.0  ;;  %v6575_v60 = vor.u32 %v6573_v53, %v6572_v59  ;;  %v6577_v54 = vrot.slane %v6572_v59, 4  ;;  %11263 = vmatpush1.bf16.msra.mxu1 %v15599_v28  ;;  %v7074_v28 = vld [vmem:[#allocation2 + $0xc0] sm:$0xf]  ;;  %20704 = vst [vmem:[#allocation88_spill] sm:$0xff] %v19462_v9 }
 0x5a6   :  { %7069 = vst [vmem:[#allocation2 + $0xb4] sm:$0xf] %v7068_v62  ;;  %v8027_v50 = vrot.slane %v8025_v23, 1  ;;  %v6579_v25 = vshrl.u32 %v13742_v57, 16  ;;  %v7222_v45 = vld [vmem:[#allocation2 + $0xac] sm:$0xf]  ;;  %11264 = vmatprep.subr.bf16.mxu1 %v20660_v6 }
 0x5a7   :  { %v13743_v44 = vpack.c.bf16 %v5880_v0, %v5880_v0  ;;  %v6576_v7 = vsel %vm18598_vm10, %v6568_v37, %v6575_v60  ;;  %v7072_v40 = vsel %vm18181_vm4, %v6577_v54, %v7071_v3  ;;  %v5690_v52 = vpop.f32.mrb[64].mxu0  ;;  %v19118_v61 = vcombine.low %v7221_v30, %v7222_v45  ;;  %v15561_v53 = vld [vmem:[#allocation2 + $0xb0] ss:$0 sps:$4 sm:$0x11]   ;;  %v7345_v1 = vld [vmem:[#allocation2 + $0x9c] sm:$0xf] }
 0x5a8   :  { %v8028_v12 = vor.u32 %v8027_v50, %v8023_v8  ;;  %7070 = vst [vmem:[#allocation2 + $0xb8] sm:$0xf] %v6576_v7  ;;  %7073 = vst [vmem:[#allocation2 + $0xbc] sm:$0x1] %v7072_v40  ;;  %v6581_v59 = vrot.slane %v6579_v25, 7  ;;  %v6582_v23 = vshll.u32 %v13742_v57, 16  ;;  %v13976_v0 = vadd.f32 %v5690_v52, %v18537_v33 }
 0x5a9   :  { %v6587_v62 = vshrl.u32 %v13743_v44, 16  ;;  %v19122_v38 = vpop.f32.mrb[65].mxu0  ;;  %v15566_v37 = vld [vmem:[#allocation2 + $0xe0] ss:$0 sps:$4 sm:$0x11]   ;;  %v6590_v60 = vshll.u32 %v13743_v44, 16 }
 0x5aa   :  { %20677 = vst [vmem:[#allocation62_spill] sm:$0xff] %v19122_v38  ;;  %v8033_v3 = vsel %vm710_vm0, %v8028_v12, %v8032_v27  ;;  %v5694_v54 = vpop.f32.mrb[66].mxu0  ;;  %v8037_v30 = vshll.u32 %v19118_v61, 16  ;;  %v8061_v45 = vshll.u32 %v19099_v19, 16  ;;  %v6584_v8 = vor.u32 %v6582_v23, %v6581_v59  ;;  %v7078_v52 = vld [vmem:[#allocation2 + $0xc8] sm:$0x1] }
 0x5ab   :  { %v6589_v50 = vrot.slane %v6587_v62, 7  ;;  %v5881_v7 = vmax.f32 %v13976_v0, 0.0  ;;  %11081 = vmatprep.mubr.bf16.mxu1 %v8033_v3  ;;  %v19127_v57 = vpop.f32.mrb[67].mxu0  ;;  %v8035_v25 = vshrl.u32 %v19118_v61, 16  ;;  %v6585_v40 = vrot.slane %v6581_v59, 4 }
 0x5ac   :  { %20678 = vst [vmem:[#allocation63_spill] sm:$0xff] %v19127_v57  ;;  %v13978_v38 = vadd.f32 %v5694_v54, %v18537_v33  ;;  %11082 = vmatmul.mubr.bf16.gmra.mrb[92].mxu1 %v13364_v48  ;;  %v8039_v44 = vrot.slane %v8037_v30, 1  ;;  %v8042_v27 = vshll.u32 %v15561_v53, 16  ;;  %v7075_v12 = vsel %vm18586_vm9, %v6584_v8, %v7074_v28  ;;  %v15784_v24 = vld [vmem:[#allocation2 + $0x80] ss:$0 sps:$4 sm:$0x11]  }
 0x5ad   :  { %v6592_v32 = vor.u32 %v6590_v60, %v6589_v50  ;;  %v6594_v20 = vrot.slane %v6589_v50, 4  ;;  %v13744_v23 = vpack.c.bf16 %v5881_v7, %v5881_v7  ;;  %7076 = vst [vmem:[#allocation2 + $0xc0] sm:$0xf] %v7075_v12  ;;  %v8063_v57 = vrot.slane %v8061_v45, 1  ;;  %v7223_v30 = vld [vmem:[#allocation2 + $0xb4] sm:$0xf] }
 0x5ae   :  { %v5882_v62 = vmax.f32 %v13978_v38, 0.0  ;;  %v8040_v0 = vor.u32 %v8039_v44, %v8035_v25  ;;  %v8044_v3 = vrot.slane %v8042_v27, 1  ;;  %v8066_v53 = vshll.u32 %v15566_v37, 16  ;;  %v15960_v13 = vld [vmem:[#allocation2 + $0x94] sm:$0xf] }
 0x5af   :  { %v6593_v59 = vsel %vm18598_vm10, %v6585_v40, %v6592_v32  ;;  %v7079_v54 = vsel %vm18181_vm4, %v6594_v20, %v7078_v52  ;;  %v6596_v48 = vshrl.u32 %v13744_v23, 16  ;;  %v5700_v60 = vpop.f32.mrb[68].mxu0  ;;  %v7224_v50 = vld [vmem:[#allocation2 + $0xb8] sm:$0xf]  ;;  %v6599_v7 = vshll.u32 %v13744_v23, 16 }
 0x5b0   :  { %7077 = vst [vmem:[#allocation2 + $0xc4] sm:$0xf] %v6593_v59  ;;  %7080 = vst [vmem:[#allocation2 + $0xc8] sm:$0x1] %v7079_v54  ;;  %v13745_v28 = vpack.c.bf16 %v5882_v62, %v5882_v62  ;;  %v8045_v8 = vsel %vm710_vm0, %v8040_v0, %v8044_v3  ;;  %v13980_v45 = vadd.f32 %v5700_v60, %v18537_v33  ;;  %v19139_v25 = vpop.f32.mrb[69].mxu0  ;;  %v20680_v37 = vshrl.u32 %v19099_v19, 16 }
 0x5b1   :  { %v6598_v38 = vrot.slane %v6596_v48, 7  ;;  %20679 = vst [vmem:[#allocation64_spill] sm:$0xff] %v19139_v25  ;;  %11089 = vmatprep.mubr.bf16.mxu1 %v8045_v8  ;;  %v13366_v32 = vcombine.low %v7223_v30, %v7224_v50  ;;  %v15564_v40 = vld [vmem:[#allocation2 + $0xbc] ss:$0 sps:$4 sm:$0x11]   ;;  %v5704_v44 = vpop.f32.mrb[70].mxu0 }
 0x5b2   :  { %v7081_v20 = vld [vmem:[#allocation2 + $0xe4] sm:$0xf]  ;;  %v6604_v52 = vshrl.u32 %v13745_v28, 16  ;;  %v8064_v27 = vor.u32 %v8063_v57, %v20680_v37  ;;  %v5883_v62 = vmax.f32 %v13980_v45, 0.0  ;;  %v13982_v0 = vadd.f32 %v5704_v44, %v18537_v33  ;;  %v19144_v3 = vpop.f32.mrb[71].mxu0 }
 0x5b3   :  { %v6601_v12 = vor.u32 %v6599_v7, %v6598_v38  ;;  %20681 = vst [vmem:[#allocation65_spill] sm:$0xff] %v19144_v3  ;;  %v8068_v23 = vrot.slane %v8066_v53, 1  ;;  %v6602_v59 = vrot.slane %v6598_v38, 4  ;;  %v6607_v48 = vshll.u32 %v13745_v28, 16  ;;  %v7085_v8 = vld [vmem:[#allocation2 + $0xec] sm:$0x1] }
 0x5b4   :  { %v6606_v54 = vrot.slane %v6604_v52, 7  ;;  %11090 = vmatmul.mubr.bf16.gmra.mrb[96].mxu1 %v19118_v61  ;;  %v8049_v30 = vshll.u32 %v13366_v32, 16  ;;  %v13746_v50 = vpack.c.bf16 %v5883_v62, %v5883_v62  ;;  %v5884_v25 = vmax.f32 %v13982_v0, 0.0  ;;  %v15604_v7 = vld [vmem:[%s20510_s3 + $0xf8] sm:$0xff]  }
 0x5b5   :  { %v7082_v60 = vsel %vm18586_vm9, %v6601_v12, %v7081_v20  ;;  %v8054_v57 = vshll.u32 %v15564_v40, 16  ;;  %v8047_v38 = vshrl.u32 %v13366_v32, 16  ;;  %11265 = vmatpush1.bf16.msra.mxu1 %v15604_v7  ;;  %v15789_v42 = vld [vmem:[#allocation2 + $0x98] ss:$0 sps:$4 sm:$0x11]  }
 0x5b6   :  { %7083 = vst [vmem:[#allocation2 + $0xe4] sm:$0xf] %v7082_v60  ;;  %v6609_v45 = vor.u32 %v6607_v48, %v6606_v54  ;;  %v6611_v53 = vrot.slane %v6606_v54, 4  ;;  %v8051_v52 = vrot.slane %v8049_v30, 1  ;;  %v6613_v28 = vshrl.u32 %v13746_v50, 16  ;;  %11523 = vmatprep.subr.bf16.mxu1 %v20660_v6 }
 0x5b7   :  { %v13747_v44 = vpack.c.bf16 %v5884_v25, %v5884_v25  ;;  %v5710_v37 = vpop.f32.mrb[72].mxu0  ;;  %v8056_v12 = vrot.slane %v8054_v57, 1  ;;  %v6616_v0 = vshll.u32 %v13746_v50, 16  ;;  %v7088_v30 = vld [vmem:[#allocation2 + $0xf0] sm:$0xf] }
 0x5b8   :  { %v6610_v61 = vsel %vm18598_vm10, %v6602_v59, %v6609_v45  ;;  %v7086_v20 = vsel %vm18181_vm4, %v6611_v53, %v7085_v8  ;;  %v8052_v40 = vor.u32 %v8051_v52, %v8047_v38  ;;  %v6615_v62 = vrot.slane %v6613_v28, 7  ;;  %v19158_v25 = vpop.f32.mrb[73].mxu0  ;;  %v7092_v50 = vld [vmem:[#allocation2 + $0xf8] sm:$0x1] }
 0x5b9   :  { %7084 = vst [vmem:[#allocation2 + $0xe8] sm:$0xf] %v6610_v61  ;;  %7087 = vst [vmem:[#allocation2 + $0xec] sm:$0x1] %v7086_v20  ;;  %v6621_v54 = vshrl.u32 %v13747_v44, 16  ;;  %v13984_v48 = vadd.f32 %v5710_v37, %v18537_v33  ;;  %v5714_v60 = vpop.f32.mrb[74].mxu0  ;;  %v8069_v8 = vsel %vm710_vm0, %v8064_v27, %v8068_v23 }
 0x5ba   :  { %20682 = vst [vmem:[#allocation66_spill] sm:$0xff] %v19158_v25  ;;  %v8057_v59 = vsel %vm710_vm0, %v8052_v40, %v8056_v12  ;;  %v6618_v7 = vor.u32 %v6616_v0, %v6615_v62  ;;  %v6624_v57 = vshll.u32 %v13747_v44, 16  ;;  %v19162_v38 = vpop.f32.mrb[75].mxu0  ;;  %v6619_v52 = vrot.slane %v6615_v62, 4 }
 0x5bb   :  { %v6623_v45 = vrot.slane %v6621_v54, 7  ;;  %v5885_v53 = vmax.f32 %v13984_v48, 0.0  ;;  %11097 = vmatprep.mubr.bf16.mxu1 %v8057_v59  ;;  %20683 = vst [vmem:[#allocation67_spill] sm:$0xff] %v19162_v38  ;;  %v13986_v28 = vadd.f32 %v5714_v60, %v18537_v33 }
 0x5bc   :  { %11098 = vmatmul.mubr.bf16.gmra.mrb[100].mxu1 %v13366_v32  ;;  %v7089_v61 = vsel %vm18586_vm9, %v6618_v7, %v7088_v30 }
 0x5bd   :  { %v6626_v20 = vor.u32 %v6624_v57, %v6623_v45  ;;  %v6628_v37 = vrot.slane %v6623_v45, 4  ;;  %v13748_v40 = vpack.c.bf16 %v5885_v53, %v5885_v53  ;;  %11105 = vmatprep.mubr.bf16.mxu1 %v8069_v8  ;;  %7090 = vst [vmem:[#allocation2 + $0xf0] sm:$0xf] %v7089_v61  ;;  %v5886_v27 = vmax.f32 %v13986_v28, 0.0  ;;  %v7227_v62 = vld [vmem:[#allocation2 + $0xe4] sm:$0xf] }
 0x5be   :  { %v7095_v45 = vld [vmem:[#allocation2 + $0xfc] sm:$0xf] }
 0x5bf   :  { %v6627_v23 = vsel %vm18598_vm10, %v6619_v52, %v6626_v20  ;;  %v7093_v44 = vsel %vm18181_vm4, %v6628_v37, %v7092_v50  ;;  %v6630_v12 = vshrl.u32 %v13748_v40, 16  ;;  %v13749_v32 = vpack.c.bf16 %v5886_v27, %v5886_v27  ;;  %v5720_v0 = vpop.f32.mrb[76].mxu0 }
 0x5c0   :  { %7091 = vst [vmem:[#allocation2 + $0xf4] sm:$0xf] %v6627_v23  ;;  %7094 = vst [vmem:[#allocation2 + $0xf8] sm:$0x1] %v7093_v44  ;;  %v19171_v54 = vld [vmem:[#allocation2 + $0xe8] sm:$0xf]  ;;  %v13988_v59 = vadd.f32 %v5720_v0, %v18537_v33 }
 0x5c1   :  { %v6632_v48 = vrot.slane %v6630_v12, 7  ;;  %v6633_v30 = vshll.u32 %v13748_v40, 16  ;;  %v19174_v60 = vpop.f32.mrb[77].mxu0  ;;  %v13368_v8 = vcombine.low %v7227_v62, %v19171_v54  ;;  %v19177_v7 = vld [vmem:[#allocation2 + $0xec] ss:$0 sps:$4 sm:$0x11]  }
 0x5c2   :  { %20684 = vst [vmem:[#allocation68_spill] sm:$0xff] %v19174_v60  ;;  %v6638_v57 = vshrl.u32 %v13749_v32, 16  ;;  %v5724_v53 = vpop.f32.mrb[78].mxu0  ;;  %v5887_v50 = vmax.f32 %v13988_v59, 0.0  ;;  %v6641_v40 = vshll.u32 %v13749_v32, 16  ;;  %v8078_v0 = vshll.u32 %v19177_v7, 16 }
 0x5c3   :  { %v6635_v52 = vor.u32 %v6633_v30, %v6632_v48  ;;  %v13990_v28 = vadd.f32 %v5724_v53, %v18537_v33  ;;  %v19180_v61 = vpop.f32.mrb[79].mxu0  ;;  %v6636_v20 = vrot.slane %v6632_v48, 4  ;;  %v8073_v27 = vshll.u32 %v13368_v8, 16  ;;  %v7099_v44 = vld [vmem:[#allocation2 + $0x104] sm:$0x1] }
 0x5c4   :  { %20685 = vst [vmem:[#allocation69_spill] sm:$0xff] %v19180_v61  ;;  %v6640_v37 = vrot.slane %v6638_v57, 7  ;;  %11106 = vmatmul.mubr.bf16.gmra.mrb[104].mxu1 %v19099_v19  ;;  %v13750_v12 = vpack.c.bf16 %v5887_v50, %v5887_v50  ;;  %v8071_v53 = vshrl.u32 %v13368_v8, 16  ;;  %v8080_v57 = vrot.slane %v8078_v0, 1  ;;  %v7229_v32 = vld [vmem:[#allocation2 + $0xf0] sm:$0xf] }
 0x5c5   :  { %v7096_v23 = vsel %vm18586_vm9, %v6635_v52, %v7095_v45  ;;  %v5888_v62 = vmax.f32 %v13990_v28, 0.0  ;;  %v8075_v38 = vrot.slane %v8073_v27, 1  ;;  %v7102_v60 = vld [vmem:[#allocation2 + $0x108] sm:$0xf] }
 0x5c6   :  { %7097 = vst [vmem:[#allocation2 + $0xfc] sm:$0xf] %v7096_v23  ;;  %v6643_v30 = vor.u32 %v6641_v40, %v6640_v37  ;;  %v6645_v59 = vrot.slane %v6640_v37, 4  ;;  %v6647_v61 = vshrl.u32 %v13750_v12, 16  ;;  %v6650_v27 = vshll.u32 %v13750_v12, 16 }
 0x5c7   :  { %v13751_v48 = vpack.c.bf16 %v5888_v62, %v5888_v62  ;;  %v19186_v25 = vld [vmem:[#allocation2 + $0xf4] sm:$0xf]  ;;  %v5730_v52 = vpop.f32.mrb[80].mxu0  ;;  %v8076_v50 = vor.u32 %v8075_v38, %v8071_v53  ;;  %v19193_v40 = vld [vmem:[#allocation2 + $0xf8] ss:$0 sps:$4 sm:$0x11]  }
 0x5c8   :  { %v6644_v19 = vsel %vm18598_vm10, %v6636_v20, %v6643_v30  ;;  %v7100_v45 = vsel %vm18181_vm4, %v6645_v59, %v7099_v44  ;;  %v13369_v28 = vcombine.low %v7229_v32, %v19186_v25  ;;  %v6649_v37 = vrot.slane %v6647_v61, 7  ;;  %v19196_v0 = vpop.f32.mrb[81].mxu0  ;;  %v7106_v12 = vld [vmem:[#allocation2 + $0x110] sm:$0x1] }
 0x5c9   :  { %7098 = vst [vmem:[#allocation2 + $0x100] sm:$0xf] %v6644_v19  ;;  %7101 = vst [vmem:[#allocation2 + $0x104] sm:$0x1] %v7100_v45  ;;  %v6655_v23 = vshrl.u32 %v13751_v48, 16  ;;  %v13992_v62 = vadd.f32 %v5730_v52, %v18537_v33  ;;  %v6658_v20 = vshll.u32 %v13751_v48, 16  ;;  %v8081_v30 = vsel %vm710_vm0, %v8076_v50, %v8080_v57 }
 0x5ca   :  { %20686 = vst [vmem:[#allocation70_spill] sm:$0xff] %v19196_v0  ;;  %v5734_v44 = vpop.f32.mrb[82].mxu0  ;;  %v8085_v59 = vshll.u32 %v13369_v28, 16  ;;  %v6652_v38 = vor.u32 %v6650_v27, %v6649_v37  ;;  %11113 = vmatprep.mubr.bf16.mxu1 %v8081_v30  ;;  %v8083_v19 = vshrl.u32 %v13369_v28, 16  ;;  %v6653_v61 = vrot.slane %v6649_v37, 4 }
 0x5cb   :  { %v6657_v53 = vrot.slane %v6655_v23, 7  ;;  %v5889_v32 = vmax.f32 %v13992_v62, 0.0  ;;  %v19199_v3 = vpop.f32.mrb[83].mxu0  ;;  %v13994_v45 = vadd.f32 %v5734_v44, %v18537_v33  ;;  %v8090_v0 = vshll.u32 %v19193_v40, 16 }
 0x5cc   :  { %20687 = vst [vmem:[#allocation71_spill] sm:$0xff] %v19199_v3  ;;  %11114 = vmatmul.mubr.bf16.gmra.mrb[108].mxu1 %v13368_v8  ;;  %v8087_v52 = vrot.slane %v8085_v59, 1  ;;  %v7103_v48 = vsel %vm18586_vm9, %v6652_v38, %v7102_v60 }
 0x5cd   :  { %v6660_v57 = vor.u32 %v6658_v20, %v6657_v53  ;;  %v6662_v50 = vrot.slane %v6657_v53, 4  ;;  %v13752_v27 = vpack.c.bf16 %v5889_v32, %v5889_v32  ;;  %7104 = vst [vmem:[#allocation2 + $0x108] sm:$0xf] %v7103_v48  ;;  %v5890_v23 = vmax.f32 %v13994_v45, 0.0  ;;  %v7231_v59 = vld [vmem:[#allocation2 + $0xfc] sm:$0xf] }
 0x5ce   :  { %v8088_v62 = vor.u32 %v8087_v52, %v8083_v19  ;;  %v8092_v30 = vrot.slane %v8090_v0, 1 }
 0x5cf   :  { %v6661_v37 = vsel %vm18598_vm10, %v6653_v61, %v6660_v57  ;;  %v7107_v44 = vsel %vm18181_vm4, %v6662_v50, %v7106_v12  ;;  %v6664_v8 = vshrl.u32 %v13752_v27, 16  ;;  %v13753_v3 = vpack.c.bf16 %v5890_v23, %v5890_v23  ;;  %v5740_v49 = vpop.f32.mrb[84].mxu0  ;;  %v7109_v12 = vld [vmem:[#allocation2 + $0x114] sm:$0xf] }
 0x5d0   :  { %7105 = vst [vmem:[#allocation2 + $0x10c] sm:$0xf] %v6661_v37  ;;  %7108 = vst [vmem:[#allocation2 + $0x110] sm:$0x1] %v7107_v44  ;;  %v8093_v60 = vsel %vm710_vm0, %v8088_v62, %v8092_v30  ;;  %v19210_v20 = vld [vmem:[#allocation2 + $0x100] sm:$0xf]  ;;  %v13996_v0 = vadd.f32 %v5740_v49, %v18537_v33 }
 0x5d1   :  { %v6666_v38 = vrot.slane %v6664_v8, 7  ;;  %v6667_v53 = vshll.u32 %v13752_v27, 16  ;;  %v19213_v32 = vpop.f32.mrb[85].mxu0  ;;  %11121 = vmatprep.mubr.bf16.mxu1 %v8093_v60  ;;  %v13370_v19 = vcombine.low %v7231_v59, %v19210_v20  ;;  %v19216_v61 = vld [vmem:[#allocation2 + $0x104] ss:$0 sps:$4 sm:$0x11]  }
 0x5d2   :  { %20688 = vst [vmem:[#allocation72_spill] sm:$0xff] %v19213_v32  ;;  %v6672_v45 = vshrl.u32 %v13753_v3, 16  ;;  %v5744_v52 = vpop.f32.mrb[86].mxu0  ;;  %v5891_v57 = vmax.f32 %v13996_v0, 0.0  ;;  %v6675_v30 = vshll.u32 %v13753_v3, 16  ;;  %v8102_v60 = vshll.u32 %v19216_v61, 16 }
 0x5d3   :  { %v6669_v48 = vor.u32 %v6667_v53, %v6666_v38  ;;  %v13998_v50 = vadd.f32 %v5744_v52, %v18537_v33  ;;  %v19219_v23 = vpop.f32.mrb[87].mxu0  ;;  %v6670_v62 = vrot.slane %v6666_v38, 4  ;;  %v8097_v49 = vshll.u32 %v13370_v19, 16  ;;  %v7113_v44 = vld [vmem:[#allocation2 + $0x11c] sm:$0x1] }
 0x5d4   :  { %20689 = vst [vmem:[#allocation73_spill] sm:$0xff] %v19219_v23  ;;  %v6674_v27 = vrot.slane %v6672_v45, 7  ;;  %11122 = vmatmul.mubr.bf16.gmra.mrb[112].mxu1 %v13369_v28  ;;  %v13754_v8 = vpack.c.bf16 %v5891_v57, %v5891_v57  ;;  %v8095_v32 = vshrl.u32 %v13370_v19, 16  ;;  %v8104_v38 = vrot.slane %v8102_v60, 1  ;;  %v7233_v45 = vld [vmem:[#allocation2 + $0x108] sm:$0xf] }
 0x5d5   :  { %v7110_v37 = vsel %vm18586_vm9, %v6669_v48, %v7109_v12  ;;  %v5892_v59 = vmax.f32 %v13998_v50, 0.0  ;;  %v8099_v33 = vrot.slane %v8097_v49, 1 }
 0x5d6   :  { %7111 = vst [vmem:[#allocation2 + $0x114] sm:$0xf] %v7110_v37  ;;  %v6677_v53 = vor.u32 %v6675_v30, %v6674_v27  ;;  %v6679_v0 = vrot.slane %v6674_v27, 4  ;;  %v6681_v52 = vshrl.u32 %v13754_v8, 16  ;;  %v6684_v30 = vshll.u32 %v13754_v8, 16 }
 0x5d7   :  { %v13755_v23 = vpack.c.bf16 %v5892_v59, %v5892_v59  ;;  %v19224_v3 = vld [vmem:[#allocation2 + $0x10c] sm:$0xf]  ;;  %v8100_v48 = vor.u32 %v8099_v33, %v8095_v32  ;;  %v19231_v50 = vld [vmem:[#allocation2 + $0x110] ss:$0 sps:$4 sm:$0x11]  }
 0x5d8   :  { %v6678_v28 = vsel %vm18598_vm10, %v6670_v62, %v6677_v53  ;;  %v7114_v12 = vsel %vm18181_vm4, %v6679_v0, %v7113_v44  ;;  %v13371_v57 = vcombine.low %v7233_v45, %v19224_v3  ;;  %v6683_v27 = vrot.slane %v6681_v52, 7  ;;  %v7116_v37 = vld [vmem:[#allocation2 + $0x120] sm:$0xf]  ;;  %v7120_v32 = vld [vmem:[#allocation2 + $0x128] sm:$0x1] }
 0x5d9   :  { %7112 = vst [vmem:[#allocation2 + $0x118] sm:$0xf] %v6678_v28  ;;  %7115 = vst [vmem:[#allocation2 + $0x11c] sm:$0x1] %v7114_v12  ;;  %v6689_v49 = vshrl.u32 %v13755_v23, 16  ;;  %v8105_v59 = vsel %vm710_vm0, %v8100_v48, %v8104_v38  ;;  %v8114_v17 = vshll.u32 %v19231_v50, 16 }
 0x5da   :  { %v8109_v60 = vshll.u32 %v13371_v57, 16  ;;  %v6686_v62 = vor.u32 %v6684_v30, %v6683_v27  ;;  %v6692_v39 = vshll.u32 %v13755_v23, 16  ;;  %11129 = vmatprep.mubr.bf16.mxu1 %v8105_v59  ;;  %v8107_v44 = vshrl.u32 %v13371_v57, 16  ;;  %v7240_v48 = vld [vmem:[#allocation2 + $0x130] sm:$0xf] }
 0x5db   :  { %v6691_v53 = vrot.slane %v6689_v49, 7  ;;  %v6687_v33 = vrot.slane %v6683_v27, 4  ;;  %v8116_v38 = vrot.slane %v8114_v17, 1  ;;  %v7239_v17 = vld [vmem:[#allocation2 + $0x12c] sm:$0xf] }
 0x5dc   :  { %11130 = vmatmul.mubr.bf16.gmra.mrb[116].mxu1 %v13370_v19  ;;  %v8111_v0 = vrot.slane %v8109_v60, 1  ;;  %v7117_v52 = vsel %vm18586_vm9, %v6686_v62, %v7116_v37  ;;  %v19247_v49 = vcombine.low %v7239_v17, %v7240_v48 }
 0x5dd   :  { %v6694_v8 = vor.u32 %v6692_v39, %v6691_v53  ;;  %v6696_v45 = vrot.slane %v6691_v53, 4  ;;  %7118 = vst [vmem:[#allocation2 + $0x120] sm:$0xf] %v7117_v52  ;;  %v7235_v27 = vld [vmem:[#allocation2 + $0x114] sm:$0xf] }
 0x5de   :  { %v8112_v28 = vor.u32 %v8111_v0, %v8107_v44  ;;  %v8145_v62 = vshll.u32 %v19247_v49, 16  ;;  %v7242_v52 = vld [vmem:[#allocation2 + $0x13c] sm:$0xf] }
 0x5df   :  { %v6695_v12 = vsel %vm18598_vm10, %v6687_v33, %v6694_v8  ;;  %v7121_v23 = vsel %vm18181_vm4, %v6696_v45, %v7120_v32  ;;  %v15583_v45 = vld [vmem:[#allocation2 + $0x134] ss:$0 sps:$4 sm:$0x11]  }
 0x5e0   :  { %7119 = vst [vmem:[#allocation2 + $0x124] sm:$0xf] %v6695_v12  ;;  %7122 = vst [vmem:[#allocation2 + $0x128] sm:$0x1] %v7121_v23  ;;  %v8117_v19 = vsel %vm710_vm0, %v8112_v28, %v8116_v38  ;;  %v19242_v30 = vld [vmem:[#allocation2 + $0x118] sm:$0xf] }
 0x5e1   :  { %11137 = vmatprep.mubr.bf16.mxu1 %v8117_v19  ;;  %v13372_v4 = vcombine.low %v7235_v27, %v19242_v30  ;;  %v19245_v39 = vld [vmem:[#allocation2 + $0x11c] ss:$0 sps:$4 sm:$0x11]   ;;  %v7241_v12 = vld [vmem:[#allocation2 + $0x138] sm:$0xf]  ;;  %v8147_v23 = vrot.slane %v8145_v62, 1 }
 0x5e2   :  { %v8126_v58 = vshll.u32 %v19245_v39, 16  ;;  %v8143_v27 = vshrl.u32 %v19247_v49, 16 }
 0x5e3   :  { %v8121_v18 = vshll.u32 %v13372_v4, 16  ;;  %v8119_v37 = vshrl.u32 %v13372_v4, 16 }
 0x5e4   :  { %11138 = vmatmul.mubr.bf16.gmra.mrb[120].mxu1 %v13371_v57  ;;  %v8128_v60 = vrot.slane %v8126_v58, 1  ;;  %v7237_v32 = vld [vmem:[#allocation2 + $0x120] sm:$0xf]  ;;  %v19252_v57 = vcombine.low %v7241_v12, %v7242_v52  ;;  %v8150_v58 = vshll.u32 %v15583_v45, 16  ;;  %v7306_v45 = vld [vmem:[#allocation2 + $0xe4] sm:$0xe] }
 0x5e5   :  { %v8123_v59 = vrot.slane %v8121_v18, 1 }
 0x5e7   :  { %v8124_v53 = vor.u32 %v8123_v59, %v8119_v37  ;;  %v7238_v44 = vld [vmem:[#allocation2 + $0x124] sm:$0xf]  ;;  %v15581_v33 = vld [vmem:[#allocation2 + $0x128] ss:$0 sps:$4 sm:$0x11]   ;;  %v8157_v37 = vshll.u32 %v19252_v57, 16 }
 0x5e8   :  { %v13373_v0 = vcombine.low %v7237_v32, %v7238_v44  ;;  %v8138_v38 = vshll.u32 %v15581_v33, 16  ;;  %v7244_v32 = vld [vmem:[#allocation2 + $0x148] sm:$0xf]  ;;  %v8152_v44 = vrot.slane %v8150_v58, 1  ;;  %v7243_v33 = vld [vmem:[#allocation2 + $0x144] sm:$0xf] }
 0x5e9   :  { %v8129_v8 = vsel %vm710_vm0, %v8124_v53, %v8128_v60  ;;  %v8148_v60 = vor.u32 %v8147_v23, %v8143_v27  ;;  %v15586_v53 = vld [vmem:[#allocation2 + $0x140] ss:$0 sps:$4 sm:$0x11]   ;;  %v8159_v62 = vrot.slane %v8157_v37, 1  ;;  %v13376_v52 = vcombine.low %v7243_v33, %v7244_v32  ;;  %v7308_v58 = vld [vmem:[#allocation2 + $0xfc] sm:$0xe] }
 0x5ea   :  { %11145 = vmatprep.mubr.bf16.mxu1 %v8129_v8  ;;  %v8133_v28 = vshll.u32 %v13373_v0, 16  ;;  %v8131_v48 = vshrl.u32 %v13373_v0, 16  ;;  %v8140_v18 = vrot.slane %v8138_v38, 1  ;;  %v8155_v8 = vshrl.u32 %v19252_v57, 16 }
 0x5eb   :  { %v13432_v38 = vcombine.low %v7306_v45, %v19171_v54  ;;  %v8430_v23 = vrot.slane %v19177_v7, 1  ;;  %v8169_v27 = vshll.u32 %v13376_v52, 16  ;;  %v8436_v7 = vrot.slane %v19216_v61, 1 }
 0x5ec   :  { %11146 = vmatmul.mubr.bf16.gmra.mrb[124].mxu1 %v13372_v4  ;;  %v8135_v19 = vrot.slane %v8133_v28, 1  ;;  %v8153_v4 = vsel %vm710_vm0, %v8148_v60, %v8152_v44  ;;  %v8162_v28 = vshll.u32 %v15586_v53, 16  ;;  %v8160_v12 = vor.u32 %v8159_v62, %v8155_v8  ;;  %v7245_v53 = vld [vmem:[#allocation2 + $0x150] sm:$0xf]  ;;  %v7309_v44 = vld [vmem:[#allocation2 + $0x108] sm:$0xe] }
 0x5ed   :  { %v13434_v60 = vcombine.low %v7308_v58, %v19210_v20  ;;  %v8439_v20 = vrot.slane %v19231_v50, 1  ;;  %v19288_v58 = vld [vmem:[#allocation2 + $0x158] ss:$0 sps:$4 sm:$0x11]  }
 0x5ee   :  { %v8136_v17 = vor.u32 %v8135_v19, %v8131_v48  ;;  %v7307_v48 = vld [vmem:[#allocation2 + $0xf0] sm:$0xe]  ;;  %v15588_v19 = vld [vmem:[#allocation2 + $0x14c] ss:$0 sps:$4 sm:$0x11]   ;;  %v8164_v37 = vrot.slane %v8162_v28, 1 }
 0x5ef   :  { %v8435_v33 = vrot.slane %v13434_v60, 1  ;;  %v7310_v28 = vld [vmem:[#allocation2 + $0x114] sm:$0xe]  ;;  %v8186_v60 = vshll.u32 %v19288_v58, 16 }
 0x5f0   :  { %v8141_v59 = vsel %vm710_vm0, %v8136_v17, %v8140_v18  ;;  %v8429_v17 = vrot.slane %v13432_v38, 1  ;;  %v13433_v18 = vcombine.low %v7307_v48, %v19186_v25  ;;  %v8165_v62 = vsel %vm710_vm0, %v8160_v12, %v8164_v37  ;;  %v7247_v37 = vld [vmem:[#allocation2 + $0x15c] sm:$0xf] }
 0x5f1   :  { %11153 = vmatprep.mubr.bf16.mxu1 %v8141_v59  ;;  %v7246_v59 = vld [vmem:[#allocation2 + $0x154] sm:$0xf]  ;;  %v13435_v25 = vcombine.low %v7309_v44, %v19224_v3  ;;  %v19276_v45 = vsel %vm1223_vm1, %v8435_v33, %v8436_v7  ;;  %v13436_v38 = vcombine.low %v7310_v28, %v19242_v30  ;;  %v8167_v12 = vshrl.u32 %v13376_v52, 16  ;;  %v19294_v7 = vld [vmem:[#allocation2 + $0x16c] sm:$0xf] }
 0x5f2   :  { %v19265_v32 = vsel %vm1223_vm1, %v8429_v17, %v8430_v23  ;;  %v8432_v54 = vrot.slane %v13433_v18, 1  ;;  %v8174_v23 = vshll.u32 %v15588_v19, 16  ;;  %v8442_v3 = vrot.slane %v19245_v39, 1  ;;  %v19283_v18 = vld [vmem:[#allocation2 + $0x160] sm:$0xf] }
 0x5f3   :  { %v8438_v61 = vrot.slane %v13435_v25, 1  ;;  %v8441_v48 = vrot.slane %v13436_v38, 1  ;;  %v13378_v19 = vcombine.low %v7247_v37, %v19283_v18  ;;  %v8188_v44 = vrot.slane %v8186_v60, 1  ;;  %v7249_v33 = vld [vmem:[#allocation2 + $0x168] sm:$0xf] }
 0x5f4   :  { %11154 = vmatmul.mubr.bf16.gmra.mrb[128].mxu1 %v13373_v0  ;;  %v8433_v0 = vrot.slane %v19193_v40, 1  ;;  %v8171_v40 = vrot.slane %v8169_v27, 1 }
 0x5f5   :  { %11161 = vmatprep.mubr.bf16.mxu1 %v8153_v4  ;;  %v13377_v4 = vcombine.low %v7245_v53, %v7246_v59  ;;  %v19286_v50 = vsel %vm1223_vm1, %v8441_v48, %v8442_v3  ;;  %v19303_v3 = vld [vmem:[#allocation2 + $0x170] ss:$0 sps:$4 sm:$0x11]   ;;  %v7251_v48 = vld [vmem:[#allocation2 + $0x174] sm:$0xf] }
 0x5f6   :  { %v19272_v8 = vsel %vm1223_vm1, %v8432_v54, %v8433_v0  ;;  %v8172_v27 = vor.u32 %v8171_v40, %v8167_v12  ;;  %v8176_v0 = vrot.slane %v8174_v23, 1  ;;  %v8193_v54 = vshll.u32 %v13378_v19, 16  ;;  %v19301_v12 = vld [vmem:[#allocation2 + $0x178] sm:$0xf] }
 0x5f7   :  { %v8181_v17 = vshll.u32 %v13377_v4, 16  ;;  %v8179_v59 = vshrl.u32 %v13377_v4, 16  ;;  %v13379_v40 = vcombine.low %v7249_v33, %v19294_v7  ;;  %v8210_v37 = vshll.u32 %v19303_v3, 16 }
 0x5f8   :  { %v8177_v30 = vsel %vm710_vm0, %v8172_v27, %v8176_v0  ;;  %v8195_v25 = vrot.slane %v8193_v54, 1  ;;  %v7253_v54 = vld [vmem:[#allocation2 + $0x180] sm:$0xf] }
 0x5f9   :  { %v8183_v39 = vrot.slane %v8181_v17, 1  ;;  %v8205_v38 = vshll.u32 %v13379_v40, 16  ;;  %v13380_v17 = vcombine.low %v7251_v48, %v19301_v12  ;;  %v8203_v0 = vshrl.u32 %v13379_v40, 16  ;;  %v7255_v48 = vld [vmem:[#allocation2 + $0x18c] sm:$0xf] }
 0x5fa   :  { %v8212_v60 = vrot.slane %v8210_v37, 1 }
 0x5fb   :  { %v8184_v53 = vor.u32 %v8183_v39, %v8179_v59  ;;  %v8207_v27 = vrot.slane %v8205_v38, 1  ;;  %v8217_v39 = vshll.u32 %v13380_v17, 16  ;;  %v19308_v59 = vld [vmem:[#allocation2 + $0x184] sm:$0xf] }
 0x5fc   :  { %11162 = vmatmul.mubr.bf16.gmra.mrb[132].mxu1 %v19247_v49  ;;  %v19281_v49 = vsel %vm1223_vm1, %v8438_v61, %v8439_v20  ;;  %v8191_v20 = vshrl.u32 %v13378_v19, 16  ;;  %v13381_v33 = vcombine.low %v7253_v54, %v19308_v59  ;;  %v19322_v54 = vld [vmem:[#allocation2 + $0x194] ss:$0 sps:$4 sm:$0x11]  }
 0x5fd   :  { %11169 = vmatprep.mubr.bf16.mxu1 %v8165_v62  ;;  %v19296_v62 = vld [vmem:[#allocation2 + $0x164] ss:$0 sps:$4 sm:$0x11]  }
 0x5fe   :  { %v8198_v28 = vshll.u32 %v19296_v62, 16  ;;  %v8196_v61 = vor.u32 %v8195_v25, %v8191_v20 }
 0x600   :  { %v8200_v23 = vrot.slane %v8198_v28, 1  ;;  %v8229_v28 = vshll.u32 %v13381_v33, 16 }
 0x604   :  { %11170 = vmatmul.mubr.bf16.gmra.mrb[136].mxu1 %v19252_v57  ;;  %v8189_v57 = vsel %vm710_vm0, %v8184_v53, %v8188_v44  ;;  %v19310_v53 = vld [vmem:[#allocation2 + $0x17c] ss:$0 sps:$4 sm:$0x11]   ;;  %v8219_v44 = vrot.slane %v8217_v39, 1 }
 0x605   :  { %11177 = vmatprep.mubr.bf16.mxu1 %v8177_v30  ;;  %v8208_v30 = vor.u32 %v8207_v27, %v8203_v0  ;;  %v8222_v25 = vshll.u32 %v19310_v53, 16  ;;  %v8227_v0 = vshrl.u32 %v13381_v33, 16 }
 0x607   :  { %v8224_v38 = vrot.slane %v8222_v25, 1 }
 0x60c   :  { %11178 = vmatmul.mubr.bf16.gmra.mrb[140].mxu1 %v13376_v52  ;;  %v8201_v52 = vsel %vm710_vm0, %v8196_v61, %v8200_v23  ;;  %v19315_v61 = vld [vmem:[#allocation2 + $0x190] sm:$0xf]  ;;  %v19317_v23 = vld [vmem:[#allocation2 + $0x188] ss:$0 sps:$4 sm:$0x11]  }
 0x60d   :  { %11185 = vmatprep.mubr.bf16.mxu1 %v8189_v57  ;;  %v8215_v57 = vshrl.u32 %v13380_v17, 16  ;;  %v13382_v27 = vcombine.low %v7255_v48, %v19315_v61  ;;  %v8234_v37 = vshll.u32 %v19317_v23, 16  ;;  %v19327_v48 = vld [vmem:[#allocation2 + $0x10] sm:$0xf] }
 0x60f   :  { %v8220_v20 = vor.u32 %v8219_v44, %v8215_v57  ;;  %v8241_v39 = vshll.u32 %v13382_v27, 16  ;;  %v8246_v57 = vshll.u32 %v19322_v54, 16 }
 0x611   :  { %v8243_v44 = vrot.slane %v8241_v39, 1 }
 0x614   :  { %11186 = vmatmul.mubr.bf16.gmra.mrb[144].mxu1 %v13377_v4  ;;  %v8213_v4 = vsel %vm710_vm0, %v8208_v30, %v8212_v60  ;;  %v8236_v60 = vrot.slane %v8234_v37, 1 }
 0x615   :  { %11193 = vmatprep.mubr.bf16.mxu1 %v8201_v52  ;;  %v8231_v52 = vrot.slane %v8229_v28, 1 }
 0x617   :  { %v8232_v30 = vor.u32 %v8231_v52, %v8227_v0  ;;  %v7321_v0 = vld [vmem:[#allocation2 + $0xc] sm:$0xf] }
 0x61c   :  { %11194 = vmatmul.mubr.bf16.gmra.mrb[148].mxu1 %v13378_v19  ;;  %v8225_v19 = vsel %vm710_vm0, %v8220_v20, %v8224_v38  ;;  %v8248_v20 = vrot.slane %v8246_v57, 1  ;;  %v7289_v38 = vld [vmem:[#allocation2] sm:$0xe] }
 0x61d   :  { %11201 = vmatprep.mubr.bf16.mxu1 %v8213_v4  ;;  %v8237_v4 = vsel %vm710_vm0, %v8232_v30, %v8236_v60  ;;  %v15937_v30 = vld [vmem:[#allocation2 + $0x8] ss:$0 sps:$4 sm:$0x11]   ;;  %v19333_v60 = vld [vmem:[#allocation2 + $0x1c] sm:$0xf] }
 0x61e   :  { %v8379_v39 = vrot.slane %v15937_v30, 1  ;;  %v7291_v30 = vld [vmem:[#allocation2 + $0x18] sm:$0xe] }
 0x624   :  { %11202 = vmatmul.mubr.bf16.gmra.mrb[152].mxu1 %v13379_v40  ;;  %v8239_v40 = vshrl.u32 %v13382_v27, 16 }
 0x625   :  { %11209 = vmatprep.mubr.bf16.mxu1 %v8225_v19  ;;  %v15936_v19 = vld [vmem:[#allocation2 + $0x4] sm:$0xf] }
 0x626   :  { %v8244_v25 = vor.u32 %v8243_v44, %v8239_v40  ;;  %v13415_v52 = vcombine.low %v7289_v38, %v15936_v19  ;;  %v7323_v44 = vld [vmem:[#allocation2 + $0x18] sm:$0xf]  ;;  %v7290_v40 = vld [vmem:[#allocation2 + $0xc] sm:$0xe] }
 0x627   :  { %v19340_v57 = vcombine.low %v7323_v44, %v19333_v60  ;;  %v15939_v38 = vld [vmem:[#allocation2 + $0x14] ss:$0 sps:$4 sm:$0x11]  }
 0x628   :  { %v8249_v28 = vsel %vm710_vm0, %v8244_v25, %v8248_v20  ;;  %v8378_v37 = vrot.slane %v13415_v52, 1  ;;  %v15938_v25 = vld [vmem:[#allocation2 + $0x10] sm:$0xf]  ;;  %v15617_v20 = vld [vmem:[%s20510_s3 + $0x108] sm:$0xff]   ;;  %v8382_v19 = vrot.slane %v15939_v38, 1 }
 0x629   :  { %v19347_v52 = vld [vmem:[#allocation2 + $0x28] sm:$0xf]  ;;  %v19362_v38 = vld [vmem:[#allocation2 + $0x34] sm:$0xf] }
 0x62c   :  { %11210 = vmatmul.mubr.bf16.gmra.mrb[156].mxu1 %v13380_v17  ;;  %v19330_v17 = vcombine.low %v7321_v0, %v19327_v48  ;;  %v15624_v0 = vld [vmem:[%s20510_s3 + $0x110] sm:$0xff]  }
 0x62d   :  { %11217 = vmatprep.mubr.bf16.mxu1 %v8237_v4  ;;  %v15610_v4 = vld [vmem:[%s20510_s3 + $0x100] sm:$0xff]  }
 0x634   :  { %11218 = vmatmul.mubr.bf16.gmra.mrb[160].mxu1 %v13381_v33  ;;  %v8380_v33 = vsel %vm1223_vm1, %v8378_v37, %v8379_v39  ;;  %v7325_v37 = vld [vmem:[#allocation2 + $0x24] sm:$0xf] }
 0x635   :  { %11225 = vmatprep.mubr.bf16.mxu1 %v8249_v28 }
 0x63c   :  { %11226 = vmatmul.mubr.bf16.gmra.mrb[164].mxu1 %v13382_v27  ;;  %v13416_v27 = vcombine.low %v7290_v40, %v15938_v25  ;;  %v15631_v40 = vld [vmem:[%s20510_s3 + $0x118] sm:$0xff]  }
 0x63d   :  { %11266 = vmatprep.mubr.bf16.mxu1 %v19330_v17 }
 0x63e   :  { %v8381_v28 = vrot.slane %v13416_v27, 1  ;;  %v15941_v27 = vld [vmem:[#allocation2 + $0x20] ss:$0 sps:$4 sm:$0x11]  }
 0x640   :  { %v8383_v39 = vsel %vm1223_vm1, %v8381_v28, %v8382_v19  ;;  %v15638_v28 = vld [vmem:[%s20510_s3 + $0x120] sm:$0xff]   ;;  %v7327_v19 = vld [vmem:[#allocation2 + $0x30] sm:$0xf] }
 0x644   :  { %11267 = vmatmul.mubr.bf16.vlgmr.msra.gmra.mrb[40].mxu1 %v8380_v33  ;;  %v19355_v33 = vcombine.low %v7325_v37, %v19347_v52  ;;  %v7292_v37 = vld [vmem:[#allocation2 + $0x24] sm:$0xe] }
 0x645   :  { %11274 = vmatprep.mubr.bf16.mxu1 %v19340_v57  ;;  %11524 = vmatpush1.bf16.msra.mxu1 %v15610_v4  ;;  %v15940_v4 = vld [vmem:[#allocation2 + $0x1c] sm:$0xf] }
 0x646   :  { %11525 = vmatprep.subr.bf16.mxu1 %v20660_v6  ;;  %v13417_v44 = vcombine.low %v7291_v30, %v15940_v4  ;;  %v19370_v30 = vcombine.low %v7327_v19, %v19362_v38  ;;  %v7293_v19 = vld [vmem:[#allocation2 + $0x30] sm:$0xe] }
 0x648   :  { %v8384_v25 = vrot.slane %v13417_v44, 1  ;;  %v15645_v44 = vld [vmem:[%s20510_s3 + $0x128] sm:$0xff]  }
 0x649   :  { %11526 = vmatpush1.bf16.msra.mxu1 %v15617_v20  ;;  %v8385_v20 = vrot.slane %v15941_v27, 1  ;;  %v15943_v27 = vld [vmem:[#allocation2 + $0x2c] ss:$0 sps:$4 sm:$0x11]  }
 0x64a   :  { %11527 = vmatprep.subr.bf16.mxu1 %v20660_v6  ;;  %v8388_v14 = vrot.slane %v15943_v27, 1  ;;  %v15945_v27 = vld [vmem:[#allocation2 + $0x38] ss:$0 sps:$4 sm:$0x11]  }
 0x64b   :  { %v8391_v2 = vrot.slane %v15945_v27, 1  ;;  %v15947_v27 = vld [vmem:[#allocation2 + $0x44] ss:$0 sps:$4 sm:$0x11]  }
 0x64c   :  { %11275 = vmatmul.mubr.bf16.gmra.mrb[44].mxu1 %v8383_v39  ;;  %v15942_v39 = vld [vmem:[#allocation2 + $0x28] sm:$0xf]  ;;  %v8394_v47 = vrot.slane %v15947_v27, 1 }
 0x64d   :  { %11282 = vmatprep.mubr.bf16.mxu1 %v19355_v33  ;;  %11528 = vmatpush1.bf16.msra.mxu1 %v15624_v0  ;;  %v8386_v0 = vsel %vm1223_vm1, %v8384_v25, %v8385_v20  ;;  %v13418_v4 = vcombine.low %v7292_v37, %v15942_v39  ;;  %v15652_v25 = vld [vmem:[%s20510_s3 + $0x130] sm:$0xff]   ;;  %v7329_v20 = vld [vmem:[#allocation2 + $0x3c] sm:$0xf] }
 0x64e   :  { %11529 = vmatprep.subr.bf16.mxu1 %v20660_v6  ;;  %v19385_v37 = vcombine.low %v7329_v20, %v19377_v63  ;;  %v7294_v20 = vld [vmem:[#allocation2 + $0x3c] sm:$0xe] }
 0x651   :  { %11530 = vmatpush1.bf16.msra.mxu1 %v15631_v40  ;;  %v8387_v40 = vrot.slane %v13418_v4, 1  ;;  %v15659_v4 = vld [vmem:[%s20510_s3 + $0x138] sm:$0xff]  }
 0x652   :  { %11531 = vmatprep.subr.bf16.mxu1 %v20660_v6 }
 0x654   :  { %11283 = vmatmul.mubr.bf16.gmra.mrb[48].mxu1 %v8386_v0  ;;  %v15944_v0 = vld [vmem:[#allocation2 + $0x34] sm:$0xf] }
 0x655   :  { %11290 = vmatprep.mubr.bf16.mxu1 %v19370_v30  ;;  %11532 = vmatpush1.bf16.msra.mxu1 %v15638_v28  ;;  %v8389_v28 = vsel %vm1223_vm1, %v8387_v40, %v8388_v14  ;;  %v13419_v39 = vcombine.low %v7293_v19, %v15944_v0  ;;  %v15666_v14 = vld [vmem:[%s20510_s3 + $0x140] sm:$0xff]   ;;  %v7331_v40 = vld [vmem:[#allocation2 + $0x48] sm:$0xf] }
 0x656   :  { %11533 = vmatprep.subr.bf16.mxu1 %v20660_v6  ;;  %v19400_v19 = vcombine.low %v7331_v40, %v19392_v16  ;;  %v7295_v40 = vld [vmem:[#allocation2 + $0x48] sm:$0xe]  ;;  %v7505_v16 = vld [vmem:[#allocation2 + $0x178] sm:$0xf] }
 0x658   :  { %20691 = vst [vmem:[#allocation75_spill] sm:$0xff] %v19400_v19 }
 0x659   :  { %11534 = vmatpush1.bf16.msra.mxu1 %v15645_v44  ;;  %v8390_v44 = vrot.slane %v13419_v39, 1  ;;  %v15673_v39 = vld [vmem:[%s20510_s3 + $0x148] sm:$0xff]  }
 0x65a   :  { %11535 = vmatprep.subr.bf16.mxu1 %v20660_v6 }
 0x65c   :  { %11291 = vmatmul.mubr.bf16.gmra.mrb[52].mxu1 %v8389_v28  ;;  %v15946_v28 = vld [vmem:[#allocation2 + $0x40] sm:$0xf] }
 0x65d   :  { %11298 = vmatprep.mubr.bf16.mxu1 %v19385_v37  ;;  %11536 = vmatpush1.bf16.msra.mxu1 %v15652_v25  ;;  %v8392_v25 = vsel %vm1223_vm1, %v8390_v44, %v8391_v2  ;;  %v13420_v0 = vcombine.low %v7294_v20, %v15946_v28  ;;  %v15680_v2 = vld [vmem:[%s20510_s3 + $0x150] sm:$0xff]  }
 0x65e   :  { %11537 = vmatprep.subr.bf16.mxu1 %v20660_v6  ;;  %v7333_v44 = vld [vmem:[#allocation2 + $0x54] sm:$0xf] }
 0x65f   :  { %v19415_v20 = vcombine.low %v7333_v44, %v19407_v35  ;;  %v15950_v44 = vld [vmem:[#allocation2 + $0x58] sm:$0xf] }
 0x660   :  { %v15820_v35 = vld [vmem:[#allocation2 + $0x158] ss:$0 sps:$4 sm:$0x11]  }
 0x661   :  { %11538 = vmatpush1.bf16.msra.mxu1 %v15659_v4  ;;  %v8393_v4 = vrot.slane %v13420_v0, 1  ;;  %20693 = vst [vmem:[#allocation77_spill] sm:$0xff] %v19415_v20 }
 0x662   :  { %11539 = vmatprep.subr.bf16.mxu1 %v20660_v6 }
 0x664   :  { %11299 = vmatmul.mubr.bf16.gmra.mrb[56].mxu1 %v8392_v25  ;;  %v15948_v25 = vld [vmem:[#allocation2 + $0x4c] sm:$0xf] }
 0x665   :  { %11306 = vmatprep.mubr.bf16.mxu1 %v19400_v19  ;;  %11540 = vmatpush1.bf16.msra.mxu1 %v15666_v14  ;;  %v8395_v14 = vsel %vm1223_vm1, %v8393_v4, %v8394_v47  ;;  %v13421_v28 = vcombine.low %v7295_v40, %v15948_v25  ;;  %v19423_v4 = vcombine.low %v7335_v31, %v19419_v11  ;;  %v15951_v25 = vld [vmem:[#allocation2 + $0x5c] ss:$0 sps:$4 sm:$0x11]   ;;  %v7297_v31 = vld [vmem:[#allocation2 + $0x60] sm:$0xe] }
 0x666   :  { %11541 = vmatprep.subr.bf16.mxu1 %v20660_v6  ;;  %v13422_v40 = vcombine.low %v7296_v29, %v15950_v44  ;;  %v7556_v11 = vld [vmem:[#allocation2 + $0x90] sm:$0xe] }
 0x667   :  { %v8396_v0 = vrot.slane %v13421_v28, 1  ;;  %20695 = vst [vmem:[#allocation79_spill] sm:$0xff] %v19423_v4  ;;  %v8400_v28 = vrot.slane %v15951_v25, 1  ;;  %v8403_v25 = vrot.slane %v15953_v15, 1 }
 0x668   :  { %v15955_v15 = vld [vmem:[#allocation2 + $0x74] ss:$0 sps:$4 sm:$0x11]  }
 0x669   :  { %11542 = vmatpush1.bf16.msra.mxu1 %v15673_v39  ;;  %v15949_v39 = vld [vmem:[#allocation2 + $0x50] ss:$0 sps:$4 sm:$0x11]  }
 0x66a   :  { %11543 = vmatprep.subr.bf16.mxu1 %v20660_v6  ;;  %v8397_v27 = vrot.slane %v15949_v39, 1  ;;  %v19429_v39 = vld [vmem:[#allocation2 + $0x70] sm:$0xf] }
 0x66b   :  { %20696 = vst [vmem:[#allocation80_spill] sm:$0xff] %v19429_v39 }
 0x66c   :  { %11307 = vmatmul.mubr.bf16.gmra.mrb[60].mxu1 %v8395_v14  ;;  %v8398_v47 = vsel %vm1223_vm1, %v8396_v0, %v8397_v27  ;;  %v8399_v14 = vrot.slane %v13422_v40, 1  ;;  %v7337_v0 = vld [vmem:[#allocation2 + $0x6c] sm:$0xf] }
 0x66d   :  { %11314 = vmatprep.mubr.bf16.mxu1 %v19415_v20  ;;  %11544 = vmatpush1.bf16.msra.mxu1 %v15680_v2  ;;  %v15687_v2 = vld [vmem:[%s20510_s3 + $0x158] sm:$0xff]   ;;  %v19434_v29 = vcombine.low %v7337_v0, %v19429_v39  ;;  %v15694_v0 = vld [vmem:[%s20510_s3 + $0x160] sm:$0xff]  }
 0x66e   :  { %11545 = vmatprep.subr.bf16.mxu1 %v20660_v6  ;;  %v8401_v27 = vsel %vm1223_vm1, %v8399_v14, %v8400_v28  ;;  %v15954_v14 = vld [vmem:[#allocation2 + $0x70] sm:$0xf]  ;;  %v15791_v20 = vld [vmem:[#allocation2 + $0xa4] ss:$0 sps:$4 sm:$0x11]  }
 0x66f   :  { %20697 = vst [vmem:[#allocation81_spill] sm:$0xff] %v19434_v29  ;;  %v13424_v28 = vcombine.low %v7298_v10, %v15954_v14 }
 0x671   :  { %11546 = vmatpush1.bf16.msra.mxu1 %v15687_v2  ;;  %v19437_v2 = vld [vmem:[#allocation2 + $0x7c] sm:$0xf] }
 0x672   :  { %11547 = vmatprep.subr.bf16.mxu1 %v20660_v6  ;;  %20698 = vst [vmem:[#allocation82_spill] sm:$0xff] %v19437_v2  ;;  %v19441_v55 = vcombine.low %v7339_v43, %v19437_v2  ;;  %v7299_v43 = vld [vmem:[#allocation2 + $0x78] sm:$0xe]  ;;  %v7555_v2 = vld [vmem:[#allocation2 + $0x84] sm:$0xe] }
 0x674   :  { %11315 = vmatmul.mubr.bf16.gmra.mrb[64].mxu1 %v8398_v47  ;;  %v15952_v47 = vld [vmem:[#allocation2 + $0x64] sm:$0xf]  ;;  %20699 = vst [vmem:[#allocation83_spill] sm:$0xff] %v19441_v55 }
 0x675   :  { %11322 = vmatprep.mubr.bf16.mxu1 %v19423_v4  ;;  %v13423_v44 = vcombine.low %v7297_v31, %v15952_v47  ;;  %v8405_v31 = vrot.slane %v13424_v28, 1  ;;  %11548 = vmatpush1.bf16.msra.mxu1 %v15694_v0  ;;  %v19447_v47 = vld [vmem:[#allocation2 + $0x88] sm:$0xf]  ;;  %v15957_v28 = vld [vmem:[#allocation2 + $0x80] ss:$0 sps:$4 sm:$0x11]  }
 0x676   :  { %20700 = vst [vmem:[#allocation84_spill] sm:$0xff] %v19447_v47  ;;  %11549 = vmatprep.subr.bf16.mxu1 %v20660_v6  ;;  %v19455_v0 = vld [vmem:[#allocation2 + $0x94] sm:$0xf] }
 0x677   :  { %v8402_v40 = vrot.slane %v13423_v44, 1  ;;  %v7341_v44 = vld [vmem:[#allocation2 + $0x84] sm:$0xf]  ;;  %20702 = vst [vmem:[#allocation86_spill] sm:$0xff] %v19455_v0 }
 0x678   :  { %v19452_v10 = vcombine.low %v7341_v44, %v19447_v47  ;;  %v19459_v44 = vcombine.low %v7343_v51, %v19455_v0  ;;  %v8411_v51 = vrot.slane %v13426_v5, 1  ;;  %v7493_v0 = vld [vmem:[#allocation2 + $0x130] sm:$0xf]  ;;  %v7469_v5 = vld [vmem:[#allocation2 + $0x88] sm:$0xf] }
 0x679   :  { %v8404_v34 = vsel %vm1223_vm1, %v8402_v40, %v8403_v25  ;;  %11550 = vmatpush1.bf16.msra.mxu1 %v15701_v46  ;;  %v19473_v47 = vld [vmem:[#allocation2 + $0x148] sm:$0xf]  ;;  %v15816_v46 = vld [vmem:[#allocation2 + $0x140] ss:$0 sps:$4 sm:$0x11]   ;;  %v13616_v39 = vcombine.low %v7555_v2, %v7469_v5 }
 0x67a   :  { %20701 = vst [vmem:[#allocation85_spill] sm:$0xff] %v19452_v10  ;;  %20703 = vst [vmem:[#allocation87_spill] sm:$0xff] %v19459_v44  ;;  %11551 = vmatprep.subr.bf16.mxu1 %v20660_v6  ;;  %v7347_v5 = vld [vmem:[#allocation2 + $0xa8] sm:$0xf] }
 0x67c   :  { %11323 = vmatmul.mubr.bf16.gmra.mrb[68].mxu1 %v8401_v27  ;;  %v8406_v27 = vrot.slane %v15955_v15, 1  ;;  %v8409_v15 = vrot.slane %v15957_v28, 1 }
 0x67d   :  { %11330 = vmatprep.mubr.bf16.mxu1 %v19434_v29 }
 0x67e   :  { %v8407_v40 = vsel %vm1223_vm1, %v8405_v31, %v8406_v27  ;;  %v7463_v31 = vld [vmem:[#allocation2 + $0x64] sm:$0xf] }
 0x684   :  { %11331 = vmatmul.mubr.bf16.gmra.mrb[72].mxu1 %v8404_v34  ;;  %v15956_v34 = vld [vmem:[#allocation2 + $0x7c] sm:$0xf] }
 0x685   :  { %11338 = vmatprep.mubr.bf16.mxu1 %v19441_v55  ;;  %v13425_v25 = vcombine.low %v7299_v43, %v15956_v34  ;;  %v7467_v43 = vld [vmem:[#allocation2 + $0x7c] sm:$0xf]  ;;  %v7301_v34 = vld [vmem:[#allocation2 + $0x90] sm:$0xe]  ;;  %v10259_v55 = vrot.slane %v15784_v24, 1 }
 0x686   :  { %v15818_v24 = vld [vmem:[#allocation2 + $0x14c] ss:$0 sps:$4 sm:$0x11]  }
 0x687   :  { %v8408_v14 = vrot.slane %v13425_v25, 1  ;;  %v15780_v25 = vld [vmem:[#allocation2 + $0x68] ss:$0 sps:$4 sm:$0x11]  }
 0x689   :  { %v8410_v27 = vsel %vm1223_vm1, %v8408_v14, %v8409_v15  ;;  %v13613_v14 = vcombine.low %v7552_v41, %v7463_v31  ;;  %v7554_v15 = vld [vmem:[#allocation2 + $0x78] sm:$0xe]  ;;  %v10253_v31 = vrot.slane %v15780_v25, 1  ;;  %v8413_v25 = vsel %vm1223_vm1, %v8411_v51, %v8412_v36  ;;  %v7569_v51 = vld [vmem:[#allocation2 + $0x144] sm:$0xe] }
 0x68a   :  { %v10261_v36 = vrot.slane %v13616_v39, 1 }
 0x68b   :  { %v10252_v41 = vrot.slane %v13613_v14, 1 }
 0x68c   :  { %11339 = vmatmul.mubr.bf16.gmra.mrb[76].mxu1 %v8407_v40  ;;  %v7551_v40 = vld [vmem:[#allocation2 + $0x54] sm:$0xe] }
 0x68d   :  { %11346 = vmatprep.mubr.bf16.mxu1 %v19452_v10  ;;  %v13612_v28 = vcombine.low %v7551_v40, %v7461_v26  ;;  %v13427_v26 = vcombine.low %v7301_v34, %v15960_v13  ;;  %v19467_v40 = vld [vmem:[#allocation2 + $0x98] ss:$0 sps:$4 sm:$0x11]   ;;  %v19470_v10 = vld [vmem:[#allocation2 + $0x134] ss:$0 sps:$4 sm:$0x11]   ;;  %v19479_v34 = vcombine.low %v7345_v1, %v19462_v9 }
 0x68e   :  { %v7501_v1 = vld [vmem:[#allocation2 + $0x160] sm:$0xf]  ;;  %v10298_v2 = vrot.slane %v19470_v10, 1  ;;  %v7571_v10 = vld [vmem:[#allocation2 + $0x15c] sm:$0xe] }
 0x68f   :  { %v10249_v22 = vrot.slane %v13612_v28, 1  ;;  %20706 = vst [vmem:[#allocation90_spill] sm:$0xff] %v19479_v34  ;;  %v19484_v28 = vsel %vm1223_vm1, %v10252_v41, %v10253_v31  ;;  %v8414_v29 = vrot.slane %v13427_v26, 1  ;;  %v10265_v41 = vrot.slane %v15789_v42, 1  ;;  %v7570_v26 = vld [vmem:[#allocation2 + $0x150] sm:$0xe] }
 0x690   :  { %20707 = vst [vmem:[#allocation91_spill] sm:$0xff] %v19484_v28  ;;  %v7473_v28 = vld [vmem:[#allocation2 + $0xa0] sm:$0xf]  ;;  %v13631_v39 = vcombine.low %v7570_v26, %v19481_v56  ;;  %v13632_v19 = vcombine.low %v7571_v10, %v7501_v1  ;;  %v15963_v26 = vld [vmem:[#allocation2 + $0xa4] ss:$0 sps:$4 sm:$0x11]  }
 0x691   :  { %v19476_v13 = vsel %vm1223_vm1, %v10249_v22, %v10250_v21  ;;  %v7567_v21 = vld [vmem:[#allocation2 + $0x12c] sm:$0xe]  ;;  %v10304_v10 = vrot.slane %v15818_v24, 1 }
 0x692   :  { %20705 = vst [vmem:[#allocation89_spill] sm:$0xff] %v19476_v13  ;;  %v19487_v22 = vld [vmem:[#allocation2 + $0xac] sm:$0xf]  ;;  %v13628_v31 = vcombine.low %v7567_v21, %v7493_v0  ;;  %v15825_v0 = vld [vmem:[#allocation2 + $0x170] ss:$0 sps:$4 sm:$0x11]  }
 0x693   :  { %v10313_v24 = vrot.slane %v15825_v0, 1 }
 0x694   :  { %11347 = vmatmul.mubr.bf16.gmra.mrb[80].mxu1 %v8410_v27  ;;  %v13615_v27 = vcombine.low %v7554_v15, %v7467_v43  ;;  %v7471_v43 = vld [vmem:[#allocation2 + $0x94] sm:$0xf]  ;;  %v7495_v15 = vld [vmem:[#allocation2 + $0x13c] sm:$0xf] }
 0x695   :  { %11354 = vmatprep.mubr.bf16.mxu1 %v19459_v44  ;;  %v15787_v44 = vld [vmem:[#allocation2 + $0x8c] ss:$0 sps:$4 sm:$0x11]   ;;  %v13617_v9 = vcombine.low %v7556_v11, %v7471_v43  ;;  %v13630_v11 = vcombine.low %v7569_v51, %v19473_v47  ;;  %v10297_v43 = vrot.slane %v13628_v31, 1  ;;  %v15962_v47 = vld [vmem:[#allocation2 + $0xa0] sm:$0xf] }
 0x696   :  { %v10258_v14 = vrot.slane %v13615_v27, 1  ;;  %v10262_v4 = vrot.slane %v15787_v44, 1  ;;  %v7568_v27 = vld [vmem:[#allocation2 + $0x138] sm:$0xe] }
 0x697   :  { %v13629_v44 = vcombine.low %v7568_v27, %v7495_v15  ;;  %v7503_v15 = vld [vmem:[#allocation2 + $0x16c] sm:$0xf]  ;;  %v7557_v27 = vld [vmem:[#allocation2 + $0x9c] sm:$0xe]  ;;  %v19506_v56 = vsel %vm1223_vm1, %v10297_v43, %v10298_v2  ;;  %v10303_v1 = vrot.slane %v13630_v11, 1  ;;  %v10307_v43 = vrot.slane %v15820_v35, 1 }
 0x698   :  { %v19490_v13 = vsel %vm1223_vm1, %v10258_v14, %v10259_v55  ;;  %v15823_v55 = vld [vmem:[#allocation2 + $0x164] ss:$0 sps:$4 sm:$0x11]   ;;  %v10264_v14 = vrot.slane %v13617_v9, 1  ;;  %v19496_v42 = vsel %vm1223_vm1, %v10261_v36, %v10262_v4  ;;  %v19503_v9 = vcombine.low %v7347_v5, %v19487_v22  ;;  %20711 = vst [vmem:[#allocation95_spill] sm:$0xff] %v19506_v56 }
 0x699   :  { %20708 = vst [vmem:[#allocation92_spill] sm:$0xff] %v19490_v13  ;;  %20709 = vst [vmem:[#allocation93_spill] sm:$0xff] %v19496_v42  ;;  %v10300_v13 = vrot.slane %v13629_v44, 1  ;;  %v15827_v4 = vld [vmem:[#allocation2 + $0x17c] ss:$0 sps:$4 sm:$0x11]   ;;  %v13618_v31 = vcombine.low %v7557_v27, %v7473_v28 }
 0x69a   :  { %v19500_v21 = vsel %vm1223_vm1, %v10264_v14, %v10265_v41  ;;  %v15829_v36 = vld [vmem:[#allocation2 + $0x188] ss:$0 sps:$4 sm:$0x11]   ;;  %v8418_v42 = vrot.slane %v15963_v26, 1  ;;  %v7507_v41 = vld [vmem:[#allocation2 + $0x184] sm:$0xf] }
 0x69b   :  { %20710 = vst [vmem:[#allocation94_spill] sm:$0xff] %v19500_v21  ;;  %v15832_v14 = vld [vmem:[#allocation2 + $0x194] ss:$0 sps:$4 sm:$0x11]   ;;  %v10268_v21 = vrot.slane %v15791_v20, 1  ;;  %v20713_v44 = vrot.slane %v19467_v40, 1 }
 0x69c   :  { %11355 = vmatmul.mubr.bf16.gmra.mrb[84].mxu1 %v8413_v25  ;;  %v7302_v25 = vld [vmem:[#allocation2 + $0x9c] sm:$0xe]  ;;  %v7572_v28 = vld [vmem:[#allocation2 + $0x168] sm:$0xe]  ;;  %v10309_v27 = vrot.slane %v13632_v19, 1  ;;  %v10310_v26 = vrot.slane %v15823_v55, 1 }
 0x69d   :  { %11362 = vmatprep.mubr.bf16.mxu1 %v19479_v34  ;;  %v10301_v34 = vrot.slane %v15816_v46, 1  ;;  %v13428_v51 = vcombine.low %v7302_v25, %v15962_v47  ;;  %v8416_v5 = vsel %vm1223_vm1, %v8414_v29, %v20713_v44  ;;  %v10267_v25 = vrot.slane %v13618_v31, 1  ;;  %v15834_v2 = vld [vmem:[#allocation2 + $0x1a0] ss:$0 sps:$4 sm:$0x11]   ;;  %v15708_v40 = vld [vmem:[%s20510_s3 + $0x170] sm:$0xff]  }
 0x69e   :  { %v10306_v47 = vrot.slane %v13631_v39, 1  ;;  %v13633_v56 = vcombine.low %v7572_v28, %v7503_v15  ;;  %v19515_v20 = vld [vmem:[#allocation2 + $0xb8] sm:$0xf]  ;;  %v7573_v35 = vld [vmem:[#allocation2 + $0x174] sm:$0xe]  ;;  %v19530_v11 = vsel %vm1223_vm1, %v10309_v27, %v10310_v26  ;;  %11552 = vmatpush1.bf16.msra.mxu1 %v15708_v40 }
 0x69f   :  { %v19509_v46 = vsel %vm1223_vm1, %v10300_v13, %v10301_v34  ;;  %v7509_v13 = vld [vmem:[#allocation2 + $0x190] sm:$0xf]  ;;  %v19521_v29 = vsel %vm1223_vm1, %v10267_v25, %v10268_v21  ;;  %v19524_v34 = vsel %vm1223_vm1, %v10303_v1, %v10304_v10  ;;  %v7511_v19 = vld [vmem:[#allocation2 + $0x19c] sm:$0xf]  ;;  %20717 = vst [vmem:[#allocation100_spill] sm:$0xff] %v19530_v11  ;;  %v13634_v15 = vcombine.low %v7573_v35, %v7505_v16 }
 0x6a0   :  { %20712 = vst [vmem:[#allocation96_spill] sm:$0xff] %v19509_v46  ;;  %20714 = vst [vmem:[#allocation97_spill] sm:$0xff] %v19521_v29  ;;  %v19527_v55 = vsel %vm1223_vm1, %v10306_v47, %v10307_v43  ;;  %v10312_v39 = vrot.slane %v13633_v56, 1  ;;  %v7574_v31 = vld [vmem:[#allocation2 + $0x180] sm:$0xe]  ;;  %v8417_v44 = vrot.slane %v13428_v51, 1  ;;  %11553 = vmatprep.subr.bf16.mxu1 %v20660_v6 }
 0x6a1   :  { %20715 = vst [vmem:[#allocation98_spill] sm:$0xff] %v19524_v34  ;;  %20716 = vst [vmem:[#allocation99_spill] sm:$0xff] %v19527_v55  ;;  %v13635_v21 = vcombine.low %v7574_v31, %v7507_v41  ;;  %v10319_v25 = vrot.slane %v15829_v36, 1  ;;  %v7575_v28 = vld [vmem:[#allocation2 + $0x18c] sm:$0xe]  ;;  %v10315_v1 = vrot.slane %v13634_v15, 1 }
 0x6a2   :  { %v19534_v0 = vsel %vm1223_vm1, %v10312_v39, %v10313_v24  ;;  %v13636_v10 = vcombine.low %v7575_v28, %v7509_v13  ;;  %v10322_v47 = vrot.slane %v15832_v14, 1  ;;  %v7576_v43 = vld [vmem:[#allocation2 + $0x198] sm:$0xe]  ;;  %v7349_v27 = vld [vmem:[#allocation2 + $0xb4] sm:$0xf]  ;;  %v10325_v16 = vrot.slane %v15834_v2, 1 }
 0x6a3   :  { %20718 = vst [vmem:[#allocation101_spill] sm:$0xff] %v19534_v0  ;;  %v10318_v26 = vrot.slane %v13635_v21, 1  ;;  %v13637_v56 = vcombine.low %v7576_v43, %v7511_v19  ;;  %v19537_v51 = vcombine.low %v7349_v27, %v19515_v20  ;;  %v8419_v40 = vsel %vm1223_vm1, %v8417_v44, %v8418_v42  ;;  %v15964_v24 = vld [vmem:[#allocation2 + $0xac] sm:$0xf]  ;;  %v7351_v42 = vld [vmem:[#allocation2 + $0xc0] sm:$0xf] }
 0x6a4   :  { %11363 = vmatmul.mubr.bf16.gmra.mrb[88].mxu1 %v8416_v5  ;;  %v10316_v5 = vrot.slane %v15827_v4, 1  ;;  %v7303_v4 = vld [vmem:[#allocation2 + $0xa8] sm:$0xe]  ;;  %v10321_v41 = vrot.slane %v13636_v10, 1  ;;  %v7304_v44 = vld [vmem:[#allocation2 + $0xb4] sm:$0xe] }
 0x6a5   :  { %11370 = vmatprep.mubr.bf16.mxu1 %v19503_v9  ;;  %v13429_v35 = vcombine.low %v7303_v4, %v15964_v24  ;;  %v19544_v13 = vsel %vm1223_vm1, %v10318_v26, %v10319_v25  ;;  %v10324_v14 = vrot.slane %v13637_v56, 1  ;;  %v15965_v15 = vld [vmem:[#allocation2 + $0xb0] ss:$0 sps:$4 sm:$0x11]   ;;  %v15966_v28 = vld [vmem:[#allocation2 + $0xb8] sm:$0xf] }
 0x6a6   :  { %v19540_v36 = vsel %vm1223_vm1, %v10315_v1, %v10316_v5  ;;  %20720 = vst [vmem:[#allocation103_spill] sm:$0xff] %v19544_v13  ;;  %v19547_v19 = vsel %vm1223_vm1, %v10321_v41, %v10322_v47  ;;  %v8421_v31 = vrot.slane %v15965_v15, 1  ;;  %v19553_v5 = vld [vmem:[#allocation2 + $0xc4] sm:$0xf]  ;;  %v13430_v1 = vcombine.low %v7304_v44, %v15966_v28  ;;  %v15715_v10 = vld [vmem:[%s20510_s3 + $0x178] sm:$0xff]  }
 0x6a7   :  { %20719 = vst [vmem:[#allocation102_spill] sm:$0xff] %v19540_v36  ;;  %20721 = vst [vmem:[#allocation104_spill] sm:$0xff] %v19547_v19  ;;  %v19551_v2 = vsel %vm1223_vm1, %v10324_v14, %v10325_v16  ;;  %v8420_v39 = vrot.slane %v13429_v35, 1  ;;  %v19557_v25 = vcombine.low %v7351_v42, %v19553_v5  ;;  %v7305_v47 = vld [vmem:[#allocation2 + $0xd8] sm:$0xe]  ;;  %11554 = vmatpush1.bf16.msra.mxu1 %v15715_v10 }
 0x6a8   :  { %20722 = vst [vmem:[#allocation105_spill] sm:$0xff] %v19551_v2  ;;  %v8423_v43 = vrot.slane %v13430_v1, 1  ;;  %v15967_v27 = vld [vmem:[#allocation2 + $0xbc] ss:$0 sps:$4 sm:$0x11]   ;;  %11812 = vmatprep.subr.bf16.mxu1 %v20660_v6 }
 0x6a9   :  { %v8422_v21 = vsel %vm1223_vm1, %v8420_v39, %v8421_v31  ;;  %v8424_v26 = vrot.slane %v15967_v27, 1  ;;  %v19563_v56 = vld [vmem:[#allocation2 + $0xe8] sm:$0xf]  ;;  %v15968_v16 = vld [vmem:[#allocation2 + $0xdc] sm:$0xf] }
 0x6aa   :  { %v13431_v4 = vcombine.low %v7305_v47, %v15968_v16  ;;  %v7353_v41 = vld [vmem:[#allocation2 + $0xe4] sm:$0xf]  ;;  %v15969_v14 = vld [vmem:[#allocation2 + $0xe0] ss:$0 sps:$4 sm:$0x11]  }
 0x6ab   :  { %v19568_v24 = vcombine.low %v7353_v41, %v19563_v56  ;;  %v8427_v39 = vrot.slane %v15969_v14, 1  ;;  %v19571_v15 = vld [vmem:[#allocation2 + $0xf4] sm:$0xf]  ;;  %v7355_v42 = vld [vmem:[#allocation2 + $0xf0] sm:$0xf] }
 0x6ac   :  { %11371 = vmatmul.mubr.bf16.gmra.mrb[92].mxu1 %v8419_v40  ;;  %v8425_v40 = vsel %vm1223_vm1, %v8423_v43, %v8424_v26  ;;  %v8426_v35 = vrot.slane %v13431_v4, 1  ;;  %v19575_v44 = vcombine.low %v7355_v42, %v19571_v15  ;;  %v7357_v28 = vld [vmem:[#allocation2 + $0xfc] sm:$0xf]  ;;  %v19585_v10 = vld [vmem:[#allocation2 + $0x10c] sm:$0xf] }
 0x6ad   :  { %11378 = vmatprep.mubr.bf16.mxu1 %v19537_v51  ;;  %v7359_v47 = vld [vmem:[#allocation2 + $0x108] sm:$0xf]  ;;  %v19592_v27 = vld [vmem:[#allocation2 + $0x118] sm:$0xf]  ;;  %v7361_v26 = vld [vmem:[#allocation2 + $0x114] sm:$0xf] }
 0x6ae   :  { %v8428_v31 = vsel %vm1223_vm1, %v8426_v35, %v8427_v39  ;;  %v19588_v43 = vcombine.low %v7359_v47, %v19585_v10  ;;  %v19595_v16 = vcombine.low %v7361_v26, %v19592_v27  ;;  %v7363_v4 = vld [vmem:[#allocation2 + $0x120] sm:$0xf]  ;;  %v15971_v42 = vld [vmem:[#allocation2 + $0x128] ss:$0 sps:$4 sm:$0x11]  }
 0x6af   :  { %v7311_v35 = vld [vmem:[#allocation2 + $0x120] sm:$0xe]  ;;  %v19613_v47 = vld [vmem:[#allocation2 + $0x13c] sm:$0xf]  ;;  %v7312_v26 = vld [vmem:[#allocation2 + $0x12c] sm:$0xe] }
 0x6b0   :  { %v7313_v13 = vld [vmem:[#allocation2 + $0x138] sm:$0xe] }
 0x6b4   :  { %11379 = vmatmul.mubr.bf16.gmra.mrb[96].mxu1 %v8422_v21  ;;  %v19578_v21 = vld [vmem:[#allocation2 + $0x100] sm:$0xf] }
 0x6b5   :  { %11386 = vmatprep.mubr.bf16.mxu1 %v19557_v25  ;;  %v19581_v1 = vcombine.low %v7357_v28, %v19578_v21  ;;  %v8445_v28 = vrot.slane %v15971_v42, 1  ;;  %v7369_v42 = vld [vmem:[#allocation2 + $0x144] sm:$0xf] }
 0x6bc   :  { %11387 = vmatmul.mubr.bf16.gmra.mrb[100].mxu1 %v8425_v40  ;;  %v7365_v40 = vld [vmem:[#allocation2 + $0x12c] sm:$0xf] }
 0x6bd   :  { %11394 = vmatprep.mubr.bf16.mxu1 %v19568_v24 }
 0x6c4   :  { %11395 = vmatmul.mubr.bf16.gmra.mrb[104].mxu1 %v8428_v31 }
 0x6c5   :  { %11402 = vmatprep.mubr.bf16.mxu1 %v19575_v44 }
 0x6cc   :  { %11403 = vmatmul.mubr.bf16.gmra.mrb[108].mxu1 %v19265_v32  ;;  %v19599_v32 = vld [vmem:[#allocation2 + $0x124] sm:$0xf] }
 0x6cd   :  { %11410 = vmatprep.mubr.bf16.mxu1 %v19581_v1  ;;  %v19602_v41 = vcombine.low %v7363_v4, %v19599_v32 }
 0x6d4   :  { %11411 = vmatmul.mubr.bf16.gmra.mrb[112].mxu1 %v19272_v8  ;;  %v19606_v8 = vld [vmem:[#allocation2 + $0x130] sm:$0xf] }
 0x6d5   :  { %11418 = vmatprep.mubr.bf16.mxu1 %v19588_v43  ;;  %v19609_v14 = vcombine.low %v7365_v40, %v19606_v8  ;;  %v15972_v40 = vld [vmem:[#allocation2 + $0x130] sm:$0xf] }
 0x6d6   :  { %v13438_v19 = vcombine.low %v7312_v26, %v15972_v40  ;;  %v15975_v26 = vld [vmem:[#allocation2 + $0x140] ss:$0 sps:$4 sm:$0x11]   ;;  %v7371_v40 = vld [vmem:[#allocation2 + $0x150] sm:$0xf] }
 0x6dc   :  { %11419 = vmatmul.mubr.bf16.gmra.mrb[116].mxu1 %v19276_v45  ;;  %v15970_v45 = vld [vmem:[#allocation2 + $0x124] sm:$0xf] }
 0x6dd   :  { %11426 = vmatprep.mubr.bf16.mxu1 %v19595_v16  ;;  %v13437_v39 = vcombine.low %v7311_v35, %v15970_v45  ;;  %v15973_v35 = vld [vmem:[#allocation2 + $0x134] ss:$0 sps:$4 sm:$0x11]  }
 0x6de   :  { %v8448_v45 = vrot.slane %v15973_v35, 1  ;;  %v7314_v35 = vld [vmem:[#allocation2 + $0x144] sm:$0xe] }
 0x6df   :  { %v8444_v31 = vrot.slane %v13437_v39, 1  ;;  %v19620_v39 = vld [vmem:[#allocation2 + $0x148] sm:$0xf] }
 0x6e0   :  { %v19624_v0 = vcombine.low %v7369_v42, %v19620_v39 }
 0x6e1   :  { %v8446_v4 = vsel %vm1223_vm1, %v8444_v31, %v8445_v28  ;;  %v15974_v31 = vld [vmem:[#allocation2 + $0x13c] sm:$0xf] }
 0x6e2   :  { %v13439_v28 = vcombine.low %v7313_v13, %v15974_v31  ;;  %v15977_v13 = vld [vmem:[#allocation2 + $0x14c] ss:$0 sps:$4 sm:$0x11]   ;;  %v19634_v31 = vld [vmem:[#allocation2 + $0x160] sm:$0xf] }
 0x6e3   :  { %v8454_v42 = vrot.slane %v15977_v13, 1 }
 0x6e4   :  { %11427 = vmatmul.mubr.bf16.gmra.mrb[120].mxu1 %v19281_v49  ;;  %v7367_v49 = vld [vmem:[#allocation2 + $0x138] sm:$0xf] }
 0x6e5   :  { %11434 = vmatprep.mubr.bf16.mxu1 %v19602_v41  ;;  %v19617_v2 = vcombine.low %v7367_v49, %v19613_v47  ;;  %v8450_v49 = vrot.slane %v13439_v28, 1  ;;  %v7373_v28 = vld [vmem:[#allocation2 + $0x15c] sm:$0xf] }
 0x6e6   :  { %v19638_v46 = vcombine.low %v7373_v28, %v19634_v31  ;;  %v19651_v28 = vld [vmem:[#allocation2 + $0x178] sm:$0xf] }
 0x6ec   :  { %11435 = vmatmul.mubr.bf16.gmra.mrb[124].mxu1 %v19286_v50  ;;  %v8447_v50 = vrot.slane %v13438_v19, 1  ;;  %v19627_v19 = vld [vmem:[#allocation2 + $0x154] sm:$0xf] }
 0x6ed   :  { %11442 = vmatprep.mubr.bf16.mxu1 %v19609_v14  ;;  %v19631_v55 = vcombine.low %v7371_v40, %v19627_v19  ;;  %v8457_v40 = vrot.slane %v19288_v58, 1  ;;  %v7377_v58 = vld [vmem:[#allocation2 + $0x174] sm:$0xf] }
 0x6ee   :  { %v8449_v36 = vsel %vm1223_vm1, %v8447_v50, %v8448_v45  ;;  %v15976_v50 = vld [vmem:[#allocation2 + $0x148] sm:$0xf] }
 0x6ef   :  { %v13440_v45 = vcombine.low %v7314_v35, %v15976_v50  ;;  %v19642_v35 = vld [vmem:[#allocation2 + $0x16c] sm:$0xf]  ;;  %v7375_v50 = vld [vmem:[#allocation2 + $0x168] sm:$0xf] }
 0x6f0   :  { %v19646_v29 = vcombine.low %v7375_v50, %v19642_v35  ;;  %v19660_v50 = vld [vmem:[#allocation2 + $0x184] sm:$0xf] }
 0x6f4   :  { %11443 = vmatmul.mubr.bf16.gmra.mrb[128].mxu1 %v8446_v4  ;;  %v8451_v4 = vrot.slane %v15975_v26, 1  ;;  %v7315_v26 = vld [vmem:[#allocation2 + $0x150] sm:$0xe] }
 0x6f5   :  { %11450 = vmatprep.mubr.bf16.mxu1 %v19617_v2 }
 0x6f6   :  { %v8452_v11 = vsel %vm1223_vm1, %v8450_v49, %v8451_v4  ;;  %v15978_v49 = vld [vmem:[#allocation2 + $0x154] sm:$0xf] }
 0x6f7   :  { %v13441_v4 = vcombine.low %v7315_v26, %v15978_v49  ;;  %v7317_v26 = vld [vmem:[#allocation2 + $0x168] sm:$0xe] }
 0x6fc   :  { %11451 = vmatmul.mubr.bf16.gmra.mrb[132].mxu1 %v8449_v36  ;;  %v8453_v36 = vrot.slane %v13440_v45, 1  ;;  %v7316_v45 = vld [vmem:[#allocation2 + $0x15c] sm:$0xe] }
 0x6fd   :  { %11458 = vmatprep.mubr.bf16.mxu1 %v19624_v0 }
 0x6fe   :  { %v8455_v34 = vsel %vm1223_vm1, %v8453_v36, %v8454_v42  ;;  %v13442_v36 = vcombine.low %v7316_v45, %v19283_v18  ;;  %v8460_v42 = vrot.slane %v19296_v62, 1  ;;  %v7379_v62 = vld [vmem:[#allocation2 + $0x180] sm:$0xf]  ;;  %v7318_v45 = vld [vmem:[#allocation2 + $0x174] sm:$0xe] }
 0x704   :  { %11459 = vmatmul.mubr.bf16.gmra.mrb[136].mxu1 %v8452_v11  ;;  %v8456_v11 = vrot.slane %v13441_v4, 1  ;;  %v19655_v4 = vcombine.low %v7377_v58, %v19651_v28  ;;  %v7382_v58 = vld [vmem:[#allocation2 + $0x190] sm:$0xf] }
 0x705   :  { %11466 = vmatprep.mubr.bf16.mxu1 %v19631_v55 }
 0x706   :  { %v8458_v13 = vsel %vm1223_vm1, %v8456_v11, %v8457_v40  ;;  %v13443_v11 = vcombine.low %v7317_v26, %v19294_v7  ;;  %v8463_v40 = vrot.slane %v19303_v3, 1  ;;  %v7381_v26 = vld [vmem:[#allocation2 + $0x18c] sm:$0xf]  ;;  %v7319_v3 = vld [vmem:[#allocation2 + $0x180] sm:$0xe] }
 0x708   :  { %v8462_v18 = vrot.slane %v13443_v11, 1  ;;  %v19670_v11 = vcombine.low %v7381_v26, %v7382_v58  ;;  %v8797_v58 = vshll.u32 %v19330_v17, 16 }
 0x70a   :  { %20724 = vst [vmem:[#allocation107_spill] sm:$0xff] %v19670_v11 }
 0x70c   :  { %11467 = vmatmul.mubr.bf16.gmra.mrb[140].mxu1 %v8455_v34  ;;  %v8459_v34 = vrot.slane %v13442_v36, 1  ;;  %v19664_v36 = vcombine.low %v7379_v62, %v19660_v50  ;;  %v7384_v62 = vld [vmem:[#allocation2 + $0x19c] sm:$0xf] }
 0x70d   :  { %11474 = vmatprep.mubr.bf16.mxu1 %v19638_v46 }
 0x70e   :  { %v8461_v49 = vsel %vm1223_vm1, %v8459_v34, %v8460_v42  ;;  %20723 = vst [vmem:[#allocation106_spill] sm:$0xff] %v19664_v36  ;;  %v13444_v34 = vcombine.low %v7318_v45, %v19301_v12  ;;  %v8466_v42 = vrot.slane %v19310_v53, 1  ;;  %v8469_v12 = vrot.slane %v19317_v23, 1  ;;  %v7383_v45 = vld [vmem:[#allocation2 + $0x198] sm:$0xf] }
 0x70f   :  { %v8472_v23 = vrot.slane %v19322_v54, 1 }
 0x710   :  { %v8465_v7 = vrot.slane %v13444_v34, 1  ;;  %v7417_v34 = vld [vmem:[#allocation2 + $0xc] sm:$0xe] }
 0x714   :  { %11475 = vmatmul.mubr.bf16.gmra.mrb[144].mxu1 %v8458_v13  ;;  %v8464_v13 = vsel %vm1223_vm1, %v8462_v18, %v8463_v40  ;;  %v13445_v18 = vcombine.low %v7319_v3, %v19308_v59  ;;  %v15717_v59 = vld [vmem:[#allocation2 + $0x14] ss:$0 sps:$4 sm:$0x11]  }
 0x715   :  { %11482 = vmatprep.mubr.bf16.mxu1 %v19646_v29 }
 0x716   :  { %v8468_v40 = vrot.slane %v13445_v18, 1  ;;  %v8799_v18 = vrot.slane %v8797_v58, 1  ;;  %v7419_v58 = vld [vmem:[#allocation2 + $0x24] sm:$0xe] }
 0x718   :  { %v8470_v53 = vsel %vm1223_vm1, %v8468_v40, %v8469_v12 }
 0x71c   :  { %11483 = vmatmul.mubr.bf16.gmra.mrb[148].mxu1 %v8461_v49  ;;  %v8467_v49 = vsel %vm1223_vm1, %v8465_v7, %v8466_v42  ;;  %v13511_v42 = vcombine.low %v7417_v34, %v19327_v48  ;;  %v15718_v48 = vld [vmem:[#allocation2 + $0x20] ss:$0 sps:$4 sm:$0x11]  }
 0x71d   :  { %11490 = vmatprep.mubr.bf16.mxu1 %v19655_v4 }
 0x71e   :  { %v9306_v3 = vrot.slane %v13511_v42, 1  ;;  %v15719_v42 = vld [vmem:[%s20510_s3 + $0x180] sm:$0xff]  }
 0x724   :  { %11491 = vmatmul.mubr.bf16.gmra.mrb[152].mxu1 %v8464_v13  ;;  %v7320_v13 = vld [vmem:[#allocation2 + $0x18c] sm:$0xe] }
 0x725   :  { %11498 = vmatprep.mubr.bf16.mxu1 %v19664_v36  ;;  %v19676_v36 = vcombine.low %v7383_v45, %v7384_v62  ;;  %v13446_v7 = vcombine.low %v7320_v13, %v19315_v61  ;;  %v8795_v62 = vshrl.u32 %v19330_v17, 16  ;;  %v8802_v45 = vshll.u32 %v15717_v59, 16 }
 0x726   :  { %v8809_v13 = vshll.u32 %v19340_v57, 16 }
 0x727   :  { %v8471_v26 = vrot.slane %v13446_v7, 1  ;;  %v8800_v34 = vor.u32 %v8799_v18, %v8795_v62  ;;  %v8804_v7 = vrot.slane %v8802_v45, 1  ;;  %v8821_v18 = vshll.u32 %v19355_v33, 16  ;;  %v15725_v62 = vld [vmem:[%s20510_s3 + $0x190] sm:$0xff]  }
 0x729   :  { %v8473_v40 = vsel %vm1223_vm1, %v8471_v26, %v8472_v23  ;;  %v13513_v26 = vcombine.low %v7419_v58, %v19347_v52  ;;  %v8807_v23 = vshrl.u32 %v19340_v57, 16  ;;  %v7420_v57 = vld [vmem:[#allocation2 + $0x30] sm:$0xe]  ;;  %v8823_v45 = vrot.slane %v8821_v18, 1 }
 0x72a   :  { %v8833_v58 = vshll.u32 %v19370_v30, 16  ;;  %v15723_v18 = vld [vmem:[#allocation2 + $0x44] ss:$0 sps:$4 sm:$0x11]  }
 0x72c   :  { %11499 = vmatmul.mubr.bf16.gmra.mrb[156].mxu1 %v8467_v49  ;;  %v9307_v49 = vrot.slane %v15717_v59, 1  ;;  %v15720_v59 = vld [vmem:[#allocation2 + $0x2c] ss:$0 sps:$4 sm:$0x11]  }
 0x72d   :  { %11506 = vmatprep.mubr.bf16.mxu1 %v19670_v11  ;;  %v7418_v11 = vld [vmem:[#allocation2 + $0x18] sm:$0xe]  ;;  %v9313_v52 = vrot.slane %v15720_v59, 1 }
 0x72e   :  { %v13512_v12 = vcombine.low %v7418_v11, %v19333_v60  ;;  %v9308_v61 = vsel %vm1223_vm1, %v9306_v3, %v9307_v49  ;;  %v8805_v60 = vsel %vm710_vm0, %v8800_v34, %v8804_v7  ;;  %v8811_v11 = vrot.slane %v8809_v13, 1  ;;  %v15722_v49 = vld [vmem:[%s20510_s3 + $0x188] sm:$0xff]  }
 0x72f   :  { %v8814_v3 = vshll.u32 %v15718_v48, 16  ;;  %v13514_v13 = vcombine.low %v7420_v57, %v19362_v38  ;;  %v8826_v7 = vshll.u32 %v15720_v59, 16 }
 0x730   :  { %v9309_v54 = vrot.slane %v13512_v12, 1  ;;  %v9312_v12 = vrot.slane %v13513_v26, 1 }
 0x731   :  { %v8828_v26 = vrot.slane %v8826_v7, 1 }
 0x732   :  { %v9314_v34 = vsel %vm1223_vm1, %v9312_v12, %v9313_v52  ;;  %v15734_v52 = vld [vmem:[%s20510_s3 + $0x1a8] sm:$0xff]  }
 0x734   :  { %11507 = vmatmul.mubr.bf16.gmra.mrb[160].mxu1 %v8470_v53  ;;  %v9310_v53 = vrot.slane %v15718_v48, 1 }
 0x735   :  { %11514 = vmatprep.mubr.bf16.mxu1 %v19676_v36 }
 0x736   :  { %v9311_v17 = vsel %vm1223_vm1, %v9309_v54, %v9310_v53  ;;  %v15721_v54 = vld [vmem:[#allocation2 + $0x38] ss:$0 sps:$4 sm:$0x11]   ;;  %v8819_v53 = vshrl.u32 %v19355_v33, 16  ;;  %v7421_v33 = vld [vmem:[#allocation2 + $0x3c] sm:$0xe] }
 0x737   :  { %v9316_v38 = vrot.slane %v15721_v54, 1  ;;  %v8838_v12 = vshll.u32 %v15721_v54, 16  ;;  %v20725_v54 = vld [vmem:[#allocation74_spill] sm:$0xff] }
 0x73c   :  { %11515 = vmatmul.mubr.bf16.gmra.mrb[164].mxu1 %v8473_v40  ;;  %v8812_v40 = vor.u32 %v8811_v11, %v8807_v23  ;;  %v9315_v11 = vrot.slane %v13514_v13, 1  ;;  %v8835_v23 = vrot.slane %v8833_v58, 1  ;;  %v8843_v58 = vshrl.u32 %v19385_v37, 16 }
 0x73d   :  { %11555 = vmatprep.mubr.bf16.mxu1 %v9308_v61  ;;  %v8816_v61 = vrot.slane %v8814_v3, 1  ;;  %v13515_v3 = vcombine.low %v7421_v33, %v19377_v63  ;;  %v9319_v63 = vrot.slane %v15723_v18, 1 }
 0x73f   :  { %v8817_v48 = vsel %vm710_vm0, %v8812_v40, %v8816_v61  ;;  %v8831_v40 = vshrl.u32 %v19370_v30, 16  ;;  %v8845_v61 = vshll.u32 %v19385_v37, 16  ;;  %v9318_v57 = vrot.slane %v13515_v3, 1  ;;  %v7422_v30 = vld [vmem:[#allocation2 + $0x48] sm:$0xe]  ;;  %v15743_v3 = vld [vmem:[%s20510_s3 + $0x1c0] sm:$0xff]  }
 0x740   :  { %v7423_v37 = vld [vmem:[#allocation2 + $0x54] sm:$0xe] }
 0x741   :  { %v9320_v7 = vsel %vm1223_vm1, %v9318_v57, %v9319_v63  ;;  %v15746_v63 = vld [vmem:[%s20510_s3 + $0x1c8] sm:$0xff]  }
 0x744   :  { %11556 = vmatmul.mubr.bf16.vlgmr.msra.gmra.mrb[40].mxu1 %v8805_v60  ;;  %v8824_v60 = vor.u32 %v8823_v45, %v8819_v53  ;;  %v15737_v45 = vld [vmem:[%s20510_s3 + $0x1b0] sm:$0xff]   ;;  %v13516_v53 = vcombine.low %v7422_v30, %v20725_v54 }
 0x745   :  { %11563 = vmatprep.mubr.bf16.mxu1 %v9311_v17  ;;  %11813 = vmatpush1.bf16.msra.mxu1 %v15719_v42  ;;  %v15728_v42 = vld [vmem:[%s20510_s3 + $0x198] sm:$0xff]   ;;  %v15731_v17 = vld [vmem:[%s20510_s3 + $0x1a0] sm:$0xff]  }
 0x746   :  { %11814 = vmatprep.subr.bf16.mxu1 %v20660_v6  ;;  %v8829_v59 = vsel %vm710_vm0, %v8824_v60, %v8828_v26  ;;  %v8850_v60 = vshll.u32 %v15723_v18, 16  ;;  %v9321_v33 = vrot.slane %v13516_v53, 1  ;;  %v15749_v53 = vld [vmem:[%s20510_s3 + $0x1d0] sm:$0xff]  }
 0x749   :  { %11815 = vmatpush1.bf16.msra.mxu1 %v15722_v49  ;;  %v9317_v49 = vsel %vm1223_vm1, %v9315_v11, %v9316_v38  ;;  %v15740_v11 = vld [vmem:[%s20510_s3 + $0x1b8] sm:$0xff]   ;;  %v20726_v38 = vld [vmem:[#allocation75_spill] sm:$0xff] }
 0x74a   :  { %11816 = vmatprep.subr.bf16.mxu1 %v20660_v6  ;;  %v8857_v26 = vshll.u32 %v20726_v38, 16 }
 0x74c   :  { %11564 = vmatmul.mubr.bf16.gmra.mrb[44].mxu1 %v8817_v48  ;;  %v8840_v48 = vrot.slane %v8838_v12, 1  ;;  %v8859_v18 = vrot.slane %v8857_v26, 1  ;;  %v15727_v26 = vld [vmem:[#allocation2 + $0x68] ss:$0 sps:$4 sm:$0x11]  }
 0x74d   :  { %11571 = vmatprep.mubr.bf16.mxu1 %v9314_v34  ;;  %11817 = vmatpush1.bf16.msra.mxu1 %v15725_v62  ;;  %v8836_v62 = vor.u32 %v8835_v23, %v8831_v40  ;;  %v8847_v34 = vrot.slane %v8845_v61, 1  ;;  %v8852_v23 = vrot.slane %v8850_v60, 1  ;;  %v20727_v40 = vld [vmem:[#allocation76_spill] sm:$0xff]  ;;  %v15726_v61 = vld [vmem:[#allocation2 + $0x5c] ss:$0 sps:$4 sm:$0x11]  }
 0x74e   :  { %11818 = vmatprep.subr.bf16.mxu1 %v20660_v6  ;;  %v13517_v12 = vcombine.low %v7423_v37, %v20727_v40  ;;  %v20729_v60 = vld [vmem:[#allocation78_spill] sm:$0xff]  ;;  %v7425_v40 = vld [vmem:[#allocation2 + $0x6c] sm:$0xe] }
 0x74f   :  { %v8841_v13 = vsel %vm710_vm0, %v8836_v62, %v8840_v48  ;;  %v8855_v62 = vshrl.u32 %v20726_v38, 16  ;;  %v20728_v48 = vld [vmem:[#allocation77_spill] sm:$0xff] }
 0x751   :  { %11819 = vmatpush1.bf16.msra.mxu1 %v15728_v42  ;;  %v15724_v42 = vld [vmem:[#allocation2 + $0x50] ss:$0 sps:$4 sm:$0x11]   ;;  %v8860_v30 = vor.u32 %v8859_v18, %v8855_v62  ;;  %v20731_v62 = vld [vmem:[#allocation80_spill] sm:$0xff] }
 0x752   :  { %11820 = vmatprep.subr.bf16.mxu1 %v20660_v6  ;;  %v8862_v57 = vshll.u32 %v15724_v42, 16 }
 0x754   :  { %11572 = vmatmul.mubr.bf16.gmra.mrb[48].mxu1 %v8829_v59  ;;  %v9322_v59 = vrot.slane %v15724_v42, 1  ;;  %v8864_v54 = vrot.slane %v8862_v57, 1  ;;  %v13519_v57 = vcombine.low %v7425_v40, %v20731_v62 }
 0x755   :  { %11579 = vmatprep.mubr.bf16.mxu1 %v9317_v49  ;;  %11821 = vmatpush1.bf16.msra.mxu1 %v15731_v17  ;;  %v8848_v17 = vor.u32 %v8847_v34, %v8843_v58  ;;  %v9325_v34 = vrot.slane %v15726_v61, 1 }
 0x756   :  { %11822 = vmatprep.subr.bf16.mxu1 %v20660_v6  ;;  %v8865_v42 = vsel %vm710_vm0, %v8860_v30, %v8864_v54  ;;  %v15752_v30 = vld [vmem:[%s20510_s3 + $0x1d8] sm:$0xff]  }
 0x757   :  { %v8853_v49 = vsel %vm710_vm0, %v8848_v17, %v8852_v23  ;;  %v8867_v17 = vshrl.u32 %v20728_v48, 16 }
 0x759   :  { %11823 = vmatpush1.bf16.msra.mxu1 %v15734_v52  ;;  %v9323_v52 = vsel %vm1223_vm1, %v9321_v33, %v9322_v59  ;;  %v8874_v33 = vshll.u32 %v15726_v61, 16  ;;  %v20730_v59 = vld [vmem:[#allocation79_spill] sm:$0xff] }
 0x75a   :  { %11824 = vmatprep.subr.bf16.mxu1 %v20660_v6  ;;  %v8881_v23 = vshll.u32 %v20730_v59, 16  ;;  %v8879_v61 = vshrl.u32 %v20730_v59, 16 }
 0x75b   :  { %v8876_v18 = vrot.slane %v8874_v33, 1  ;;  %v15730_v33 = vld [vmem:[#allocation2 + $0x80] ss:$0 sps:$4 sm:$0x11]  }
 0x75c   :  { %11580 = vmatmul.mubr.bf16.gmra.mrb[52].mxu1 %v8841_v13  ;;  %v9324_v13 = vrot.slane %v13517_v12, 1  ;;  %v9334_v40 = vrot.slane %v15730_v33, 1 }
 0x75d   :  { %11587 = vmatprep.mubr.bf16.mxu1 %v9320_v7  ;;  %11825 = vmatpush1.bf16.msra.mxu1 %v15737_v45  ;;  %v8869_v45 = vshll.u32 %v20728_v48, 16  ;;  %v7424_v7 = vld [vmem:[#allocation2 + $0x60] sm:$0xe]  ;;  %v15729_v48 = vld [vmem:[#allocation2 + $0x74] ss:$0 sps:$4 sm:$0x11]  }
 0x75e   :  { %11826 = vmatprep.subr.bf16.mxu1 %v20660_v6  ;;  %v9326_v38 = vsel %vm1223_vm1, %v9324_v13, %v9325_v34  ;;  %v20732_v13 = vld [vmem:[#allocation81_spill] sm:$0xff] }
 0x75f   :  { %v8871_v58 = vrot.slane %v8869_v45, 1  ;;  %v8886_v45 = vshll.u32 %v15727_v26, 16  ;;  %v8893_v34 = vshll.u32 %v20732_v13, 16  ;;  %v8891_v59 = vshrl.u32 %v20732_v13, 16 }
 0x761   :  { %11827 = vmatpush1.bf16.msra.mxu1 %v15740_v11  ;;  %v13518_v11 = vcombine.low %v7424_v7, %v20729_v60  ;;  %v9331_v7 = vrot.slane %v15729_v48, 1 }
 0x762   :  { %11828 = vmatprep.subr.bf16.mxu1 %v20660_v6 }
 0x763   :  { %v9327_v37 = vrot.slane %v13518_v11, 1  ;;  %v8895_v11 = vrot.slane %v8893_v34, 1  ;;  %v15755_v34 = vld [vmem:[%s20510_s3 + $0x1e0] sm:$0xff]  }
 0x764   :  { %11588 = vmatmul.mubr.bf16.gmra.mrb[56].mxu1 %v8853_v49  ;;  %v9328_v49 = vrot.slane %v15727_v26, 1 }
 0x765   :  { %11595 = vmatprep.mubr.bf16.mxu1 %v9323_v52  ;;  %11829 = vmatpush1.bf16.msra.mxu1 %v15743_v3  ;;  %v8872_v3 = vor.u32 %v8871_v58, %v8867_v17  ;;  %v8883_v52 = vrot.slane %v8881_v23, 1  ;;  %v7426_v58 = vld [vmem:[#allocation2 + $0x78] sm:$0xe]  ;;  %v8898_v23 = vshll.u32 %v15729_v48, 16  ;;  %v8910_v48 = vshll.u32 %v15730_v33, 16 }
 0x766   :  { %11830 = vmatprep.subr.bf16.mxu1 %v20660_v6 }
 0x767   :  { %v8877_v12 = vsel %vm710_vm0, %v8872_v3, %v8876_v18  ;;  %v8884_v54 = vor.u32 %v8883_v52, %v8879_v61  ;;  %v20734_v3 = vld [vmem:[#allocation83_spill] sm:$0xff] }
 0x768   :  { %v7427_v52 = vld [vmem:[#allocation2 + $0x84] sm:$0xe]  ;;  %v8903_v13 = vshrl.u32 %v20734_v3, 16 }
 0x769   :  { %11831 = vmatpush1.bf16.msra.mxu1 %v15746_v63  ;;  %v9329_v63 = vsel %vm1223_vm1, %v9327_v37, %v9328_v49  ;;  %v8905_v37 = vshll.u32 %v20734_v3, 16  ;;  %v8896_v49 = vor.u32 %v8895_v11, %v8891_v59  ;;  %v7428_v11 = vld [vmem:[#allocation2 + $0x90] sm:$0xe] }
 0x76a   :  { %11832 = vmatprep.subr.bf16.mxu1 %v20660_v6 }
 0x76c   :  { %11596 = vmatmul.mubr.bf16.gmra.mrb[60].mxu1 %v8865_v42  ;;  %v8888_v42 = vrot.slane %v8886_v45, 1 }
 0x76d   :  { %11603 = vmatprep.mubr.bf16.mxu1 %v9326_v38  ;;  %11833 = vmatpush1.bf16.msra.mxu1 %v15749_v53  ;;  %v9330_v53 = vrot.slane %v13519_v57, 1  ;;  %v20733_v38 = vld [vmem:[#allocation82_spill] sm:$0xff]  ;;  %v8907_v57 = vrot.slane %v8905_v37, 1 }
 0x76e   :  { %11834 = vmatprep.subr.bf16.mxu1 %v20660_v6  ;;  %v8889_v60 = vsel %vm710_vm0, %v8884_v54, %v8888_v42  ;;  %v13520_v17 = vcombine.low %v7426_v58, %v20733_v38  ;;  %v20736_v54 = vld [vmem:[#allocation85_spill] sm:$0xff] }
 0x76f   :  { %v9332_v26 = vsel %vm1223_vm1, %v9330_v53, %v9331_v7  ;;  %v8917_v53 = vshll.u32 %v20736_v54, 16  ;;  %v8908_v7 = vor.u32 %v8907_v57, %v8903_v13  ;;  %v8915_v3 = vshrl.u32 %v20736_v54, 16  ;;  %v7429_v57 = vld [vmem:[#allocation2 + $0x9c] sm:$0xe] }
 0x770   :  { %v9333_v18 = vrot.slane %v13520_v17, 1 }
 0x771   :  { %11835 = vmatpush1.bf16.msra.mxu1 %v15752_v30  ;;  %v15732_v30 = vld [vmem:[#allocation2 + $0x8c] ss:$0 sps:$4 sm:$0x11]   ;;  %v8919_v17 = vrot.slane %v8917_v53, 1 }
 0x772   :  { %11836 = vmatprep.subr.bf16.mxu1 %v20660_v6  ;;  %v9335_v45 = vsel %vm1223_vm1, %v9333_v18, %v9334_v40  ;;  %v9337_v58 = vrot.slane %v15732_v30, 1  ;;  %v8922_v37 = vshll.u32 %v15732_v30, 16  ;;  %v15758_v53 = vld [vmem:[%s20510_s3 + $0x1e8] sm:$0xff]  }
 0x773   :  { %v8920_v40 = vor.u32 %v8919_v17, %v8915_v3  ;;  %v7430_v17 = vld [vmem:[#allocation2 + $0xa8] sm:$0xe]  ;;  %v15736_v3 = vld [vmem:[#allocation2 + $0xb0] ss:$0 sps:$4 sm:$0x11]  }
 0x774   :  { %11604 = vmatmul.mubr.bf16.gmra.mrb[64].mxu1 %v8877_v12  ;;  %v8900_v12 = vrot.slane %v8898_v23, 1  ;;  %v15733_v23 = vld [vmem:[#allocation2 + $0x98] ss:$0 sps:$4 sm:$0x11]  }
 0x775   :  { %11611 = vmatprep.mubr.bf16.mxu1 %v9329_v63  ;;  %v20735_v63 = vld [vmem:[#allocation84_spill] sm:$0xff]  ;;  %11837 = vmatpush1.bf16.msra.mxu1 %v15755_v34  ;;  %v15735_v34 = vld [vmem:[#allocation2 + $0xa4] ss:$0 sps:$4 sm:$0x11]   ;;  %v8934_v30 = vshll.u32 %v15733_v23, 16 }
 0x776   :  { %v8901_v62 = vsel %vm710_vm0, %v8896_v49, %v8900_v12  ;;  %v13521_v61 = vcombine.low %v7427_v52, %v20735_v63  ;;  %11838 = vmatprep.subr.bf16.mxu1 %v20660_v6  ;;  %v20738_v49 = vld [vmem:[#allocation87_spill] sm:$0xff]  ;;  %v9340_v52 = vrot.slane %v15733_v23, 1 }
 0x777   :  { %v8929_v18 = vshll.u32 %v20738_v49, 16  ;;  %v8927_v54 = vshrl.u32 %v20738_v49, 16  ;;  %v8946_v49 = vshll.u32 %v15735_v34, 16 }
 0x778   :  { %v9336_v42 = vrot.slane %v13521_v61, 1 }
 0x779   :  { %v8931_v61 = vrot.slane %v8929_v18, 1  ;;  %11839 = vmatpush1.bf16.msra.mxu1 %v15758_v53  ;;  %v8953_v18 = vshll.u32 %v19503_v9, 16 }
 0x77a   :  { %v9338_v33 = vsel %vm1223_vm1, %v9336_v42, %v9337_v58  ;;  %11840 = vmatprep.subr.bf16.mxu1 %v20660_v6 }
 0x77b   :  { %v8932_v58 = vor.u32 %v8931_v61, %v8927_v54  ;;  %v8955_v61 = vrot.slane %v8953_v18, 1  ;;  %v15761_v54 = vld [vmem:[%s20510_s3 + $0x1f0] sm:$0xff]  }
 0x77c   :  { %11612 = vmatmul.mubr.bf16.gmra.mrb[68].mxu1 %v8889_v60  ;;  %v8912_v60 = vrot.slane %v8910_v48, 1 }
 0x77d   :  { %11619 = vmatprep.mubr.bf16.mxu1 %v9332_v26  ;;  %v20737_v26 = vld [vmem:[#allocation86_spill] sm:$0xff]  ;;  %11841 = vmatpush1.bf16.msra.mxu1 %v15761_v54 }
 0x77e   :  { %v8913_v38 = vsel %vm710_vm0, %v8908_v7, %v8912_v60  ;;  %v13522_v59 = vcombine.low %v7428_v11, %v20737_v26  ;;  %v20740_v7 = vld [vmem:[#allocation90_spill] sm:$0xff]  ;;  %v9343_v11 = vrot.slane %v15735_v34, 1  ;;  %v8958_v34 = vshll.u32 %v15736_v3, 16  ;;  %11842 = vmatprep.subr.bf16.mxu1 %v20660_v6 }
 0x77f   :  { %v8941_v42 = vshll.u32 %v20740_v7, 16 }
 0x780   :  { %v9339_v12 = vrot.slane %v13522_v59, 1 }
 0x781   :  { %v8943_v59 = vrot.slane %v8941_v42, 1 }
 0x782   :  { %v9341_v48 = vsel %vm1223_vm1, %v9339_v12, %v9340_v52  ;;  %v9346_v52 = vrot.slane %v15736_v3, 1 }
 0x784   :  { %11620 = vmatmul.mubr.bf16.gmra.mrb[72].mxu1 %v8901_v62  ;;  %v8924_v62 = vrot.slane %v8922_v37, 1  ;;  %v8939_v37 = vshrl.u32 %v20740_v7, 16 }
 0x785   :  { %11627 = vmatprep.mubr.bf16.mxu1 %v9335_v45  ;;  %v20739_v45 = vld [vmem:[#allocation88_spill] sm:$0xff] }
 0x786   :  { %v8925_v63 = vsel %vm710_vm0, %v8920_v40, %v8924_v62  ;;  %v13523_v13 = vcombine.low %v7429_v57, %v20739_v45  ;;  %v8944_v40 = vor.u32 %v8943_v59, %v8939_v37  ;;  %v8948_v62 = vrot.slane %v8946_v49, 1  ;;  %v7431_v57 = vld [vmem:[#allocation2 + $0xb4] sm:$0xe]  ;;  %v7433_v49 = vld [vmem:[#allocation2 + $0xe4] sm:$0xe] }
 0x788   :  { %v9342_v60 = vrot.slane %v13523_v13, 1  ;;  %v15738_v13 = vld [vmem:[#allocation2 + $0xbc] ss:$0 sps:$4 sm:$0x11]  }
 0x789   :  { %v9349_v42 = vrot.slane %v15738_v13, 1  ;;  %v8970_v59 = vshll.u32 %v15738_v13, 16 }
 0x78a   :  { %v9344_v23 = vsel %vm1223_vm1, %v9342_v60, %v9343_v11 }
 0x78b   :  { %v8972_v37 = vrot.slane %v8970_v59, 1  ;;  %v15744_v59 = vld [vmem:[#allocation2 + $0x104] ss:$0 sps:$4 sm:$0x11]  }
 0x78c   :  { %11628 = vmatmul.mubr.bf16.gmra.mrb[76].mxu1 %v8913_v38  ;;  %v8936_v38 = vrot.slane %v8934_v30, 1  ;;  %v8965_v30 = vshll.u32 %v19537_v51, 16 }
 0x78d   :  { %11635 = vmatprep.mubr.bf16.mxu1 %v9338_v33  ;;  %v13524_v33 = vcombine.low %v7430_v17, %v19487_v22  ;;  %v13525_v22 = vcombine.low %v7431_v57, %v19515_v20  ;;  %v8960_v20 = vrot.slane %v8958_v34, 1  ;;  %v15739_v17 = vld [vmem:[#allocation2 + $0xc8] ss:$0 sps:$4 sm:$0x11]   ;;  %v15764_v57 = vld [vmem:[%s20510_s3 + $0x1f8] sm:$0xff]  }
 0x78e   :  { %v8937_v26 = vsel %vm710_vm0, %v8932_v58, %v8936_v38  ;;  %v7432_v58 = vld [vmem:[#allocation2 + $0xc0] sm:$0xe]  ;;  %v8967_v11 = vrot.slane %v8965_v30, 1  ;;  %v9352_v6 = vrot.slane %v15739_v17, 1  ;;  %11843 = vmatpush1.bf16.msra.mxu1 %v15764_v57  ;;  %v9025_v57 = vshll.u32 %v19588_v43, 16 }
 0x78f   :  { %v9345_v12 = vrot.slane %v13524_v33, 1  ;;  %v9348_v7 = vrot.slane %v13525_v22, 1  ;;  %v8977_v33 = vshll.u32 %v19557_v25, 16  ;;  %v15742_v30 = vld [vmem:[#allocation2 + $0xf8] ss:$0 sps:$4 sm:$0x11]  }
 0x791   :  { %v9347_v45 = vsel %vm1223_vm1, %v9345_v12, %v9346_v52  ;;  %v9350_v38 = vsel %vm1223_vm1, %v9348_v7, %v9349_v42  ;;  %v15741_v52 = vld [vmem:[#allocation2 + $0xec] ss:$0 sps:$4 sm:$0x11]   ;;  %v9001_v42 = vshll.u32 %v19575_v44, 16 }
 0x792   :  { %v8994_v7 = vshll.u32 %v15741_v52, 16 }
 0x794   :  { %11636 = vmatmul.mubr.bf16.gmra.mrb[80].mxu1 %v8925_v63  ;;  %v8949_v63 = vsel %vm710_vm0, %v8944_v40, %v8948_v62  ;;  %v8979_v40 = vrot.slane %v8977_v33, 1  ;;  %v8982_v62 = vshll.u32 %v15739_v17, 16  ;;  %v9003_v17 = vrot.slane %v9001_v42, 1 }
 0x795   :  { %11643 = vmatprep.mubr.bf16.mxu1 %v9341_v48  ;;  %v8951_v48 = vshrl.u32 %v19503_v9, 16  ;;  %v13526_v9 = vcombine.low %v7432_v58, %v19553_v5  ;;  %v13527_v5 = vcombine.low %v7433_v49, %v19563_v56  ;;  %v7434_v56 = vld [vmem:[#allocation2 + $0xf0] sm:$0xe]  ;;  %v8999_v33 = vshrl.u32 %v19575_v44, 16 }
 0x796   :  { %v8984_v13 = vrot.slane %v8982_v62, 1  ;;  %v13528_v54 = vcombine.low %v7434_v56, %v19571_v15  ;;  %v9011_v44 = vshrl.u32 %v19581_v1, 16  ;;  %v9018_v62 = vshll.u32 %v15744_v59, 16 }
 0x797   :  { %v8956_v53 = vor.u32 %v8955_v61, %v8951_v48  ;;  %v9351_v3 = vrot.slane %v13526_v9, 1  ;;  %v9354_v22 = vrot.slane %v13527_v5, 1  ;;  %v7435_v9 = vld [vmem:[#allocation2 + $0xfc] sm:$0xe] }
 0x798   :  { %v9357_v58 = vrot.slane %v13528_v54, 1  ;;  %v13529_v15 = vcombine.low %v7435_v9, %v19578_v21  ;;  %v9361_v21 = vrot.slane %v15744_v59, 1  ;;  %v15747_v54 = vld [vmem:[#allocation2 + $0x11c] ss:$0 sps:$4 sm:$0x11]  }
 0x799   :  { %v8961_v60 = vsel %vm710_vm0, %v8956_v53, %v8960_v20  ;;  %v9353_v12 = vsel %vm1223_vm1, %v9351_v3, %v9352_v6  ;;  %v8987_v53 = vshrl.u32 %v19568_v24, 16  ;;  %v9013_v3 = vshll.u32 %v19581_v1, 16 }
 0x79a   :  { %v9004_v6 = vor.u32 %v9003_v17, %v8999_v33  ;;  %v9023_v1 = vshrl.u32 %v19588_v43, 16  ;;  %v9367_v42 = vrot.slane %v15747_v54, 1  ;;  %v9035_v43 = vshrl.u32 %v19595_v16, 16 }
 0x79b   :  { %v9015_v5 = vrot.slane %v9013_v3, 1  ;;  %v9042_v17 = vshll.u32 %v15747_v54, 16  ;;  %v7439_v3 = vld [vmem:[#allocation2 + $0x12c] sm:$0xe] }
 0x79c   :  { %11644 = vmatmul.mubr.bf16.gmra.mrb[84].mxu1 %v8937_v26  ;;  %v8963_v26 = vshrl.u32 %v19537_v51, 16  ;;  %v8975_v51 = vshrl.u32 %v19557_v25, 16 }
 0x79d   :  { %11651 = vmatprep.mubr.bf16.mxu1 %v9344_v23 }
 0x79e   :  { %v8968_v23 = vor.u32 %v8967_v11, %v8963_v26  ;;  %v8980_v61 = vor.u32 %v8979_v40, %v8975_v51  ;;  %v8996_v11 = vrot.slane %v8994_v7, 1  ;;  %v15745_v51 = vld [vmem:[#allocation2 + $0x110] ss:$0 sps:$4 sm:$0x11]  }
 0x7a0   :  { %v8973_v18 = vsel %vm710_vm0, %v8968_v23, %v8972_v37  ;;  %v8985_v48 = vsel %vm710_vm0, %v8980_v61, %v8984_v13  ;;  %v9006_v23 = vshll.u32 %v15742_v30, 16  ;;  %v9360_v37 = vrot.slane %v13529_v15, 1  ;;  %v7437_v13 = vld [vmem:[#allocation2 + $0x114] sm:$0xe] }
 0x7a1   :  { %v9049_v15 = vshll.u32 %v19602_v41, 16 }
 0x7a2   :  { %v9008_v49 = vrot.slane %v9006_v23, 1  ;;  %v9044_v23 = vrot.slane %v9042_v17, 1 }
 0x7a4   :  { %11652 = vmatmul.mubr.bf16.gmra.mrb[88].mxu1 %v8949_v63  ;;  %v8989_v63 = vshll.u32 %v19568_v24, 16  ;;  %v19837_v24 = vld [vmem:[%s20510_s3 + $0x200] sm:$0xff]   ;;  %v9009_v40 = vsel %vm710_vm0, %v9004_v6, %v9008_v49  ;;  %v15750_v49 = vld [vmem:[#allocation2 + $0x134] ss:$0 sps:$4 sm:$0x11]  }
 0x7a5   :  { %11659 = vmatprep.mubr.bf16.mxu1 %v9347_v45  ;;  %v9355_v45 = vrot.slane %v15741_v52, 1  ;;  %13816 = vmatprep.subr.bf16.mxu1 %v19837_v24  ;;  %v9362_v52 = vsel %vm1223_vm1, %v9360_v37, %v9361_v21  ;;  %v9051_v37 = vrot.slane %v9049_v15, 1  ;;  %v9097_v15 = vshll.u32 %v19631_v55, 16 }
 0x7a6   :  { %v8991_v34 = vrot.slane %v8989_v63, 1  ;;  %v9016_v63 = vor.u32 %v9015_v5, %v9011_v44  ;;  %v7440_v44 = vld [vmem:[#allocation2 + $0x138] sm:$0xe] }
 0x7a7   :  { %v9356_v25 = vsel %vm1223_vm1, %v9354_v22, %v9355_v45  ;;  %v9364_v22 = vrot.slane %v15745_v51, 1  ;;  %v9020_v45 = vrot.slane %v9018_v62, 1 }
 0x7a8   :  { %v8992_v20 = vor.u32 %v8991_v34, %v8987_v53 }
 0x7a9   :  { %v9021_v56 = vsel %vm710_vm0, %v9016_v63, %v9020_v45  ;;  %v9073_v45 = vshll.u32 %v19617_v2, 16 }
 0x7ac   :  { %11660 = vmatmul.mubr.bf16.gmra.mrb[92].mxu1 %v8961_v60  ;;  %v9358_v60 = vrot.slane %v15742_v30, 1  ;;  %v9037_v30 = vshll.u32 %v19595_v16, 16  ;;  %v9047_v16 = vshrl.u32 %v19602_v41, 16  ;;  %v9059_v41 = vshrl.u32 %v19609_v14, 16 }
 0x7ad   :  { %11667 = vmatprep.mubr.bf16.mxu1 %v9350_v38  ;;  %v8997_v38 = vsel %vm710_vm0, %v8992_v20, %v8996_v11 }
 0x7ae   :  { %v9359_v26 = vsel %vm1223_vm1, %v9357_v58, %v9358_v60  ;;  %v7438_v58 = vld [vmem:[#allocation2 + $0x120] sm:$0xe]  ;;  %v9039_v11 = vrot.slane %v9037_v30, 1  ;;  %v9052_v5 = vor.u32 %v9051_v37, %v9047_v16  ;;  %v15753_v30 = vld [vmem:[#allocation2 + $0x14c] ss:$0 sps:$4 sm:$0x11]  }
 0x7af   :  { %v9090_v17 = vshll.u32 %v15753_v30, 16  ;;  %v9099_v37 = vrot.slane %v9097_v15, 1  ;;  %v9109_v16 = vshll.u32 %v19638_v46, 16 }
 0x7b4   :  { %11668 = vmatmul.mubr.bf16.gmra.mrb[96].mxu1 %v8973_v18  ;;  %v7436_v18 = vld [vmem:[#allocation2 + $0x108] sm:$0xe] }
 0x7b5   :  { %11675 = vmatprep.mubr.bf16.mxu1 %v9353_v12  ;;  %v13530_v12 = vcombine.low %v7436_v18, %v19585_v10  ;;  %v13531_v10 = vcombine.low %v7437_v13, %v19592_v27  ;;  %v13532_v27 = vcombine.low %v7438_v58, %v19599_v32  ;;  %v13533_v32 = vcombine.low %v7439_v3, %v19606_v8  ;;  %v7443_v3 = vld [vmem:[#allocation2 + $0x15c] sm:$0xe] }
 0x7b6   :  { %v13534_v8 = vcombine.low %v7440_v44, %v19613_v47  ;;  %v9379_v58 = vrot.slane %v15753_v30, 1  ;;  %v9111_v44 = vrot.slane %v9109_v16, 1 }
 0x7b7   :  { %v9363_v61 = vrot.slane %v13530_v12, 1  ;;  %v9366_v7 = vrot.slane %v13531_v10, 1  ;;  %v9369_v59 = vrot.slane %v13532_v27, 1  ;;  %v9372_v12 = vrot.slane %v13533_v32, 1 }
 0x7b9   :  { %v9365_v34 = vsel %vm1223_vm1, %v9363_v61, %v9364_v22  ;;  %v9368_v9 = vsel %vm1223_vm1, %v9366_v7, %v9367_v42  ;;  %v15751_v61 = vld [vmem:[#allocation2 + $0x140] ss:$0 sps:$4 sm:$0x11]   ;;  %v9066_v22 = vshll.u32 %v15750_v49, 16  ;;  %v9085_v7 = vshll.u32 %v19624_v0, 16 }
 0x7bb   :  { %v9068_v10 = vrot.slane %v9066_v22, 1 }
 0x7bc   :  { %11676 = vmatmul.mubr.bf16.gmra.mrb[100].mxu1 %v8985_v48  ;;  %v9027_v48 = vrot.slane %v9025_v57, 1 }
 0x7bd   :  { %11683 = vmatprep.mubr.bf16.mxu1 %v9356_v25  ;;  %v9030_v25 = vshll.u32 %v15745_v51, 16 }
 0x7be   :  { %v9028_v53 = vor.u32 %v9027_v48, %v9023_v1  ;;  %v9376_v48 = vrot.slane %v15751_v61, 1  ;;  %v9075_v1 = vrot.slane %v9073_v45, 1 }
 0x7bf   :  { %v9032_v20 = vrot.slane %v9030_v25, 1 }
 0x7c1   :  { %v9033_v60 = vsel %vm710_vm0, %v9028_v53, %v9032_v20  ;;  %v9078_v53 = vshll.u32 %v15751_v61, 16 }
 0x7c4   :  { %11684 = vmatmul.mubr.bf16.gmra.mrb[104].mxu1 %v8997_v38  ;;  %v15748_v38 = vld [vmem:[#allocation2 + $0x128] ss:$0 sps:$4 sm:$0x11]  }
 0x7c5   :  { %11691 = vmatprep.mubr.bf16.mxu1 %v9359_v26  ;;  %v9040_v26 = vor.u32 %v9039_v11, %v9035_v43  ;;  %v9370_v33 = vrot.slane %v15748_v38, 1  ;;  %v9054_v18 = vshll.u32 %v15748_v38, 16  ;;  %v7442_v11 = vld [vmem:[#allocation2 + $0x150] sm:$0xe] }
 0x7c6   :  { %v15754_v43 = vld [vmem:[#allocation2 + $0x158] ss:$0 sps:$4 sm:$0x11]  }
 0x7c7   :  { %v9045_v6 = vsel %vm710_vm0, %v9040_v26, %v9044_v23  ;;  %v9371_v21 = vsel %vm1223_vm1, %v9369_v59, %v9370_v33  ;;  %v9056_v51 = vrot.slane %v9054_v18, 1  ;;  %v9382_v33 = vrot.slane %v15754_v43, 1 }
 0x7c8   :  { %v9092_v23 = vrot.slane %v9090_v17, 1 }
 0x7c9   :  { %v9057_v62 = vsel %vm710_vm0, %v9052_v5, %v9056_v51 }
 0x7cc   :  { %11692 = vmatmul.mubr.bf16.gmra.mrb[108].mxu1 %v9009_v40  ;;  %v9061_v40 = vshll.u32 %v19609_v14, 16  ;;  %v9071_v14 = vshrl.u32 %v19617_v2, 16  ;;  %v9083_v2 = vshrl.u32 %v19624_v0, 16  ;;  %v9095_v0 = vshrl.u32 %v19631_v55, 16 }
 0x7cd   :  { %11699 = vmatprep.mubr.bf16.mxu1 %v9362_v52  ;;  %v9373_v52 = vrot.slane %v15750_v49, 1  ;;  %v9102_v49 = vshll.u32 %v15754_v43, 16  ;;  %v9107_v55 = vshrl.u32 %v19638_v46, 16  ;;  %v9119_v46 = vshrl.u32 %v19646_v29, 16 }
 0x7ce   :  { %v9063_v57 = vrot.slane %v9061_v40, 1  ;;  %v9076_v42 = vor.u32 %v9075_v1, %v9071_v14  ;;  %v9100_v18 = vor.u32 %v9099_v37, %v9095_v0  ;;  %v9133_v1 = vshll.u32 %v19655_v4, 16  ;;  %v19901_v0 = vld [vmem:[#allocation2 + $0x1c] sm:$0xf] }
 0x7cf   :  { %v9374_v63 = vsel %vm1223_vm1, %v9372_v12, %v9373_v52  ;;  %v9104_v12 = vrot.slane %v9102_v49, 1  ;;  %v7444_v52 = vld [vmem:[#allocation2 + $0x168] sm:$0xe]  ;;  %v9112_v61 = vor.u32 %v9111_v44, %v9107_v55  ;;  %v7448_v49 = vld [vmem:[#allocation2 + $0x198] sm:$0xe] }
 0x7d0   :  { %v9064_v13 = vor.u32 %v9063_v57, %v9059_v41  ;;  %v15757_v57 = vld [vmem:[#allocation2 + $0x170] ss:$0 sps:$4 sm:$0x11]  }
 0x7d1   :  { %v9105_v51 = vsel %vm710_vm0, %v9100_v18, %v9104_v12  ;;  %v9388_v22 = vrot.slane %v15757_v57, 1 }
 0x7d2   :  { %v9069_v54 = vsel %vm710_vm0, %v9064_v13, %v9068_v10  ;;  %v7445_v13 = vld [vmem:[#allocation2 + $0x174] sm:$0xe] }
 0x7d4   :  { %11700 = vmatmul.mubr.bf16.gmra.mrb[112].mxu1 %v9021_v56  ;;  %v9375_v56 = vrot.slane %v13534_v8, 1 }
 0x7d5   :  { %11707 = vmatprep.mubr.bf16.mxu1 %v9365_v34  ;;  %v7441_v34 = vld [vmem:[#allocation2 + $0x144] sm:$0xe] }
 0x7d6   :  { %v13535_v47 = vcombine.low %v7441_v34, %v19620_v39  ;;  %v9377_v25 = vsel %vm1223_vm1, %v9375_v56, %v9376_v48  ;;  %v13536_v39 = vcombine.low %v7442_v11, %v19627_v19  ;;  %v13537_v19 = vcombine.low %v7443_v3, %v19634_v31  ;;  %v15759_v34 = vld [vmem:[#allocation2 + $0x17c] ss:$0 sps:$4 sm:$0x11]   ;;  %v20742_v3 = vld [vmem:[#allocation107_spill] sm:$0xff] }
 0x7d7   :  { %v13538_v31 = vcombine.low %v7444_v52, %v19642_v35  ;;  %v13539_v35 = vcombine.low %v7445_v13, %v19651_v28  ;;  %v9391_v30 = vrot.slane %v15759_v34, 1  ;;  %v20741_v11 = vld [vmem:[#allocation106_spill] sm:$0xff] }
 0x7d8   :  { %v9378_v20 = vrot.slane %v13535_v47, 1  ;;  %v9381_v59 = vrot.slane %v13536_v39, 1  ;;  %v9384_v40 = vrot.slane %v13537_v19, 1 }
 0x7d9   :  { %v9387_v41 = vrot.slane %v13538_v31, 1  ;;  %v9155_v31 = vshrl.u32 %v20742_v3, 16 }
 0x7da   :  { %v9380_v38 = vsel %vm1223_vm1, %v9378_v20, %v9379_v58  ;;  %v9383_v32 = vsel %vm1223_vm1, %v9381_v59, %v9382_v33  ;;  %v15760_v58 = vld [vmem:[#allocation2 + $0x188] ss:$0 sps:$4 sm:$0x11]   ;;  %v15762_v33 = vld [vmem:[#allocation2 + $0x194] ss:$0 sps:$4 sm:$0x11]  }
 0x7db   :  { %v9389_v10 = vsel %vm1223_vm1, %v9387_v41, %v9388_v22  ;;  %v19908_v22 = vld [vmem:[#allocation2 + $0x28] sm:$0xf] }
 0x7dc   :  { %11708 = vmatmul.mubr.bf16.gmra.mrb[116].mxu1 %v9033_v60  ;;  %v9080_v60 = vrot.slane %v9078_v53, 1  ;;  %v7446_v53 = vld [vmem:[#allocation2 + $0x180] sm:$0xe] }
 0x7dd   :  { %11715 = vmatprep.mubr.bf16.mxu1 %v9368_v9  ;;  %v9087_v9 = vrot.slane %v9085_v7, 1  ;;  %v13540_v28 = vcombine.low %v7446_v53, %v19660_v50 }
 0x7de   :  { %v9081_v27 = vsel %vm710_vm0, %v9076_v42, %v9080_v60  ;;  %v9135_v42 = vrot.slane %v9133_v1, 1  ;;  %v9138_v60 = vshll.u32 %v15759_v34, 16 }
 0x7df   :  { %v9088_v26 = vor.u32 %v9087_v9, %v9083_v2  ;;  %v9393_v39 = vrot.slane %v13540_v28, 1  ;;  %v7447_v2 = vld [vmem:[#allocation2 + $0x18c] sm:$0xe]  ;;  %v19919_v28 = vld [vmem:[#allocation2 + $0x2c] ss:$0 sps:$4 sm:$0x11]  }
 0x7e0   :  { %v9140_v43 = vrot.slane %v9138_v60, 1 }
 0x7e4   :  { %11716 = vmatmul.mubr.bf16.gmra.mrb[120].mxu1 %v9045_v6  ;;  %v9093_v6 = vsel %vm710_vm0, %v9088_v26, %v9092_v23  ;;  %v15979_v26 = vld [vmem:[#allocation2 + $0x190] sm:$0xf]  ;;  %v9150_v23 = vshll.u32 %v15760_v58, 16 }
 0x7e5   :  { %11723 = vmatprep.mubr.bf16.mxu1 %v9371_v21  ;;  %v15756_v21 = vld [vmem:[#allocation2 + $0x164] ss:$0 sps:$4 sm:$0x11]   ;;  %v13541_v50 = vcombine.low %v7447_v2, %v15979_v26  ;;  %v19927_v2 = vld [vmem:[#allocation2 + $0x38] ss:$0 sps:$4 sm:$0x11]  }
 0x7e6   :  { %v9385_v5 = vrot.slane %v15756_v21, 1  ;;  %v9114_v8 = vshll.u32 %v15756_v21, 16  ;;  %v9152_v21 = vrot.slane %v9150_v23, 1  ;;  %v15785_v23 = vld [vmem:[%s20510_s3 + $0x210] sm:$0xff]  }
 0x7e7   :  { %v9396_v19 = vrot.slane %v13541_v50, 1 }
 0x7e8   :  { %v9116_v45 = vrot.slane %v9114_v8, 1 }
 0x7ea   :  { %v9117_v56 = vsel %vm710_vm0, %v9112_v61, %v9116_v45  ;;  %v19910_v45 = vld [vmem:[#allocation2 + $0x20] ss:$0 sps:$4 sm:$0x11]  }
 0x7ec   :  { %11724 = vmatmul.mubr.bf16.gmra.mrb[124].mxu1 %v9057_v62  ;;  %v9386_v62 = vsel %vm1223_vm1, %v9384_v40, %v9385_v5  ;;  %v7450_v40 = vld [vmem:[#allocation2 + $0x18] sm:$0xf]  ;;  %v15980_v5 = vld [vmem:[#allocation2 + $0x19c] sm:$0xf] }
 0x7ed   :  { %11731 = vmatprep.mubr.bf16.mxu1 %v9374_v63  ;;  %v9121_v63 = vshll.u32 %v19646_v29, 16  ;;  %v9131_v29 = vshrl.u32 %v19655_v4, 16  ;;  %v9143_v4 = vshrl.u32 %v20741_v11, 16  ;;  %v13542_v12 = vcombine.low %v7448_v49, %v15980_v5 }
 0x7ee   :  { %v13543_v44 = vcombine.low %v7450_v40, %v19901_v0 }
 0x7ef   :  { %v9123_v48 = vrot.slane %v9121_v63, 1  ;;  %v9136_v9 = vor.u32 %v9135_v42, %v9131_v29  ;;  %v9399_v8 = vrot.slane %v13542_v12, 1  ;;  %v15803_v12 = vld [vmem:[%s20510_s3 + $0x220] sm:$0xff]  }
 0x7f0   :  { %v9725_v61 = vshll.u32 %v13543_v44, 16  ;;  %v9723_v1 = vshrl.u32 %v13543_v44, 16 }
 0x7f1   :  { %v9124_v47 = vor.u32 %v9123_v48, %v9119_v46  ;;  %v9141_v17 = vsel %vm710_vm0, %v9136_v9, %v9140_v43  ;;  %v7452_v48 = vld [vmem:[#allocation2 + $0x24] sm:$0xf]  ;;  %v9167_v46 = vshrl.u32 %v19676_v36, 16 }
 0x7f2   :  { %v13544_v34 = vcombine.low %v7452_v48, %v19908_v22 }
 0x7f4   :  { %11732 = vmatmul.mubr.bf16.gmra.mrb[128].mxu1 %v9069_v54  ;;  %v9126_v54 = vshll.u32 %v15757_v57, 16  ;;  %v9169_v57 = vshll.u32 %v19676_v36, 16 }
 0x7f5   :  { %11739 = vmatprep.mubr.bf16.mxu1 %v9377_v25  ;;  %v9390_v25 = vrot.slane %v13539_v35, 1 }
 0x7f6   :  { %v9128_v14 = vrot.slane %v9126_v54, 1 }
 0x7f7   :  { %v9392_v20 = vsel %vm1223_vm1, %v9390_v25, %v9391_v30 }
 0x7f8   :  { %v9129_v7 = vsel %vm710_vm0, %v9124_v47, %v9128_v14  ;;  %v9730_v47 = vshll.u32 %v19910_v45, 16  ;;  %v9737_v14 = vshll.u32 %v13544_v34, 16 }
 0x7fa   :  { %v9732_v42 = vrot.slane %v9730_v47, 1  ;;  %v9739_v36 = vrot.slane %v9737_v14, 1  ;;  %v15983_v47 = vld [vmem:[#allocation2 + $0x5c] ss:$0 sps:$4 sm:$0x11]  }
 0x7fc   :  { %11740 = vmatmul.mubr.bf16.gmra.mrb[132].mxu1 %v9081_v27  ;;  %v9145_v27 = vshll.u32 %v20741_v11, 16  ;;  %v9735_v11 = vshrl.u32 %v13544_v34, 16 }
 0x7fd   :  { %11747 = vmatprep.mubr.bf16.mxu1 %v9380_v38  ;;  %v9394_v38 = vrot.slane %v15760_v58, 1  ;;  %v7454_v58 = vld [vmem:[#allocation2 + $0x30] sm:$0xf] }
 0x7fe   :  { %v9147_v15 = vrot.slane %v9145_v27, 1  ;;  %v9742_v27 = vshll.u32 %v19919_v28, 16  ;;  %v9740_v9 = vor.u32 %v9739_v36, %v9735_v11 }
 0x7ff   :  { %v9395_v59 = vsel %vm1223_vm1, %v9393_v39, %v9394_v38  ;;  %v19925_v38 = vld [vmem:[#allocation2 + $0x40] sm:$0xf] }
 0x800   :  { %v9148_v37 = vor.u32 %v9147_v15, %v9143_v4  ;;  %v9744_v43 = vrot.slane %v9742_v27, 1  ;;  %v7456_v15 = vld [vmem:[#allocation2 + $0x3c] sm:$0xf]  ;;  %v9754_v4 = vshll.u32 %v19927_v2, 16 }
 0x801   :  { %v15984_v27 = vld [vmem:[#allocation2 + $0x68] ss:$0 sps:$4 sm:$0x11]  }
 0x802   :  { %v9153_v16 = vsel %vm710_vm0, %v9148_v37, %v9152_v21  ;;  %v9745_v26 = vsel %vm710_vm0, %v9740_v9, %v9744_v43  ;;  %v19939_v37 = vld [vmem:[#allocation2 + $0x4c] sm:$0xf]  ;;  %v7458_v21 = vld [vmem:[#allocation2 + $0x48] sm:$0xf]  ;;  %v9802_v9 = vshll.u32 %v15984_v27, 16 }
 0x804   :  { %11748 = vmatmul.mubr.bf16.gmra.mrb[136].mxu1 %v9093_v6  ;;  %v9157_v6 = vshll.u32 %v20742_v3, 16 }
 0x805   :  { %11755 = vmatprep.mubr.bf16.mxu1 %v9383_v32  ;;  %v9397_v32 = vrot.slane %v15762_v33, 1 }
 0x806   :  { %v9159_v18 = vrot.slane %v9157_v6, 1 }
 0x807   :  { %v9398_v52 = vsel %vm1223_vm1, %v9396_v19, %v9397_v32  ;;  %v9756_v19 = vrot.slane %v9754_v4, 1  ;;  %v19941_v32 = vld [vmem:[#allocation2 + $0x44] ss:$0 sps:$4 sm:$0x11]  }
 0x808   :  { %v9160_v55 = vor.u32 %v9159_v18, %v9155_v31  ;;  %v13547_v18 = vcombine.low %v7458_v21, %v19939_v37  ;;  %v9766_v5 = vshll.u32 %v19941_v32, 16  ;;  %v19952_v31 = vld [vmem:[#allocation2 + $0x50] ss:$0 sps:$4 sm:$0x11]   ;;  %v7468_v21 = vld [vmem:[#allocation2 + $0x84] sm:$0xf] }
 0x80c   :  { %11756 = vmatmul.mubr.bf16.gmra.mrb[140].mxu1 %v9105_v51  ;;  %v15763_v51 = vld [vmem:[#allocation2 + $0x1a0] ss:$0 sps:$4 sm:$0x11]  }
 0x80d   :  { %11763 = vmatprep.mubr.bf16.mxu1 %v9386_v62  ;;  %v9162_v62 = vshll.u32 %v15762_v33, 16  ;;  %v9400_v63 = vrot.slane %v15763_v51, 1  ;;  %v9174_v54 = vshll.u32 %v15763_v51, 16  ;;  %v9773_v51 = vshll.u32 %v13547_v18, 16 }
 0x80f   :  { %v9164_v41 = vrot.slane %v9162_v62, 1  ;;  %v9401_v35 = vsel %vm1223_vm1, %v9399_v8, %v9400_v63  ;;  %v9176_v53 = vrot.slane %v9174_v54, 1  ;;  %v7460_v62 = vld [vmem:[#allocation2 + $0x54] sm:$0xf]  ;;  %v15981_v8 = vld [vmem:[#allocation2 + $0x58] sm:$0xf] }
 0x810   :  { %v13548_v63 = vcombine.low %v7460_v62, %v15981_v8 }
 0x811   :  { %v9165_v13 = vsel %vm710_vm0, %v9160_v55, %v9164_v41  ;;  %v9775_v55 = vrot.slane %v9773_v51, 1  ;;  %v9778_v41 = vshll.u32 %v19952_v31, 16 }
 0x813   :  { %v9780_v48 = vrot.slane %v9778_v41, 1 }
 0x814   :  { %11764 = vmatmul.mubr.bf16.gmra.mrb[144].mxu1 %v9117_v56  ;;  %v9171_v56 = vrot.slane %v9169_v57, 1 }
 0x815   :  { %11771 = vmatprep.mubr.bf16.mxu1 %v9389_v10  ;;  %v9727_v10 = vrot.slane %v9725_v61, 1  ;;  %v9771_v61 = vshrl.u32 %v13547_v18, 16 }
 0x816   :  { %v9172_v25 = vor.u32 %v9171_v56, %v9167_v46  ;;  %v9785_v56 = vshll.u32 %v13548_v63, 16  ;;  %v15982_v46 = vld [vmem:[#allocation2 + $0x64] sm:$0xf] }
 0x817   :  { %v9728_v30 = vor.u32 %v9727_v10, %v9723_v1  ;;  %v9783_v1 = vshrl.u32 %v13548_v63, 16 }
 0x819   :  { %v9733_v29 = vsel %vm710_vm0, %v9728_v30, %v9732_v42 }
 0x81c   :  { %11772 = vmatmul.mubr.bf16.gmra.mrb[148].mxu1 %v9129_v7  ;;  %v19917_v7 = vld [vmem:[#allocation2 + $0x34] sm:$0xf] }
 0x81d   :  { %11779 = vmatprep.mubr.bf16.mxu1 %v9392_v20  ;;  %v9177_v20 = vsel %vm710_vm0, %v9172_v25, %v9176_v53  ;;  %v13545_v60 = vcombine.low %v7454_v58, %v19917_v7  ;;  %v9790_v25 = vshll.u32 %v15983_v47, 16  ;;  %v19957_v53 = vld [vmem:[#allocation2 + $0x70] sm:$0xf] }
 0x81f   :  { %v9749_v39 = vshll.u32 %v13545_v60, 16  ;;  %v9747_v33 = vshrl.u32 %v13545_v60, 16  ;;  %v9792_v42 = vrot.slane %v9790_v25, 1  ;;  %v15821_v25 = vld [vmem:[%s20510_s3 + $0x230] sm:$0xff]  }
 0x821   :  { %v9751_v50 = vrot.slane %v9749_v39, 1 }
 0x823   :  { %v9752_v3 = vor.u32 %v9751_v50, %v9747_v33  ;;  %v15985_v33 = vld [vmem:[#allocation2 + $0x7c] sm:$0xf] }
 0x824   :  { %11780 = vmatmul.mubr.bf16.gmra.mrb[152].mxu1 %v9141_v17  ;;  %v15776_v17 = vld [vmem:[%s20510_s3 + $0x208] sm:$0xff]  }
 0x825   :  { %11787 = vmatprep.mubr.bf16.mxu1 %v9395_v59  ;;  %v13546_v59 = vcombine.low %v7456_v15, %v19925_v38  ;;  %v9757_v49 = vsel %vm710_vm0, %v9752_v3, %v9756_v19  ;;  %v19964_v15 = vld [vmem:[#allocation2 + $0x74] ss:$0 sps:$4 sm:$0x11]  }
 0x826   :  { %v9814_v3 = vshll.u32 %v19964_v15, 16 }
 0x827   :  { %v9761_v6 = vshll.u32 %v13546_v59, 16  ;;  %v9759_v40 = vshrl.u32 %v13546_v59, 16 }
 0x82c   :  { %11788 = vmatmul.mubr.bf16.gmra.mrb[156].mxu1 %v9153_v16  ;;  %v9763_v16 = vrot.slane %v9761_v6, 1 }
 0x82d   :  { %11795 = vmatprep.mubr.bf16.mxu1 %v9398_v52 }
 0x82e   :  { %v9764_v52 = vor.u32 %v9763_v16, %v9759_v40 }
 0x834   :  { %11796 = vmatmul.mubr.bf16.gmra.mrb[160].mxu1 %v9165_v13  ;;  %v9776_v13 = vor.u32 %v9775_v55, %v9771_v61 }
 0x835   :  { %11803 = vmatprep.mubr.bf16.mxu1 %v9401_v35  ;;  %v7462_v35 = vld [vmem:[#allocation2 + $0x60] sm:$0xf] }
 0x836   :  { %v9781_v10 = vsel %vm710_vm0, %v9776_v13, %v9780_v48  ;;  %v13549_v54 = vcombine.low %v7462_v35, %v15982_v46  ;;  %v15989_v13 = vld [vmem:[#allocation2 + $0x8c] ss:$0 sps:$4 sm:$0x11]  }
 0x838   :  { %v9797_v14 = vshll.u32 %v13549_v54, 16  ;;  %v9795_v11 = vshrl.u32 %v13549_v54, 16 }
 0x83c   :  { %11804 = vmatmul.mubr.bf16.gmra.mrb[164].mxu1 %v9177_v20  ;;  %v7464_v20 = vld [vmem:[#allocation2 + $0x6c] sm:$0xf] }
 0x83d   :  { %11844 = vmatprep.mubr.bf16.mxu1 %v9733_v29  ;;  %v9799_v29 = vrot.slane %v9797_v14, 1  ;;  %v13550_v36 = vcombine.low %v7464_v20, %v19957_v53  ;;  %v15991_v14 = vld [vmem:[#allocation2 + $0x98] ss:$0 sps:$4 sm:$0x11]  }
 0x83f   :  { %v9800_v39 = vor.u32 %v9799_v29, %v9795_v11  ;;  %v9809_v43 = vshll.u32 %v13550_v36, 16  ;;  %v19974_v29 = vld [vmem:[#allocation2 + $0xac] sm:$0xf] }
 0x844   :  { %11845 = vmatmul.mubr.bf16.vlgmr.msra.gmra.mrb[40].mxu1 %v13543_v44  ;;  %v9768_v44 = vrot.slane %v9766_v5, 1 }
 0x845   :  { %11852 = vmatprep.mubr.bf16.mxu1 %v9745_v26  ;;  %13817 = vmatpush3.bf16.msra.mxu1 %v19837_v24  ;;  %v15794_v24 = vld [vmem:[%s20510_s3 + $0x218] sm:$0xff]  }
 0x846   :  { %13818 = vmatprep.subr.bf16.mxu1 %v15776_v17  ;;  %v9769_v57 = vsel %vm710_vm0, %v9764_v52, %v9768_v44  ;;  %v7466_v26 = vld [vmem:[#allocation2 + $0x78] sm:$0xf] }
 0x847   :  { %v13551_v4 = vcombine.low %v7466_v26, %v15985_v33 }
 0x849   :  { %13819 = vmatpush3.bf16.msra.mxu1 %v15776_v17  ;;  %v9804_v17 = vrot.slane %v9802_v9, 1  ;;  %v9821_v19 = vshll.u32 %v13551_v4, 16  ;;  %v9819_v5 = vshrl.u32 %v13551_v4, 16 }
 0x84a   :  { %13820 = vmatprep.subr.bf16.mxu1 %v15785_v23 }
 0x84b   :  { %v9805_v50 = vsel %vm710_vm0, %v9800_v39, %v9804_v17  ;;  %v9823_v16 = vrot.slane %v9821_v19, 1 }
 0x84c   :  { %11853 = vmatmul.mubr.bf16.gmra.mrb[44].mxu1 %v13544_v34  ;;  %v9787_v34 = vrot.slane %v9785_v56, 1  ;;  %v9838_v56 = vshll.u32 %v15989_v13, 16  ;;  %v19994_v13 = vld [vmem:[#allocation2 + $0xc8] ss:$0 sps:$4 sm:$0x11]  }
 0x84d   :  { %11860 = vmatprep.mubr.bf16.mxu1 %v9757_v49  ;;  %13821 = vmatpush3.bf16.msra.mxu1 %v15785_v23  ;;  %v9807_v23 = vshrl.u32 %v13550_v36, 16  ;;  %v9824_v51 = vor.u32 %v9823_v16, %v9819_v5  ;;  %v19987_v5 = vld [vmem:[#allocation2 + $0xbc] ss:$0 sps:$4 sm:$0x11]  }
 0x84e   :  { %13822 = vmatprep.subr.bf16.mxu1 %v15794_v24  ;;  %v9788_v30 = vor.u32 %v9787_v34, %v9783_v1  ;;  %v7472_v34 = vld [vmem:[#allocation2 + $0x9c] sm:$0xf]  ;;  %v15990_v1 = vld [vmem:[#allocation2 + $0xa0] sm:$0xf] }
 0x84f   :  { %v13554_v47 = vcombine.low %v7472_v34, %v15990_v1 }
 0x850   :  { %v9793_v58 = vsel %vm710_vm0, %v9788_v30, %v9792_v42  ;;  %v9850_v42 = vshll.u32 %v15991_v14, 16 }
 0x851   :  { %13823 = vmatpush3.bf16.msra.mxu1 %v15794_v24  ;;  %v9816_v24 = vrot.slane %v9814_v3, 1  ;;  %v9855_v39 = vshrl.u32 %v13554_v47, 16 }
 0x852   :  { %13824 = vmatprep.subr.bf16.mxu1 %v15803_v12 }
 0x854   :  { %11861 = vmatmul.mubr.bf16.gmra.mrb[48].mxu1 %v13545_v60  ;;  %v15812_v60 = vld [vmem:[%s20510_s3 + $0x228] sm:$0xff]  }
 0x855   :  { %11868 = vmatprep.mubr.bf16.mxu1 %v9769_v57  ;;  %13825 = vmatpush3.bf16.msra.mxu1 %v15803_v12  ;;  %v15987_v12 = vld [vmem:[#allocation2 + $0x80] ss:$0 sps:$4 sm:$0x11]   ;;  %v7470_v57 = vld [vmem:[#allocation2 + $0x90] sm:$0xf] }
 0x856   :  { %13826 = vmatprep.subr.bf16.mxu1 %v15812_v60  ;;  %v9826_v52 = vshll.u32 %v15987_v12, 16  ;;  %v7478_v12 = vld [vmem:[#allocation2 + $0xc0] sm:$0xf] }
 0x858   :  { %v9828_v62 = vrot.slane %v9826_v52, 1 }
 0x859   :  { %13827 = vmatpush3.bf16.msra.mxu1 %v15812_v60  ;;  %v7474_v60 = vld [vmem:[#allocation2 + $0xa8] sm:$0xf] }
 0x85a   :  { %v9829_v55 = vsel %vm710_vm0, %v9824_v51, %v9828_v62  ;;  %13828 = vmatprep.subr.bf16.mxu1 %v15821_v25  ;;  %v13555_v9 = vcombine.low %v7474_v60, %v19974_v29 }
 0x85c   :  { %11869 = vmatmul.mubr.bf16.gmra.mrb[52].mxu1 %v13546_v59  ;;  %v9811_v59 = vrot.slane %v9809_v43, 1  ;;  %v15992_v43 = vld [vmem:[#allocation2 + $0xa4] ss:$0 sps:$4 sm:$0x11]  }
 0x85d   :  { %11876 = vmatprep.mubr.bf16.mxu1 %v9781_v10  ;;  %v9840_v10 = vrot.slane %v9838_v56, 1  ;;  %13829 = vmatpush3.bf16.msra.mxu1 %v15821_v25  ;;  %v9862_v17 = vshll.u32 %v15992_v43, 16  ;;  %v20004_v25 = vld [vmem:[#allocation2 + $0xf4] sm:$0xf] }
 0x85e   :  { %v9812_v6 = vor.u32 %v9811_v59, %v9807_v23  ;;  %v19978_v59 = vld [vmem:[#allocation2 + $0xb8] sm:$0xf]  ;;  %v7476_v23 = vld [vmem:[#allocation2 + $0xb4] sm:$0xf] }
 0x85f   :  { %v9864_v33 = vrot.slane %v9862_v17, 1  ;;  %v13556_v19 = vcombine.low %v7476_v23, %v19978_v59  ;;  %v20012_v17 = vld [vmem:[#allocation2 + $0xf8] ss:$0 sps:$4 sm:$0x11]  }
 0x860   :  { %v9817_v49 = vsel %vm710_vm0, %v9812_v6, %v9816_v24  ;;  %v9867_v24 = vshrl.u32 %v13555_v9, 16 }
 0x861   :  { %v9881_v16 = vshll.u32 %v13556_v19, 16  ;;  %v9879_v62 = vshrl.u32 %v13556_v19, 16 }
 0x863   :  { %v9883_v51 = vrot.slane %v9881_v16, 1  ;;  %v7486_v16 = vld [vmem:[#allocation2 + $0x108] sm:$0xf] }
 0x864   :  { %11877 = vmatmul.mubr.bf16.gmra.mrb[56].mxu1 %v13547_v18  ;;  %v15986_v18 = vld [vmem:[#allocation2 + $0x88] sm:$0xf] }
 0x865   :  { %11884 = vmatprep.mubr.bf16.mxu1 %v9793_v58  ;;  %v13552_v40 = vcombine.low %v7468_v21, %v15986_v18  ;;  %v9857_v58 = vshll.u32 %v13554_v47, 16  ;;  %v19985_v18 = vld [vmem:[#allocation2 + $0xc4] sm:$0xf] }
 0x867   :  { %v9833_v44 = vshll.u32 %v13552_v40, 16  ;;  %v9831_v41 = vshrl.u32 %v13552_v40, 16  ;;  %v9859_v27 = vrot.slane %v9857_v58, 1  ;;  %v7482_v58 = vld [vmem:[#allocation2 + $0xf0] sm:$0xf] }
 0x868   :  { %v13559_v60 = vcombine.low %v7482_v58, %v20004_v25 }
 0x869   :  { %v9835_v8 = vrot.slane %v9833_v44, 1  ;;  %v9860_v26 = vor.u32 %v9859_v27, %v9855_v39  ;;  %v13557_v44 = vcombine.low %v7478_v12, %v19985_v18  ;;  %v20009_v39 = vld [vmem:[#allocation2 + $0x100] sm:$0xf] }
 0x86a   :  { %v9915_v23 = vshrl.u32 %v13559_v60, 16 }
 0x86b   :  { %v9836_v48 = vor.u32 %v9835_v8, %v9831_v41  ;;  %v9865_v3 = vsel %vm710_vm0, %v9860_v26, %v9864_v33  ;;  %v19992_v8 = vld [vmem:[#allocation2 + $0xd0] sm:$0xf]  ;;  %v9891_v34 = vshrl.u32 %v13557_v44, 16  ;;  %v7484_v26 = vld [vmem:[#allocation2 + $0xfc] sm:$0xf] }
 0x86c   :  { %11885 = vmatmul.mubr.bf16.gmra.mrb[60].mxu1 %v13548_v63  ;;  %v15988_v63 = vld [vmem:[#allocation2 + $0x94] sm:$0xf]  ;;  %v13560_v33 = vcombine.low %v7484_v26, %v20009_v39  ;;  %v20037_v26 = vld [vmem:[#allocation2 + $0x128] ss:$0 sps:$4 sm:$0x11]  }
 0x86d   :  { %11892 = vmatprep.mubr.bf16.mxu1 %v9805_v50  ;;  %v13553_v61 = vcombine.low %v7470_v57, %v15988_v63  ;;  %v9841_v46 = vsel %vm710_vm0, %v9836_v48, %v9840_v10  ;;  %v9869_v50 = vshll.u32 %v13555_v9, 16  ;;  %v9886_v57 = vshll.u32 %v19987_v5, 16  ;;  %v15830_v10 = vld [vmem:[%s20510_s3 + $0x238] sm:$0xff]  }
 0x86e   :  { %v9884_v63 = vor.u32 %v9883_v51, %v9879_v62  ;;  %13830 = vmatprep.subr.bf16.mxu1 %v15830_v10  ;;  %v9927_v51 = vshrl.u32 %v13560_v33, 16 }
 0x86f   :  { %v9845_v35 = vshll.u32 %v13553_v61, 16  ;;  %v9843_v30 = vshrl.u32 %v13553_v61, 16  ;;  %v9871_v6 = vrot.slane %v9869_v50, 1  ;;  %v9888_v41 = vrot.slane %v9886_v57, 1  ;;  %13831 = vmatpush3.bf16.msra.mxu1 %v15830_v10 }
 0x871   :  { %v9889_v48 = vsel %vm710_vm0, %v9884_v63, %v9888_v41  ;;  %v7488_v41 = vld [vmem:[#allocation2 + $0x114] sm:$0xf] }
 0x874   :  { %11893 = vmatmul.mubr.bf16.gmra.mrb[64].mxu1 %v13549_v54  ;;  %v9847_v54 = vrot.slane %v9845_v35, 1 }
 0x875   :  { %11900 = vmatprep.mubr.bf16.mxu1 %v9817_v49  ;;  %v9872_v49 = vor.u32 %v9871_v6, %v9867_v24  ;;  %v20016_v24 = vld [vmem:[#allocation2 + $0x10c] sm:$0xf] }
 0x876   :  { %v9848_v20 = vor.u32 %v9847_v54, %v9843_v30  ;;  %v20002_v54 = vld [vmem:[#allocation2 + $0xd4] ss:$0 sps:$4 sm:$0x11]  }
 0x87c   :  { %11901 = vmatmul.mubr.bf16.gmra.mrb[68].mxu1 %v13550_v36  ;;  %v9852_v36 = vrot.slane %v9850_v42, 1 }
 0x87d   :  { %11908 = vmatprep.mubr.bf16.mxu1 %v9829_v55  ;;  %v7480_v55 = vld [vmem:[#allocation2 + $0xcc] sm:$0xf] }
 0x87e   :  { %v9853_v11 = vsel %vm710_vm0, %v9848_v20, %v9852_v36  ;;  %v13558_v56 = vcombine.low %v7480_v55, %v19992_v8  ;;  %v9910_v20 = vshll.u32 %v20002_v54, 16  ;;  %v20023_v55 = vld [vmem:[#allocation2 + $0x118] sm:$0xf] }
 0x880   :  { %v9905_v1 = vshll.u32 %v13558_v56, 16  ;;  %v9903_v14 = vshrl.u32 %v13558_v56, 16  ;;  %v9912_v27 = vrot.slane %v9910_v20, 1 }
 0x882   :  { %v9907_v42 = vrot.slane %v9905_v1, 1 }
 0x884   :  { %11909 = vmatmul.mubr.bf16.gmra.mrb[72].mxu1 %v13551_v4  ;;  %v19980_v4 = vld [vmem:[#allocation2 + $0xb0] ss:$0 sps:$4 sm:$0x11]  }
 0x885   :  { %11916 = vmatprep.mubr.bf16.mxu1 %v9841_v46  ;;  %v9874_v21 = vshll.u32 %v19980_v4, 16  ;;  %v9898_v46 = vshll.u32 %v19994_v13, 16 }
 0x887   :  { %v9900_v30 = vrot.slane %v9898_v46, 1 }
 0x88c   :  { %11917 = vmatmul.mubr.bf16.gmra.mrb[76].mxu1 %v13552_v40  ;;  %v9876_v40 = vrot.slane %v9874_v21, 1 }
 0x88d   :  { %11924 = vmatprep.mubr.bf16.mxu1 %v9853_v11  ;;  %v9908_v11 = vor.u32 %v9907_v42, %v9903_v14  ;;  %v20032_v14 = vld [vmem:[#allocation2 + $0x11c] ss:$0 sps:$4 sm:$0x11]   ;;  %v7490_v42 = vld [vmem:[#allocation2 + $0x120] sm:$0xf] }
 0x88e   :  { %v9877_v52 = vsel %vm710_vm0, %v9872_v49, %v9876_v40  ;;  %v20018_v49 = vld [vmem:[#allocation2 + $0x104] ss:$0 sps:$4 sm:$0x11]  }
 0x88f   :  { %v9913_v43 = vsel %vm710_vm0, %v9908_v11, %v9912_v27  ;;  %v9958_v11 = vshll.u32 %v20032_v14, 16 }
 0x894   :  { %11925 = vmatmul.mubr.bf16.gmra.mrb[80].mxu1 %v13553_v61  ;;  %v9893_v61 = vshll.u32 %v13557_v44, 16 }
 0x895   :  { %11932 = vmatprep.mubr.bf16.mxu1 %v9865_v3  ;;  %v9922_v3 = vshll.u32 %v20012_v17, 16 }
 0x896   :  { %v9895_v35 = vrot.slane %v9893_v61, 1  ;;  %v20025_v61 = vld [vmem:[#allocation2 + $0x110] ss:$0 sps:$4 sm:$0x11]  }
 0x897   :  { %v9924_v21 = vrot.slane %v9922_v3, 1 }
 0x89c   :  { %11933 = vmatmul.mubr.bf16.gmra.mrb[84].mxu1 %v13554_v47  ;;  %v9896_v47 = vor.u32 %v9895_v35, %v9891_v34  ;;  %v13562_v35 = vcombine.low %v7488_v41, %v20023_v55  ;;  %v9946_v34 = vshll.u32 %v20025_v61, 16  ;;  %v15995_v41 = vld [vmem:[#allocation2 + $0x134] ss:$0 sps:$4 sm:$0x11]  }
 0x89d   :  { %11940 = vmatprep.mubr.bf16.mxu1 %v9877_v52  ;;  %v13561_v52 = vcombine.low %v7486_v16, %v20016_v24 }
 0x89e   :  { %v9901_v36 = vsel %vm710_vm0, %v9896_v47, %v9900_v30  ;;  %v9953_v1 = vshll.u32 %v13562_v35, 16  ;;  %v20030_v47 = vld [vmem:[#allocation2 + $0x124] sm:$0xf]  ;;  %v9948_v30 = vrot.slane %v9946_v34, 1 }
 0x89f   :  { %v9941_v57 = vshll.u32 %v13561_v52, 16  ;;  %v9939_v10 = vshrl.u32 %v13561_v52, 16 }
 0x8a0   :  { %v9955_v58 = vrot.slane %v9953_v1, 1 }
 0x8a4   :  { %11941 = vmatmul.mubr.bf16.gmra.mrb[88].mxu1 %v13555_v9  ;;  %v9917_v9 = vshll.u32 %v13559_v60, 16 }
 0x8a5   :  { %11948 = vmatprep.mubr.bf16.mxu1 %v9889_v48  ;;  %v9943_v48 = vrot.slane %v9941_v57, 1  ;;  %v15994_v57 = vld [vmem:[#allocation2 + $0x13c] sm:$0xf] }
 0x8a6   :  { %v9919_v50 = vrot.slane %v9917_v9, 1 }
 0x8a7   :  { %v9944_v46 = vor.u32 %v9943_v48, %v9939_v10 }
 0x8a8   :  { %v9920_v6 = vor.u32 %v9919_v50, %v9915_v23  ;;  %v7492_v50 = vld [vmem:[#allocation2 + $0x12c] sm:$0xf] }
 0x8a9   :  { %v9949_v20 = vsel %vm710_vm0, %v9944_v46, %v9948_v30  ;;  %v7496_v46 = vld [vmem:[#allocation2 + $0x144] sm:$0xf] }
 0x8aa   :  { %v9925_v40 = vsel %vm710_vm0, %v9920_v6, %v9924_v21  ;;  %v9970_v21 = vshll.u32 %v20037_v26, 16 }
 0x8ac   :  { %11949 = vmatmul.mubr.bf16.gmra.mrb[92].mxu1 %v13556_v19  ;;  %v9929_v19 = vshll.u32 %v13560_v33, 16 }
 0x8ad   :  { %11956 = vmatprep.mubr.bf16.mxu1 %v9901_v36  ;;  %v13563_v36 = vcombine.low %v7490_v42, %v20030_v47  ;;  %v15996_v42 = vld [vmem:[#allocation2 + $0x148] sm:$0xf] }
 0x8ae   :  { %v9931_v12 = vrot.slane %v9929_v19, 1 }
 0x8af   :  { %v9965_v9 = vshll.u32 %v13563_v36, 16  ;;  %v9963_v19 = vshrl.u32 %v13563_v36, 16 }
 0x8b0   :  { %v9932_v62 = vor.u32 %v9931_v12, %v9927_v51  ;;  %v9972_v12 = vrot.slane %v9970_v21, 1  ;;  %v7494_v51 = vld [vmem:[#allocation2 + $0x138] sm:$0xf] }
 0x8b1   :  { %v9967_v3 = vrot.slane %v9965_v9, 1 }
 0x8b3   :  { %v9968_v16 = vor.u32 %v9967_v3, %v9963_v19  ;;  %v15998_v3 = vld [vmem:[#allocation2 + $0x154] sm:$0xf]  ;;  %v15999_v19 = vld [vmem:[#allocation2 + $0x14c] ss:$0 sps:$4 sm:$0x11]  }
 0x8b4   :  { %11957 = vmatmul.mubr.bf16.gmra.mrb[96].mxu1 %v13557_v44  ;;  %v9934_v44 = vshll.u32 %v20018_v49, 16  ;;  %v10006_v21 = vshll.u32 %v15999_v19, 16  ;;  %v16005_v19 = vld [vmem:[#allocation2 + $0x170] ss:$0 sps:$4 sm:$0x11]  }
 0x8b5   :  { %11964 = vmatprep.mubr.bf16.mxu1 %v9913_v43  ;;  %v9960_v43 = vrot.slane %v9958_v11, 1 }
 0x8b6   :  { %v9936_v63 = vrot.slane %v9934_v44, 1  ;;  %v9973_v44 = vsel %vm710_vm0, %v9968_v16, %v9972_v12  ;;  %v10008_v12 = vrot.slane %v10006_v21, 1  ;;  %v10042_v21 = vshll.u32 %v16005_v19, 16 }
 0x8bc   :  { %11965 = vmatmul.mubr.bf16.gmra.mrb[100].mxu1 %v13558_v56  ;;  %v9937_v56 = vsel %vm710_vm0, %v9932_v62, %v9936_v63  ;;  %v13565_v63 = vcombine.low %v7494_v51, %v15994_v57  ;;  %v7500_v51 = vld [vmem:[#allocation2 + $0x15c] sm:$0xf]  ;;  %v16000_v57 = vld [vmem:[#allocation2 + $0x160] sm:$0xf] }
 0x8bd   :  { %11972 = vmatprep.mubr.bf16.mxu1 %v9925_v40 }
 0x8be   :  { %v9989_v10 = vshll.u32 %v13565_v63, 16 }
 0x8c0   :  { %v9991_v30 = vrot.slane %v9989_v10, 1 }
 0x8c4   :  { %11973 = vmatmul.mubr.bf16.gmra.mrb[104].mxu1 %v13559_v60  ;;  %v9951_v60 = vshrl.u32 %v13562_v35, 16 }
 0x8c5   :  { %11980 = vmatprep.mubr.bf16.mxu1 %v9937_v56  ;;  %v9982_v56 = vshll.u32 %v15995_v41, 16  ;;  %v16001_v41 = vld [vmem:[#allocation2 + $0x158] ss:$0 sps:$4 sm:$0x11]  }
 0x8c6   :  { %v9956_v27 = vor.u32 %v9955_v58, %v9951_v60  ;;  %v15997_v58 = vld [vmem:[#allocation2 + $0x140] ss:$0 sps:$4 sm:$0x11]  }
 0x8c7   :  { %v9984_v34 = vrot.slane %v9982_v56, 1  ;;  %v9994_v60 = vshll.u32 %v15997_v58, 16  ;;  %v10018_v56 = vshll.u32 %v16001_v41, 16  ;;  %v16003_v58 = vld [vmem:[#allocation2 + $0x164] ss:$0 sps:$4 sm:$0x11]  }
 0x8c8   :  { %v9961_v23 = vsel %vm710_vm0, %v9956_v27, %v9960_v43  ;;  %v7498_v43 = vld [vmem:[#allocation2 + $0x150] sm:$0xf]  ;;  %v16007_v41 = vld [vmem:[#allocation2 + $0x17c] ss:$0 sps:$4 sm:$0x11]  }
 0x8c9   :  { %v9996_v9 = vrot.slane %v9994_v60, 1  ;;  %v10030_v60 = vshll.u32 %v16003_v58, 16  ;;  %v16009_v58 = vld [vmem:[#allocation2 + $0x188] ss:$0 sps:$4 sm:$0x11]  }
 0x8cc   :  { %11981 = vmatmul.mubr.bf16.gmra.mrb[108].mxu1 %v13560_v33  ;;  %v15993_v33 = vld [vmem:[#allocation2 + $0x130] sm:$0xf] }
 0x8cd   :  { %11988 = vmatprep.mubr.bf16.mxu1 %v9949_v20  ;;  %v13564_v6 = vcombine.low %v7492_v50, %v15993_v33  ;;  %v13566_v20 = vcombine.low %v7496_v46, %v15996_v42  ;;  %v13567_v33 = vcombine.low %v7498_v43, %v15998_v3  ;;  %v7502_v46 = vld [vmem:[#allocation2 + $0x168] sm:$0xf]  ;;  %v16002_v42 = vld [vmem:[#allocation2 + $0x16c] sm:$0xf]  ;;  %v7504_v43 = vld [vmem:[#allocation2 + $0x174] sm:$0xf] }
 0x8ce   :  { %v16004_v3 = vld [vmem:[#allocation2 + $0x178] sm:$0xf] }
 0x8cf   :  { %v9977_v40 = vshll.u32 %v13564_v6, 16  ;;  %v10001_v27 = vshll.u32 %v13566_v20, 16 }
 0x8d1   :  { %v9979_v62 = vrot.slane %v9977_v40, 1  ;;  %v10013_v40 = vshll.u32 %v13567_v33, 16 }
 0x8d4   :  { %11989 = vmatmul.mubr.bf16.gmra.mrb[112].mxu1 %v13561_v52  ;;  %v9975_v52 = vshrl.u32 %v13564_v6, 16 }
 0x8d5   :  { %11996 = vmatprep.mubr.bf16.mxu1 %v9961_v23  ;;  %v10003_v23 = vrot.slane %v10001_v27, 1 }
 0x8d6   :  { %v9980_v48 = vor.u32 %v9979_v62, %v9975_v52  ;;  %v10015_v62 = vrot.slane %v10013_v40, 1  ;;  %v13568_v52 = vcombine.low %v7500_v51, %v16000_v57  ;;  %v7506_v51 = vld [vmem:[#allocation2 + $0x180] sm:$0xf]  ;;  %v16006_v57 = vld [vmem:[#allocation2 + $0x184] sm:$0xf] }
 0x8d8   :  { %v9985_v1 = vsel %vm710_vm0, %v9980_v48, %v9984_v34  ;;  %v10025_v10 = vshll.u32 %v13568_v52, 16  ;;  %v10020_v34 = vrot.slane %v10018_v56, 1  ;;  %v10054_v56 = vshll.u32 %v16007_v41, 16 }
 0x8dc   :  { %11997 = vmatmul.mubr.bf16.gmra.mrb[116].mxu1 %v13562_v35  ;;  %v9987_v35 = vshrl.u32 %v13565_v63, 16 }
 0x8dd   :  { %12004 = vmatprep.mubr.bf16.mxu1 %v9973_v44 }
 0x8de   :  { %v9992_v11 = vor.u32 %v9991_v30, %v9987_v35  ;;  %v10027_v30 = vrot.slane %v10025_v10, 1  ;;  %v13569_v35 = vcombine.low %v7502_v46, %v16002_v42  ;;  %v7508_v46 = vld [vmem:[#allocation2 + $0x18c] sm:$0xf]  ;;  %v16008_v42 = vld [vmem:[#allocation2 + $0x190] sm:$0xf] }
 0x8e0   :  { %v9997_v50 = vsel %vm710_vm0, %v9992_v11, %v9996_v9  ;;  %v10037_v27 = vshll.u32 %v13569_v35, 16  ;;  %v10032_v9 = vrot.slane %v10030_v60, 1  ;;  %v10066_v60 = vshll.u32 %v16009_v58, 16  ;;  %v20062_v58 = vld [vmem:[#allocation2 + $0x1ac] ss:$0 sps:$4 sm:$0x11]  }
 0x8e4   :  { %12005 = vmatmul.mubr.bf16.gmra.mrb[120].mxu1 %v13563_v36  ;;  %v9999_v36 = vshrl.u32 %v13566_v20, 16 }
 0x8e5   :  { %12012 = vmatprep.mubr.bf16.mxu1 %v9985_v1 }
 0x8e6   :  { %v10004_v16 = vor.u32 %v10003_v23, %v9999_v36  ;;  %v10039_v23 = vrot.slane %v10037_v27, 1  ;;  %v13570_v36 = vcombine.low %v7504_v43, %v16004_v3  ;;  %v10068_v3 = vrot.slane %v10066_v60, 1 }
 0x8e8   :  { %v10009_v44 = vsel %vm710_vm0, %v10004_v16, %v10008_v12  ;;  %v10049_v40 = vshll.u32 %v13570_v36, 16  ;;  %v10044_v12 = vrot.slane %v10042_v21, 1  ;;  %v16010_v21 = vld [vmem:[#allocation2 + $0x19c] sm:$0xf] }
 0x8ec   :  { %12013 = vmatmul.mubr.bf16.gmra.mrb[124].mxu1 %v13564_v6  ;;  %v10011_v6 = vshrl.u32 %v13567_v33, 16 }
 0x8ed   :  { %12020 = vmatprep.mubr.bf16.mxu1 %v9997_v50 }
 0x8ee   :  { %v10016_v48 = vor.u32 %v10015_v62, %v10011_v6  ;;  %v10051_v62 = vrot.slane %v10049_v40, 1  ;;  %v13571_v6 = vcombine.low %v7506_v51, %v16006_v57  ;;  %v20056_v57 = vld [vmem:[#allocation2 + $0x1a8] sm:$0xf] }
 0x8f0   :  { %v10021_v1 = vsel %vm710_vm0, %v10016_v48, %v10020_v34  ;;  %v10061_v10 = vshll.u32 %v13571_v6, 16  ;;  %v10056_v34 = vrot.slane %v10054_v56, 1 }
 0x8f4   :  { %12021 = vmatmul.mubr.bf16.gmra.mrb[128].mxu1 %v13565_v63  ;;  %v10023_v63 = vshrl.u32 %v13568_v52, 16 }
 0x8f5   :  { %12028 = vmatprep.mubr.bf16.mxu1 %v10009_v44 }
 0x8f6   :  { %v10028_v11 = vor.u32 %v10027_v30, %v10023_v63  ;;  %v10063_v30 = vrot.slane %v10061_v10, 1  ;;  %v13572_v63 = vcombine.low %v7508_v46, %v16008_v42  ;;  %v16012_v42 = vld [vmem:[#allocation2 + $0x1a0] ss:$0 sps:$4 sm:$0x11]  }
 0x8f8   :  { %v10033_v50 = vsel %vm710_vm0, %v10028_v11, %v10032_v9  ;;  %v10073_v43 = vshll.u32 %v13572_v63, 16  ;;  %v10071_v40 = vshrl.u32 %v13572_v63, 16 }
 0x8fa   :  { %v10075_v19 = vrot.slane %v10073_v43, 1 }
 0x8fc   :  { %12029 = vmatmul.mubr.bf16.gmra.mrb[132].mxu1 %v13566_v20  ;;  %v10035_v20 = vshrl.u32 %v13569_v35, 16  ;;  %v10076_v41 = vor.u32 %v10075_v19, %v10071_v40  ;;  %v10102_v19 = vshll.u32 %v20062_v58, 16 }
 0x8fd   :  { %12036 = vmatprep.mubr.bf16.mxu1 %v10021_v1 }
 0x8fe   :  { %v10040_v16 = vor.u32 %v10039_v23, %v10035_v20  ;;  %v7510_v20 = vld [vmem:[#allocation2 + $0x198] sm:$0xf] }
 0x900   :  { %v10045_v44 = vsel %vm710_vm0, %v10040_v16, %v10044_v12  ;;  %v13573_v16 = vcombine.low %v7510_v20, %v16010_v21  ;;  %v16011_v12 = vld [vmem:[#allocation2 + $0x194] ss:$0 sps:$4 sm:$0x11]  }
 0x901   :  { %v10078_v51 = vshll.u32 %v16011_v12, 16  ;;  %v10104_v12 = vrot.slane %v10102_v19, 1  ;;  %v10241_v19 = vrot.slane %v19927_v2, 1  ;;  %v10244_v2 = vrot.slane %v19941_v32, 1  ;;  %v7553_v32 = vld [vmem:[#allocation2 + $0x6c] sm:$0xe] }
 0x902   :  { %v10085_v56 = vshll.u32 %v13573_v16, 16 }
 0x903   :  { %v10080_v10 = vrot.slane %v10078_v51, 1 }
 0x904   :  { %12037 = vmatmul.mubr.bf16.gmra.mrb[136].mxu1 %v13567_v33  ;;  %v10047_v33 = vshrl.u32 %v13570_v36, 16 }
 0x905   :  { %12044 = vmatprep.mubr.bf16.mxu1 %v10033_v50  ;;  %v10081_v46 = vsel %vm710_vm0, %v10076_v41, %v10080_v10 }
 0x906   :  { %v10052_v48 = vor.u32 %v10051_v62, %v10047_v33  ;;  %v7512_v62 = vld [vmem:[#allocation2 + $0x1a4] sm:$0xf] }
 0x908   :  { %v10057_v1 = vsel %vm710_vm0, %v10052_v48, %v10056_v34  ;;  %v13574_v34 = vcombine.low %v7512_v62, %v20056_v57 }
 0x90a   :  { %v10097_v60 = vshll.u32 %v13574_v34, 16 }
 0x90c   :  { %12045 = vmatmul.mubr.bf16.gmra.mrb[140].mxu1 %v13568_v52  ;;  %v10059_v52 = vshrl.u32 %v13571_v6, 16 }
 0x90d   :  { %12052 = vmatprep.mubr.bf16.mxu1 %v10045_v44 }
 0x90e   :  { %v10064_v9 = vor.u32 %v10063_v30, %v10059_v52  ;;  %v10083_v30 = vshrl.u32 %v13573_v16, 16  ;;  %v10090_v52 = vshll.u32 %v16012_v42, 16 }
 0x910   :  { %v10092_v20 = vrot.slane %v10090_v52, 1 }
 0x914   :  { %12053 = vmatmul.mubr.bf16.gmra.mrb[144].mxu1 %v13569_v35  ;;  %v10069_v35 = vsel %vm710_vm0, %v10064_v9, %v10068_v3 }
 0x915   :  { %12060 = vmatprep.mubr.bf16.mxu1 %v10057_v1  ;;  %v10087_v1 = vrot.slane %v10085_v56, 1 }
 0x917   :  { %v20049_v11 = vpop.f32.mrb[40].mxu1  ;;  %v10088_v43 = vor.u32 %v10087_v1, %v10083_v30  ;;  %v10235_v30 = vrot.slane %v19910_v45, 1 }
 0x918   :  { %v11848_v27 = vpop.f32.mrb[41].mxu1 }
 0x919   :  { %v20051_v50 = vpop.f32.mrb[42].mxu1  ;;  %v10093_v21 = vsel %vm710_vm0, %v10088_v43, %v10092_v20  ;;  %v7548_v43 = vld [vmem:[#allocation2 + $0x30] sm:$0xe] }
 0x91a   :  { %v11851_v23 = vpop.f32.mrb[43].mxu1 }
 0x91c   :  { %12061 = vmatmul.mubr.bf16.gmra.mrb[148].mxu1 %v13570_v36 }
 0x91d   :  { %12068 = vmatprep.mubr.bf16.mxu1 %v10069_v35  ;;  %v10095_v35 = vshrl.u32 %v13574_v34, 16 }
 0x91f   :  { %v20054_v44 = vpop.f32.mrb[44].mxu1 }
 0x920   :  { %v11856_v33 = vpop.f32.mrb[45].mxu1 }
 0x921   :  { %v20058_v48 = vpop.f32.mrb[46].mxu1 }
 0x922   :  { %v11859_v36 = vpop.f32.mrb[47].mxu1 }
 0x923   :  { %v7546_v36 = vld [vmem:[#allocation2 + $0x18] sm:$0xe] }
 0x924   :  { %12069 = vmatmul.mubr.bf16.gmra.mrb[152].mxu1 %v13571_v6  ;;  %v10099_v6 = vrot.slane %v10097_v60, 1  ;;  %v13607_v10 = vcombine.low %v7546_v36, %v19901_v0  ;;  %v7547_v60 = vld [vmem:[#allocation2 + $0x24] sm:$0xe] }
 0x925   :  { %12076 = vmatprep.mubr.bf16.mxu1 %v10081_v46 }
 0x926   :  { %v10100_v40 = vor.u32 %v10099_v6, %v10095_v35  ;;  %v10234_v1 = vrot.slane %v13607_v10, 1  ;;  %v10238_v35 = vrot.slane %v19919_v28, 1 }
 0x927   :  { %v20064_v27 = vpop.f32.mrb[48].mxu1 }
 0x928   :  { %v11864_v9 = vpop.f32.mrb[49].mxu1  ;;  %v10105_v56 = vsel %vm710_vm0, %v10100_v40, %v10104_v12 }
 0x929   :  { %v20066_v23 = vpop.f32.mrb[50].mxu1  ;;  %v13608_v9 = vcombine.low %v7547_v60, %v19908_v22  ;;  %v7549_v22 = vld [vmem:[#allocation2 + $0x3c] sm:$0xe] }
 0x92a   :  { %v11867_v3 = vpop.f32.mrb[51].mxu1  ;;  %v13610_v12 = vcombine.low %v7549_v22, %v19925_v38 }
 0x92b   :  { %v10236_v3 = vsel %vm1223_vm1, %v10234_v1, %v10235_v30  ;;  %v10237_v20 = vrot.slane %v13608_v9, 1 }
 0x92c   :  { %12077 = vmatmul.mubr.bf16.gmra.mrb[156].mxu1 %v13572_v63 }
 0x92d   :  { %12084 = vmatprep.mubr.bf16.mxu1 %v10093_v21 }
 0x92f   :  { %v20070_v51 = vpop.f32.mrb[52].mxu1 }
 0x930   :  { %v11872_v62 = vpop.f32.mrb[53].mxu1 }
 0x931   :  { %v20072_v33 = vpop.f32.mrb[54].mxu1  ;;  %v7550_v62 = vld [vmem:[#allocation2 + $0x48] sm:$0xe] }
 0x932   :  { %v11875_v41 = vpop.f32.mrb[55].mxu1 }
 0x933   :  { %v13611_v41 = vcombine.low %v7550_v62, %v19939_v37 }
 0x934   :  { %12085 = vmatmul.mubr.bf16.gmra.mrb[160].mxu1 %v13573_v16  ;;  %v13609_v16 = vcombine.low %v7548_v43, %v19917_v7 }
 0x935   :  { %12092 = vmatprep.mubr.bf16.mxu1 %v10105_v56  ;;  %v10243_v56 = vrot.slane %v13610_v12, 1  ;;  %v10246_v10 = vrot.slane %v13611_v41, 1  ;;  %v7558_v41 = vld [vmem:[#allocation2 + $0xa8] sm:$0xe] }
 0x936   :  { %v10240_v45 = vrot.slane %v13609_v16, 1  ;;  %v20743_v16 = vld [vmem:[#allocation89_spill] sm:$0xff] }
 0x937   :  { %v20076_v46 = vpop.f32.mrb[56].mxu1  ;;  %v10245_v38 = vsel %vm1223_vm1, %v10243_v56, %v10244_v2  ;;  %v20746_v56 = vld [vmem:[#allocation93_spill] sm:$0xff]  ;;  %v20747_v2 = vld [vmem:[#allocation94_spill] sm:$0xff] }
 0x938   :  { %v11880_v63 = vpop.f32.mrb[57].mxu1  ;;  %v10242_v7 = vsel %vm1223_vm1, %v10240_v45, %v10241_v19 }
 0x939   :  { %v20079_v42 = vpop.f32.mrb[58].mxu1  ;;  %v10247_v63 = vrot.slane %v19952_v31, 1  ;;  %v20744_v31 = vld [vmem:[#allocation91_spill] sm:$0xff] }
 0x93a   :  { %v11883_v52 = vpop.f32.mrb[59].mxu1 }
 0x93b   :  { %v10248_v52 = vsel %vm1223_vm1, %v10246_v10, %v10247_v63 }
 0x93c   :  { %12093 = vmatmul.mubr.bf16.gmra.mrb[164].mxu1 %v13574_v34  ;;  %v10239_v34 = vsel %vm1223_vm1, %v10237_v20, %v10238_v35 }
 0x93d   :  { %13832 = vmatprep.mubr.bf16.mxu1 %v10236_v3  ;;  %v13614_v3 = vcombine.low %v7553_v32, %v19957_v53  ;;  %v7560_v32 = vld [vmem:[#allocation2 + $0xc0] sm:$0xe] }
 0x93f   :  { %v20084_v0 = vpop.f32.mrb[60].mxu1  ;;  %v10255_v35 = vrot.slane %v13614_v3, 1  ;;  %v20748_v3 = vld [vmem:[#allocation97_spill] sm:$0xff] }
 0x940   :  { %v11888_v6 = vpop.f32.mrb[61].mxu1 }
 0x941   :  { %v20088_v21 = vpop.f32.mrb[62].mxu1  ;;  %v10256_v6 = vrot.slane %v19964_v15, 1  ;;  %v13619_v15 = vcombine.low %v7558_v41, %v19974_v29  ;;  %v13621_v29 = vcombine.low %v7560_v32, %v19985_v18  ;;  %v7562_v41 = vld [vmem:[#allocation2 + $0xf0] sm:$0xe]  ;;  %v7564_v32 = vld [vmem:[#allocation2 + $0x108] sm:$0xe] }
 0x942   :  { %v11891_v40 = vpop.f32.mrb[63].mxu1 }
 0x943   :  { %v10257_v22 = vsel %vm1223_vm1, %v10255_v35, %v10256_v6  ;;  %v10270_v63 = vrot.slane %v13619_v15, 1 }
 0x944   :  { %13833 = vmatmul.mubr.bf16.vlgmr.msra.gmra.mrb[168].mxu1 %v10239_v34  ;;  %v20745_v34 = vld [vmem:[#allocation92_spill] sm:$0xff] }
 0x945   :  { %13836 = vmatprep.mubr.bf16.mxu1 %v10242_v7 }
 0x947   :  { %v20094_v28 = vpop.f32.mrb[64].mxu1 }
 0x948   :  { %v11896_v36 = vpop.f32.mrb[65].mxu1 }
 0x949   :  { %v20098_v1 = vpop.f32.mrb[66].mxu1 }
 0x94a   :  { %v11899_v30 = vpop.f32.mrb[67].mxu1 }
 0x94b   :  { %v10271_v30 = vrot.slane %v19980_v4, 1  ;;  %v10274_v4 = vrot.slane %v19987_v5, 1  ;;  %v10280_v5 = vrot.slane %v20002_v54, 1  ;;  %v13625_v54 = vcombine.low %v7564_v32, %v20016_v24 }
 0x94c   :  { %13837 = vmatmul.mubr.bf16.gmra.mrb[172].mxu1 %v10245_v38 }
 0x94d   :  { %13840 = vmatprep.mubr.bf16.mxu1 %v10248_v52 }
 0x94f   :  { %v20102_v37 = vpop.f32.mrb[68].mxu1 }
 0x950   :  { %v11904_v60 = vpop.f32.mrb[69].mxu1 }
 0x951   :  { %v20104_v9 = vpop.f32.mrb[70].mxu1  ;;  %v7559_v60 = vld [vmem:[#allocation2 + $0xb4] sm:$0xe] }
 0x952   :  { %v11907_v43 = vpop.f32.mrb[71].mxu1 }
 0x953   :  { %v13620_v43 = vcombine.low %v7559_v60, %v19978_v59  ;;  %v7563_v60 = vld [vmem:[#allocation2 + $0xfc] sm:$0xe] }
 0x954   :  { %13841 = vmatmul.mubr.bf16.gmra.mrb[176].mxu1 %v20743_v16  ;;  %v10272_v16 = vsel %vm1223_vm1, %v10270_v63, %v10271_v30  ;;  %v10283_v63 = vrot.slane %v20012_v17, 1  ;;  %v10286_v17 = vrot.slane %v20018_v49, 1 }
 0x955   :  { %13844 = vmatprep.mubr.bf16.mxu1 %v20744_v31  ;;  %v7561_v31 = vld [vmem:[#allocation2 + $0xcc] sm:$0xe]  ;;  %v10273_v6 = vrot.slane %v13620_v43, 1  ;;  %v13624_v43 = vcombine.low %v7563_v60, %v20009_v39  ;;  %v7565_v39 = vld [vmem:[#allocation2 + $0x114] sm:$0xe] }
 0x956   :  { %v13622_v59 = vcombine.low %v7561_v31, %v19992_v8  ;;  %v10288_v31 = vrot.slane %v13625_v54, 1  ;;  %v20752_v54 = vld [vmem:[#allocation99_spill] sm:$0xff] }
 0x957   :  { %v20109_v20 = vpop.f32.mrb[72].mxu1 }
 0x958   :  { %v11912_v45 = vpop.f32.mrb[73].mxu1  ;;  %v10279_v15 = vrot.slane %v13622_v59, 1  ;;  %v7566_v59 = vld [vmem:[#allocation2 + $0x120] sm:$0xe] }
 0x959   :  { %v20112_v19 = vpop.f32.mrb[74].mxu1 }
 0x95a   :  { %v11915_v40 = vpop.f32.mrb[75].mxu1  ;;  %v10281_v30 = vsel %vm1223_vm1, %v10279_v15, %v10280_v5 }
 0x95b   :  { %v10276_v40 = vrot.slane %v13621_v29, 1 }
 0x95c   :  { %13845 = vmatmul.mubr.bf16.gmra.mrb[180].mxu1 %v10257_v22  ;;  %v10277_v22 = vrot.slane %v19994_v13, 1 }
 0x95d   :  { %13848 = vmatprep.mubr.bf16.mxu1 %v20745_v34 }
 0x95e   :  { %v10278_v18 = vsel %vm1223_vm1, %v10276_v40, %v10277_v22  ;;  %v13626_v22 = vcombine.low %v7565_v39, %v20023_v55 }
 0x95f   :  { %v20116_v12 = vpop.f32.mrb[76].mxu1 }
 0x960   :  { %v11920_v53 = vpop.f32.mrb[77].mxu1 }
 0x961   :  { %v20118_v62 = vpop.f32.mrb[78].mxu1 }
 0x962   :  { %v11923_v7 = vpop.f32.mrb[79].mxu1 }
 0x963   :  { %v10275_v7 = vsel %vm1223_vm1, %v10273_v6, %v10274_v4  ;;  %v10289_v6 = vrot.slane %v20025_v61, 1  ;;  %v10292_v61 = vrot.slane %v20032_v14, 1  ;;  %v20749_v14 = vld [vmem:[#allocation95_spill] sm:$0xff] }
 0x964   :  { %13849 = vmatmul.mubr.bf16.gmra.mrb[184].mxu1 %v20746_v56  ;;  %v13623_v56 = vcombine.low %v7562_v41, %v20004_v25 }
 0x965   :  { %13852 = vmatprep.mubr.bf16.mxu1 %v20747_v2  ;;  %v10290_v24 = vsel %vm1223_vm1, %v10288_v31, %v10289_v6  ;;  %v20753_v6 = vld [vmem:[#allocation100_spill] sm:$0xff] }
 0x967   :  { %v20123_v36 = vpop.f32.mrb[80].mxu1 }
 0x968   :  { %v11928_v10 = vpop.f32.mrb[81].mxu1 }
 0x969   :  { %v20126_v38 = vpop.f32.mrb[82].mxu1  ;;  %v10282_v10 = vrot.slane %v13623_v56, 1  ;;  %v10295_v56 = vrot.slane %v20037_v26, 1 }
 0x96a   :  { %v11931_v52 = vpop.f32.mrb[83].mxu1 }
 0x96b   :  { %v10284_v25 = vsel %vm1223_vm1, %v10282_v10, %v10283_v63 }
 0x96c   :  { %13853 = vmatmul.mubr.bf16.gmra.mrb[188].mxu1 %v20748_v3 }
 0x96d   :  { %13856 = vmatprep.mubr.bf16.mxu1 %v10272_v16  ;;  %v10285_v16 = vrot.slane %v13624_v43, 1 }
 0x96f   :  { %v20132_v35 = vpop.f32.mrb[84].mxu1  ;;  %v10287_v40 = vsel %vm1223_vm1, %v10285_v16, %v10286_v17 }
 0x970   :  { %v11936_v45 = vpop.f32.mrb[85].mxu1 }
 0x971   :  { %v20136_v34 = vpop.f32.mrb[86].mxu1 }
 0x972   :  { %v11939_v53 = vpop.f32.mrb[87].mxu1 }
 0x973   :  { %v13627_v53 = vcombine.low %v7566_v59, %v20030_v47 }
 0x974   :  { %13857 = vmatmul.mubr.bf16.gmra.mrb[192].mxu1 %v10275_v7  ;;  %v10291_v7 = vrot.slane %v13626_v22, 1 }
 0x975   :  { %13860 = vmatprep.mubr.bf16.mxu1 %v10278_v18  ;;  %v10294_v18 = vrot.slane %v13627_v53, 1  ;;  %v20756_v53 = vld [vmem:[#allocation103_spill] sm:$0xff] }
 0x976   :  { %v10293_v55 = vsel %vm1223_vm1, %v10291_v7, %v10292_v61  ;;  %v7577_v7 = vld [vmem:[#allocation2 + $0x1a4] sm:$0xe] }
 0x977   :  { %v20143_v2 = vpop.f32.mrb[88].mxu1 }
 0x978   :  { %v11944_v13 = vpop.f32.mrb[89].mxu1 }
 0x979   :  { %v20146_v8 = vpop.f32.mrb[90].mxu1  ;;  %v10296_v13 = vsel %vm1223_vm1, %v10294_v18, %v10295_v56  ;;  %v13638_v56 = vcombine.low %v7577_v7, %v20056_v57 }
 0x97a   :  { %v11947_v52 = vpop.f32.mrb[91].mxu1 }
 0x97b   :  { %v20750_v52 = vld [vmem:[#allocation96_spill] sm:$0xff] }
 0x97c   :  { %13861 = vmatmul.mubr.bf16.gmra.mrb[196].mxu1 %v10281_v30 }
 0x97d   :  { %13864 = vmatprep.mubr.bf16.mxu1 %v10284_v25  ;;  %v20751_v25 = vld [vmem:[#allocation98_spill] sm:$0xff] }
 0x97f   :  { %v20152_v3 = vpop.f32.mrb[92].mxu1 }
 0x980   :  { %v11952_v29 = vpop.f32.mrb[93].mxu1 }
 0x981   :  { %v20156_v4 = vpop.f32.mrb[94].mxu1 }
 0x982   :  { %v11955_v45 = vpop.f32.mrb[95].mxu1 }
 0x983   :  { %v20754_v45 = vld [vmem:[#allocation101_spill] sm:$0xff] }
 0x984   :  { %13865 = vmatmul.mubr.bf16.gmra.mrb[200].mxu1 %v10287_v40 }
 0x985   :  { %13868 = vmatprep.mubr.bf16.mxu1 %v10290_v24  ;;  %v20755_v24 = vld [vmem:[#allocation102_spill] sm:$0xff] }
 0x987   :  { %v20162_v49 = vpop.f32.mrb[96].mxu1 }
 0x988   :  { %v11960_v41 = vpop.f32.mrb[97].mxu1 }
 0x989   :  { %v20166_v15 = vpop.f32.mrb[98].mxu1 }
 0x98a   :  { %v11963_v5 = vpop.f32.mrb[99].mxu1 }
 0x98c   :  { %13869 = vmatmul.mubr.bf16.gmra.mrb[204].mxu1 %v10293_v55  ;;  %v20757_v55 = vld [vmem:[#allocation104_spill] sm:$0xff] }
 0x98d   :  { %13872 = vmatprep.mubr.bf16.mxu1 %v10296_v13  ;;  %v20758_v13 = vld [vmem:[#allocation105_spill] sm:$0xff] }
 0x98f   :  { %v20170_v47 = vpop.f32.mrb[100].mxu1 }
 0x990   :  { %v11968_v10 = vpop.f32.mrb[101].mxu1 }
 0x991   :  { %v20172_v63 = vpop.f32.mrb[102].mxu1  ;;  %v10327_v10 = vrot.slane %v13638_v56, 1 }
 0x992   :  { %v11971_v30 = vpop.f32.mrb[103].mxu1 }
 0x993   :  { %v10328_v30 = vrot.slane %v20062_v58, 1 }
 0x994   :  { %13873 = vmatmul.mubr.bf16.gmra.mrb[208].mxu1 %v20749_v14 }
 0x995   :  { %13876 = vmatprep.mubr.bf16.mxu1 %v20750_v52 }
 0x997   :  { %v20176_v26 = vpop.f32.mrb[104].mxu1 }
 0x998   :  { %v11976_v60 = vpop.f32.mrb[105].mxu1 }
 0x999   :  { %v20178_v43 = vpop.f32.mrb[106].mxu1 }
 0x99a   :  { %v11979_v32 = vpop.f32.mrb[107].mxu1 }
 0x99b   :  { %v10329_v32 = vsel %vm1223_vm1, %v10327_v10, %v10328_v30 }
 0x99c   :  { %13877 = vmatmul.mubr.bf16.gmra.mrb[212].mxu1 %v20751_v25 }
 0x99d   :  { %13880 = vmatprep.mubr.bf16.mxu1 %v20752_v54 }
 0x99f   :  { %v20182_v16 = vpop.f32.mrb[108].mxu1 }
 0x9a0   :  { %v11984_v17 = vpop.f32.mrb[109].mxu1 }
 0x9a1   :  { %v20184_v29 = vpop.f32.mrb[110].mxu1 }
 0x9a2   :  { %v11987_v31 = vpop.f32.mrb[111].mxu1 }
 0x9a4   :  { %13881 = vmatmul.mubr.bf16.gmra.mrb[216].mxu1 %v20753_v6 }
 0x9a5   :  { %13884 = vmatprep.mubr.bf16.mxu1 %v20754_v45 }
 0x9a7   :  { %v20188_v39 = vpop.f32.mrb[112].mxu1 }
 0x9a8   :  { %v11992_v40 = vpop.f32.mrb[113].mxu1 }
 0x9a9   :  { %v20190_v22 = vpop.f32.mrb[114].mxu1 }
 0x9aa   :  { %v11995_v59 = vpop.f32.mrb[115].mxu1 }
 0x9ac   :  { %13885 = vmatmul.mubr.bf16.gmra.mrb[220].mxu1 %v20755_v24 }
 0x9ad   :  { %13888 = vmatprep.mubr.bf16.mxu1 %v20756_v53 }
 0x9af   :  { %v20194_v61 = vpop.f32.mrb[116].mxu1 }
 0x9b0   :  { %v12000_v41 = vpop.f32.mrb[117].mxu1 }
 0x9b1   :  { %v20196_v18 = vpop.f32.mrb[118].mxu1 }
 0x9b2   :  { %v12003_v5 = vpop.f32.mrb[119].mxu1 }
 0x9b4   :  { %13889 = vmatmul.mubr.bf16.gmra.mrb[224].mxu1 %v20757_v55 }
 0x9b5   :  { %13892 = vmatprep.mubr.bf16.mxu1 %v20758_v13 }
 0x9b7   :  { %v20202_v14 = vpop.f32.mrb[120].mxu1 }
 0x9b8   :  { %v12008_v52 = vpop.f32.mrb[121].mxu1 }
 0x9b9   :  { %v20204_v60 = vpop.f32.mrb[122].mxu1 }
 0x9ba   :  { %20759 = vst [vmem:[#allocation74_spill] sm:$0xff] %v20204_v60  ;;  %v12011_v25 = vpop.f32.mrb[123].mxu1 }
 0x9bc   :  { %13893 = vmatmul.mubr.bf16.gmra.mrb[228].mxu1 %v10329_v32 }
 0x9bf   :  { %v20207_v54 = vpop.f32.mrb[124].mxu1 }
 0x9c0   :  { %v12016_v57 = vpop.f32.mrb[125].mxu1 }
 0x9c1   :  { %v20209_v17 = vpop.f32.mrb[126].mxu1 }
 0x9c2   :  { %v12019_v31 = vpop.f32.mrb[127].mxu1 }
 0x9c7   :  { %v20211_v6 = vpop.f32.mrb[128].mxu1 }
 0x9c8   :  { %20760 = vst [vmem:[#allocation75_spill] sm:$0xff] %v20211_v6  ;;  %v12024_v45 = vpop.f32.mrb[129].mxu1 }
 0x9c9   :  { %v20213_v40 = vpop.f32.mrb[130].mxu1 }
 0x9ca   :  { %20761 = vst [vmem:[#allocation76_spill] sm:$0xff] %v20213_v40  ;;  %v12027_v58 = vpop.f32.mrb[131].mxu1 }
 0x9cf   :  { %v20215_v59 = vpop.f32.mrb[132].mxu1 }
 0x9d0   :  { %20762 = vst [vmem:[#allocation77_spill] sm:$0xff] %v20215_v59  ;;  %v12032_v24 = vpop.f32.mrb[133].mxu1 }
 0x9d1   :  { %v20217_v53 = vpop.f32.mrb[134].mxu1 }
 0x9d2   :  { %20763 = vst [vmem:[#allocation78_spill] sm:$0xff] %v20217_v53  ;;  %v12035_v7 = vpop.f32.mrb[135].mxu1 }
 0x9d7   :  { %v20219_v41 = vpop.f32.mrb[136].mxu1 }
 0x9d8   :  { %20764 = vst [vmem:[#allocation79_spill] sm:$0xff] %v20219_v41  ;;  %v12040_v56 = vpop.f32.mrb[137].mxu1  ;;  %v20783_v41 = vld [vmem:[#allocation20_spill] sm:$0xff] }
 0x9d9   :  { %v20221_v5 = vpop.f32.mrb[138].mxu1 }
 0x9da   :  { %20765 = vst [vmem:[#allocation80_spill] sm:$0xff] %v20221_v5  ;;  %v12043_v55 = vpop.f32.mrb[139].mxu1 }
 0x9df   :  { %v20223_v13 = vpop.f32.mrb[140].mxu1 }
 0x9e0   :  { %20766 = vst [vmem:[#allocation81_spill] sm:$0xff] %v20223_v13  ;;  %v12048_v10 = vpop.f32.mrb[141].mxu1 }
 0x9e1   :  { %v20225_v30 = vpop.f32.mrb[142].mxu1 }
 0x9e2   :  { %20767 = vst [vmem:[#allocation82_spill] sm:$0xff] %v20225_v30  ;;  %v12051_v52 = vpop.f32.mrb[143].mxu1 }
 0x9e7   :  { %v20227_v32 = vpop.f32.mrb[144].mxu1 }
 0x9e8   :  { %20768 = vst [vmem:[#allocation83_spill] sm:$0xff] %v20227_v32  ;;  %v12056_v25 = vpop.f32.mrb[145].mxu1 }
 0x9e9   :  { %v20229_v57 = vpop.f32.mrb[146].mxu1 }
 0x9ea   :  { %20769 = vst [vmem:[#allocation84_spill] sm:$0xff] %v20229_v57  ;;  %v12059_v31 = vpop.f32.mrb[147].mxu1 }
 0x9ef   :  { %v20231_v45 = vpop.f32.mrb[148].mxu1 }
 0x9f0   :  { %20770 = vst [vmem:[#allocation85_spill] sm:$0xff] %v20231_v45  ;;  %v12064_v58 = vpop.f32.mrb[149].mxu1 }
 0x9f1   :  { %v20233_v24 = vpop.f32.mrb[150].mxu1 }
 0x9f2   :  { %20771 = vst [vmem:[#allocation86_spill] sm:$0xff] %v20233_v24  ;;  %v12067_v7 = vpop.f32.mrb[151].mxu1 }
 0x9f7   :  { %v20235_v56 = vpop.f32.mrb[152].mxu1 }
 0x9f8   :  { %20772 = vst [vmem:[#allocation87_spill] sm:$0xff] %v20235_v56  ;;  %v12072_v55 = vpop.f32.mrb[153].mxu1 }
 0x9f9   :  { %v20237_v5 = vpop.f32.mrb[154].mxu1 }
 0x9fa   :  { %20773 = vst [vmem:[#allocation88_spill] sm:$0xff] %v20237_v5  ;;  %v12075_v10 = vpop.f32.mrb[155].mxu1 }
 0x9fb   :  { %v20254_v10 = vld [vmem:[%s20511_s4] ss:$0 sm:$0xff]  ;;  %s16065_s4 = smov [#allocation6]  }
 0x9fc   :  { %s12587_s9 = sshll.u32 %s16065_s4, 4  ;;  %s12588_s9 = int_to_ptr.vmem [resolvable:$true] %s12587_s9 }
 0x9fd   :  { %s16035_s10 = scalar_lea.vmem %s12588_s9, 8192  ;;  %p16040_p9 = scmp.lt.s32.totalorder %s12588_s9, %s12588_s9 }
 0x9fe   :  { %p16036_p8 = scmp.ne.s32.totalorder %s12588_s9, %s16035_s10  ;;  %p16041_p10 = scmp.lt.s32.totalorder %s16035_s10, %s16035_s10 }
 0x9ff   :  { %v20239_v30 = vpop.f32.mrb[156].mxu1 }
 0xa00   :  { %20774 = vst [vmem:[#allocation90_spill] sm:$0xff] %v20239_v30  ;;  %v12080_v52 = vpop.f32.mrb[157].mxu1  ;;  %p16042_p11 = por %p16041_p10, %p16040_p9 }
 0xa01   :  { %v20241_v32 = vpop.f32.mrb[158].mxu1  ;;  %v14082_v52 = vadd.f32 %v20254_v10, %v20054_v44 }
 0xa02   :  { %20775 = vst [vmem:[#allocation106_spill] sm:$0xff] %v20241_v32  ;;  %v12083_v25 = vpop.f32.mrb[159].mxu1  ;;  %v14081_v32 = vadd.f32 %v20254_v10, %v20051_v50  ;;  %v14086_v50 = vadd.f32 %v20254_v10, %v20070_v51  ;;  %p16043_p12 = pnand %p16042_p11, %p16036_p8 }
 0xa03   :  { %v14080_v25 = vadd.f32 %v20254_v10, %v20049_v11 }
 0xa07   :  { %v20243_v57 = vpop.f32.mrb[160].mxu1 }
 0xa08   :  { %20776 = vst [vmem:[#allocation107_spill] sm:$0xff] %v20243_v57  ;;  %v12088_v31 = vpop.f32.mrb[161].mxu1 }
 0xa09   :  { %v20245_v45 = vpop.f32.mrb[162].mxu1 }
 0xa0a   :  { %20777 = vst [vmem:[#allocation89_spill] sm:$0xff] %v20245_v45  ;;  %v12091_v58 = vpop.f32.mrb[163].mxu1  ;;  %v20780_v45 = vld [vmem:[#allocation9_spill] sm:$0xff] }
 0xa0b   :  { %v20781_v58 = vld [vmem:[#allocation19_spill] sm:$0xff]  ;;  %v13919_v11 = vadd.f32 %v20783_v41, %v20780_v45  ;;  %v14084_v41 = vadd.f32 %v20254_v10, %v20064_v27 }
 0xa0c   :  { %v13917_v57 = vadd.f32 %v20781_v58, %v20780_v45  ;;  %v20784_v58 = vld [vmem:[#allocation18_spill] sm:$0xff] }
 0xa0d   :  { %v13915_v6 = vadd.f32 %v20784_v58, %v20780_v45 }
 0xa0f   :  { %v20247_v24 = vpop.f32.mrb[164].mxu1 }
 0xa10   :  { %20778 = vst [vmem:[#allocation91_spill] sm:$0xff] %v20247_v24  ;;  %v12096_v7 = vpop.f32.mrb[165].mxu1  ;;  %v20782_v24 = vld [vmem:[#allocation17_spill] sm:$0xff] }
 0xa11   :  { %v20249_v56 = vpop.f32.mrb[166].mxu1  ;;  %v14083_v7 = vadd.f32 %v20254_v10, %v20058_v48  ;;  %v13913_v5 = vadd.f32 %v20782_v24, %v20780_v45 }
 0xa12   :  { %20779 = vst [vmem:[#allocation92_spill] sm:$0xff] %v20249_v56  ;;  %v12099_v55 = vpop.f32.mrb[167].mxu1 }
 0xa17   :  { %v13834_v31 = vpop.f32.mrb[168].mxu1 }
 0xa18   :  { %v12144_v56 = vadd.f32 %v14082_v52, %v13834_v31  ;;  %v12135_v55 = vpop.f32.mrb[169].mxu1 }
 0xa19   :  { %v12136_v30 = vadd.f32 %v14080_v25, %v12135_v55  ;;  %v13835_v44 = vpop.f32.mrb[170].mxu1 }
 0xa1a   :  { %v12392_v13 = vadd.f32 %v13917_v57, %v12144_v56  ;;  %v12147_v40 = vadd.f32 %v14083_v7, %v13835_v44  ;;  %v12138_v53 = vpop.f32.mrb[171].mxu1  ;;  %v20785_v7 = vld [vmem:[#allocation36_spill] sm:$0xff] }
 0xa1b   :  { %v12390_v48 = vadd.f32 %v13913_v5, %v12136_v30  ;;  %v12139_v52 = vadd.f32 %v14081_v32, %v12138_v53  ;;  %v13925_v55 = vadd.f32 %v20785_v7, %v20780_v45  ;;  %v14087_v53 = vadd.f32 %v20254_v10, %v20072_v33  ;;  %v20786_v5 = vld [vmem:[#allocation21_spill] sm:$0xff]  ;;  %v20788_v33 = vld [vmem:[#allocation22_spill] sm:$0xff] }
 0xa1c   :  { %v12456_v31 = vmax.f32 %v12392_v13, 0.0  ;;  %v12393_v59 = vadd.f32 %v13919_v11, %v12147_v40  ;;  %v13921_v51 = vadd.f32 %v20786_v5, %v20780_v45  ;;  %v20787_v13 = vld [vmem:[#allocation37_spill] sm:$0xff]  ;;  %v13923_v58 = vadd.f32 %v20788_v33, %v20780_v45 }
 0xa1d   :  { %v12454_v60 = vmax.f32 %v12390_v48, 0.0  ;;  %v12391_v24 = vadd.f32 %v13915_v6, %v12139_v52  ;;  %v13927_v30 = vadd.f32 %v20787_v13, %v20780_v45 }
 0xa1e   :  { %12520 = vst [vmem:[#allocation6 + $0x10] sm:$0xff] %v12456_v31  ;;  %v12457_v25 = vmax.f32 %v12393_v59, 0.0  ;;  %v14085_v59 = vadd.f32 %v20254_v10, %v20066_v23  ;;  %v14090_v23 = vadd.f32 %v20254_v10, %v20084_v0 }
 0xa1f   :  { %12518 = vst [vmem:[#allocation6] sm:$0xff] %v12454_v60  ;;  %v12455_v57 = vmax.f32 %v12391_v24, 0.0  ;;  %v13838_v56 = vpop.f32.mrb[172].mxu1 }
 0xa20   :  { %12521 = vst [vmem:[#allocation6 + $0x18] sm:$0xff] %v12457_v25  ;;  %v12160_v40 = vadd.f32 %v14086_v50, %v13838_v56  ;;  %v12151_v6 = vpop.f32.mrb[173].mxu1 }
 0xa21   :  { %12519 = vst [vmem:[#allocation6 + $0x8] sm:$0xff] %v12455_v57  ;;  %v12152_v27 = vadd.f32 %v14084_v41, %v12151_v6  ;;  %v13839_v60 = vpop.f32.mrb[174].mxu1  ;;  %v14088_v57 = vadd.f32 %v20254_v10, %v20076_v46 }
 0xa22   :  { %v12396_v32 = vadd.f32 %v13925_v55, %v12160_v40  ;;  %v12163_v44 = vadd.f32 %v14087_v53, %v13839_v60  ;;  %v12154_v11 = vpop.f32.mrb[175].mxu1  ;;  %v20789_v55 = vld [vmem:[#allocation40_spill] sm:$0xff]  ;;  %v14091_v40 = vadd.f32 %v20254_v10, %v20088_v21  ;;  %v20791_v60 = vld [vmem:[#allocation41_spill] sm:$0xff]  ;;  %v20792_v21 = vld [vmem:[#allocation39_spill] sm:$0xff] }
 0xa23   :  { %v12394_v48 = vadd.f32 %v13921_v51, %v12152_v27  ;;  %v12155_v52 = vadd.f32 %v14085_v59, %v12154_v11  ;;  %v13933_v53 = vadd.f32 %v20789_v55, %v20780_v45  ;;  %v20790_v51 = vld [vmem:[#allocation38_spill] sm:$0xff]  ;;  %v14089_v59 = vadd.f32 %v20254_v10, %v20079_v42 }
 0xa24   :  { %v12460_v31 = vmax.f32 %v12396_v32, 0.0  ;;  %v12397_v24 = vadd.f32 %v13927_v30, %v12163_v44  ;;  %v13929_v0 = vadd.f32 %v20790_v51, %v20780_v45  ;;  %v13935_v13 = vadd.f32 %v20791_v60, %v20780_v45  ;;  %v20795_v51 = vld [vmem:[#allocation45_spill] sm:$0xff] }
 0xa25   :  { %v12458_v50 = vmax.f32 %v12394_v48, 0.0  ;;  %v12395_v25 = vadd.f32 %v13923_v58, %v12155_v52  ;;  %v13931_v11 = vadd.f32 %v20792_v21, %v20780_v45  ;;  %v14094_v42 = vadd.f32 %v20254_v10, %v20102_v37 }
 0xa26   :  { %12524 = vst [vmem:[#allocation6 + $0x30] sm:$0xff] %v12460_v31  ;;  %v12461_v41 = vmax.f32 %v12397_v24, 0.0 }
 0xa27   :  { %12522 = vst [vmem:[#allocation6 + $0x20] sm:$0xff] %v12458_v50  ;;  %v12459_v56 = vmax.f32 %v12395_v25, 0.0  ;;  %v13842_v7 = vpop.f32.mrb[176].mxu1  ;;  %v14092_v25 = vadd.f32 %v20254_v10, %v20094_v28 }
 0xa28   :  { %12525 = vst [vmem:[#allocation6 + $0x38] sm:$0xff] %v12461_v41  ;;  %v12176_v6 = vadd.f32 %v14090_v23, %v13842_v7  ;;  %v12167_v5 = vpop.f32.mrb[177].mxu1  ;;  %v14095_v7 = vadd.f32 %v20254_v10, %v20104_v9  ;;  %v20796_v9 = vld [vmem:[#allocation43_spill] sm:$0xff] }
 0xa29   :  { %12523 = vst [vmem:[#allocation6 + $0x28] sm:$0xff] %v12459_v56  ;;  %v12168_v46 = vadd.f32 %v14088_v57, %v12167_v5  ;;  %v13843_v27 = vpop.f32.mrb[178].mxu1  ;;  %v20793_v57 = vld [vmem:[#allocation44_spill] sm:$0xff]  ;;  %v13939_v60 = vadd.f32 %v20796_v9, %v20780_v45 }
 0xa2a   :  { %v12400_v30 = vadd.f32 %v13933_v53, %v12176_v6  ;;  %v12179_v32 = vadd.f32 %v14091_v40, %v13843_v27  ;;  %v12170_v44 = vpop.f32.mrb[179].mxu1  ;;  %v13941_v56 = vadd.f32 %v20793_v57, %v20780_v45  ;;  %v20794_v40 = vld [vmem:[#allocation42_spill] sm:$0xff]  ;;  %v14093_v6 = vadd.f32 %v20254_v10, %v20098_v1 }
 0xa2b   :  { %v12398_v33 = vadd.f32 %v13929_v0, %v12168_v46  ;;  %v12171_v58 = vadd.f32 %v14089_v59, %v12170_v44  ;;  %v13937_v37 = vadd.f32 %v20794_v40, %v20780_v45  ;;  %v13943_v0 = vadd.f32 %v20795_v51, %v20780_v45 }
 0xa2c   :  { %v12464_v48 = vmax.f32 %v12400_v30, 0.0  ;;  %v12401_v52 = vadd.f32 %v13935_v13, %v12179_v32  ;;  %v14098_v1 = vadd.f32 %v20254_v10, %v20116_v12 }
 0xa2d   :  { %v12462_v31 = vmax.f32 %v12398_v33, 0.0  ;;  %v12399_v24 = vadd.f32 %v13931_v11, %v12171_v58  ;;  %v14096_v58 = vadd.f32 %v20254_v10, %v20109_v20 }
 0xa2e   :  { %12528 = vst [vmem:[#allocation6 + $0x50] sm:$0xff] %v12464_v48  ;;  %v12465_v50 = vmax.f32 %v12401_v52, 0.0 }
 0xa2f   :  { %12526 = vst [vmem:[#allocation6 + $0x40] sm:$0xff] %v12462_v31  ;;  %v12463_v23 = vmax.f32 %v12399_v24, 0.0  ;;  %v13846_v41 = vpop.f32.mrb[180].mxu1  ;;  %v20797_v31 = vld [vmem:[#allocation48_spill] sm:$0xff] }
 0xa30   :  { %12529 = vst [vmem:[#allocation6 + $0x58] sm:$0xff] %v12465_v50  ;;  %v12192_v55 = vadd.f32 %v14094_v42, %v13846_v41  ;;  %v12183_v53 = vpop.f32.mrb[181].mxu1  ;;  %v13949_v24 = vadd.f32 %v20797_v31, %v20780_v45  ;;  %v14099_v42 = vadd.f32 %v20254_v10, %v20118_v62  ;;  %v14097_v41 = vadd.f32 %v20254_v10, %v20112_v19  ;;  %v20800_v62 = vld [vmem:[#allocation47_spill] sm:$0xff] }
 0xa31   :  { %12527 = vst [vmem:[#allocation6 + $0x48] sm:$0xff] %v12463_v23  ;;  %v12184_v28 = vadd.f32 %v14092_v25, %v12183_v53  ;;  %v13847_v5 = vpop.f32.mrb[182].mxu1  ;;  %v20798_v23 = vld [vmem:[#allocation46_spill] sm:$0xff]  ;;  %v14102_v19 = vadd.f32 %v20254_v10, %v20132_v35 }
 0xa32   :  { %v12404_v59 = vadd.f32 %v13941_v56, %v12192_v55  ;;  %v12195_v46 = vadd.f32 %v14095_v7, %v13847_v5  ;;  %v12186_v27 = vpop.f32.mrb[183].mxu1  ;;  %v13945_v12 = vadd.f32 %v20798_v23, %v20780_v45  ;;  %v20799_v56 = vld [vmem:[#allocation49_spill] sm:$0xff] }
 0xa33   :  { %v12402_v13 = vadd.f32 %v13937_v37, %v12184_v28  ;;  %v12187_v30 = vadd.f32 %v14093_v6, %v12186_v27  ;;  %v13951_v7 = vadd.f32 %v20799_v56, %v20780_v45  ;;  %v13947_v37 = vadd.f32 %v20800_v62, %v20780_v45 }
 0xa34   :  { %v12468_v32 = vmax.f32 %v12404_v59, 0.0  ;;  %v12405_v44 = vadd.f32 %v13943_v0, %v12195_v46  ;;  %v14100_v27 = vadd.f32 %v20254_v10, %v20123_v36  ;;  %v14104_v56 = vadd.f32 %v20254_v10, %v20143_v2 }
 0xa35   :  { %v12466_v21 = vmax.f32 %v12402_v13, 0.0  ;;  %v12403_v11 = vadd.f32 %v13939_v60, %v12187_v30  ;;  %v20801_v13 = vld [vmem:[#allocation52_spill] sm:$0xff]  ;;  %v14107_v62 = vadd.f32 %v20254_v10, %v20156_v4  ;;  %v20808_v4 = vld [vmem:[#allocation55_spill] sm:$0xff] }
 0xa36   :  { %12532 = vst [vmem:[#allocation6 + $0x70] sm:$0xff] %v12468_v32  ;;  %v12469_v33 = vmax.f32 %v12405_v44, 0.0  ;;  %v13957_v30 = vadd.f32 %v20801_v13, %v20780_v45  ;;  %v14103_v32 = vadd.f32 %v20254_v10, %v20136_v34  ;;  %v20804_v34 = vld [vmem:[#allocation51_spill] sm:$0xff] }
 0xa37   :  { %12530 = vst [vmem:[#allocation6 + $0x60] sm:$0xff] %v12466_v21  ;;  %v12467_v48 = vmax.f32 %v12403_v11, 0.0  ;;  %v13850_v52 = vpop.f32.mrb[184].mxu1  ;;  %v20802_v11 = vld [vmem:[#allocation50_spill] sm:$0xff] }
 0xa38   :  { %12533 = vst [vmem:[#allocation6 + $0x78] sm:$0xff] %v12469_v33  ;;  %v12208_v50 = vadd.f32 %v14098_v1, %v13850_v52  ;;  %v12199_v25 = vpop.f32.mrb[185].mxu1  ;;  %v13953_v35 = vadd.f32 %v20802_v11, %v20780_v45  ;;  %v14101_v1 = vadd.f32 %v20254_v10, %v20126_v38  ;;  %v14106_v38 = vadd.f32 %v20254_v10, %v20152_v3 }
 0xa39   :  { %12531 = vst [vmem:[#allocation6 + $0x68] sm:$0xff] %v12467_v48  ;;  %v12200_v20 = vadd.f32 %v14096_v58, %v12199_v25  ;;  %v13851_v57 = vpop.f32.mrb[186].mxu1  ;;  %v20803_v58 = vld [vmem:[#allocation53_spill] sm:$0xff] }
 0xa3a   :  { %v12408_v55 = vadd.f32 %v13949_v24, %v12208_v50  ;;  %v12211_v53 = vadd.f32 %v14099_v42, %v13851_v57  ;;  %v12202_v40 = vpop.f32.mrb[187].mxu1  ;;  %v13959_v48 = vadd.f32 %v20803_v58, %v20780_v45  ;;  %v13955_v42 = vadd.f32 %v20804_v34, %v20780_v45 }
 0xa3b   :  { %v12406_v6 = vadd.f32 %v13945_v12, %v12200_v20  ;;  %v12203_v28 = vadd.f32 %v14097_v41, %v12202_v40  ;;  %v14109_v34 = vadd.f32 %v20254_v10, %v20166_v15  ;;  %v14114_v15 = vadd.f32 %v20254_v10, %v20182_v16 }
 0xa3c   :  { %v12472_v5 = vmax.f32 %v12408_v55, 0.0  ;;  %v12409_v51 = vadd.f32 %v13951_v7, %v12211_v53  ;;  %v20805_v53 = vld [vmem:[#allocation56_spill] sm:$0xff] }
 0xa3d   :  { %v12470_v0 = vmax.f32 %v12406_v6, 0.0  ;;  %v12407_v59 = vadd.f32 %v13947_v37, %v12203_v28  ;;  %v13965_v40 = vadd.f32 %v20805_v53, %v20780_v45  ;;  %v20806_v28 = vld [vmem:[#allocation54_spill] sm:$0xff] }
 0xa3e   :  { %12536 = vst [vmem:[#allocation6 + $0x90] sm:$0xff] %v12472_v5  ;;  %v12473_v46 = vmax.f32 %v12409_v51, 0.0  ;;  %v13961_v3 = vadd.f32 %v20806_v28, %v20780_v45  ;;  %v14105_v5 = vadd.f32 %v20254_v10, %v20146_v8  ;;  %v14110_v8 = vadd.f32 %v20254_v10, %v20170_v47  ;;  %v20813_v28 = vld [vmem:[#allocation64_spill] sm:$0xff] }
 0xa3f   :  { %12534 = vst [vmem:[#allocation6 + $0x80] sm:$0xff] %v12470_v0  ;;  %v12471_v9 = vmax.f32 %v12407_v59, 0.0  ;;  %v13854_v60 = vpop.f32.mrb[188].mxu1  ;;  %v20807_v0 = vld [vmem:[#allocation57_spill] sm:$0xff] }
 0xa40   :  { %12537 = vst [vmem:[#allocation6 + $0x98] sm:$0xff] %v12473_v46  ;;  %v12224_v44 = vadd.f32 %v14102_v19, %v13854_v60  ;;  %v12215_v21 = vpop.f32.mrb[189].mxu1  ;;  %v13967_v59 = vadd.f32 %v20807_v0, %v20780_v45  ;;  %v20814_v0 = vld [vmem:[#allocation62_spill] sm:$0xff] }
 0xa41   :  { %12535 = vst [vmem:[#allocation6 + $0x88] sm:$0xff] %v12471_v9  ;;  %v12216_v36 = vadd.f32 %v14100_v27, %v12215_v21  ;;  %v13855_v33 = vpop.f32.mrb[190].mxu1  ;;  %v13963_v9 = vadd.f32 %v20808_v4, %v20780_v45  ;;  %v13977_v16 = vadd.f32 %v20814_v0, %v20780_v45 }
 0xa42   :  { %v12412_v52 = vadd.f32 %v13957_v30, %v12224_v44  ;;  %v12227_v31 = vadd.f32 %v14103_v32, %v13855_v33  ;;  %v12218_v24 = vpop.f32.mrb[191].mxu1  ;;  %v20809_v33 = vld [vmem:[#allocation60_spill] sm:$0xff] }
 0xa43   :  { %v12410_v50 = vadd.f32 %v13953_v35, %v12216_v36  ;;  %v12219_v25 = vadd.f32 %v14101_v1, %v12218_v24  ;;  %v14108_v35 = vadd.f32 %v20254_v10, %v20162_v49  ;;  %v13973_v58 = vadd.f32 %v20809_v33, %v20780_v45  ;;  %v20810_v24 = vld [vmem:[#allocation58_spill] sm:$0xff] }
 0xa44   :  { %v12476_v23 = vmax.f32 %v12412_v52, 0.0  ;;  %v12413_v12 = vadd.f32 %v13959_v48, %v12227_v31  ;;  %v14111_v48 = vadd.f32 %v20254_v10, %v20172_v63  ;;  %v13969_v47 = vadd.f32 %v20810_v24, %v20780_v45  ;;  %v20812_v63 = vld [vmem:[#allocation59_spill] sm:$0xff] }
 0xa45   :  { %v12474_v41 = vmax.f32 %v12410_v50, 0.0  ;;  %v12411_v20 = vadd.f32 %v13955_v42, %v12219_v25  ;;  %v20811_v50 = vld [vmem:[#allocation61_spill] sm:$0xff] }
 0xa46   :  { %12540 = vst [vmem:[#allocation6 + $0xb0] sm:$0xff] %v12476_v23  ;;  %v12477_v57 = vmax.f32 %v12413_v12, 0.0  ;;  %v13975_v25 = vadd.f32 %v20811_v50, %v20780_v45 }
 0xa47   :  { %12538 = vst [vmem:[#allocation6 + $0xa0] sm:$0xff] %v12474_v41  ;;  %v12475_v7 = vmax.f32 %v12411_v20, 0.0  ;;  %v13858_v55 = vpop.f32.mrb[192].mxu1  ;;  %v13971_v20 = vadd.f32 %v20812_v63, %v20780_v45 }
 0xa48   :  { %12541 = vst [vmem:[#allocation6 + $0xb8] sm:$0xff] %v12477_v57  ;;  %v12240_v37 = vadd.f32 %v14106_v38, %v13858_v55  ;;  %v12231_v6 = vpop.f32.mrb[193].mxu1 }
 0xa49   :  { %12539 = vst [vmem:[#allocation6 + $0xa8] sm:$0xff] %v12475_v7  ;;  %v12232_v2 = vadd.f32 %v14104_v56, %v12231_v6  ;;  %v13859_v51 = vpop.f32.mrb[194].mxu1 }
 0xa4a   :  { %v12416_v19 = vadd.f32 %v13965_v40, %v12240_v37  ;;  %v12243_v46 = vadd.f32 %v14107_v62, %v13859_v51  ;;  %v12234_v27 = vpop.f32.mrb[195].mxu1  ;;  %v14112_v62 = vadd.f32 %v20254_v10, %v20176_v26 }
 0xa4b   :  { %v12414_v60 = vadd.f32 %v13961_v3, %v12232_v2  ;;  %v12235_v13 = vadd.f32 %v14105_v5, %v12234_v27  ;;  %v13981_v3 = vadd.f32 %v20813_v28, %v20780_v45  ;;  %v14115_v5 = vadd.f32 %v20254_v10, %v20184_v29  ;;  %v20816_v29 = vld [vmem:[#allocation63_spill] sm:$0xff] }
 0xa4c   :  { %v12480_v30 = vmax.f32 %v12416_v19, 0.0  ;;  %v12417_v32 = vadd.f32 %v13967_v59, %v12243_v46  ;;  %v14113_v59 = vadd.f32 %v20254_v10, %v20178_v43  ;;  %v20815_v46 = vld [vmem:[#allocation65_spill] sm:$0xff]  ;;  %v14118_v43 = vadd.f32 %v20254_v10, %v20194_v61 }
 0xa4d   :  { %v12478_v44 = vmax.f32 %v12414_v60, 0.0  ;;  %v12415_v21 = vadd.f32 %v13963_v9, %v12235_v13  ;;  %v13983_v27 = vadd.f32 %v20815_v46, %v20780_v45  ;;  %v13979_v13 = vadd.f32 %v20816_v29, %v20780_v45 }
 0xa4e   :  { %12544 = vst [vmem:[#allocation6 + $0xd0] sm:$0xff] %v12480_v30  ;;  %v12481_v11 = vmax.f32 %v12417_v32, 0.0 }
 0xa4f   :  { %12542 = vst [vmem:[#allocation6 + $0xc0] sm:$0xff] %v12478_v44  ;;  %v12479_v1 = vmax.f32 %v12415_v21, 0.0  ;;  %v13862_v36 = vpop.f32.mrb[196].mxu1 }
 0xa50   :  { %12545 = vst [vmem:[#allocation6 + $0xd8] sm:$0xff] %v12481_v11  ;;  %v12256_v52 = vadd.f32 %v14110_v8, %v13862_v36  ;;  %v12247_v31 = vpop.f32.mrb[197].mxu1 }
 0xa51   :  { %12543 = vst [vmem:[#allocation6 + $0xc8] sm:$0xff] %v12479_v1  ;;  %v12248_v49 = vadd.f32 %v14108_v35, %v12247_v31  ;;  %v13863_v42 = vpop.f32.mrb[198].mxu1  ;;  %v14116_v1 = vadd.f32 %v20254_v10, %v20188_v39 }
 0xa52   :  { %v12420_v23 = vadd.f32 %v13973_v58, %v12256_v52  ;;  %v12259_v12 = vadd.f32 %v14111_v48, %v13863_v42  ;;  %v12250_v41 = vpop.f32.mrb[199].mxu1  ;;  %v20817_v58 = vld [vmem:[#allocation68_spill] sm:$0xff]  ;;  %v14119_v52 = vadd.f32 %v20254_v10, %v20196_v18  ;;  %v20819_v42 = vld [vmem:[#allocation69_spill] sm:$0xff]  ;;  %v20820_v18 = vld [vmem:[#allocation67_spill] sm:$0xff] }
 0xa53   :  { %v12418_v38 = vadd.f32 %v13969_v47, %v12248_v49  ;;  %v12251_v57 = vadd.f32 %v14109_v34, %v12250_v41  ;;  %v13989_v48 = vadd.f32 %v20817_v58, %v20780_v45  ;;  %v20818_v47 = vld [vmem:[#allocation66_spill] sm:$0xff]  ;;  %v14117_v34 = vadd.f32 %v20254_v10, %v20190_v22  ;;  %v20829_v58 = vld [vmem:[#allocation76_spill] sm:$0xff] }
 0xa54   :  { %v12484_v56 = vmax.f32 %v12420_v23, 0.0  ;;  %v12421_v7 = vadd.f32 %v13975_v25, %v12259_v12  ;;  %v13985_v61 = vadd.f32 %v20818_v47, %v20780_v45  ;;  %v13991_v50 = vadd.f32 %v20819_v42, %v20780_v45 }
 0xa55   :  { %v12482_v55 = vmax.f32 %v12418_v38, 0.0  ;;  %v12419_v53 = vadd.f32 %v13971_v20, %v12251_v57  ;;  %v13987_v41 = vadd.f32 %v20820_v18, %v20780_v45  ;;  %v14122_v22 = vadd.f32 %v20254_v10, %v20207_v54  ;;  %v20833_v18 = vld [vmem:[#allocation24_spill] sm:$0xff] }
 0xa56   :  { %12548 = vst [vmem:[#allocation6 + $0xf0] sm:$0xff] %v12484_v56  ;;  %v12485_v40 = vmax.f32 %v12421_v7, 0.0 }
 0xa57   :  { %12546 = vst [vmem:[#allocation6 + $0xe0] sm:$0xff] %v12482_v55  ;;  %v12483_v37 = vmax.f32 %v12419_v53, 0.0  ;;  %v13866_v6 = vpop.f32.mrb[200].mxu1  ;;  %v14120_v53 = vadd.f32 %v20254_v10, %v20202_v14 }
 0xa58   :  { %12549 = vst [vmem:[#allocation6 + $0xf8] sm:$0xff] %v12485_v40  ;;  %v12272_v2 = vadd.f32 %v14114_v15, %v13866_v6  ;;  %v12263_v51 = vpop.f32.mrb[201].mxu1  ;;  %v14123_v6 = vadd.f32 %v20254_v10, %v20209_v17  ;;  %v20825_v17 = vld [vmem:[#allocation71_spill] sm:$0xff] }
 0xa59   :  { %12547 = vst [vmem:[#allocation6 + $0xe8] sm:$0xff] %v12483_v37  ;;  %v12264_v26 = vadd.f32 %v14112_v62, %v12263_v51  ;;  %v13867_v19 = vpop.f32.mrb[202].mxu1  ;;  %v20821_v62 = vld [vmem:[#allocation72_spill] sm:$0xff] }
 0xa5a   :  { %v12424_v4 = vadd.f32 %v13981_v3, %v12272_v2  ;;  %v12275_v9 = vadd.f32 %v14115_v5, %v13867_v19  ;;  %v12266_v60 = vpop.f32.mrb[203].mxu1  ;;  %v13997_v37 = vadd.f32 %v20821_v62, %v20780_v45  ;;  %v20822_v5 = vld [vmem:[#allocation70_spill] sm:$0xff]  ;;  %v20837_v62 = vld [vmem:[#allocation80_spill] sm:$0xff] }
 0xa5b   :  { %v12422_v30 = vadd.f32 %v13977_v16, %v12264_v26  ;;  %v12267_v32 = vadd.f32 %v14113_v59, %v12266_v60  ;;  %v13993_v54 = vadd.f32 %v20822_v5, %v20780_v45  ;;  %v20823_v2 = vld [vmem:[#allocation74_spill] sm:$0xff]  ;;  %v20824_v16 = vld [vmem:[#allocation73_spill] sm:$0xff] }
 0xa5c   :  { %v12488_v44 = vmax.f32 %v12424_v4, 0.0  ;;  %v12425_v21 = vadd.f32 %v13983_v27, %v12275_v9  ;;  %v14121_v51 = vadd.f32 %v20254_v10, %v20823_v2  ;;  %v13999_v59 = vadd.f32 %v20824_v16, %v20780_v45 }
 0xa5d   :  { %v12486_v8 = vmax.f32 %v12422_v30, 0.0  ;;  %v12423_v11 = vadd.f32 %v13979_v13, %v12267_v32  ;;  %v13995_v27 = vadd.f32 %v20825_v17, %v20780_v45  ;;  %v20826_v32 = vld [vmem:[#allocation77_spill] sm:$0xff] }
 0xa5e   :  { %12552 = vst [vmem:[#allocation6 + $0x110] sm:$0xff] %v12488_v44  ;;  %v12489_v35 = vmax.f32 %v12425_v21, 0.0  ;;  %v14126_v44 = vadd.f32 %v20254_v10, %v20826_v32  ;;  %v20844_v32 = vld [vmem:[#allocation86_spill] sm:$0xff] }
 0xa5f   :  { %12550 = vst [vmem:[#allocation6 + $0x100] sm:$0xff] %v12486_v8  ;;  %v12487_v36 = vmax.f32 %v12423_v11, 0.0  ;;  %v13870_v33 = vpop.f32.mrb[204].mxu1  ;;  %v20827_v8 = vld [vmem:[#allocation75_spill] sm:$0xff] }
 0xa60   :  { %12553 = vst [vmem:[#allocation6 + $0x118] sm:$0xff] %v12489_v35  ;;  %v12288_v31 = vadd.f32 %v14118_v43, %v13870_v33  ;;  %v12279_v24 = vpop.f32.mrb[205].mxu1  ;;  %v14124_v11 = vadd.f32 %v20254_v10, %v20827_v8 }
 0xa61   :  { %12551 = vst [vmem:[#allocation6 + $0x108] sm:$0xff] %v12487_v36  ;;  %v12280_v39 = vadd.f32 %v14116_v1, %v12279_v24  ;;  %v13871_v49 = vpop.f32.mrb[206].mxu1  ;;  %v20828_v1 = vld [vmem:[#allocation78_spill] sm:$0xff]  ;;  %v20830_v24 = vld [vmem:[#allocation25_spill] sm:$0xff] }
 0xa62   :  { %v12428_v25 = vadd.f32 %v13989_v48, %v12288_v31  ;;  %v12291_v23 = vadd.f32 %v14119_v52, %v13871_v49  ;;  %v12282_v12 = vpop.f32.mrb[207].mxu1  ;;  %v14127_v45 = vadd.f32 %v20254_v10, %v20828_v1  ;;  %v14125_v48 = vadd.f32 %v20254_v10, %v20829_v58 }
 0xa63   :  { %v12426_v63 = vadd.f32 %v13985_v61, %v12280_v39  ;;  %v12283_v20 = vadd.f32 %v14117_v34, %v12282_v12  ;;  %v20831_v39 = vld [vmem:[#allocation23_spill] sm:$0xff] }
 0xa64   :  { %v12492_v38 = vmax.f32 %v12428_v25, 0.0  ;;  %v12429_v57 = vadd.f32 %v13991_v50, %v12291_v23  ;;  %v20832_v25 = vld [vmem:[#allocation26_spill] sm:$0xff] }
 0xa65   :  { %v12490_v56 = vmax.f32 %v12426_v63, 0.0  ;;  %v12427_v7 = vadd.f32 %v13987_v41, %v12283_v20  ;;  %v20834_v63 = vld [vmem:[#allocation81_spill] sm:$0xff] }
 0xa66   :  { %12556 = vst [vmem:[#allocation6 + $0x130] sm:$0xff] %v12492_v38  ;;  %v12493_v55 = vmax.f32 %v12429_v57, 0.0  ;;  %v14130_v20 = vadd.f32 %v20254_v10, %v20834_v63  ;;  %v20835_v57 = vld [vmem:[#allocation79_spill] sm:$0xff]  ;;  %v20852_v63 = vld [vmem:[#allocation106_spill] sm:$0xff] }
 0xa67   :  { %12554 = vst [vmem:[#allocation6 + $0x120] sm:$0xff] %v12490_v56  ;;  %v12491_v15 = vmax.f32 %v12427_v7, 0.0  ;;  %v13874_v40 = vpop.f32.mrb[208].mxu1  ;;  %v14128_v56 = vadd.f32 %v20254_v10, %v20835_v57 }
 0xa68   :  { %12557 = vst [vmem:[#allocation6 + $0x138] sm:$0xff] %v12493_v55  ;;  %v12304_v28 = vadd.f32 %v14122_v22, %v13874_v40  ;;  %v12295_v3 = vpop.f32.mrb[209].mxu1  ;;  %v20836_v55 = vld [vmem:[#allocation82_spill] sm:$0xff] }
 0xa69   :  { %12555 = vst [vmem:[#allocation6 + $0x128] sm:$0xff] %v12491_v15  ;;  %v12296_v14 = vadd.f32 %v14120_v53, %v12295_v3  ;;  %v13875_v0 = vpop.f32.mrb[210].mxu1  ;;  %v14131_v53 = vadd.f32 %v20254_v10, %v20836_v55  ;;  %v20838_v3 = vld [vmem:[#allocation29_spill] sm:$0xff] }
 0xa6a   :  { %v12432_v26 = vadd.f32 %v13997_v37, %v12304_v28  ;;  %v12307_v19 = vadd.f32 %v14123_v6, %v13875_v0  ;;  %v12298_v46 = vpop.f32.mrb[211].mxu1  ;;  %v14129_v37 = vadd.f32 %v20254_v10, %v20837_v62 }
 0xa6b   :  { %v12430_v4 = vadd.f32 %v13993_v54, %v12296_v14  ;;  %v12299_v9 = vadd.f32 %v14121_v51, %v12298_v46  ;;  %v20839_v51 = vld [vmem:[#allocation27_spill] sm:$0xff]  ;;  %v20841_v46 = vld [vmem:[#allocation28_spill] sm:$0xff] }
 0xa6c   :  { %v12496_v60 = vmax.f32 %v12432_v26, 0.0  ;;  %v12433_v29 = vadd.f32 %v13999_v59, %v12307_v19  ;;  %v20840_v59 = vld [vmem:[#allocation30_spill] sm:$0xff] }
 0xa6d   :  { %v12494_v13 = vmax.f32 %v12430_v4, 0.0  ;;  %v12431_v30 = vadd.f32 %v13995_v27, %v12299_v9  ;;  %v20842_v27 = vld [vmem:[#allocation85_spill] sm:$0xff] }
 0xa6e   :  { %12560 = vst [vmem:[#allocation6 + $0x150] sm:$0xff] %v12496_v60  ;;  %v12497_v21 = vmax.f32 %v12433_v29, 0.0  ;;  %v14134_v4 = vadd.f32 %v20254_v10, %v20842_v27  ;;  %v20843_v60 = vld [vmem:[#allocation83_spill] sm:$0xff]  ;;  %v20860_v27 = vld [vmem:[#allocation92_spill] sm:$0xff] }
 0xa6f   :  { %12558 = vst [vmem:[#allocation6 + $0x140] sm:$0xff] %v12494_v13  ;;  %v12495_v43 = vmax.f32 %v12431_v30, 0.0  ;;  %v13878_v35 = vpop.f32.mrb[212].mxu1  ;;  %v14132_v29 = vadd.f32 %v20254_v10, %v20843_v60 }
 0xa70   :  { %12561 = vst [vmem:[#allocation6 + $0x158] sm:$0xff] %v12497_v21  ;;  %v12320_v36 = vadd.f32 %v14126_v44, %v13878_v35  ;;  %v12311_v33 = vpop.f32.mrb[213].mxu1  ;;  %v14135_v44 = vadd.f32 %v20254_v10, %v20844_v32 }
 0xa71   :  { %12559 = vst [vmem:[#allocation6 + $0x148] sm:$0xff] %v12495_v43  ;;  %v12312_v52 = vadd.f32 %v14124_v11, %v12311_v33  ;;  %v13879_v31 = vpop.f32.mrb[214].mxu1  ;;  %v20845_v11 = vld [vmem:[#allocation84_spill] sm:$0xff] }
 0xa72   :  { %v12436_v47 = vadd.f32 %v20830_v24, %v12320_v36  ;;  %v12323_v61 = vadd.f32 %v14127_v45, %v13879_v31  ;;  %v12314_v34 = vpop.f32.mrb[215].mxu1  ;;  %v14133_v43 = vadd.f32 %v20254_v10, %v20845_v11  ;;  %v20846_v45 = vld [vmem:[#allocation33_spill] sm:$0xff] }
 0xa73   :  { %v12434_v49 = vadd.f32 %v20831_v39, %v12312_v52  ;;  %v12315_v42 = vadd.f32 %v14125_v48, %v12314_v34  ;;  %v20847_v48 = vld [vmem:[#allocation31_spill] sm:$0xff]  ;;  %v20849_v39 = vld [vmem:[#allocation32_spill] sm:$0xff] }
 0xa74   :  { %v12500_v50 = vmax.f32 %v12436_v47, 0.0  ;;  %v12437_v23 = vadd.f32 %v20832_v25, %v12323_v61  ;;  %v20848_v47 = vld [vmem:[#allocation34_spill] sm:$0xff] }
 0xa75   :  { %v12498_v12 = vmax.f32 %v12434_v49, 0.0  ;;  %v12435_v41 = vadd.f32 %v20833_v18, %v12315_v42  ;;  %v20850_v42 = vld [vmem:[#allocation90_spill] sm:$0xff] }
 0xa76   :  { %12564 = vst [vmem:[#allocation6 + $0x170] sm:$0xff] %v12500_v50  ;;  %v12501_v38 = vmax.f32 %v12437_v23, 0.0  ;;  %v14138_v50 = vadd.f32 %v20254_v10, %v20850_v42  ;;  %v20851_v23 = vld [vmem:[#allocation87_spill] sm:$0xff] }
 0xa77   :  { %12562 = vst [vmem:[#allocation6 + $0x160] sm:$0xff] %v12498_v12  ;;  %v12499_v7 = vmax.f32 %v12435_v41, 0.0  ;;  %v13882_v22 = vpop.f32.mrb[216].mxu1  ;;  %v14136_v12 = vadd.f32 %v20254_v10, %v20851_v23 }
 0xa78   :  { %12565 = vst [vmem:[#allocation6 + $0x178] sm:$0xff] %v12501_v38  ;;  %v12336_v15 = vadd.f32 %v14130_v20, %v13882_v22  ;;  %v12327_v40 = vpop.f32.mrb[217].mxu1  ;;  %v14139_v20 = vadd.f32 %v20254_v10, %v20852_v63 }
 0xa79   :  { %12563 = vst [vmem:[#allocation6 + $0x168] sm:$0xff] %v12499_v7  ;;  %v12328_v6 = vadd.f32 %v14128_v56, %v12327_v40  ;;  %v13883_v28 = vpop.f32.mrb[218].mxu1  ;;  %v20853_v56 = vld [vmem:[#allocation88_spill] sm:$0xff] }
 0xa7a   :  { %v12440_v5 = vadd.f32 %v20838_v3, %v12336_v15  ;;  %v12339_v54 = vadd.f32 %v14131_v53, %v13883_v28  ;;  %v12330_v2 = vpop.f32.mrb[219].mxu1  ;;  %v14137_v7 = vadd.f32 %v20254_v10, %v20853_v56  ;;  %v20854_v53 = vld [vmem:[#allocation11_spill] sm:$0xff] }
 0xa7b   :  { %v12438_v14 = vadd.f32 %v20839_v51, %v12328_v6  ;;  %v12331_v0 = vadd.f32 %v14129_v37, %v12330_v2  ;;  %v20855_v37 = vld [vmem:[#allocation35_spill] sm:$0xff]  ;;  %v20857_v51 = vld [vmem:[#allocation10_spill] sm:$0xff] }
 0xa7c   :  { %v12504_v16 = vmax.f32 %v12440_v5, 0.0  ;;  %v12441_v26 = vadd.f32 %v20840_v59, %v12339_v54  ;;  %v20856_v5 = vld [vmem:[#allocation12_spill] sm:$0xff] }
 0xa7d   :  { %v12502_v19 = vmax.f32 %v12438_v14, 0.0  ;;  %v12439_v17 = vadd.f32 %v20841_v46, %v12331_v0  ;;  %v20858_v0 = vld [vmem:[#allocation91_spill] sm:$0xff] }
 0xa7e   :  { %12568 = vst [vmem:[#allocation6 + $0x190] sm:$0xff] %v12504_v16  ;;  %v12505_v9 = vmax.f32 %v12441_v26, 0.0  ;;  %v14142_v16 = vadd.f32 %v20254_v10, %v20858_v0  ;;  %v20859_v26 = vld [vmem:[#allocation107_spill] sm:$0xff] }
 0xa7f   :  { %12566 = vst [vmem:[#allocation6 + $0x180] sm:$0xff] %v12502_v19  ;;  %v12503_v13 = vmax.f32 %v12439_v17, 0.0  ;;  %v13886_v30 = vpop.f32.mrb[220].mxu1  ;;  %v14140_v19 = vadd.f32 %v20254_v10, %v20859_v26 }
 0xa80   :  { %12569 = vst [vmem:[#allocation6 + $0x198] sm:$0xff] %v12505_v9  ;;  %v12352_v21 = vadd.f32 %v14134_v4, %v13886_v30  ;;  %v12343_v8 = vpop.f32.mrb[221].mxu1  ;;  %v14143_v4 = vadd.f32 %v20254_v10, %v20860_v27 }
 0xa81   :  { %12567 = vst [vmem:[#allocation6 + $0x188] sm:$0xff] %v12503_v13  ;;  %v12344_v35 = vadd.f32 %v14132_v29, %v12343_v8  ;;  %v13887_v1 = vpop.f32.mrb[222].mxu1  ;;  %v20861_v29 = vld [vmem:[#allocation89_spill] sm:$0xff] }
 0xa82   :  { %v12444_v36 = vadd.f32 %v20846_v45, %v12352_v21  ;;  %v12355_v33 = vadd.f32 %v14135_v44, %v13887_v1  ;;  %v12346_v58 = vpop.f32.mrb[223].mxu1  ;;  %v14141_v13 = vadd.f32 %v20254_v10, %v20861_v29  ;;  %v20862_v44 = vld [vmem:[#allocation15_spill] sm:$0xff] }
 0xa83   :  { %v12442_v52 = vadd.f32 %v20847_v48, %v12344_v35  ;;  %v12347_v31 = vadd.f32 %v14133_v43, %v12346_v58  ;;  %v20863_v43 = vld [vmem:[#allocation13_spill] sm:$0xff]  ;;  %v20865_v48 = vld [vmem:[#allocation14_spill] sm:$0xff] }
 0xa84   :  { %v12508_v24 = vmax.f32 %v12444_v36, 0.0  ;;  %v12445_v61 = vadd.f32 %v20848_v47, %v12355_v33  ;;  %v20864_v36 = vld [vmem:[#allocation16_spill] sm:$0xff] }
 0xa85   :  { %v12506_v34 = vmax.f32 %v12442_v52, 0.0  ;;  %v12443_v49 = vadd.f32 %v20849_v39, %v12347_v31 }
 0xa86   :  { %12572 = vst [vmem:[#allocation6 + $0x1b0] sm:$0xff] %v12508_v24  ;;  %v12509_v25 = vmax.f32 %v12445_v61, 0.0 }
 0xa87   :  { %12570 = vst [vmem:[#allocation6 + $0x1a0] sm:$0xff] %v12506_v34  ;;  %v12507_v18 = vmax.f32 %v12443_v49, 0.0  ;;  %v13890_v41 = vpop.f32.mrb[224].mxu1 }
 0xa88   :  { %12573 = vst [vmem:[#allocation6 + $0x1b8] sm:$0xff] %v12509_v25  ;;  %v12368_v38 = vadd.f32 %v14138_v50, %v13890_v41  ;;  %v12359_v57 = vpop.f32.mrb[225].mxu1 }
 0xa89   :  { %12571 = vst [vmem:[#allocation6 + $0x1a8] sm:$0xff] %v12507_v18  ;;  %v12360_v22 = vadd.f32 %v14136_v12, %v12359_v57  ;;  %v13891_v55 = vpop.f32.mrb[226].mxu1 }
 0xa8a   :  { %v12448_v15 = vadd.f32 %v20854_v53, %v12368_v38  ;;  %v12371_v40 = vadd.f32 %v14139_v20, %v13891_v55  ;;  %v12362_v62 = vpop.f32.mrb[227].mxu1 }
 0xa8b   :  { %v12446_v6 = vadd.f32 %v20855_v37, %v12360_v22  ;;  %v12363_v28 = vadd.f32 %v14137_v7, %v12362_v62 }
 0xa8c   :  { %v12512_v3 = vmax.f32 %v12448_v15, 0.0  ;;  %v12449_v54 = vadd.f32 %v20856_v5, %v12371_v40 }
 0xa8d   :  { %v12510_v2 = vmax.f32 %v12446_v6, 0.0  ;;  %v12447_v14 = vadd.f32 %v20857_v51, %v12363_v28 }
 0xa8e   :  { %12576 = vst [vmem:[#allocation6 + $0x1d0] sm:$0xff] %v12512_v3  ;;  %v12513_v59 = vmax.f32 %v12449_v54, 0.0 }
 0xa8f   :  { %12574 = vst [vmem:[#allocation6 + $0x1c0] sm:$0xff] %v12510_v2  ;;  %v12511_v46 = vmax.f32 %v12447_v14, 0.0  ;;  %v13894_v17 = vpop.f32.mrb[228].mxu1 }
 0xa90   :  { %12577 = vst [vmem:[#allocation6 + $0x1d8] sm:$0xff] %v12513_v59  ;;  %v12384_v9 = vadd.f32 %v14142_v16, %v13894_v17  ;;  %v12375_v60 = vpop.f32.mrb[229].mxu1 }
 0xa91   :  { %12575 = vst [vmem:[#allocation6 + $0x1c8] sm:$0xff] %v12511_v46  ;;  %v12376_v30 = vadd.f32 %v14140_v19, %v12375_v60  ;;  %v13895_v32 = vpop.f32.mrb[230].mxu1 }
 0xa92   :  { %v12452_v21 = vadd.f32 %v20862_v44, %v12384_v9  ;;  %v12387_v8 = vadd.f32 %v14143_v4, %v13895_v32  ;;  %v12378_v11 = vpop.f32.mrb[231].mxu1 }
 0xa93   :  { %v12450_v35 = vadd.f32 %v20863_v43, %v12376_v30  ;;  %v12379_v1 = vadd.f32 %v14141_v13, %v12378_v11 }
 0xa94   :  { %v12516_v45 = vmax.f32 %v12452_v21, 0.0  ;;  %v12453_v33 = vadd.f32 %v20864_v36, %v12387_v8 }
 0xa95   :  { %v12514_v58 = vmax.f32 %v12450_v35, 0.0  ;;  %v12451_v52 = vadd.f32 %v20865_v48, %v12379_v1 }
 0xa96   :  { %12580 = vst [vmem:[#allocation6 + $0x1f0] sm:$0xff] %v12516_v45  ;;  %v12517_v10 = vmax.f32 %v12453_v33, 0.0 }
 0xa97   :  { %12578 = vst [vmem:[#allocation6 + $0x1e0] sm:$0xff] %v12514_v58  ;;  %v12515_v31 = vmax.f32 %v12451_v52, 0.0 }
 0xa98   :  { %12581 = vst [vmem:[#allocation6 + $0x1f8] sm:$0xff] %v12517_v10 }
 0xa99   :  { %12579 = vst [vmem:[#allocation6 + $0x1e8] sm:$0xff] %v12515_v31 }
 0xa9a   :  { %16046 = shalt.err (!%p16043_p12)
}
 0xa9b   :  { %s16047_s13 = scalar_lea.hbm %s20512_s5, 8192 }
 0xa9c   :  { %p16048_p13 = scmp.ne.s32.totalorder %s20512_s5, %s16047_s13  ;;  %p16051_p0 = scmp.lt.u32.totalorder %s16047_s13, %s20512_s5 }
 0xa9e   :  { %p16053_p1 = pnand %p16051_p0, %p16048_p13 }
 0xaa0   :  { %16056 = shalt.err (!%p16053_p1)
}
 0xaa1   :  { %12593 = dma.vmem_to_hbm [thread:$0]  %s12588_s9, 8192, %s20512_s5, [#allocation5], %s16062_s28, %s16062_s28, %s16063_s29  }
 0xaa2   :  { %16059 = dma.done.wait [#allocation5], 8192  }
 0xaa3   :  { %16060 = vsyncadd [#allocation5], 4294959104 }
 0xaa4   :  { %12597 = vsyncpa [#allocation4], 1 }
 0xaa5   :  { %12598 = vsyncpa [#allocation5], 1 }

</bundles_post_ra>
